<compile_context>
chip_gen: v7x
topology: tpu7x:2x2x1
jax: 0.10.0
libtpu: 0.0.40
codegen_flags: <defaults>
</compile_context>

<pallas_src>
import numpy as np
import jax
import jax.numpy as jnp
from jax import lax
from jax.experimental import pallas as pl
from jax.experimental.pallas import tpu as pltpu

KSIZE = 5

LAP_2D_OP = np.array(
    [[0.0, 0.0, -1.0 / 12, 0.0, 0.0],
     [0.0, 0.0, 4.0 / 3, 0.0, 0.0],
     [-1.0 / 12, 4.0 / 3, -5.0, 4.0 / 3, -1.0 / 12],
     [0.0, 0.0, 4.0 / 3, 0.0, 0.0],
     [0.0, 0.0, -1.0 / 12, 0.0, 0.0]], dtype=np.float32)


# ------------------------------ packing helpers ------------------------------

def _oihw_to_matrix(w):
    # (O, I, 5, 5) -> (O, 25*I): rows = out channel, cols tap-major / in-minor.
    o, i, k1, k2 = w.shape
    return jnp.transpose(w, (0, 2, 3, 1)).reshape(o, k1 * k2 * i)


# ---------------------------- fused Pallas kernel ----------------------------

def _build_fused_kernel(H, W, Ch, n_steps, eff_steps, lap_taps):
    """Builds the fully fused forward kernel (closure over static config).

    The kernel operates on one batch element (grid axis = batch); all working
    tensors are (C, H*W): channels on sublanes, pixels (256) on lanes.
    """
    HW = H * W
    G4 = 4 * Ch
    G3 = 3 * Ch

    def shift_hw(v, dy, dx, col_w):
        # out[..., h*W + w] = v[..., ((h - dy) % H) * W + ((w - dx) % W)]
        # Each lane-row of v is exactly one H*W image, so the H-shift is an
        # exact flat roll; the W-shift needs a 2-roll + column-select fix-up.
        s = dy * W + dx
        if dx == 0:
            return v if s == 0 else jnp.roll(v, s, axis=-1)
        a = jnp.roll(v, s, axis=-1)
        if dx > 0:
            b = jnp.roll(v, s - W, axis=-1)
            return jnp.where(col_w >= dx, a, b)
        b = jnp.roll(v, s + W, axis=-1)
        return jnp.where(col_w < W + dx, a, b)

    def conv_slab(v, col_w):
        # v: (C, HW) -> im2col slab (25*C, HW), tap-major / channel-minor.
        # Share the 5 W-shifted variants; each tap then costs one extra roll.
        wvar = {}
        for dx in (2, 1, 0, -1, -2):
            wvar[dx] = shift_hw(v, 0, dx, col_w)
        taps = []
        for ky in range(KSIZE):
            dy = 2 - ky
            for kx in range(KSIZE):
                base = wvar[2 - kx]
                taps.append(base if dy == 0 else jnp.roll(base, dy * W, axis=-1))
        return jnp.concatenate(taps, axis=0)

    def lap5(v, col_w):
        # Fixed 4th-order Laplacian stencil (9 taps), evaluated on the VPU.
        acc = jnp.zeros_like(v)
        for (ky, kx), coef in lap_taps:
            acc = acc + coef * shift_hw(v, 2 - ky, 2 - kx, col_w)
        return acc

    def kernel(x_ref, h0_ref, c0_ref, u0_ref, wx_ref, whout_ref,
               bg_ref, bo_ref, ls_ref, outs_ref, hs_ref, cs_ref):
        col_w = lax.broadcasted_iota(jnp.int32, (1, HW), 1) % W

        w_all = whout_ref[...]              # (4*Ch + 2, 25*Ch) bf16 [Wh | Wout]
        w_gates = w_all[:G4]                # (4*Ch, 25*Ch)
        w_out = w_all[G4:G4 + 2]            # (2,    25*Ch)

        # input -> gate contribution is constant across steps: ONE matmul.
        x_slab = conv_slab(x_ref[0].astype(jnp.bfloat16), col_w)   # (25*Cin, HW)
        xg = jnp.dot(wx_ref[...], x_slab,
                     preferred_element_type=jnp.float32) + bg_ref[...]

        # gate contribution of the initial hidden state (Wh rows only).
        h0_slab = conv_slab(h0_ref[0].astype(jnp.bfloat16), col_w)  # (25*Ch, HW)
        hg = jnp.dot(w_gates, h0_slab, preferred_element_type=jnp.float32)

        c = c0_ref[0]                       # (Ch, HW) f32
        prev = u0_ref[0]                    # (2,  HW) f32
        ls = ls_ref[...]                    # (2, 1)  nu_up * sigmoid(Cu/Cv)
        bo = bo_ref[...]                    # (2, 1)

        if n_steps < 2:   # reference returns an empty second_last_state here;
            hs_ref[0] = h0_ref[0]           # write something deterministic.
            cs_ref[0] = c0_ref[0]

        out_idx = 0
        # TODO(synk): for very long rollouts switch this statically unrolled
        # loop to lax.fori_loop with pl.ds-indexed output writes + pl.when.
        for s in range(n_steps):
            last = (s == n_steps - 1)
            effective = (s in eff_steps)
            if last and not effective:
                break  # nothing observable is produced by the final step

            gates = xg + hg                              # (4*Ch, HW) f32
            # lane-dense activations: sigmoid gates (i, f, o) are one slab.
            sig = jax.nn.sigmoid(gates[:G3])             # (3*Ch, HW)
            gg = jnp.tanh(gates[G3:G4])                  # (Ch,  HW)
            gi, gf, go = sig[:Ch], sig[Ch:2 * Ch], sig[2 * Ch:G3]
            c = gf * c + gi * gg
            h = go * jnp.tanh(c)                         # (Ch, HW) f32

            if s == n_steps - 2:
                hs_ref[0] = h
                cs_ref[0] = c

            # one im2col conv of the new hidden state yields BOTH the next
            # step's hidden gate term and this step's output-layer result.
            # NOTE: h passes through a bf16 cast each step (MXU operands);
            # fine at small step counts, use f32 LHS for long rollouts.
            h_slab = conv_slab(h.astype(jnp.bfloat16), col_w)       # (25*Ch, HW)
            if not last:
                comb = jnp.dot(w_all, h_slab,
                               preferred_element_type=jnp.float32)  # (4Ch+2, HW)
                hg = comb[:G4]

            if effective:
                if last:
                    # only the 2 Wout rows are consumed on the final step.
                    out_c = jnp.dot(w_out, h_slab,
                                    preferred_element_type=jnp.float32) + bo
                else:
                    out_c = comb[G4:G4 + 2] + bo
                # Laplacian physics correction of the previous output (linear
                # op, so scaling after the stencil matches the reference).
                out_s = out_c + lap5(prev, col_w) * ls               # (2, HW)
                outs_ref[out_idx, 0] = out_s
                prev = out_s
                out_idx += 1

    return kernel


# --------------------------------- model ------------------------------------

class ConvLSTMBurgersPallas:
    """Pallas port of the `convlstm` module's forward pass (fully fused)."""

    def __init__(self, input_channels, hidden_channels, input_kernel_size,
                 input_stride, input_padding, num_layers, step=1,
                 effective_step=(1,), key=jax.random.PRNGKey(0)):
        self.input_channels = [input_channels] + list(hidden_channels)
        self.hidden_channels = list(hidden_channels)
        self.num_layers = num_layers
        self.step = step
        self.effective_step = list(effective_step)
        self.dx, self.dt, self.nu_up = 1.0 / 100, 0.00025, 0.0107

        # TODO(synk): the fused single-kernel path covers the 1-layer
        # 5x5 / stride-1 / pad-0 configuration used by the 2D-Burgers script;
        # a multi-layer fused variant would chain [Wh_i | Wx_{i+1}] convs.
        assert num_layers == 1, "fused Pallas path implements the 1-layer config"
        for i in range(num_layers):
            assert (input_kernel_size[i] == 5 and input_stride[i] == 1
                    and input_padding[i] == 0), \
                "port covers the 5x5 / stride-1 / pad-0 configuration"

        np.random.seed(1234)
        self.Cu = jnp.float32(np.random.rand())
        self.Cv = jnp.float32(np.random.rand())

        # NOTE: the reference's apply(initialize_weights) would also clobber
        # the frozen Laplacian weights with random values (a bug in the
        # original script); we keep the physical 4th-order Laplacian stencil.
        lap_np = LAP_2D_OP / self.dx ** 2 * self.dt
        self.lap_w_raw = jnp.asarray(lap_np.reshape(1, 1, 5, 5), jnp.float32)
        self.lap_taps = tuple(((ky, kx), float(lap_np[ky, kx]))
                              for ky in range(KSIZE) for kx in range(KSIZE)
                              if float(lap_np[ky, kx]) != 0.0)

        c_bound = float(np.sqrt(1.0 / (3 * 3 * 320)))
        keys = iter(jax.random.split(key, 16 * num_layers + 1))

        def u(shape):
            return jax.random.uniform(next(keys), shape, jnp.float32,
                                      minval=-c_bound, maxval=c_bound)

        self.cells_raw = []   # raw OIHW weights (used by the pure-JAX reference)
        for i in range(num_layers):
            cin = self.input_channels[i]
            ch = self.hidden_channels[i]
            raw = dict(
                wxi=u((ch, cin, 5, 5)), wxf=u((ch, cin, 5, 5)),
                wxc=u((ch, cin, 5, 5)), wxo=u((ch, cin, 5, 5)),
                whi=u((ch, ch, 5, 5)), whf=u((ch, ch, 5, 5)),
                whc=u((ch, ch, 5, 5)), who=u((ch, ch, 5, 5)),
                bxi=jnp.zeros((ch,), jnp.float32),
                bxf=jnp.zeros((ch,), jnp.float32),
                bxc=jnp.zeros((ch,), jnp.float32),
                bxo=jnp.ones((ch,), jnp.float32),   # Wxo.bias.fill_(1.0)
            )
            self.cells_raw.append(raw)

        wout = jax.random.uniform(next(keys), (2, 16, 5, 5), jnp.float32,
                                  minval=-c_bound, maxval=c_bound)
        self.wout_raw = wout
        self.bout_raw = jnp.zeros((2,), jnp.float32)

        # ---- fused-kernel weight packing (hoisted out of the kernel) --------
        # Tap-stacked matrices: rows = out channel (gate order i, f, o, c so
        # the three sigmoid gates are one contiguous slab), cols = tap-major /
        # in-channel-minor (matches the in-kernel im2col slab ordering).
        raw = self.cells_raw[0]
        ch = self.hidden_channels[0]
        wx_m = jnp.concatenate(
            [_oihw_to_matrix(raw[k]) for k in ('wxi', 'wxf', 'wxo', 'wxc')], axis=0)
        wh_m = jnp.concatenate(
            [_oihw_to_matrix(raw[k]) for k in ('whi', 'whf', 'who', 'whc')], axis=0)
        whout_m = jnp.concatenate([wh_m, _oihw_to_matrix(wout)], axis=0)
        self.wx_w = wx_m.astype(jnp.bfloat16)        # (4*ch, 25*Cin)
        self.whout_w = whout_m.astype(jnp.bfloat16)  # (4*ch + 2, 25*ch)
        self.bg = jnp.concatenate(
            [raw['bxi'], raw['bxf'], raw['bxo'], raw['bxc']]).reshape(4 * ch, 1)
        self.bo2 = self.bout_raw.reshape(2, 1)

    def forward(self, initial_state, u0_obs, inp):
        B, Cin, H, W = inp.shape
        HW = H * W
        Ch = self.hidden_channels[0]
        n_steps = self.step
        eff = tuple(s for s in range(n_steps) if s in set(self.effective_step))
        n_eff = len(eff)
        assert n_eff >= 1, "at least one effective step expected"

        h0, c0 = initial_state[0]
        # pure reshapes (no transposes): NCHW -> (B, C, H*W), pixels on lanes.
        x_f = inp.reshape(B, Cin, HW)
        h0f = h0.reshape(B, Ch, HW)
        c0f = c0.reshape(B, Ch, HW)
        u0f = u0_obs.reshape(B, 2, HW)
        ls = (self.nu_up * jax.nn.sigmoid(jnp.stack([self.Cu, self.Cv]))
              ).reshape(2, 1).astype(jnp.float32)

        kernel = _build_fused_kernel(H, W, Ch, n_steps, eff, self.lap_taps)

        ins = (x_f, h0f, c0f, u0f, self.wx_w, self.whout_w,
               self.bg, self.bo2, ls)
        in_specs = [
            pl.BlockSpec((1, Cin, HW), lambda b: (b, 0, 0)),
            pl.BlockSpec((1, Ch, HW), lambda b: (b, 0, 0)),
            pl.BlockSpec((1, Ch, HW), lambda b: (b, 0, 0)),
            pl.BlockSpec((1, 2, HW), lambda b: (b, 0, 0)),
            pl.BlockSpec(self.wx_w.shape, lambda b: (0, 0)),
            pl.BlockSpec(self.whout_w.shape, lambda b: (0, 0)),
            pl.BlockSpec(self.bg.shape, lambda b: (0, 0)),
            pl.BlockSpec(self.bo2.shape, lambda b: (0, 0)),
            pl.BlockSpec((2, 1), lambda b: (0, 0)),
        ]
        out_shapes = (
            jax.ShapeDtypeStruct((n_eff, B, 2, HW), jnp.float32),
            jax.ShapeDtypeStruct((B, Ch, HW), jnp.float32),
            jax.ShapeDtypeStruct((B, Ch, HW), jnp.float32),
        )
        out_specs = (
            pl.BlockSpec((n_eff, 1, 2, HW), lambda b: (0, b, 0, 0)),
            pl.BlockSpec((1, Ch, HW), lambda b: (b, 0, 0)),
            pl.BlockSpec((1, Ch, HW), lambda b: (b, 0, 0)),
        )
        outs, hs, cs = pl.pallas_call(
            kernel,
            grid=(B,),                                   # batch-parallel grid
            in_specs=in_specs,
            out_specs=out_specs,
            out_shape=out_shapes,
            compiler_params=pltpu.CompilerParams(
                dimension_semantics=("parallel",),
                vmem_limit_bytes=32 * 1024 * 1024),
        )(*ins)

        # lane-dense kernel outputs reshape straight back to NCHW (no transpose).
        outputs = [u0_obs] + [outs[k].reshape(B, 2, H, W) for k in range(n_eff)]
        if n_steps >= 2:
            second_last_state = [(hs.reshape(B, Ch, H, W),
                                  cs.reshape(B, Ch, H, W))]
        else:
            second_last_state = []
        return outputs, second_last_state


# ------------------ pure-JAX reference (for verification) -------------------

def _ref_conv_circ(x, w, bias=None, pad=2):
    xp = jnp.pad(x, ((0, 0), (0, 0), (pad, pad), (pad, pad)), mode='wrap')
    out = lax.conv_general_dilated(xp, w, (1, 1), 'VALID',
                                   dimension_numbers=('NCHW', 'OIHW', 'NCHW'))
    if bias is not None:
        out = out + bias.reshape(1, -1, 1, 1)
    return out


def ref_forward(model, initial_state, u0_obs, inp):
    internal_state = []
    outputs = [u0_obs]
    second_last_state = []
    for step in range(model.step):
        x = inp
        for i in range(model.num_layers):
            if step == 0:
                internal_state.append(initial_state[i])
            h, c = internal_state[i]
            p = model.cells_raw[i]
            xp = jnp.pad(x, ((0, 0), (0, 0), (2, 2), (2, 2)), mode='wrap')
            hp = jnp.pad(h, ((0, 0), (0, 0), (2, 2), (2, 2)), mode='wrap')

            def conv(a, w):
                return lax.conv_general_dilated(
                    a, w, (1, 1), 'VALID',
                    dimension_numbers=('NCHW', 'OIHW', 'NCHW'))

            ci = jax.nn.sigmoid(conv(xp, p['wxi']) + p['bxi'].reshape(1, -1, 1, 1)
                                + conv(hp, p['whi']))
            cf = jax.nn.sigmoid(conv(xp, p['wxf']) + p['bxf'].reshape(1, -1, 1, 1)
                                + conv(hp, p['whf']))
            cc = cf * c + ci * jnp.tanh(conv(xp, p['wxc'])
                                        + p['bxc'].reshape(1, -1, 1, 1)
                                        + conv(hp, p['whc']))
            co = jax.nn.sigmoid(conv(xp, p['wxo']) + p['bxo'].reshape(1, -1, 1, 1)
                                + conv(hp, p['who']))
            x = co * jnp.tanh(cc)
            internal_state[i] = (x, cc)
        x = _ref_conv_circ(x, model.wout_raw, model.bout_raw)
        if step == model.step - 2:
            second_last_state = list(internal_state)
        if step in model.effective_step:
            x_prev = outputs[-1]
            lap_u = (_ref_conv_circ(x_prev[:, 0:1], model.lap_w_raw)
                     * model.nu_up * jax.nn.sigmoid(model.Cu))
            lap_v = (_ref_conv_circ(x_prev[:, 1:2], model.lap_w_raw)
                     * model.nu_up * jax.nn.sigmoid(model.Cv))
            outputs.append(x + jnp.concatenate([lap_u, lap_v], axis=1))
    return outputs, second_last_state


# ---------------------------------- main -------------------------------------

if __name__ == "__main__":
    B, H, W = 2, 16, 16
    input_channels = 2
    hidden_channels = [16]
    num_layers = 1
    step = 3
    effective_step = [0, 1, 2]

    model = ConvLSTMBurgersPallas(
        input_channels=input_channels, hidden_channels=hidden_channels,
        input_kernel_size=[5], input_stride=[1], input_padding=[0],
        num_layers=num_layers, step=step, effective_step=effective_step,
        key=jax.random.PRNGKey(42))

    key = jax.random.PRNGKey(0)
    k1, k2, k3, k4 = jax.random.split(key, 4)
    u0_obs = jax.random.normal(k1, (B, 2, H, W), jnp.float32)
    inp = jax.random.normal(k2, (B, 2, H, W), jnp.float32)
    h0 = 0.1 * jax.random.normal(k3, (B, hidden_channels[0], H, W), jnp.float32)
    c0 = 0.1 * jax.random.normal(k4, (B, hidden_channels[0], H, W), jnp.float32)
    initial_state = [(h0, c0)]

    outputs, second_last_state = model.forward(initial_state, u0_obs, inp)
    outputs = [jax.block_until_ready(o) for o in outputs]
    second_last_state = jax.tree_util.tree_map(jax.block_until_ready,
                                               second_last_state)

    # cross-check the fused Pallas forward against a pure-JAX (lax.conv) ref
    ref_outputs, ref_sls = ref_forward(model, initial_state, u0_obs, inp)
    assert len(outputs) == len(ref_outputs) == 1 + len(effective_step)
    for o, r in zip(outputs, ref_outputs):
        assert o.shape == r.shape and o.dtype == r.dtype
        assert float(jnp.max(jnp.abs(o - r))) < 1e-2   # bf16 MXU operands
    assert len(second_last_state) == len(ref_sls) == 1
    for (h_p, c_p), (h_r, c_r) in zip(second_last_state, ref_sls):
        assert h_p.shape == h_r.shape and c_p.shape == c_r.shape
        assert float(jnp.max(jnp.abs(h_p - h_r))) < 1e-2
        assert float(jnp.max(jnp.abs(c_p - c_r))) < 1e-2

    print("KERNEL_OK")
</pallas_src>

<mosaic_0001>
module attributes {stable_mosaic.version = 11 : i64} {
  func.func @kernel(%arg0: i32, %arg1: memref<1x2x256xf32, #tpu.memory_space<vmem>>, %arg2: memref<1x16x256xf32, #tpu.memory_space<vmem>>, %arg3: memref<1x16x256xf32, #tpu.memory_space<vmem>>, %arg4: memref<1x2x256xf32, #tpu.memory_space<vmem>>, %arg5: memref<64x50xbf16, #tpu.memory_space<vmem>>, %arg6: memref<66x400xbf16, #tpu.memory_space<vmem>>, %arg7: memref<64x1xf32, #tpu.memory_space<vmem>>, %arg8: memref<2x1xf32, #tpu.memory_space<vmem>>, %arg9: memref<2x1xf32, #tpu.memory_space<vmem>>, %arg10: memref<3x1x2x256xf32, #tpu.memory_space<vmem>>, %arg11: memref<1x16x256xf32, #tpu.memory_space<vmem>>, %arg12: memref<1x16x256xf32, #tpu.memory_space<vmem>>) attributes {dimension_semantics = [#tpu.dimension_semantics<parallel>], iteration_bounds = array<i64: 2>, scalar_prefetch = 0 : i64, scratch_operands = 0 : i64, tpu.core_type = #tpu.core_type<tc>, window_params = [{transform_indices = @transform_0, window_bounds = array<i64: 1, 2, 256>}, {transform_indices = @transform_1, window_bounds = array<i64: 1, 16, 256>}, {transform_indices = @transform_2, window_bounds = array<i64: 1, 16, 256>}, {transform_indices = @transform_3, window_bounds = array<i64: 1, 2, 256>}, {pipeline_mode = #tpu.pipeline_mode<synchronous>, transform_indices = @transform_4, window_bounds = array<i64: 64, 50>}, {pipeline_mode = #tpu.pipeline_mode<synchronous>, transform_indices = @transform_5, window_bounds = array<i64: 66, 400>}, {pipeline_mode = #tpu.pipeline_mode<synchronous>, transform_indices = @transform_6, window_bounds = array<i64: 64, 1>}, {pipeline_mode = #tpu.pipeline_mode<synchronous>, transform_indices = @transform_7, window_bounds = array<i64: 2, 1>}, {pipeline_mode = #tpu.pipeline_mode<synchronous>, transform_indices = @transform_8, window_bounds = array<i64: 2, 1>}, {transform_indices = @transform_9, window_bounds = array<i64: 3, 1, 2, 256>}, {transform_indices = @transform_10, window_bounds = array<i64: 1, 16, 256>}, {transform_indices = @transform_11, window_bounds = array<i64: 1, 16, 256>}]} {
    %0 = tpu.iota {dimensions = array<i32: 1>} : vector<1x256xi32>
    %c16_i32 = arith.constant 16 : i32
    %c0_i32 = arith.constant 0 : i32
    %1 = arith.cmpi eq, %c16_i32, %c0_i32 : i32
    %c1_i32 = arith.constant 1 : i32
    %2 = arith.select %1, %c1_i32, %c16_i32 : i32
    %3 = vector.broadcast %2 : i32 to vector<1x256xi32>
    %4 = arith.remsi %0, %3 : vector<1x256xi32>
    %c0_i32_0 = arith.constant 0 : i32
    %5 = vector.broadcast %c0_i32_0 : i32 to vector<1x256xi32>
    %6 = arith.cmpi ne, %4, %5 : vector<1x256xi32>
    %c0_i32_1 = arith.constant 0 : i32
    %7 = vector.broadcast %c0_i32_1 : i32 to vector<1x256xi32>
    %8 = arith.cmpi slt, %4, %7 : vector<1x256xi32>
    %c0_i32_2 = arith.constant 0 : i32
    %9 = arith.cmpi slt, %2, %c0_i32_2 : i32
    %10 = vector.broadcast %9 : i1 to vector<1x256xi1>
    %11 = vector.broadcast %10 : vector<1x256xi1> to vector<1x256xi1>
    %12 = arith.xori %8, %11 : vector<1x256xi1>
    %13 = arith.andi %12, %6 : vector<1x256xi1>
    %14 = vector.broadcast %2 : i32 to vector<1x256xi32>
    %15 = arith.addi %4, %14 : vector<1x256xi32>
    %16 = arith.select %13, %15, %4 : vector<1x256xi1>, vector<1x256xi32>
    %c0 = arith.constant 0 : index
    %c0_3 = arith.constant 0 : index
    %17 = vector.load %arg6[%c0, %c0_3] : memref<66x400xbf16, #tpu.memory_space<vmem>>, vector<66x400xbf16>
    %18 = vector.extract_strided_slice %17 {offsets = [0, 0], sizes = [64, 400], strides = [1, 1]} : vector<66x400xbf16> to vector<64x400xbf16>
    %19 = vector.extract_strided_slice %17 {offsets = [64, 0], sizes = [2, 400], strides = [1, 1]} : vector<66x400xbf16> to vector<2x400xbf16>
    %c0_4 = arith.constant 0 : index
    %c0_5 = arith.constant 0 : index
    %c0_6 = arith.constant 0 : index
    %20 = vector.load %arg1[%c0_4, %c0_5, %c0_6] : memref<1x2x256xf32, #tpu.memory_space<vmem>>, vector<1x2x256xf32>
    %21 = vector.shape_cast %20 : vector<1x2x256xf32> to vector<2x256xf32>
    %22 = arith.truncf %21 : vector<2x256xf32> to vector<2x256xbf16>
    %23 = vector.extract_strided_slice %22 {offsets = [0, 254], sizes = [2, 2], strides = [1, 1]} : vector<2x256xbf16> to vector<2x2xbf16>
    %24 = vector.extract_strided_slice %22 {offsets = [0, 0], sizes = [2, 254], strides = [1, 1]} : vector<2x256xbf16> to vector<2x254xbf16>
    %25 = tpu.concatenate %23, %24 in 1 : vector<2x2xbf16>, vector<2x254xbf16> -> vector<2x256xbf16>
    %26 = vector.extract_strided_slice %22 {offsets = [0, 14], sizes = [2, 242], strides = [1, 1]} : vector<2x256xbf16> to vector<2x242xbf16>
    %27 = vector.extract_strided_slice %22 {offsets = [0, 0], sizes = [2, 14], strides = [1, 1]} : vector<2x256xbf16> to vector<2x14xbf16>
    %28 = tpu.concatenate %26, %27 in 1 : vector<2x242xbf16>, vector<2x14xbf16> -> vector<2x256xbf16>
    %c2_i32 = arith.constant 2 : i32
    %29 = vector.broadcast %c2_i32 : i32 to vector<1x256xi32>
    %30 = arith.cmpi sge, %16, %29 : vector<1x256xi32>
    %31 = vector.shape_cast %30 : vector<1x256xi1> to vector<1x256xi1>
    %32 = vector.broadcast %31 : vector<1x256xi1> to vector<2x256xi1>
    %33 = arith.select %32, %25, %28 : vector<2x256xi1>, vector<2x256xbf16>
    %34 = vector.extract_strided_slice %22 {offsets = [0, 255], sizes = [2, 1], strides = [1, 1]} : vector<2x256xbf16> to vector<2x1xbf16>
    %35 = vector.extract_strided_slice %22 {offsets = [0, 0], sizes = [2, 255], strides = [1, 1]} : vector<2x256xbf16> to vector<2x255xbf16>
    %36 = tpu.concatenate %34, %35 in 1 : vector<2x1xbf16>, vector<2x255xbf16> -> vector<2x256xbf16>
    %37 = vector.extract_strided_slice %22 {offsets = [0, 15], sizes = [2, 241], strides = [1, 1]} : vector<2x256xbf16> to vector<2x241xbf16>
    %38 = vector.extract_strided_slice %22 {offsets = [0, 0], sizes = [2, 15], strides = [1, 1]} : vector<2x256xbf16> to vector<2x15xbf16>
    %39 = tpu.concatenate %37, %38 in 1 : vector<2x241xbf16>, vector<2x15xbf16> -> vector<2x256xbf16>
    %c1_i32_7 = arith.constant 1 : i32
    %40 = vector.broadcast %c1_i32_7 : i32 to vector<1x256xi32>
    %41 = arith.cmpi sge, %16, %40 : vector<1x256xi32>
    %42 = vector.shape_cast %41 : vector<1x256xi1> to vector<1x256xi1>
    %43 = vector.broadcast %42 : vector<1x256xi1> to vector<2x256xi1>
    %44 = arith.select %43, %36, %39 : vector<2x256xi1>, vector<2x256xbf16>
    %45 = vector.extract_strided_slice %22 {offsets = [0, 1], sizes = [2, 255], strides = [1, 1]} : vector<2x256xbf16> to vector<2x255xbf16>
    %46 = vector.extract_strided_slice %22 {offsets = [0, 0], sizes = [2, 1], strides = [1, 1]} : vector<2x256xbf16> to vector<2x1xbf16>
    %47 = tpu.concatenate %45, %46 in 1 : vector<2x255xbf16>, vector<2x1xbf16> -> vector<2x256xbf16>
    %48 = vector.extract_strided_slice %22 {offsets = [0, 241], sizes = [2, 15], strides = [1, 1]} : vector<2x256xbf16> to vector<2x15xbf16>
    %49 = vector.extract_strided_slice %22 {offsets = [0, 0], sizes = [2, 241], strides = [1, 1]} : vector<2x256xbf16> to vector<2x241xbf16>
    %50 = tpu.concatenate %48, %49 in 1 : vector<2x15xbf16>, vector<2x241xbf16> -> vector<2x256xbf16>
    %c15_i32 = arith.constant 15 : i32
    %51 = vector.broadcast %c15_i32 : i32 to vector<1x256xi32>
    %52 = arith.cmpi slt, %16, %51 : vector<1x256xi32>
    %53 = vector.shape_cast %52 : vector<1x256xi1> to vector<1x256xi1>
    %54 = vector.broadcast %53 : vector<1x256xi1> to vector<2x256xi1>
    %55 = arith.select %54, %47, %50 : vector<2x256xi1>, vector<2x256xbf16>
    %56 = vector.extract_strided_slice %22 {offsets = [0, 2], sizes = [2, 254], strides = [1, 1]} : vector<2x256xbf16> to vector<2x254xbf16>
    %57 = vector.extract_strided_slice %22 {offsets = [0, 0], sizes = [2, 2], strides = [1, 1]} : vector<2x256xbf16> to vector<2x2xbf16>
    %58 = tpu.concatenate %56, %57 in 1 : vector<2x254xbf16>, vector<2x2xbf16> -> vector<2x256xbf16>
    %59 = vector.extract_strided_slice %22 {offsets = [0, 242], sizes = [2, 14], strides = [1, 1]} : vector<2x256xbf16> to vector<2x14xbf16>
    %60 = vector.extract_strided_slice %22 {offsets = [0, 0], sizes = [2, 242], strides = [1, 1]} : vector<2x256xbf16> to vector<2x242xbf16>
    %61 = tpu.concatenate %59, %60 in 1 : vector<2x14xbf16>, vector<2x242xbf16> -> vector<2x256xbf16>
    %c14_i32 = arith.constant 14 : i32
    %62 = vector.broadcast %c14_i32 : i32 to vector<1x256xi32>
    %63 = arith.cmpi slt, %16, %62 : vector<1x256xi32>
    %64 = vector.shape_cast %63 : vector<1x256xi1> to vector<1x256xi1>
    %65 = vector.broadcast %64 : vector<1x256xi1> to vector<2x256xi1>
    %66 = arith.select %65, %58, %61 : vector<2x256xi1>, vector<2x256xbf16>
    %67 = vector.extract_strided_slice %33 {offsets = [0, 224], sizes = [2, 32], strides = [1, 1]} : vector<2x256xbf16> to vector<2x32xbf16>
    %68 = vector.extract_strided_slice %33 {offsets = [0, 0], sizes = [2, 224], strides = [1, 1]} : vector<2x256xbf16> to vector<2x224xbf16>
    %69 = tpu.concatenate %67, %68 in 1 : vector<2x32xbf16>, vector<2x224xbf16> -> vector<2x256xbf16>
    %70 = vector.extract_strided_slice %44 {offsets = [0, 224], sizes = [2, 32], strides = [1, 1]} : vector<2x256xbf16> to vector<2x32xbf16>
    %71 = vector.extract_strided_slice %44 {offsets = [0, 0], sizes = [2, 224], strides = [1, 1]} : vector<2x256xbf16> to vector<2x224xbf16>
    %72 = tpu.concatenate %70, %71 in 1 : vector<2x32xbf16>, vector<2x224xbf16> -> vector<2x256xbf16>
    %73 = vector.extract_strided_slice %22 {offsets = [0, 224], sizes = [2, 32], strides = [1, 1]} : vector<2x256xbf16> to vector<2x32xbf16>
    %74 = vector.extract_strided_slice %22 {offsets = [0, 0], sizes = [2, 224], strides = [1, 1]} : vector<2x256xbf16> to vector<2x224xbf16>
    %75 = tpu.concatenate %73, %74 in 1 : vector<2x32xbf16>, vector<2x224xbf16> -> vector<2x256xbf16>
    %76 = vector.extract_strided_slice %55 {offsets = [0, 224], sizes = [2, 32], strides = [1, 1]} : vector<2x256xbf16> to vector<2x32xbf16>
    %77 = vector.extract_strided_slice %55 {offsets = [0, 0], sizes = [2, 224], strides = [1, 1]} : vector<2x256xbf16> to vector<2x224xbf16>
    %78 = tpu.concatenate %76, %77 in 1 : vector<2x32xbf16>, vector<2x224xbf16> -> vector<2x256xbf16>
    %79 = vector.extract_strided_slice %66 {offsets = [0, 224], sizes = [2, 32], strides = [1, 1]} : vector<2x256xbf16> to vector<2x32xbf16>
    %80 = vector.extract_strided_slice %66 {offsets = [0, 0], sizes = [2, 224], strides = [1, 1]} : vector<2x256xbf16> to vector<2x224xbf16>
    %81 = tpu.concatenate %79, %80 in 1 : vector<2x32xbf16>, vector<2x224xbf16> -> vector<2x256xbf16>
    %82 = vector.extract_strided_slice %33 {offsets = [0, 240], sizes = [2, 16], strides = [1, 1]} : vector<2x256xbf16> to vector<2x16xbf16>
    %83 = vector.extract_strided_slice %33 {offsets = [0, 0], sizes = [2, 240], strides = [1, 1]} : vector<2x256xbf16> to vector<2x240xbf16>
    %84 = tpu.concatenate %82, %83 in 1 : vector<2x16xbf16>, vector<2x240xbf16> -> vector<2x256xbf16>
    %85 = vector.extract_strided_slice %44 {offsets = [0, 240], sizes = [2, 16], strides = [1, 1]} : vector<2x256xbf16> to vector<2x16xbf16>
    %86 = vector.extract_strided_slice %44 {offsets = [0, 0], sizes = [2, 240], strides = [1, 1]} : vector<2x256xbf16> to vector<2x240xbf16>
    %87 = tpu.concatenate %85, %86 in 1 : vector<2x16xbf16>, vector<2x240xbf16> -> vector<2x256xbf16>
    %88 = vector.extract_strided_slice %22 {offsets = [0, 240], sizes = [2, 16], strides = [1, 1]} : vector<2x256xbf16> to vector<2x16xbf16>
    %89 = vector.extract_strided_slice %22 {offsets = [0, 0], sizes = [2, 240], strides = [1, 1]} : vector<2x256xbf16> to vector<2x240xbf16>
    %90 = tpu.concatenate %88, %89 in 1 : vector<2x16xbf16>, vector<2x240xbf16> -> vector<2x256xbf16>
    %91 = vector.extract_strided_slice %55 {offsets = [0, 240], sizes = [2, 16], strides = [1, 1]} : vector<2x256xbf16> to vector<2x16xbf16>
    %92 = vector.extract_strided_slice %55 {offsets = [0, 0], sizes = [2, 240], strides = [1, 1]} : vector<2x256xbf16> to vector<2x240xbf16>
    %93 = tpu.concatenate %91, %92 in 1 : vector<2x16xbf16>, vector<2x240xbf16> -> vector<2x256xbf16>
    %94 = vector.extract_strided_slice %66 {offsets = [0, 240], sizes = [2, 16], strides = [1, 1]} : vector<2x256xbf16> to vector<2x16xbf16>
    %95 = vector.extract_strided_slice %66 {offsets = [0, 0], sizes = [2, 240], strides = [1, 1]} : vector<2x256xbf16> to vector<2x240xbf16>
    %96 = tpu.concatenate %94, %95 in 1 : vector<2x16xbf16>, vector<2x240xbf16> -> vector<2x256xbf16>
    %97 = vector.extract_strided_slice %33 {offsets = [0, 16], sizes = [2, 240], strides = [1, 1]} : vector<2x256xbf16> to vector<2x240xbf16>
    %98 = vector.extract_strided_slice %33 {offsets = [0, 0], sizes = [2, 16], strides = [1, 1]} : vector<2x256xbf16> to vector<2x16xbf16>
    %99 = tpu.concatenate %97, %98 in 1 : vector<2x240xbf16>, vector<2x16xbf16> -> vector<2x256xbf16>
    %100 = vector.extract_strided_slice %44 {offsets = [0, 16], sizes = [2, 240], strides = [1, 1]} : vector<2x256xbf16> to vector<2x240xbf16>
    %101 = vector.extract_strided_slice %44 {offsets = [0, 0], sizes = [2, 16], strides = [1, 1]} : vector<2x256xbf16> to vector<2x16xbf16>
    %102 = tpu.concatenate %100, %101 in 1 : vector<2x240xbf16>, vector<2x16xbf16> -> vector<2x256xbf16>
    %103 = vector.extract_strided_slice %22 {offsets = [0, 16], sizes = [2, 240], strides = [1, 1]} : vector<2x256xbf16> to vector<2x240xbf16>
    %104 = vector.extract_strided_slice %22 {offsets = [0, 0], sizes = [2, 16], strides = [1, 1]} : vector<2x256xbf16> to vector<2x16xbf16>
    %105 = tpu.concatenate %103, %104 in 1 : vector<2x240xbf16>, vector<2x16xbf16> -> vector<2x256xbf16>
    %106 = vector.extract_strided_slice %55 {offsets = [0, 16], sizes = [2, 240], strides = [1, 1]} : vector<2x256xbf16> to vector<2x240xbf16>
    %107 = vector.extract_strided_slice %55 {offsets = [0, 0], sizes = [2, 16], strides = [1, 1]} : vector<2x256xbf16> to vector<2x16xbf16>
    %108 = tpu.concatenate %106, %107 in 1 : vector<2x240xbf16>, vector<2x16xbf16> -> vector<2x256xbf16>
    %109 = vector.extract_strided_slice %66 {offsets = [0, 16], sizes = [2, 240], strides = [1, 1]} : vector<2x256xbf16> to vector<2x240xbf16>
    %110 = vector.extract_strided_slice %66 {offsets = [0, 0], sizes = [2, 16], strides = [1, 1]} : vector<2x256xbf16> to vector<2x16xbf16>
    %111 = tpu.concatenate %109, %110 in 1 : vector<2x240xbf16>, vector<2x16xbf16> -> vector<2x256xbf16>
    %112 = vector.extract_strided_slice %33 {offsets = [0, 32], sizes = [2, 224], strides = [1, 1]} : vector<2x256xbf16> to vector<2x224xbf16>
    %113 = vector.extract_strided_slice %33 {offsets = [0, 0], sizes = [2, 32], strides = [1, 1]} : vector<2x256xbf16> to vector<2x32xbf16>
    %114 = tpu.concatenate %112, %113 in 1 : vector<2x224xbf16>, vector<2x32xbf16> -> vector<2x256xbf16>
    %115 = vector.extract_strided_slice %44 {offsets = [0, 32], sizes = [2, 224], strides = [1, 1]} : vector<2x256xbf16> to vector<2x224xbf16>
    %116 = vector.extract_strided_slice %44 {offsets = [0, 0], sizes = [2, 32], strides = [1, 1]} : vector<2x256xbf16> to vector<2x32xbf16>
    %117 = tpu.concatenate %115, %116 in 1 : vector<2x224xbf16>, vector<2x32xbf16> -> vector<2x256xbf16>
    %118 = vector.extract_strided_slice %22 {offsets = [0, 32], sizes = [2, 224], strides = [1, 1]} : vector<2x256xbf16> to vector<2x224xbf16>
    %119 = vector.extract_strided_slice %22 {offsets = [0, 0], sizes = [2, 32], strides = [1, 1]} : vector<2x256xbf16> to vector<2x32xbf16>
    %120 = tpu.concatenate %118, %119 in 1 : vector<2x224xbf16>, vector<2x32xbf16> -> vector<2x256xbf16>
    %121 = vector.extract_strided_slice %55 {offsets = [0, 32], sizes = [2, 224], strides = [1, 1]} : vector<2x256xbf16> to vector<2x224xbf16>
    %122 = vector.extract_strided_slice %55 {offsets = [0, 0], sizes = [2, 32], strides = [1, 1]} : vector<2x256xbf16> to vector<2x32xbf16>
    %123 = tpu.concatenate %121, %122 in 1 : vector<2x224xbf16>, vector<2x32xbf16> -> vector<2x256xbf16>
    %124 = vector.extract_strided_slice %66 {offsets = [0, 32], sizes = [2, 224], strides = [1, 1]} : vector<2x256xbf16> to vector<2x224xbf16>
    %125 = vector.extract_strided_slice %66 {offsets = [0, 0], sizes = [2, 32], strides = [1, 1]} : vector<2x256xbf16> to vector<2x32xbf16>
    %126 = tpu.concatenate %124, %125 in 1 : vector<2x224xbf16>, vector<2x32xbf16> -> vector<2x256xbf16>
    %127 = tpu.concatenate %69, %72, %75, %78, %81, %84, %87, %90, %93, %96, %33, %44, %22, %55, %66, %99 in 0 : vector<2x256xbf16>, vector<2x256xbf16>, vector<2x256xbf16>, vector<2x256xbf16>, vector<2x256xbf16>, vector<2x256xbf16>, vector<2x256xbf16>, vector<2x256xbf16>, vector<2x256xbf16>, vector<2x256xbf16>, vector<2x256xbf16>, vector<2x256xbf16>, vector<2x256xbf16>, vector<2x256xbf16>, vector<2x256xbf16>, vector<2x256xbf16> -> vector<32x256xbf16>
    %128 = tpu.concatenate %102, %105, %108, %111, %114, %117, %120, %123, %126 in 0 : vector<2x256xbf16>, vector<2x256xbf16>, vector<2x256xbf16>, vector<2x256xbf16>, vector<2x256xbf16>, vector<2x256xbf16>, vector<2x256xbf16>, vector<2x256xbf16>, vector<2x256xbf16> -> vector<18x256xbf16>
    %129 = tpu.concatenate %127, %128 in 0 : vector<32x256xbf16>, vector<18x256xbf16> -> vector<50x256xbf16>
    %c0_8 = arith.constant 0 : index
    %c0_9 = arith.constant 0 : index
    %130 = vector.load %arg5[%c0_8, %c0_9] : memref<64x50xbf16, #tpu.memory_space<vmem>>, vector<64x50xbf16>
    %cst = arith.constant dense<0.000000e+00> : vector<64x256xf32>
    %131 = tpu.matmul %130, %129, %cst {dimension_numbers = #tpu.dot_dimension_numbers<[1], [0], [0], [1], [0, 0, 1, 1], [], []>} : vector<64x50xbf16>, vector<50x256xbf16>, vector<64x256xf32> -> vector<64x256xf32>
    %c0_10 = arith.constant 0 : index
    %c0_11 = arith.constant 0 : index
    %132 = vector.load %arg7[%c0_10, %c0_11] : memref<64x1xf32, #tpu.memory_space<vmem>>, vector<64x1xf32>
    %133 = vector.broadcast %132 : vector<64x1xf32> to vector<64x256xf32>
    %134 = arith.addf %131, %133 : vector<64x256xf32>
    %c0_12 = arith.constant 0 : index
    %c0_13 = arith.constant 0 : index
    %c0_14 = arith.constant 0 : index
    %135 = vector.load %arg2[%c0_12, %c0_13, %c0_14] : memref<1x16x256xf32, #tpu.memory_space<vmem>>, vector<1x16x256xf32>
    %136 = vector.shape_cast %135 : vector<1x16x256xf32> to vector<16x256xf32>
    %137 = arith.truncf %136 : vector<16x256xf32> to vector<16x256xbf16>
    %138 = vector.extract_strided_slice %137 {offsets = [0, 254], sizes = [16, 2], strides = [1, 1]} : vector<16x256xbf16> to vector<16x2xbf16>
    %139 = vector.extract_strided_slice %137 {offsets = [0, 0], sizes = [16, 254], strides = [1, 1]} : vector<16x256xbf16> to vector<16x254xbf16>
    %140 = tpu.concatenate %138, %139 in 1 : vector<16x2xbf16>, vector<16x254xbf16> -> vector<16x256xbf16>
    %141 = vector.extract_strided_slice %137 {offsets = [0, 14], sizes = [16, 242], strides = [1, 1]} : vector<16x256xbf16> to vector<16x242xbf16>
    %142 = vector.extract_strided_slice %137 {offsets = [0, 0], sizes = [16, 14], strides = [1, 1]} : vector<16x256xbf16> to vector<16x14xbf16>
    %143 = tpu.concatenate %141, %142 in 1 : vector<16x242xbf16>, vector<16x14xbf16> -> vector<16x256xbf16>
    %c2_i32_15 = arith.constant 2 : i32
    %144 = vector.broadcast %c2_i32_15 : i32 to vector<1x256xi32>
    %145 = arith.cmpi sge, %16, %144 : vector<1x256xi32>
    %146 = vector.shape_cast %145 : vector<1x256xi1> to vector<1x256xi1>
    %147 = vector.broadcast %146 : vector<1x256xi1> to vector<16x256xi1>
    %148 = arith.select %147, %140, %143 : vector<16x256xi1>, vector<16x256xbf16>
    %149 = vector.extract_strided_slice %137 {offsets = [0, 255], sizes = [16, 1], strides = [1, 1]} : vector<16x256xbf16> to vector<16x1xbf16>
    %150 = vector.extract_strided_slice %137 {offsets = [0, 0], sizes = [16, 255], strides = [1, 1]} : vector<16x256xbf16> to vector<16x255xbf16>
    %151 = tpu.concatenate %149, %150 in 1 : vector<16x1xbf16>, vector<16x255xbf16> -> vector<16x256xbf16>
    %152 = vector.extract_strided_slice %137 {offsets = [0, 15], sizes = [16, 241], strides = [1, 1]} : vector<16x256xbf16> to vector<16x241xbf16>
    %153 = vector.extract_strided_slice %137 {offsets = [0, 0], sizes = [16, 15], strides = [1, 1]} : vector<16x256xbf16> to vector<16x15xbf16>
    %154 = tpu.concatenate %152, %153 in 1 : vector<16x241xbf16>, vector<16x15xbf16> -> vector<16x256xbf16>
    %c1_i32_16 = arith.constant 1 : i32
    %155 = vector.broadcast %c1_i32_16 : i32 to vector<1x256xi32>
    %156 = arith.cmpi sge, %16, %155 : vector<1x256xi32>
    %157 = vector.shape_cast %156 : vector<1x256xi1> to vector<1x256xi1>
    %158 = vector.broadcast %157 : vector<1x256xi1> to vector<16x256xi1>
    %159 = arith.select %158, %151, %154 : vector<16x256xi1>, vector<16x256xbf16>
    %160 = vector.extract_strided_slice %137 {offsets = [0, 1], sizes = [16, 255], strides = [1, 1]} : vector<16x256xbf16> to vector<16x255xbf16>
    %161 = vector.extract_strided_slice %137 {offsets = [0, 0], sizes = [16, 1], strides = [1, 1]} : vector<16x256xbf16> to vector<16x1xbf16>
    %162 = tpu.concatenate %160, %161 in 1 : vector<16x255xbf16>, vector<16x1xbf16> -> vector<16x256xbf16>
    %163 = vector.extract_strided_slice %137 {offsets = [0, 241], sizes = [16, 15], strides = [1, 1]} : vector<16x256xbf16> to vector<16x15xbf16>
    %164 = vector.extract_strided_slice %137 {offsets = [0, 0], sizes = [16, 241], strides = [1, 1]} : vector<16x256xbf16> to vector<16x241xbf16>
    %165 = tpu.concatenate %163, %164 in 1 : vector<16x15xbf16>, vector<16x241xbf16> -> vector<16x256xbf16>
    %c15_i32_17 = arith.constant 15 : i32
    %166 = vector.broadcast %c15_i32_17 : i32 to vector<1x256xi32>
    %167 = arith.cmpi slt, %16, %166 : vector<1x256xi32>
    %168 = vector.shape_cast %167 : vector<1x256xi1> to vector<1x256xi1>
    %169 = vector.broadcast %168 : vector<1x256xi1> to vector<16x256xi1>
    %170 = arith.select %169, %162, %165 : vector<16x256xi1>, vector<16x256xbf16>
    %171 = vector.extract_strided_slice %137 {offsets = [0, 2], sizes = [16, 254], strides = [1, 1]} : vector<16x256xbf16> to vector<16x254xbf16>
    %172 = vector.extract_strided_slice %137 {offsets = [0, 0], sizes = [16, 2], strides = [1, 1]} : vector<16x256xbf16> to vector<16x2xbf16>
    %173 = tpu.concatenate %171, %172 in 1 : vector<16x254xbf16>, vector<16x2xbf16> -> vector<16x256xbf16>
    %174 = vector.extract_strided_slice %137 {offsets = [0, 242], sizes = [16, 14], strides = [1, 1]} : vector<16x256xbf16> to vector<16x14xbf16>
    %175 = vector.extract_strided_slice %137 {offsets = [0, 0], sizes = [16, 242], strides = [1, 1]} : vector<16x256xbf16> to vector<16x242xbf16>
    %176 = tpu.concatenate %174, %175 in 1 : vector<16x14xbf16>, vector<16x242xbf16> -> vector<16x256xbf16>
    %c14_i32_18 = arith.constant 14 : i32
    %177 = vector.broadcast %c14_i32_18 : i32 to vector<1x256xi32>
    %178 = arith.cmpi slt, %16, %177 : vector<1x256xi32>
    %179 = vector.shape_cast %178 : vector<1x256xi1> to vector<1x256xi1>
    %180 = vector.broadcast %179 : vector<1x256xi1> to vector<16x256xi1>
    %181 = arith.select %180, %173, %176 : vector<16x256xi1>, vector<16x256xbf16>
    %182 = vector.extract_strided_slice %148 {offsets = [0, 224], sizes = [16, 32], strides = [1, 1]} : vector<16x256xbf16> to vector<16x32xbf16>
    %183 = vector.extract_strided_slice %148 {offsets = [0, 0], sizes = [16, 224], strides = [1, 1]} : vector<16x256xbf16> to vector<16x224xbf16>
    %184 = tpu.concatenate %182, %183 in 1 : vector<16x32xbf16>, vector<16x224xbf16> -> vector<16x256xbf16>
    %185 = vector.extract_strided_slice %159 {offsets = [0, 224], sizes = [16, 32], strides = [1, 1]} : vector<16x256xbf16> to vector<16x32xbf16>
    %186 = vector.extract_strided_slice %159 {offsets = [0, 0], sizes = [16, 224], strides = [1, 1]} : vector<16x256xbf16> to vector<16x224xbf16>
    %187 = tpu.concatenate %185, %186 in 1 : vector<16x32xbf16>, vector<16x224xbf16> -> vector<16x256xbf16>
    %188 = vector.extract_strided_slice %137 {offsets = [0, 224], sizes = [16, 32], strides = [1, 1]} : vector<16x256xbf16> to vector<16x32xbf16>
    %189 = vector.extract_strided_slice %137 {offsets = [0, 0], sizes = [16, 224], strides = [1, 1]} : vector<16x256xbf16> to vector<16x224xbf16>
    %190 = tpu.concatenate %188, %189 in 1 : vector<16x32xbf16>, vector<16x224xbf16> -> vector<16x256xbf16>
    %191 = vector.extract_strided_slice %170 {offsets = [0, 224], sizes = [16, 32], strides = [1, 1]} : vector<16x256xbf16> to vector<16x32xbf16>
    %192 = vector.extract_strided_slice %170 {offsets = [0, 0], sizes = [16, 224], strides = [1, 1]} : vector<16x256xbf16> to vector<16x224xbf16>
    %193 = tpu.concatenate %191, %192 in 1 : vector<16x32xbf16>, vector<16x224xbf16> -> vector<16x256xbf16>
    %194 = vector.extract_strided_slice %181 {offsets = [0, 224], sizes = [16, 32], strides = [1, 1]} : vector<16x256xbf16> to vector<16x32xbf16>
    %195 = vector.extract_strided_slice %181 {offsets = [0, 0], sizes = [16, 224], strides = [1, 1]} : vector<16x256xbf16> to vector<16x224xbf16>
    %196 = tpu.concatenate %194, %195 in 1 : vector<16x32xbf16>, vector<16x224xbf16> -> vector<16x256xbf16>
    %197 = vector.extract_strided_slice %148 {offsets = [0, 240], sizes = [16, 16], strides = [1, 1]} : vector<16x256xbf16> to vector<16x16xbf16>
    %198 = vector.extract_strided_slice %148 {offsets = [0, 0], sizes = [16, 240], strides = [1, 1]} : vector<16x256xbf16> to vector<16x240xbf16>
    %199 = tpu.concatenate %197, %198 in 1 : vector<16x16xbf16>, vector<16x240xbf16> -> vector<16x256xbf16>
    %200 = vector.extract_strided_slice %159 {offsets = [0, 240], sizes = [16, 16], strides = [1, 1]} : vector<16x256xbf16> to vector<16x16xbf16>
    %201 = vector.extract_strided_slice %159 {offsets = [0, 0], sizes = [16, 240], strides = [1, 1]} : vector<16x256xbf16> to vector<16x240xbf16>
    %202 = tpu.concatenate %200, %201 in 1 : vector<16x16xbf16>, vector<16x240xbf16> -> vector<16x256xbf16>
    %203 = vector.extract_strided_slice %137 {offsets = [0, 240], sizes = [16, 16], strides = [1, 1]} : vector<16x256xbf16> to vector<16x16xbf16>
    %204 = vector.extract_strided_slice %137 {offsets = [0, 0], sizes = [16, 240], strides = [1, 1]} : vector<16x256xbf16> to vector<16x240xbf16>
    %205 = tpu.concatenate %203, %204 in 1 : vector<16x16xbf16>, vector<16x240xbf16> -> vector<16x256xbf16>
    %206 = vector.extract_strided_slice %170 {offsets = [0, 240], sizes = [16, 16], strides = [1, 1]} : vector<16x256xbf16> to vector<16x16xbf16>
    %207 = vector.extract_strided_slice %170 {offsets = [0, 0], sizes = [16, 240], strides = [1, 1]} : vector<16x256xbf16> to vector<16x240xbf16>
    %208 = tpu.concatenate %206, %207 in 1 : vector<16x16xbf16>, vector<16x240xbf16> -> vector<16x256xbf16>
    %209 = vector.extract_strided_slice %181 {offsets = [0, 240], sizes = [16, 16], strides = [1, 1]} : vector<16x256xbf16> to vector<16x16xbf16>
    %210 = vector.extract_strided_slice %181 {offsets = [0, 0], sizes = [16, 240], strides = [1, 1]} : vector<16x256xbf16> to vector<16x240xbf16>
    %211 = tpu.concatenate %209, %210 in 1 : vector<16x16xbf16>, vector<16x240xbf16> -> vector<16x256xbf16>
    %212 = vector.extract_strided_slice %148 {offsets = [0, 16], sizes = [16, 240], strides = [1, 1]} : vector<16x256xbf16> to vector<16x240xbf16>
    %213 = vector.extract_strided_slice %148 {offsets = [0, 0], sizes = [16, 16], strides = [1, 1]} : vector<16x256xbf16> to vector<16x16xbf16>
    %214 = tpu.concatenate %212, %213 in 1 : vector<16x240xbf16>, vector<16x16xbf16> -> vector<16x256xbf16>
    %215 = vector.extract_strided_slice %159 {offsets = [0, 16], sizes = [16, 240], strides = [1, 1]} : vector<16x256xbf16> to vector<16x240xbf16>
    %216 = vector.extract_strided_slice %159 {offsets = [0, 0], sizes = [16, 16], strides = [1, 1]} : vector<16x256xbf16> to vector<16x16xbf16>
    %217 = tpu.concatenate %215, %216 in 1 : vector<16x240xbf16>, vector<16x16xbf16> -> vector<16x256xbf16>
    %218 = vector.extract_strided_slice %137 {offsets = [0, 16], sizes = [16, 240], strides = [1, 1]} : vector<16x256xbf16> to vector<16x240xbf16>
    %219 = vector.extract_strided_slice %137 {offsets = [0, 0], sizes = [16, 16], strides = [1, 1]} : vector<16x256xbf16> to vector<16x16xbf16>
    %220 = tpu.concatenate %218, %219 in 1 : vector<16x240xbf16>, vector<16x16xbf16> -> vector<16x256xbf16>
    %221 = vector.extract_strided_slice %170 {offsets = [0, 16], sizes = [16, 240], strides = [1, 1]} : vector<16x256xbf16> to vector<16x240xbf16>
    %222 = vector.extract_strided_slice %170 {offsets = [0, 0], sizes = [16, 16], strides = [1, 1]} : vector<16x256xbf16> to vector<16x16xbf16>
    %223 = tpu.concatenate %221, %222 in 1 : vector<16x240xbf16>, vector<16x16xbf16> -> vector<16x256xbf16>
    %224 = vector.extract_strided_slice %181 {offsets = [0, 16], sizes = [16, 240], strides = [1, 1]} : vector<16x256xbf16> to vector<16x240xbf16>
    %225 = vector.extract_strided_slice %181 {offsets = [0, 0], sizes = [16, 16], strides = [1, 1]} : vector<16x256xbf16> to vector<16x16xbf16>
    %226 = tpu.concatenate %224, %225 in 1 : vector<16x240xbf16>, vector<16x16xbf16> -> vector<16x256xbf16>
    %227 = vector.extract_strided_slice %148 {offsets = [0, 32], sizes = [16, 224], strides = [1, 1]} : vector<16x256xbf16> to vector<16x224xbf16>
    %228 = vector.extract_strided_slice %148 {offsets = [0, 0], sizes = [16, 32], strides = [1, 1]} : vector<16x256xbf16> to vector<16x32xbf16>
    %229 = tpu.concatenate %227, %228 in 1 : vector<16x224xbf16>, vector<16x32xbf16> -> vector<16x256xbf16>
    %230 = vector.extract_strided_slice %159 {offsets = [0, 32], sizes = [16, 224], strides = [1, 1]} : vector<16x256xbf16> to vector<16x224xbf16>
    %231 = vector.extract_strided_slice %159 {offsets = [0, 0], sizes = [16, 32], strides = [1, 1]} : vector<16x256xbf16> to vector<16x32xbf16>
    %232 = tpu.concatenate %230, %231 in 1 : vector<16x224xbf16>, vector<16x32xbf16> -> vector<16x256xbf16>
    %233 = vector.extract_strided_slice %137 {offsets = [0, 32], sizes = [16, 224], strides = [1, 1]} : vector<16x256xbf16> to vector<16x224xbf16>
    %234 = vector.extract_strided_slice %137 {offsets = [0, 0], sizes = [16, 32], strides = [1, 1]} : vector<16x256xbf16> to vector<16x32xbf16>
    %235 = tpu.concatenate %233, %234 in 1 : vector<16x224xbf16>, vector<16x32xbf16> -> vector<16x256xbf16>
    %236 = vector.extract_strided_slice %170 {offsets = [0, 32], sizes = [16, 224], strides = [1, 1]} : vector<16x256xbf16> to vector<16x224xbf16>
    %237 = vector.extract_strided_slice %170 {offsets = [0, 0], sizes = [16, 32], strides = [1, 1]} : vector<16x256xbf16> to vector<16x32xbf16>
    %238 = tpu.concatenate %236, %237 in 1 : vector<16x224xbf16>, vector<16x32xbf16> -> vector<16x256xbf16>
    %239 = vector.extract_strided_slice %181 {offsets = [0, 32], sizes = [16, 224], strides = [1, 1]} : vector<16x256xbf16> to vector<16x224xbf16>
    %240 = vector.extract_strided_slice %181 {offsets = [0, 0], sizes = [16, 32], strides = [1, 1]} : vector<16x256xbf16> to vector<16x32xbf16>
    %241 = tpu.concatenate %239, %240 in 1 : vector<16x224xbf16>, vector<16x32xbf16> -> vector<16x256xbf16>
    %242 = tpu.concatenate %184, %187, %190, %193, %196, %199, %202, %205, %208, %211, %148, %159, %137, %170, %181, %214 in 0 : vector<16x256xbf16>, vector<16x256xbf16>, vector<16x256xbf16>, vector<16x256xbf16>, vector<16x256xbf16>, vector<16x256xbf16>, vector<16x256xbf16>, vector<16x256xbf16>, vector<16x256xbf16>, vector<16x256xbf16>, vector<16x256xbf16>, vector<16x256xbf16>, vector<16x256xbf16>, vector<16x256xbf16>, vector<16x256xbf16>, vector<16x256xbf16> -> vector<256x256xbf16>
    %243 = tpu.concatenate %217, %220, %223, %226, %229, %232, %235, %238, %241 in 0 : vector<16x256xbf16>, vector<16x256xbf16>, vector<16x256xbf16>, vector<16x256xbf16>, vector<16x256xbf16>, vector<16x256xbf16>, vector<16x256xbf16>, vector<16x256xbf16>, vector<16x256xbf16> -> vector<144x256xbf16>
    %244 = tpu.concatenate %242, %243 in 0 : vector<256x256xbf16>, vector<144x256xbf16> -> vector<400x256xbf16>
    %cst_19 = arith.constant dense<0.000000e+00> : vector<64x256xf32>
    %245 = tpu.matmul %18, %244, %cst_19 {dimension_numbers = #tpu.dot_dimension_numbers<[1], [0], [0], [1], [0, 0, 1, 1], [], []>} : vector<64x400xbf16>, vector<400x256xbf16>, vector<64x256xf32> -> vector<64x256xf32>
    %c0_20 = arith.constant 0 : index
    %c0_21 = arith.constant 0 : index
    %c0_22 = arith.constant 0 : index
    %246 = vector.load %arg3[%c0_20, %c0_21, %c0_22] : memref<1x16x256xf32, #tpu.memory_space<vmem>>, vector<1x16x256xf32>
    %247 = vector.shape_cast %246 : vector<1x16x256xf32> to vector<16x256xf32>
    %c0_23 = arith.constant 0 : index
    %c0_24 = arith.constant 0 : index
    %c0_25 = arith.constant 0 : index
    %248 = vector.load %arg4[%c0_23, %c0_24, %c0_25] : memref<1x2x256xf32, #tpu.memory_space<vmem>>, vector<1x2x256xf32>
    %249 = vector.shape_cast %248 : vector<1x2x256xf32> to vector<2x256xf32>
    %c0_26 = arith.constant 0 : index
    %c0_27 = arith.constant 0 : index
    %250 = vector.load %arg9[%c0_26, %c0_27] : memref<2x1xf32, #tpu.memory_space<vmem>>, vector<2x1xf32>
    %c0_28 = arith.constant 0 : index
    %c0_29 = arith.constant 0 : index
    %251 = vector.load %arg8[%c0_28, %c0_29] : memref<2x1xf32, #tpu.memory_space<vmem>>, vector<2x1xf32>
    %252 = arith.addf %134, %245 : vector<64x256xf32>
    %253 = vector.extract_strided_slice %252 {offsets = [0, 0], sizes = [48, 256], strides = [1, 1]} : vector<64x256xf32> to vector<48x256xf32>
    %254 = arith.negf %253 : vector<48x256xf32>
    %255 = math.exp %254 : vector<48x256xf32>
    %cst_30 = arith.constant 1.000000e+00 : f32
    %256 = vector.broadcast %cst_30 : f32 to vector<48x256xf32>
    %257 = arith.addf %256, %255 : vector<48x256xf32>
    %258 = arith.divf %256, %257 : vector<48x256xf32>
    %259 = vector.extract_strided_slice %252 {offsets = [48, 0], sizes = [16, 256], strides = [1, 1]} : vector<64x256xf32> to vector<16x256xf32>
    %260 = math.tanh %259 : vector<16x256xf32>
    %261 = vector.extract_strided_slice %258 {offsets = [0, 0], sizes = [16, 256], strides = [1, 1]} : vector<48x256xf32> to vector<16x256xf32>
    %262 = vector.extract_strided_slice %258 {offsets = [16, 0], sizes = [16, 256], strides = [1, 1]} : vector<48x256xf32> to vector<16x256xf32>
    %263 = vector.extract_strided_slice %258 {offsets = [32, 0], sizes = [16, 256], strides = [1, 1]} : vector<48x256xf32> to vector<16x256xf32>
    %264 = arith.mulf %262, %247 : vector<16x256xf32>
    %265 = arith.mulf %261, %260 : vector<16x256xf32>
    %266 = arith.addf %264, %265 : vector<16x256xf32>
    %267 = math.tanh %266 : vector<16x256xf32>
    %268 = arith.mulf %263, %267 : vector<16x256xf32>
    %269 = arith.truncf %268 : vector<16x256xf32> to vector<16x256xbf16>
    %270 = vector.extract_strided_slice %269 {offsets = [0, 254], sizes = [16, 2], strides = [1, 1]} : vector<16x256xbf16> to vector<16x2xbf16>
    %271 = vector.extract_strided_slice %269 {offsets = [0, 0], sizes = [16, 254], strides = [1, 1]} : vector<16x256xbf16> to vector<16x254xbf16>
    %272 = tpu.concatenate %270, %271 in 1 : vector<16x2xbf16>, vector<16x254xbf16> -> vector<16x256xbf16>
    %273 = vector.extract_strided_slice %269 {offsets = [0, 14], sizes = [16, 242], strides = [1, 1]} : vector<16x256xbf16> to vector<16x242xbf16>
    %274 = vector.extract_strided_slice %269 {offsets = [0, 0], sizes = [16, 14], strides = [1, 1]} : vector<16x256xbf16> to vector<16x14xbf16>
    %275 = tpu.concatenate %273, %274 in 1 : vector<16x242xbf16>, vector<16x14xbf16> -> vector<16x256xbf16>
    %c2_i32_31 = arith.constant 2 : i32
    %276 = vector.broadcast %c2_i32_31 : i32 to vector<1x256xi32>
    %277 = arith.cmpi sge, %16, %276 : vector<1x256xi32>
    %278 = vector.shape_cast %277 : vector<1x256xi1> to vector<1x256xi1>
    %279 = vector.broadcast %278 : vector<1x256xi1> to vector<16x256xi1>
    %280 = arith.select %279, %272, %275 : vector<16x256xi1>, vector<16x256xbf16>
    %281 = vector.extract_strided_slice %269 {offsets = [0, 255], sizes = [16, 1], strides = [1, 1]} : vector<16x256xbf16> to vector<16x1xbf16>
    %282 = vector.extract_strided_slice %269 {offsets = [0, 0], sizes = [16, 255], strides = [1, 1]} : vector<16x256xbf16> to vector<16x255xbf16>
    %283 = tpu.concatenate %281, %282 in 1 : vector<16x1xbf16>, vector<16x255xbf16> -> vector<16x256xbf16>
    %284 = vector.extract_strided_slice %269 {offsets = [0, 15], sizes = [16, 241], strides = [1, 1]} : vector<16x256xbf16> to vector<16x241xbf16>
    %285 = vector.extract_strided_slice %269 {offsets = [0, 0], sizes = [16, 15], strides = [1, 1]} : vector<16x256xbf16> to vector<16x15xbf16>
    %286 = tpu.concatenate %284, %285 in 1 : vector<16x241xbf16>, vector<16x15xbf16> -> vector<16x256xbf16>
    %c1_i32_32 = arith.constant 1 : i32
    %287 = vector.broadcast %c1_i32_32 : i32 to vector<1x256xi32>
    %288 = arith.cmpi sge, %16, %287 : vector<1x256xi32>
    %289 = vector.shape_cast %288 : vector<1x256xi1> to vector<1x256xi1>
    %290 = vector.broadcast %289 : vector<1x256xi1> to vector<16x256xi1>
    %291 = arith.select %290, %283, %286 : vector<16x256xi1>, vector<16x256xbf16>
    %292 = vector.extract_strided_slice %269 {offsets = [0, 1], sizes = [16, 255], strides = [1, 1]} : vector<16x256xbf16> to vector<16x255xbf16>
    %293 = vector.extract_strided_slice %269 {offsets = [0, 0], sizes = [16, 1], strides = [1, 1]} : vector<16x256xbf16> to vector<16x1xbf16>
    %294 = tpu.concatenate %292, %293 in 1 : vector<16x255xbf16>, vector<16x1xbf16> -> vector<16x256xbf16>
    %295 = vector.extract_strided_slice %269 {offsets = [0, 241], sizes = [16, 15], strides = [1, 1]} : vector<16x256xbf16> to vector<16x15xbf16>
    %296 = vector.extract_strided_slice %269 {offsets = [0, 0], sizes = [16, 241], strides = [1, 1]} : vector<16x256xbf16> to vector<16x241xbf16>
    %297 = tpu.concatenate %295, %296 in 1 : vector<16x15xbf16>, vector<16x241xbf16> -> vector<16x256xbf16>
    %c15_i32_33 = arith.constant 15 : i32
    %298 = vector.broadcast %c15_i32_33 : i32 to vector<1x256xi32>
    %299 = arith.cmpi slt, %16, %298 : vector<1x256xi32>
    %300 = vector.shape_cast %299 : vector<1x256xi1> to vector<1x256xi1>
    %301 = vector.broadcast %300 : vector<1x256xi1> to vector<16x256xi1>
    %302 = arith.select %301, %294, %297 : vector<16x256xi1>, vector<16x256xbf16>
    %303 = vector.extract_strided_slice %269 {offsets = [0, 2], sizes = [16, 254], strides = [1, 1]} : vector<16x256xbf16> to vector<16x254xbf16>
    %304 = vector.extract_strided_slice %269 {offsets = [0, 0], sizes = [16, 2], strides = [1, 1]} : vector<16x256xbf16> to vector<16x2xbf16>
    %305 = tpu.concatenate %303, %304 in 1 : vector<16x254xbf16>, vector<16x2xbf16> -> vector<16x256xbf16>
    %306 = vector.extract_strided_slice %269 {offsets = [0, 242], sizes = [16, 14], strides = [1, 1]} : vector<16x256xbf16> to vector<16x14xbf16>
    %307 = vector.extract_strided_slice %269 {offsets = [0, 0], sizes = [16, 242], strides = [1, 1]} : vector<16x256xbf16> to vector<16x242xbf16>
    %308 = tpu.concatenate %306, %307 in 1 : vector<16x14xbf16>, vector<16x242xbf16> -> vector<16x256xbf16>
    %c14_i32_34 = arith.constant 14 : i32
    %309 = vector.broadcast %c14_i32_34 : i32 to vector<1x256xi32>
    %310 = arith.cmpi slt, %16, %309 : vector<1x256xi32>
    %311 = vector.shape_cast %310 : vector<1x256xi1> to vector<1x256xi1>
    %312 = vector.broadcast %311 : vector<1x256xi1> to vector<16x256xi1>
    %313 = arith.select %312, %305, %308 : vector<16x256xi1>, vector<16x256xbf16>
    %314 = vector.extract_strided_slice %280 {offsets = [0, 224], sizes = [16, 32], strides = [1, 1]} : vector<16x256xbf16> to vector<16x32xbf16>
    %315 = vector.extract_strided_slice %280 {offsets = [0, 0], sizes = [16, 224], strides = [1, 1]} : vector<16x256xbf16> to vector<16x224xbf16>
    %316 = tpu.concatenate %314, %315 in 1 : vector<16x32xbf16>, vector<16x224xbf16> -> vector<16x256xbf16>
    %317 = vector.extract_strided_slice %291 {offsets = [0, 224], sizes = [16, 32], strides = [1, 1]} : vector<16x256xbf16> to vector<16x32xbf16>
    %318 = vector.extract_strided_slice %291 {offsets = [0, 0], sizes = [16, 224], strides = [1, 1]} : vector<16x256xbf16> to vector<16x224xbf16>
    %319 = tpu.concatenate %317, %318 in 1 : vector<16x32xbf16>, vector<16x224xbf16> -> vector<16x256xbf16>
    %320 = vector.extract_strided_slice %269 {offsets = [0, 224], sizes = [16, 32], strides = [1, 1]} : vector<16x256xbf16> to vector<16x32xbf16>
    %321 = vector.extract_strided_slice %269 {offsets = [0, 0], sizes = [16, 224], strides = [1, 1]} : vector<16x256xbf16> to vector<16x224xbf16>
    %322 = tpu.concatenate %320, %321 in 1 : vector<16x32xbf16>, vector<16x224xbf16> -> vector<16x256xbf16>
    %323 = vector.extract_strided_slice %302 {offsets = [0, 224], sizes = [16, 32], strides = [1, 1]} : vector<16x256xbf16> to vector<16x32xbf16>
    %324 = vector.extract_strided_slice %302 {offsets = [0, 0], sizes = [16, 224], strides = [1, 1]} : vector<16x256xbf16> to vector<16x224xbf16>
    %325 = tpu.concatenate %323, %324 in 1 : vector<16x32xbf16>, vector<16x224xbf16> -> vector<16x256xbf16>
    %326 = vector.extract_strided_slice %313 {offsets = [0, 224], sizes = [16, 32], strides = [1, 1]} : vector<16x256xbf16> to vector<16x32xbf16>
    %327 = vector.extract_strided_slice %313 {offsets = [0, 0], sizes = [16, 224], strides = [1, 1]} : vector<16x256xbf16> to vector<16x224xbf16>
    %328 = tpu.concatenate %326, %327 in 1 : vector<16x32xbf16>, vector<16x224xbf16> -> vector<16x256xbf16>
    %329 = vector.extract_strided_slice %280 {offsets = [0, 240], sizes = [16, 16], strides = [1, 1]} : vector<16x256xbf16> to vector<16x16xbf16>
    %330 = vector.extract_strided_slice %280 {offsets = [0, 0], sizes = [16, 240], strides = [1, 1]} : vector<16x256xbf16> to vector<16x240xbf16>
    %331 = tpu.concatenate %329, %330 in 1 : vector<16x16xbf16>, vector<16x240xbf16> -> vector<16x256xbf16>
    %332 = vector.extract_strided_slice %291 {offsets = [0, 240], sizes = [16, 16], strides = [1, 1]} : vector<16x256xbf16> to vector<16x16xbf16>
    %333 = vector.extract_strided_slice %291 {offsets = [0, 0], sizes = [16, 240], strides = [1, 1]} : vector<16x256xbf16> to vector<16x240xbf16>
    %334 = tpu.concatenate %332, %333 in 1 : vector<16x16xbf16>, vector<16x240xbf16> -> vector<16x256xbf16>
    %335 = vector.extract_strided_slice %269 {offsets = [0, 240], sizes = [16, 16], strides = [1, 1]} : vector<16x256xbf16> to vector<16x16xbf16>
    %336 = vector.extract_strided_slice %269 {offsets = [0, 0], sizes = [16, 240], strides = [1, 1]} : vector<16x256xbf16> to vector<16x240xbf16>
    %337 = tpu.concatenate %335, %336 in 1 : vector<16x16xbf16>, vector<16x240xbf16> -> vector<16x256xbf16>
    %338 = vector.extract_strided_slice %302 {offsets = [0, 240], sizes = [16, 16], strides = [1, 1]} : vector<16x256xbf16> to vector<16x16xbf16>
    %339 = vector.extract_strided_slice %302 {offsets = [0, 0], sizes = [16, 240], strides = [1, 1]} : vector<16x256xbf16> to vector<16x240xbf16>
    %340 = tpu.concatenate %338, %339 in 1 : vector<16x16xbf16>, vector<16x240xbf16> -> vector<16x256xbf16>
    %341 = vector.extract_strided_slice %313 {offsets = [0, 240], sizes = [16, 16], strides = [1, 1]} : vector<16x256xbf16> to vector<16x16xbf16>
    %342 = vector.extract_strided_slice %313 {offsets = [0, 0], sizes = [16, 240], strides = [1, 1]} : vector<16x256xbf16> to vector<16x240xbf16>
    %343 = tpu.concatenate %341, %342 in 1 : vector<16x16xbf16>, vector<16x240xbf16> -> vector<16x256xbf16>
    %344 = vector.extract_strided_slice %280 {offsets = [0, 16], sizes = [16, 240], strides = [1, 1]} : vector<16x256xbf16> to vector<16x240xbf16>
    %345 = vector.extract_strided_slice %280 {offsets = [0, 0], sizes = [16, 16], strides = [1, 1]} : vector<16x256xbf16> to vector<16x16xbf16>
    %346 = tpu.concatenate %344, %345 in 1 : vector<16x240xbf16>, vector<16x16xbf16> -> vector<16x256xbf16>
    %347 = vector.extract_strided_slice %291 {offsets = [0, 16], sizes = [16, 240], strides = [1, 1]} : vector<16x256xbf16> to vector<16x240xbf16>
    %348 = vector.extract_strided_slice %291 {offsets = [0, 0], sizes = [16, 16], strides = [1, 1]} : vector<16x256xbf16> to vector<16x16xbf16>
    %349 = tpu.concatenate %347, %348 in 1 : vector<16x240xbf16>, vector<16x16xbf16> -> vector<16x256xbf16>
    %350 = vector.extract_strided_slice %269 {offsets = [0, 16], sizes = [16, 240], strides = [1, 1]} : vector<16x256xbf16> to vector<16x240xbf16>
    %351 = vector.extract_strided_slice %269 {offsets = [0, 0], sizes = [16, 16], strides = [1, 1]} : vector<16x256xbf16> to vector<16x16xbf16>
    %352 = tpu.concatenate %350, %351 in 1 : vector<16x240xbf16>, vector<16x16xbf16> -> vector<16x256xbf16>
    %353 = vector.extract_strided_slice %302 {offsets = [0, 16], sizes = [16, 240], strides = [1, 1]} : vector<16x256xbf16> to vector<16x240xbf16>
    %354 = vector.extract_strided_slice %302 {offsets = [0, 0], sizes = [16, 16], strides = [1, 1]} : vector<16x256xbf16> to vector<16x16xbf16>
    %355 = tpu.concatenate %353, %354 in 1 : vector<16x240xbf16>, vector<16x16xbf16> -> vector<16x256xbf16>
    %356 = vector.extract_strided_slice %313 {offsets = [0, 16], sizes = [16, 240], strides = [1, 1]} : vector<16x256xbf16> to vector<16x240xbf16>
    %357 = vector.extract_strided_slice %313 {offsets = [0, 0], sizes = [16, 16], strides = [1, 1]} : vector<16x256xbf16> to vector<16x16xbf16>
    %358 = tpu.concatenate %356, %357 in 1 : vector<16x240xbf16>, vector<16x16xbf16> -> vector<16x256xbf16>
    %359 = vector.extract_strided_slice %280 {offsets = [0, 32], sizes = [16, 224], strides = [1, 1]} : vector<16x256xbf16> to vector<16x224xbf16>
    %360 = vector.extract_strided_slice %280 {offsets = [0, 0], sizes = [16, 32], strides = [1, 1]} : vector<16x256xbf16> to vector<16x32xbf16>
    %361 = tpu.concatenate %359, %360 in 1 : vector<16x224xbf16>, vector<16x32xbf16> -> vector<16x256xbf16>
    %362 = vector.extract_strided_slice %291 {offsets = [0, 32], sizes = [16, 224], strides = [1, 1]} : vector<16x256xbf16> to vector<16x224xbf16>
    %363 = vector.extract_strided_slice %291 {offsets = [0, 0], sizes = [16, 32], strides = [1, 1]} : vector<16x256xbf16> to vector<16x32xbf16>
    %364 = tpu.concatenate %362, %363 in 1 : vector<16x224xbf16>, vector<16x32xbf16> -> vector<16x256xbf16>
    %365 = vector.extract_strided_slice %269 {offsets = [0, 32], sizes = [16, 224], strides = [1, 1]} : vector<16x256xbf16> to vector<16x224xbf16>
    %366 = vector.extract_strided_slice %269 {offsets = [0, 0], sizes = [16, 32], strides = [1, 1]} : vector<16x256xbf16> to vector<16x32xbf16>
    %367 = tpu.concatenate %365, %366 in 1 : vector<16x224xbf16>, vector<16x32xbf16> -> vector<16x256xbf16>
    %368 = vector.extract_strided_slice %302 {offsets = [0, 32], sizes = [16, 224], strides = [1, 1]} : vector<16x256xbf16> to vector<16x224xbf16>
    %369 = vector.extract_strided_slice %302 {offsets = [0, 0], sizes = [16, 32], strides = [1, 1]} : vector<16x256xbf16> to vector<16x32xbf16>
    %370 = tpu.concatenate %368, %369 in 1 : vector<16x224xbf16>, vector<16x32xbf16> -> vector<16x256xbf16>
    %371 = vector.extract_strided_slice %313 {offsets = [0, 32], sizes = [16, 224], strides = [1, 1]} : vector<16x256xbf16> to vector<16x224xbf16>
    %372 = vector.extract_strided_slice %313 {offsets = [0, 0], sizes = [16, 32], strides = [1, 1]} : vector<16x256xbf16> to vector<16x32xbf16>
    %373 = tpu.concatenate %371, %372 in 1 : vector<16x224xbf16>, vector<16x32xbf16> -> vector<16x256xbf16>
    %374 = tpu.concatenate %316, %319, %322, %325, %328, %331, %334, %337, %340, %343, %280, %291, %269, %302, %313, %346 in 0 : vector<16x256xbf16>, vector<16x256xbf16>, vector<16x256xbf16>, vector<16x256xbf16>, vector<16x256xbf16>, vector<16x256xbf16>, vector<16x256xbf16>, vector<16x256xbf16>, vector<16x256xbf16>, vector<16x256xbf16>, vector<16x256xbf16>, vector<16x256xbf16>, vector<16x256xbf16>, vector<16x256xbf16>, vector<16x256xbf16>, vector<16x256xbf16> -> vector<256x256xbf16>
    %375 = tpu.concatenate %349, %352, %355, %358, %361, %364, %367, %370, %373 in 0 : vector<16x256xbf16>, vector<16x256xbf16>, vector<16x256xbf16>, vector<16x256xbf16>, vector<16x256xbf16>, vector<16x256xbf16>, vector<16x256xbf16>, vector<16x256xbf16>, vector<16x256xbf16> -> vector<144x256xbf16>
    %376 = tpu.concatenate %374, %375 in 0 : vector<256x256xbf16>, vector<144x256xbf16> -> vector<400x256xbf16>
    %cst_35 = arith.constant dense<0.000000e+00> : vector<66x256xf32>
    %377 = tpu.matmul %17, %376, %cst_35 {dimension_numbers = #tpu.dot_dimension_numbers<[1], [0], [0], [1], [0, 0, 1, 1], [], []>} : vector<66x400xbf16>, vector<400x256xbf16>, vector<66x256xf32> -> vector<66x256xf32>
    %378 = vector.extract_strided_slice %377 {offsets = [0, 0], sizes = [64, 256], strides = [1, 1]} : vector<66x256xf32> to vector<64x256xf32>
    %379 = vector.extract_strided_slice %377 {offsets = [64, 0], sizes = [2, 256], strides = [1, 1]} : vector<66x256xf32> to vector<2x256xf32>
    %380 = vector.broadcast %251 : vector<2x1xf32> to vector<2x256xf32>
    %381 = arith.addf %379, %380 : vector<2x256xf32>
    %cst_36 = arith.constant 0.000000e+00 : f32
    %382 = vector.broadcast %cst_36 : f32 to vector<2x256xf32>
    %383 = vector.extract_strided_slice %249 {offsets = [0, 224], sizes = [2, 32], strides = [1, 1]} : vector<2x256xf32> to vector<2x32xf32>
    %384 = vector.extract_strided_slice %249 {offsets = [0, 0], sizes = [2, 224], strides = [1, 1]} : vector<2x256xf32> to vector<2x224xf32>
    %385 = tpu.concatenate %383, %384 in 1 : vector<2x32xf32>, vector<2x224xf32> -> vector<2x256xf32>
    %cst_37 = arith.constant -0.208333358 : f32
    %386 = vector.broadcast %cst_37 : f32 to vector<2x256xf32>
    %387 = arith.mulf %386, %385 : vector<2x256xf32>
    %388 = arith.addf %382, %387 : vector<2x256xf32>
    %389 = vector.extract_strided_slice %249 {offsets = [0, 240], sizes = [2, 16], strides = [1, 1]} : vector<2x256xf32> to vector<2x16xf32>
    %390 = vector.extract_strided_slice %249 {offsets = [0, 0], sizes = [2, 240], strides = [1, 1]} : vector<2x256xf32> to vector<2x240xf32>
    %391 = tpu.concatenate %389, %390 in 1 : vector<2x16xf32>, vector<2x240xf32> -> vector<2x256xf32>
    %cst_38 = arith.constant 3.33333373 : f32
    %392 = vector.broadcast %cst_38 : f32 to vector<2x256xf32>
    %393 = arith.mulf %392, %391 : vector<2x256xf32>
    %394 = arith.addf %388, %393 : vector<2x256xf32>
    %395 = vector.extract_strided_slice %249 {offsets = [0, 254], sizes = [2, 2], strides = [1, 1]} : vector<2x256xf32> to vector<2x2xf32>
    %396 = vector.extract_strided_slice %249 {offsets = [0, 0], sizes = [2, 254], strides = [1, 1]} : vector<2x256xf32> to vector<2x254xf32>
    %397 = tpu.concatenate %395, %396 in 1 : vector<2x2xf32>, vector<2x254xf32> -> vector<2x256xf32>
    %398 = vector.extract_strided_slice %249 {offsets = [0, 14], sizes = [2, 242], strides = [1, 1]} : vector<2x256xf32> to vector<2x242xf32>
    %399 = vector.extract_strided_slice %249 {offsets = [0, 0], sizes = [2, 14], strides = [1, 1]} : vector<2x256xf32> to vector<2x14xf32>
    %400 = tpu.concatenate %398, %399 in 1 : vector<2x242xf32>, vector<2x14xf32> -> vector<2x256xf32>
    %c2_i32_39 = arith.constant 2 : i32
    %401 = vector.broadcast %c2_i32_39 : i32 to vector<1x256xi32>
    %402 = arith.cmpi sge, %16, %401 : vector<1x256xi32>
    %403 = vector.shape_cast %402 : vector<1x256xi1> to vector<1x256xi1>
    %404 = vector.broadcast %403 : vector<1x256xi1> to vector<2x256xi1>
    %405 = arith.select %404, %397, %400 : vector<2x256xi1>, vector<2x256xf32>
    %cst_40 = arith.constant -0.208333358 : f32
    %406 = vector.broadcast %cst_40 : f32 to vector<2x256xf32>
    %407 = arith.mulf %406, %405 : vector<2x256xf32>
    %408 = arith.addf %394, %407 : vector<2x256xf32>
    %409 = vector.extract_strided_slice %249 {offsets = [0, 255], sizes = [2, 1], strides = [1, 1]} : vector<2x256xf32> to vector<2x1xf32>
    %410 = vector.extract_strided_slice %249 {offsets = [0, 0], sizes = [2, 255], strides = [1, 1]} : vector<2x256xf32> to vector<2x255xf32>
    %411 = tpu.concatenate %409, %410 in 1 : vector<2x1xf32>, vector<2x255xf32> -> vector<2x256xf32>
    %412 = vector.extract_strided_slice %249 {offsets = [0, 15], sizes = [2, 241], strides = [1, 1]} : vector<2x256xf32> to vector<2x241xf32>
    %413 = vector.extract_strided_slice %249 {offsets = [0, 0], sizes = [2, 15], strides = [1, 1]} : vector<2x256xf32> to vector<2x15xf32>
    %414 = tpu.concatenate %412, %413 in 1 : vector<2x241xf32>, vector<2x15xf32> -> vector<2x256xf32>
    %c1_i32_41 = arith.constant 1 : i32
    %415 = vector.broadcast %c1_i32_41 : i32 to vector<1x256xi32>
    %416 = arith.cmpi sge, %16, %415 : vector<1x256xi32>
    %417 = vector.shape_cast %416 : vector<1x256xi1> to vector<1x256xi1>
    %418 = vector.broadcast %417 : vector<1x256xi1> to vector<2x256xi1>
    %419 = arith.select %418, %411, %414 : vector<2x256xi1>, vector<2x256xf32>
    %cst_42 = arith.constant 3.33333373 : f32
    %420 = vector.broadcast %cst_42 : f32 to vector<2x256xf32>
    %421 = arith.mulf %420, %419 : vector<2x256xf32>
    %422 = arith.addf %408, %421 : vector<2x256xf32>
    %cst_43 = arith.constant -12.500001 : f32
    %423 = vector.broadcast %cst_43 : f32 to vector<2x256xf32>
    %424 = arith.mulf %423, %249 : vector<2x256xf32>
    %425 = arith.addf %422, %424 : vector<2x256xf32>
    %426 = vector.extract_strided_slice %249 {offsets = [0, 1], sizes = [2, 255], strides = [1, 1]} : vector<2x256xf32> to vector<2x255xf32>
    %427 = vector.extract_strided_slice %249 {offsets = [0, 0], sizes = [2, 1], strides = [1, 1]} : vector<2x256xf32> to vector<2x1xf32>
    %428 = tpu.concatenate %426, %427 in 1 : vector<2x255xf32>, vector<2x1xf32> -> vector<2x256xf32>
    %429 = vector.extract_strided_slice %249 {offsets = [0, 241], sizes = [2, 15], strides = [1, 1]} : vector<2x256xf32> to vector<2x15xf32>
    %430 = vector.extract_strided_slice %249 {offsets = [0, 0], sizes = [2, 241], strides = [1, 1]} : vector<2x256xf32> to vector<2x241xf32>
    %431 = tpu.concatenate %429, %430 in 1 : vector<2x15xf32>, vector<2x241xf32> -> vector<2x256xf32>
    %c15_i32_44 = arith.constant 15 : i32
    %432 = vector.broadcast %c15_i32_44 : i32 to vector<1x256xi32>
    %433 = arith.cmpi slt, %16, %432 : vector<1x256xi32>
    %434 = vector.shape_cast %433 : vector<1x256xi1> to vector<1x256xi1>
    %435 = vector.broadcast %434 : vector<1x256xi1> to vector<2x256xi1>
    %436 = arith.select %435, %428, %431 : vector<2x256xi1>, vector<2x256xf32>
    %cst_45 = arith.constant 3.33333373 : f32
    %437 = vector.broadcast %cst_45 : f32 to vector<2x256xf32>
    %438 = arith.mulf %437, %436 : vector<2x256xf32>
    %439 = arith.addf %425, %438 : vector<2x256xf32>
    %440 = vector.extract_strided_slice %249 {offsets = [0, 2], sizes = [2, 254], strides = [1, 1]} : vector<2x256xf32> to vector<2x254xf32>
    %441 = vector.extract_strided_slice %249 {offsets = [0, 0], sizes = [2, 2], strides = [1, 1]} : vector<2x256xf32> to vector<2x2xf32>
    %442 = tpu.concatenate %440, %441 in 1 : vector<2x254xf32>, vector<2x2xf32> -> vector<2x256xf32>
    %443 = vector.extract_strided_slice %249 {offsets = [0, 242], sizes = [2, 14], strides = [1, 1]} : vector<2x256xf32> to vector<2x14xf32>
    %444 = vector.extract_strided_slice %249 {offsets = [0, 0], sizes = [2, 242], strides = [1, 1]} : vector<2x256xf32> to vector<2x242xf32>
    %445 = tpu.concatenate %443, %444 in 1 : vector<2x14xf32>, vector<2x242xf32> -> vector<2x256xf32>
    %c14_i32_46 = arith.constant 14 : i32
    %446 = vector.broadcast %c14_i32_46 : i32 to vector<1x256xi32>
    %447 = arith.cmpi slt, %16, %446 : vector<1x256xi32>
    %448 = vector.shape_cast %447 : vector<1x256xi1> to vector<1x256xi1>
    %449 = vector.broadcast %448 : vector<1x256xi1> to vector<2x256xi1>
    %450 = arith.select %449, %442, %445 : vector<2x256xi1>, vector<2x256xf32>
    %cst_47 = arith.constant -0.208333358 : f32
    %451 = vector.broadcast %cst_47 : f32 to vector<2x256xf32>
    %452 = arith.mulf %451, %450 : vector<2x256xf32>
    %453 = arith.addf %439, %452 : vector<2x256xf32>
    %454 = vector.extract_strided_slice %249 {offsets = [0, 16], sizes = [2, 240], strides = [1, 1]} : vector<2x256xf32> to vector<2x240xf32>
    %455 = vector.extract_strided_slice %249 {offsets = [0, 0], sizes = [2, 16], strides = [1, 1]} : vector<2x256xf32> to vector<2x16xf32>
    %456 = tpu.concatenate %454, %455 in 1 : vector<2x240xf32>, vector<2x16xf32> -> vector<2x256xf32>
    %cst_48 = arith.constant 3.33333373 : f32
    %457 = vector.broadcast %cst_48 : f32 to vector<2x256xf32>
    %458 = arith.mulf %457, %456 : vector<2x256xf32>
    %459 = arith.addf %453, %458 : vector<2x256xf32>
    %460 = vector.extract_strided_slice %249 {offsets = [0, 32], sizes = [2, 224], strides = [1, 1]} : vector<2x256xf32> to vector<2x224xf32>
    %461 = vector.extract_strided_slice %249 {offsets = [0, 0], sizes = [2, 32], strides = [1, 1]} : vector<2x256xf32> to vector<2x32xf32>
    %462 = tpu.concatenate %460, %461 in 1 : vector<2x224xf32>, vector<2x32xf32> -> vector<2x256xf32>
    %cst_49 = arith.constant -0.208333358 : f32
    %463 = vector.broadcast %cst_49 : f32 to vector<2x256xf32>
    %464 = arith.mulf %463, %462 : vector<2x256xf32>
    %465 = arith.addf %459, %464 : vector<2x256xf32>
    %466 = vector.broadcast %250 : vector<2x1xf32> to vector<2x256xf32>
    %467 = arith.mulf %465, %466 : vector<2x256xf32>
    %468 = arith.addf %381, %467 : vector<2x256xf32>
    %c0_50 = arith.constant 0 : index
    %c0_51 = arith.constant 0 : index
    %c0_52 = arith.constant 0 : index
    %c0_53 = arith.constant 0 : index
    %469 = vector.load %arg10[%c0_50, %c0_51, %c0_52, %c0_53] : memref<3x1x2x256xf32, #tpu.memory_space<vmem>>, vector<1x1x2x256xf32>
    %470 = vector.shape_cast %469 : vector<1x1x2x256xf32> to vector<2x256xf32>
    %471 = vector.shape_cast %468 : vector<2x256xf32> to vector<1x1x2x256xf32>
    tpu.vector_store %arg10[%c0_50, %c0_51, %c0_52, %c0_53], %471 {strides = array<i32>} : memref<3x1x2x256xf32, #tpu.memory_space<vmem>>, vector<1x1x2x256xf32>,
    %472 = arith.addf %134, %378 : vector<64x256xf32>
    %473 = vector.extract_strided_slice %472 {offsets = [0, 0], sizes = [48, 256], strides = [1, 1]} : vector<64x256xf32> to vector<48x256xf32>
    %474 = arith.negf %473 : vector<48x256xf32>
    %475 = math.exp %474 : vector<48x256xf32>
    %cst_54 = arith.constant 1.000000e+00 : f32
    %476 = vector.broadcast %cst_54 : f32 to vector<48x256xf32>
    %477 = arith.addf %476, %475 : vector<48x256xf32>
    %478 = arith.divf %476, %477 : vector<48x256xf32>
    %479 = vector.extract_strided_slice %472 {offsets = [48, 0], sizes = [16, 256], strides = [1, 1]} : vector<64x256xf32> to vector<16x256xf32>
    %480 = math.tanh %479 : vector<16x256xf32>
    %481 = vector.extract_strided_slice %478 {offsets = [0, 0], sizes = [16, 256], strides = [1, 1]} : vector<48x256xf32> to vector<16x256xf32>
    %482 = vector.extract_strided_slice %478 {offsets = [16, 0], sizes = [16, 256], strides = [1, 1]} : vector<48x256xf32> to vector<16x256xf32>
    %483 = vector.extract_strided_slice %478 {offsets = [32, 0], sizes = [16, 256], strides = [1, 1]} : vector<48x256xf32> to vector<16x256xf32>
    %484 = arith.mulf %482, %266 : vector<16x256xf32>
    %485 = arith.mulf %481, %480 : vector<16x256xf32>
    %486 = arith.addf %484, %485 : vector<16x256xf32>
    %487 = math.tanh %486 : vector<16x256xf32>
    %488 = arith.mulf %483, %487 : vector<16x256xf32>
    %c0_55 = arith.constant 0 : index
    %c0_56 = arith.constant 0 : index
    %c0_57 = arith.constant 0 : index
    %489 = vector.load %arg11[%c0_55, %c0_56, %c0_57] : memref<1x16x256xf32, #tpu.memory_space<vmem>>, vector<1x16x256xf32>
    %490 = vector.shape_cast %489 : vector<1x16x256xf32> to vector<16x256xf32>
    %491 = vector.shape_cast %488 : vector<16x256xf32> to vector<1x16x256xf32>
    tpu.vector_store %arg11[%c0_55, %c0_56, %c0_57], %491 {strides = array<i32>} : memref<1x16x256xf32, #tpu.memory_space<vmem>>, vector<1x16x256xf32>,
    %c0_58 = arith.constant 0 : index
    %c0_59 = arith.constant 0 : index
    %c0_60 = arith.constant 0 : index
    %492 = vector.load %arg12[%c0_58, %c0_59, %c0_60] : memref<1x16x256xf32, #tpu.memory_space<vmem>>, vector<1x16x256xf32>
    %493 = vector.shape_cast %492 : vector<1x16x256xf32> to vector<16x256xf32>
    %494 = vector.shape_cast %486 : vector<16x256xf32> to vector<1x16x256xf32>
    tpu.vector_store %arg12[%c0_58, %c0_59, %c0_60], %494 {strides = array<i32>} : memref<1x16x256xf32, #tpu.memory_space<vmem>>, vector<1x16x256xf32>,
    %495 = arith.truncf %488 : vector<16x256xf32> to vector<16x256xbf16>
    %496 = vector.extract_strided_slice %495 {offsets = [0, 254], sizes = [16, 2], strides = [1, 1]} : vector<16x256xbf16> to vector<16x2xbf16>
    %497 = vector.extract_strided_slice %495 {offsets = [0, 0], sizes = [16, 254], strides = [1, 1]} : vector<16x256xbf16> to vector<16x254xbf16>
    %498 = tpu.concatenate %496, %497 in 1 : vector<16x2xbf16>, vector<16x254xbf16> -> vector<16x256xbf16>
    %499 = vector.extract_strided_slice %495 {offsets = [0, 14], sizes = [16, 242], strides = [1, 1]} : vector<16x256xbf16> to vector<16x242xbf16>
    %500 = vector.extract_strided_slice %495 {offsets = [0, 0], sizes = [16, 14], strides = [1, 1]} : vector<16x256xbf16> to vector<16x14xbf16>
    %501 = tpu.concatenate %499, %500 in 1 : vector<16x242xbf16>, vector<16x14xbf16> -> vector<16x256xbf16>
    %c2_i32_61 = arith.constant 2 : i32
    %502 = vector.broadcast %c2_i32_61 : i32 to vector<1x256xi32>
    %503 = arith.cmpi sge, %16, %502 : vector<1x256xi32>
    %504 = vector.shape_cast %503 : vector<1x256xi1> to vector<1x256xi1>
    %505 = vector.broadcast %504 : vector<1x256xi1> to vector<16x256xi1>
    %506 = arith.select %505, %498, %501 : vector<16x256xi1>, vector<16x256xbf16>
    %507 = vector.extract_strided_slice %495 {offsets = [0, 255], sizes = [16, 1], strides = [1, 1]} : vector<16x256xbf16> to vector<16x1xbf16>
    %508 = vector.extract_strided_slice %495 {offsets = [0, 0], sizes = [16, 255], strides = [1, 1]} : vector<16x256xbf16> to vector<16x255xbf16>
    %509 = tpu.concatenate %507, %508 in 1 : vector<16x1xbf16>, vector<16x255xbf16> -> vector<16x256xbf16>
    %510 = vector.extract_strided_slice %495 {offsets = [0, 15], sizes = [16, 241], strides = [1, 1]} : vector<16x256xbf16> to vector<16x241xbf16>
    %511 = vector.extract_strided_slice %495 {offsets = [0, 0], sizes = [16, 15], strides = [1, 1]} : vector<16x256xbf16> to vector<16x15xbf16>
    %512 = tpu.concatenate %510, %511 in 1 : vector<16x241xbf16>, vector<16x15xbf16> -> vector<16x256xbf16>
    %c1_i32_62 = arith.constant 1 : i32
    %513 = vector.broadcast %c1_i32_62 : i32 to vector<1x256xi32>
    %514 = arith.cmpi sge, %16, %513 : vector<1x256xi32>
    %515 = vector.shape_cast %514 : vector<1x256xi1> to vector<1x256xi1>
    %516 = vector.broadcast %515 : vector<1x256xi1> to vector<16x256xi1>
    %517 = arith.select %516, %509, %512 : vector<16x256xi1>, vector<16x256xbf16>
    %518 = vector.extract_strided_slice %495 {offsets = [0, 1], sizes = [16, 255], strides = [1, 1]} : vector<16x256xbf16> to vector<16x255xbf16>
    %519 = vector.extract_strided_slice %495 {offsets = [0, 0], sizes = [16, 1], strides = [1, 1]} : vector<16x256xbf16> to vector<16x1xbf16>
    %520 = tpu.concatenate %518, %519 in 1 : vector<16x255xbf16>, vector<16x1xbf16> -> vector<16x256xbf16>
    %521 = vector.extract_strided_slice %495 {offsets = [0, 241], sizes = [16, 15], strides = [1, 1]} : vector<16x256xbf16> to vector<16x15xbf16>
    %522 = vector.extract_strided_slice %495 {offsets = [0, 0], sizes = [16, 241], strides = [1, 1]} : vector<16x256xbf16> to vector<16x241xbf16>
    %523 = tpu.concatenate %521, %522 in 1 : vector<16x15xbf16>, vector<16x241xbf16> -> vector<16x256xbf16>
    %c15_i32_63 = arith.constant 15 : i32
    %524 = vector.broadcast %c15_i32_63 : i32 to vector<1x256xi32>
    %525 = arith.cmpi slt, %16, %524 : vector<1x256xi32>
    %526 = vector.shape_cast %525 : vector<1x256xi1> to vector<1x256xi1>
    %527 = vector.broadcast %526 : vector<1x256xi1> to vector<16x256xi1>
    %528 = arith.select %527, %520, %523 : vector<16x256xi1>, vector<16x256xbf16>
    %529 = vector.extract_strided_slice %495 {offsets = [0, 2], sizes = [16, 254], strides = [1, 1]} : vector<16x256xbf16> to vector<16x254xbf16>
    %530 = vector.extract_strided_slice %495 {offsets = [0, 0], sizes = [16, 2], strides = [1, 1]} : vector<16x256xbf16> to vector<16x2xbf16>
    %531 = tpu.concatenate %529, %530 in 1 : vector<16x254xbf16>, vector<16x2xbf16> -> vector<16x256xbf16>
    %532 = vector.extract_strided_slice %495 {offsets = [0, 242], sizes = [16, 14], strides = [1, 1]} : vector<16x256xbf16> to vector<16x14xbf16>
    %533 = vector.extract_strided_slice %495 {offsets = [0, 0], sizes = [16, 242], strides = [1, 1]} : vector<16x256xbf16> to vector<16x242xbf16>
    %534 = tpu.concatenate %532, %533 in 1 : vector<16x14xbf16>, vector<16x242xbf16> -> vector<16x256xbf16>
    %c14_i32_64 = arith.constant 14 : i32
    %535 = vector.broadcast %c14_i32_64 : i32 to vector<1x256xi32>
    %536 = arith.cmpi slt, %16, %535 : vector<1x256xi32>
    %537 = vector.shape_cast %536 : vector<1x256xi1> to vector<1x256xi1>
    %538 = vector.broadcast %537 : vector<1x256xi1> to vector<16x256xi1>
    %539 = arith.select %538, %531, %534 : vector<16x256xi1>, vector<16x256xbf16>
    %540 = vector.extract_strided_slice %506 {offsets = [0, 224], sizes = [16, 32], strides = [1, 1]} : vector<16x256xbf16> to vector<16x32xbf16>
    %541 = vector.extract_strided_slice %506 {offsets = [0, 0], sizes = [16, 224], strides = [1, 1]} : vector<16x256xbf16> to vector<16x224xbf16>
    %542 = tpu.concatenate %540, %541 in 1 : vector<16x32xbf16>, vector<16x224xbf16> -> vector<16x256xbf16>
    %543 = vector.extract_strided_slice %517 {offsets = [0, 224], sizes = [16, 32], strides = [1, 1]} : vector<16x256xbf16> to vector<16x32xbf16>
    %544 = vector.extract_strided_slice %517 {offsets = [0, 0], sizes = [16, 224], strides = [1, 1]} : vector<16x256xbf16> to vector<16x224xbf16>
    %545 = tpu.concatenate %543, %544 in 1 : vector<16x32xbf16>, vector<16x224xbf16> -> vector<16x256xbf16>
    %546 = vector.extract_strided_slice %495 {offsets = [0, 224], sizes = [16, 32], strides = [1, 1]} : vector<16x256xbf16> to vector<16x32xbf16>
    %547 = vector.extract_strided_slice %495 {offsets = [0, 0], sizes = [16, 224], strides = [1, 1]} : vector<16x256xbf16> to vector<16x224xbf16>
    %548 = tpu.concatenate %546, %547 in 1 : vector<16x32xbf16>, vector<16x224xbf16> -> vector<16x256xbf16>
    %549 = vector.extract_strided_slice %528 {offsets = [0, 224], sizes = [16, 32], strides = [1, 1]} : vector<16x256xbf16> to vector<16x32xbf16>
    %550 = vector.extract_strided_slice %528 {offsets = [0, 0], sizes = [16, 224], strides = [1, 1]} : vector<16x256xbf16> to vector<16x224xbf16>
    %551 = tpu.concatenate %549, %550 in 1 : vector<16x32xbf16>, vector<16x224xbf16> -> vector<16x256xbf16>
    %552 = vector.extract_strided_slice %539 {offsets = [0, 224], sizes = [16, 32], strides = [1, 1]} : vector<16x256xbf16> to vector<16x32xbf16>
    %553 = vector.extract_strided_slice %539 {offsets = [0, 0], sizes = [16, 224], strides = [1, 1]} : vector<16x256xbf16> to vector<16x224xbf16>
    %554 = tpu.concatenate %552, %553 in 1 : vector<16x32xbf16>, vector<16x224xbf16> -> vector<16x256xbf16>
    %555 = vector.extract_strided_slice %506 {offsets = [0, 240], sizes = [16, 16], strides = [1, 1]} : vector<16x256xbf16> to vector<16x16xbf16>
    %556 = vector.extract_strided_slice %506 {offsets = [0, 0], sizes = [16, 240], strides = [1, 1]} : vector<16x256xbf16> to vector<16x240xbf16>
    %557 = tpu.concatenate %555, %556 in 1 : vector<16x16xbf16>, vector<16x240xbf16> -> vector<16x256xbf16>
    %558 = vector.extract_strided_slice %517 {offsets = [0, 240], sizes = [16, 16], strides = [1, 1]} : vector<16x256xbf16> to vector<16x16xbf16>
    %559 = vector.extract_strided_slice %517 {offsets = [0, 0], sizes = [16, 240], strides = [1, 1]} : vector<16x256xbf16> to vector<16x240xbf16>
    %560 = tpu.concatenate %558, %559 in 1 : vector<16x16xbf16>, vector<16x240xbf16> -> vector<16x256xbf16>
    %561 = vector.extract_strided_slice %495 {offsets = [0, 240], sizes = [16, 16], strides = [1, 1]} : vector<16x256xbf16> to vector<16x16xbf16>
    %562 = vector.extract_strided_slice %495 {offsets = [0, 0], sizes = [16, 240], strides = [1, 1]} : vector<16x256xbf16> to vector<16x240xbf16>
    %563 = tpu.concatenate %561, %562 in 1 : vector<16x16xbf16>, vector<16x240xbf16> -> vector<16x256xbf16>
    %564 = vector.extract_strided_slice %528 {offsets = [0, 240], sizes = [16, 16], strides = [1, 1]} : vector<16x256xbf16> to vector<16x16xbf16>
    %565 = vector.extract_strided_slice %528 {offsets = [0, 0], sizes = [16, 240], strides = [1, 1]} : vector<16x256xbf16> to vector<16x240xbf16>
    %566 = tpu.concatenate %564, %565 in 1 : vector<16x16xbf16>, vector<16x240xbf16> -> vector<16x256xbf16>
    %567 = vector.extract_strided_slice %539 {offsets = [0, 240], sizes = [16, 16], strides = [1, 1]} : vector<16x256xbf16> to vector<16x16xbf16>
    %568 = vector.extract_strided_slice %539 {offsets = [0, 0], sizes = [16, 240], strides = [1, 1]} : vector<16x256xbf16> to vector<16x240xbf16>
    %569 = tpu.concatenate %567, %568 in 1 : vector<16x16xbf16>, vector<16x240xbf16> -> vector<16x256xbf16>
    %570 = vector.extract_strided_slice %506 {offsets = [0, 16], sizes = [16, 240], strides = [1, 1]} : vector<16x256xbf16> to vector<16x240xbf16>
    %571 = vector.extract_strided_slice %506 {offsets = [0, 0], sizes = [16, 16], strides = [1, 1]} : vector<16x256xbf16> to vector<16x16xbf16>
    %572 = tpu.concatenate %570, %571 in 1 : vector<16x240xbf16>, vector<16x16xbf16> -> vector<16x256xbf16>
    %573 = vector.extract_strided_slice %517 {offsets = [0, 16], sizes = [16, 240], strides = [1, 1]} : vector<16x256xbf16> to vector<16x240xbf16>
    %574 = vector.extract_strided_slice %517 {offsets = [0, 0], sizes = [16, 16], strides = [1, 1]} : vector<16x256xbf16> to vector<16x16xbf16>
    %575 = tpu.concatenate %573, %574 in 1 : vector<16x240xbf16>, vector<16x16xbf16> -> vector<16x256xbf16>
    %576 = vector.extract_strided_slice %495 {offsets = [0, 16], sizes = [16, 240], strides = [1, 1]} : vector<16x256xbf16> to vector<16x240xbf16>
    %577 = vector.extract_strided_slice %495 {offsets = [0, 0], sizes = [16, 16], strides = [1, 1]} : vector<16x256xbf16> to vector<16x16xbf16>
    %578 = tpu.concatenate %576, %577 in 1 : vector<16x240xbf16>, vector<16x16xbf16> -> vector<16x256xbf16>
    %579 = vector.extract_strided_slice %528 {offsets = [0, 16], sizes = [16, 240], strides = [1, 1]} : vector<16x256xbf16> to vector<16x240xbf16>
    %580 = vector.extract_strided_slice %528 {offsets = [0, 0], sizes = [16, 16], strides = [1, 1]} : vector<16x256xbf16> to vector<16x16xbf16>
    %581 = tpu.concatenate %579, %580 in 1 : vector<16x240xbf16>, vector<16x16xbf16> -> vector<16x256xbf16>
    %582 = vector.extract_strided_slice %539 {offsets = [0, 16], sizes = [16, 240], strides = [1, 1]} : vector<16x256xbf16> to vector<16x240xbf16>
    %583 = vector.extract_strided_slice %539 {offsets = [0, 0], sizes = [16, 16], strides = [1, 1]} : vector<16x256xbf16> to vector<16x16xbf16>
    %584 = tpu.concatenate %582, %583 in 1 : vector<16x240xbf16>, vector<16x16xbf16> -> vector<16x256xbf16>
    %585 = vector.extract_strided_slice %506 {offsets = [0, 32], sizes = [16, 224], strides = [1, 1]} : vector<16x256xbf16> to vector<16x224xbf16>
    %586 = vector.extract_strided_slice %506 {offsets = [0, 0], sizes = [16, 32], strides = [1, 1]} : vector<16x256xbf16> to vector<16x32xbf16>
    %587 = tpu.concatenate %585, %586 in 1 : vector<16x224xbf16>, vector<16x32xbf16> -> vector<16x256xbf16>
    %588 = vector.extract_strided_slice %517 {offsets = [0, 32], sizes = [16, 224], strides = [1, 1]} : vector<16x256xbf16> to vector<16x224xbf16>
    %589 = vector.extract_strided_slice %517 {offsets = [0, 0], sizes = [16, 32], strides = [1, 1]} : vector<16x256xbf16> to vector<16x32xbf16>
    %590 = tpu.concatenate %588, %589 in 1 : vector<16x224xbf16>, vector<16x32xbf16> -> vector<16x256xbf16>
    %591 = vector.extract_strided_slice %495 {offsets = [0, 32], sizes = [16, 224], strides = [1, 1]} : vector<16x256xbf16> to vector<16x224xbf16>
    %592 = vector.extract_strided_slice %495 {offsets = [0, 0], sizes = [16, 32], strides = [1, 1]} : vector<16x256xbf16> to vector<16x32xbf16>
    %593 = tpu.concatenate %591, %592 in 1 : vector<16x224xbf16>, vector<16x32xbf16> -> vector<16x256xbf16>
    %594 = vector.extract_strided_slice %528 {offsets = [0, 32], sizes = [16, 224], strides = [1, 1]} : vector<16x256xbf16> to vector<16x224xbf16>
    %595 = vector.extract_strided_slice %528 {offsets = [0, 0], sizes = [16, 32], strides = [1, 1]} : vector<16x256xbf16> to vector<16x32xbf16>
    %596 = tpu.concatenate %594, %595 in 1 : vector<16x224xbf16>, vector<16x32xbf16> -> vector<16x256xbf16>
    %597 = vector.extract_strided_slice %539 {offsets = [0, 32], sizes = [16, 224], strides = [1, 1]} : vector<16x256xbf16> to vector<16x224xbf16>
    %598 = vector.extract_strided_slice %539 {offsets = [0, 0], sizes = [16, 32], strides = [1, 1]} : vector<16x256xbf16> to vector<16x32xbf16>
    %599 = tpu.concatenate %597, %598 in 1 : vector<16x224xbf16>, vector<16x32xbf16> -> vector<16x256xbf16>
    %600 = tpu.concatenate %542, %545, %548, %551, %554, %557, %560, %563, %566, %569, %506, %517, %495, %528, %539, %572 in 0 : vector<16x256xbf16>, vector<16x256xbf16>, vector<16x256xbf16>, vector<16x256xbf16>, vector<16x256xbf16>, vector<16x256xbf16>, vector<16x256xbf16>, vector<16x256xbf16>, vector<16x256xbf16>, vector<16x256xbf16>, vector<16x256xbf16>, vector<16x256xbf16>, vector<16x256xbf16>, vector<16x256xbf16>, vector<16x256xbf16>, vector<16x256xbf16> -> vector<256x256xbf16>
    %601 = tpu.concatenate %575, %578, %581, %584, %587, %590, %593, %596, %599 in 0 : vector<16x256xbf16>, vector<16x256xbf16>, vector<16x256xbf16>, vector<16x256xbf16>, vector<16x256xbf16>, vector<16x256xbf16>, vector<16x256xbf16>, vector<16x256xbf16>, vector<16x256xbf16> -> vector<144x256xbf16>
    %602 = tpu.concatenate %600, %601 in 0 : vector<256x256xbf16>, vector<144x256xbf16> -> vector<400x256xbf16>
    %cst_65 = arith.constant dense<0.000000e+00> : vector<66x256xf32>
    %603 = tpu.matmul %17, %602, %cst_65 {dimension_numbers = #tpu.dot_dimension_numbers<[1], [0], [0], [1], [0, 0, 1, 1], [], []>} : vector<66x400xbf16>, vector<400x256xbf16>, vector<66x256xf32> -> vector<66x256xf32>
    %604 = vector.extract_strided_slice %603 {offsets = [0, 0], sizes = [64, 256], strides = [1, 1]} : vector<66x256xf32> to vector<64x256xf32>
    %605 = vector.extract_strided_slice %603 {offsets = [64, 0], sizes = [2, 256], strides = [1, 1]} : vector<66x256xf32> to vector<2x256xf32>
    %606 = vector.broadcast %251 : vector<2x1xf32> to vector<2x256xf32>
    %607 = arith.addf %605, %606 : vector<2x256xf32>
    %cst_66 = arith.constant 0.000000e+00 : f32
    %608 = vector.broadcast %cst_66 : f32 to vector<2x256xf32>
    %609 = vector.extract_strided_slice %468 {offsets = [0, 224], sizes = [2, 32], strides = [1, 1]} : vector<2x256xf32> to vector<2x32xf32>
    %610 = vector.extract_strided_slice %468 {offsets = [0, 0], sizes = [2, 224], strides = [1, 1]} : vector<2x256xf32> to vector<2x224xf32>
    %611 = tpu.concatenate %609, %610 in 1 : vector<2x32xf32>, vector<2x224xf32> -> vector<2x256xf32>
    %cst_67 = arith.constant -0.208333358 : f32
    %612 = vector.broadcast %cst_67 : f32 to vector<2x256xf32>
    %613 = arith.mulf %612, %611 : vector<2x256xf32>
    %614 = arith.addf %608, %613 : vector<2x256xf32>
    %615 = vector.extract_strided_slice %468 {offsets = [0, 240], sizes = [2, 16], strides = [1, 1]} : vector<2x256xf32> to vector<2x16xf32>
    %616 = vector.extract_strided_slice %468 {offsets = [0, 0], sizes = [2, 240], strides = [1, 1]} : vector<2x256xf32> to vector<2x240xf32>
    %617 = tpu.concatenate %615, %616 in 1 : vector<2x16xf32>, vector<2x240xf32> -> vector<2x256xf32>
    %cst_68 = arith.constant 3.33333373 : f32
    %618 = vector.broadcast %cst_68 : f32 to vector<2x256xf32>
    %619 = arith.mulf %618, %617 : vector<2x256xf32>
    %620 = arith.addf %614, %619 : vector<2x256xf32>
    %621 = vector.extract_strided_slice %468 {offsets = [0, 254], sizes = [2, 2], strides = [1, 1]} : vector<2x256xf32> to vector<2x2xf32>
    %622 = vector.extract_strided_slice %468 {offsets = [0, 0], sizes = [2, 254], strides = [1, 1]} : vector<2x256xf32> to vector<2x254xf32>
    %623 = tpu.concatenate %621, %622 in 1 : vector<2x2xf32>, vector<2x254xf32> -> vector<2x256xf32>
    %624 = vector.extract_strided_slice %468 {offsets = [0, 14], sizes = [2, 242], strides = [1, 1]} : vector<2x256xf32> to vector<2x242xf32>
    %625 = vector.extract_strided_slice %468 {offsets = [0, 0], sizes = [2, 14], strides = [1, 1]} : vector<2x256xf32> to vector<2x14xf32>
    %626 = tpu.concatenate %624, %625 in 1 : vector<2x242xf32>, vector<2x14xf32> -> vector<2x256xf32>
    %c2_i32_69 = arith.constant 2 : i32
    %627 = vector.broadcast %c2_i32_69 : i32 to vector<1x256xi32>
    %628 = arith.cmpi sge, %16, %627 : vector<1x256xi32>
    %629 = vector.shape_cast %628 : vector<1x256xi1> to vector<1x256xi1>
    %630 = vector.broadcast %629 : vector<1x256xi1> to vector<2x256xi1>
    %631 = arith.select %630, %623, %626 : vector<2x256xi1>, vector<2x256xf32>
    %cst_70 = arith.constant -0.208333358 : f32
    %632 = vector.broadcast %cst_70 : f32 to vector<2x256xf32>
    %633 = arith.mulf %632, %631 : vector<2x256xf32>
    %634 = arith.addf %620, %633 : vector<2x256xf32>
    %635 = vector.extract_strided_slice %468 {offsets = [0, 255], sizes = [2, 1], strides = [1, 1]} : vector<2x256xf32> to vector<2x1xf32>
    %636 = vector.extract_strided_slice %468 {offsets = [0, 0], sizes = [2, 255], strides = [1, 1]} : vector<2x256xf32> to vector<2x255xf32>
    %637 = tpu.concatenate %635, %636 in 1 : vector<2x1xf32>, vector<2x255xf32> -> vector<2x256xf32>
    %638 = vector.extract_strided_slice %468 {offsets = [0, 15], sizes = [2, 241], strides = [1, 1]} : vector<2x256xf32> to vector<2x241xf32>
    %639 = vector.extract_strided_slice %468 {offsets = [0, 0], sizes = [2, 15], strides = [1, 1]} : vector<2x256xf32> to vector<2x15xf32>
    %640 = tpu.concatenate %638, %639 in 1 : vector<2x241xf32>, vector<2x15xf32> -> vector<2x256xf32>
    %c1_i32_71 = arith.constant 1 : i32
    %641 = vector.broadcast %c1_i32_71 : i32 to vector<1x256xi32>
    %642 = arith.cmpi sge, %16, %641 : vector<1x256xi32>
    %643 = vector.shape_cast %642 : vector<1x256xi1> to vector<1x256xi1>
    %644 = vector.broadcast %643 : vector<1x256xi1> to vector<2x256xi1>
    %645 = arith.select %644, %637, %640 : vector<2x256xi1>, vector<2x256xf32>
    %cst_72 = arith.constant 3.33333373 : f32
    %646 = vector.broadcast %cst_72 : f32 to vector<2x256xf32>
    %647 = arith.mulf %646, %645 : vector<2x256xf32>
    %648 = arith.addf %634, %647 : vector<2x256xf32>
    %cst_73 = arith.constant -12.500001 : f32
    %649 = vector.broadcast %cst_73 : f32 to vector<2x256xf32>
    %650 = arith.mulf %649, %468 : vector<2x256xf32>
    %651 = arith.addf %648, %650 : vector<2x256xf32>
    %652 = vector.extract_strided_slice %468 {offsets = [0, 1], sizes = [2, 255], strides = [1, 1]} : vector<2x256xf32> to vector<2x255xf32>
    %653 = vector.extract_strided_slice %468 {offsets = [0, 0], sizes = [2, 1], strides = [1, 1]} : vector<2x256xf32> to vector<2x1xf32>
    %654 = tpu.concatenate %652, %653 in 1 : vector<2x255xf32>, vector<2x1xf32> -> vector<2x256xf32>
    %655 = vector.extract_strided_slice %468 {offsets = [0, 241], sizes = [2, 15], strides = [1, 1]} : vector<2x256xf32> to vector<2x15xf32>
    %656 = vector.extract_strided_slice %468 {offsets = [0, 0], sizes = [2, 241], strides = [1, 1]} : vector<2x256xf32> to vector<2x241xf32>
    %657 = tpu.concatenate %655, %656 in 1 : vector<2x15xf32>, vector<2x241xf32> -> vector<2x256xf32>
    %c15_i32_74 = arith.constant 15 : i32
    %658 = vector.broadcast %c15_i32_74 : i32 to vector<1x256xi32>
    %659 = arith.cmpi slt, %16, %658 : vector<1x256xi32>
    %660 = vector.shape_cast %659 : vector<1x256xi1> to vector<1x256xi1>
    %661 = vector.broadcast %660 : vector<1x256xi1> to vector<2x256xi1>
    %662 = arith.select %661, %654, %657 : vector<2x256xi1>, vector<2x256xf32>
    %cst_75 = arith.constant 3.33333373 : f32
    %663 = vector.broadcast %cst_75 : f32 to vector<2x256xf32>
    %664 = arith.mulf %663, %662 : vector<2x256xf32>
    %665 = arith.addf %651, %664 : vector<2x256xf32>
    %666 = vector.extract_strided_slice %468 {offsets = [0, 2], sizes = [2, 254], strides = [1, 1]} : vector<2x256xf32> to vector<2x254xf32>
    %667 = vector.extract_strided_slice %468 {offsets = [0, 0], sizes = [2, 2], strides = [1, 1]} : vector<2x256xf32> to vector<2x2xf32>
    %668 = tpu.concatenate %666, %667 in 1 : vector<2x254xf32>, vector<2x2xf32> -> vector<2x256xf32>
    %669 = vector.extract_strided_slice %468 {offsets = [0, 242], sizes = [2, 14], strides = [1, 1]} : vector<2x256xf32> to vector<2x14xf32>
    %670 = vector.extract_strided_slice %468 {offsets = [0, 0], sizes = [2, 242], strides = [1, 1]} : vector<2x256xf32> to vector<2x242xf32>
    %671 = tpu.concatenate %669, %670 in 1 : vector<2x14xf32>, vector<2x242xf32> -> vector<2x256xf32>
    %c14_i32_76 = arith.constant 14 : i32
    %672 = vector.broadcast %c14_i32_76 : i32 to vector<1x256xi32>
    %673 = arith.cmpi slt, %16, %672 : vector<1x256xi32>
    %674 = vector.shape_cast %673 : vector<1x256xi1> to vector<1x256xi1>
    %675 = vector.broadcast %674 : vector<1x256xi1> to vector<2x256xi1>
    %676 = arith.select %675, %668, %671 : vector<2x256xi1>, vector<2x256xf32>
    %cst_77 = arith.constant -0.208333358 : f32
    %677 = vector.broadcast %cst_77 : f32 to vector<2x256xf32>
    %678 = arith.mulf %677, %676 : vector<2x256xf32>
    %679 = arith.addf %665, %678 : vector<2x256xf32>
    %680 = vector.extract_strided_slice %468 {offsets = [0, 16], sizes = [2, 240], strides = [1, 1]} : vector<2x256xf32> to vector<2x240xf32>
    %681 = vector.extract_strided_slice %468 {offsets = [0, 0], sizes = [2, 16], strides = [1, 1]} : vector<2x256xf32> to vector<2x16xf32>
    %682 = tpu.concatenate %680, %681 in 1 : vector<2x240xf32>, vector<2x16xf32> -> vector<2x256xf32>
    %cst_78 = arith.constant 3.33333373 : f32
    %683 = vector.broadcast %cst_78 : f32 to vector<2x256xf32>
    %684 = arith.mulf %683, %682 : vector<2x256xf32>
    %685 = arith.addf %679, %684 : vector<2x256xf32>
    %686 = vector.extract_strided_slice %468 {offsets = [0, 32], sizes = [2, 224], strides = [1, 1]} : vector<2x256xf32> to vector<2x224xf32>
    %687 = vector.extract_strided_slice %468 {offsets = [0, 0], sizes = [2, 32], strides = [1, 1]} : vector<2x256xf32> to vector<2x32xf32>
    %688 = tpu.concatenate %686, %687 in 1 : vector<2x224xf32>, vector<2x32xf32> -> vector<2x256xf32>
    %cst_79 = arith.constant -0.208333358 : f32
    %689 = vector.broadcast %cst_79 : f32 to vector<2x256xf32>
    %690 = arith.mulf %689, %688 : vector<2x256xf32>
    %691 = arith.addf %685, %690 : vector<2x256xf32>
    %692 = vector.broadcast %250 : vector<2x1xf32> to vector<2x256xf32>
    %693 = arith.mulf %691, %692 : vector<2x256xf32>
    %694 = arith.addf %607, %693 : vector<2x256xf32>
    %c1 = arith.constant 1 : index
    %c0_80 = arith.constant 0 : index
    %c0_81 = arith.constant 0 : index
    %c0_82 = arith.constant 0 : index
    %695 = vector.load %arg10[%c1, %c0_80, %c0_81, %c0_82] : memref<3x1x2x256xf32, #tpu.memory_space<vmem>>, vector<1x1x2x256xf32>
    %696 = vector.shape_cast %695 : vector<1x1x2x256xf32> to vector<2x256xf32>
    %697 = vector.shape_cast %694 : vector<2x256xf32> to vector<1x1x2x256xf32>
    tpu.vector_store %arg10[%c1, %c0_80, %c0_81, %c0_82], %697 {strides = array<i32>} : memref<3x1x2x256xf32, #tpu.memory_space<vmem>>, vector<1x1x2x256xf32>,
    %698 = arith.addf %134, %604 : vector<64x256xf32>
    %699 = vector.extract_strided_slice %698 {offsets = [0, 0], sizes = [48, 256], strides = [1, 1]} : vector<64x256xf32> to vector<48x256xf32>
    %700 = arith.negf %699 : vector<48x256xf32>
    %701 = math.exp %700 : vector<48x256xf32>
    %cst_83 = arith.constant 1.000000e+00 : f32
    %702 = vector.broadcast %cst_83 : f32 to vector<48x256xf32>
    %703 = arith.addf %702, %701 : vector<48x256xf32>
    %704 = arith.divf %702, %703 : vector<48x256xf32>
    %705 = vector.extract_strided_slice %698 {offsets = [48, 0], sizes = [16, 256], strides = [1, 1]} : vector<64x256xf32> to vector<16x256xf32>
    %706 = math.tanh %705 : vector<16x256xf32>
    %707 = vector.extract_strided_slice %704 {offsets = [0, 0], sizes = [16, 256], strides = [1, 1]} : vector<48x256xf32> to vector<16x256xf32>
    %708 = vector.extract_strided_slice %704 {offsets = [16, 0], sizes = [16, 256], strides = [1, 1]} : vector<48x256xf32> to vector<16x256xf32>
    %709 = vector.extract_strided_slice %704 {offsets = [32, 0], sizes = [16, 256], strides = [1, 1]} : vector<48x256xf32> to vector<16x256xf32>
    %710 = arith.mulf %708, %486 : vector<16x256xf32>
    %711 = arith.mulf %707, %706 : vector<16x256xf32>
    %712 = arith.addf %710, %711 : vector<16x256xf32>
    %713 = math.tanh %712 : vector<16x256xf32>
    %714 = arith.mulf %709, %713 : vector<16x256xf32>
    %715 = arith.truncf %714 : vector<16x256xf32> to vector<16x256xbf16>
    %716 = vector.extract_strided_slice %715 {offsets = [0, 254], sizes = [16, 2], strides = [1, 1]} : vector<16x256xbf16> to vector<16x2xbf16>
    %717 = vector.extract_strided_slice %715 {offsets = [0, 0], sizes = [16, 254], strides = [1, 1]} : vector<16x256xbf16> to vector<16x254xbf16>
    %718 = tpu.concatenate %716, %717 in 1 : vector<16x2xbf16>, vector<16x254xbf16> -> vector<16x256xbf16>
    %719 = vector.extract_strided_slice %715 {offsets = [0, 14], sizes = [16, 242], strides = [1, 1]} : vector<16x256xbf16> to vector<16x242xbf16>
    %720 = vector.extract_strided_slice %715 {offsets = [0, 0], sizes = [16, 14], strides = [1, 1]} : vector<16x256xbf16> to vector<16x14xbf16>
    %721 = tpu.concatenate %719, %720 in 1 : vector<16x242xbf16>, vector<16x14xbf16> -> vector<16x256xbf16>
    %c2_i32_84 = arith.constant 2 : i32
    %722 = vector.broadcast %c2_i32_84 : i32 to vector<1x256xi32>
    %723 = arith.cmpi sge, %16, %722 : vector<1x256xi32>
    %724 = vector.shape_cast %723 : vector<1x256xi1> to vector<1x256xi1>
    %725 = vector.broadcast %724 : vector<1x256xi1> to vector<16x256xi1>
    %726 = arith.select %725, %718, %721 : vector<16x256xi1>, vector<16x256xbf16>
    %727 = vector.extract_strided_slice %715 {offsets = [0, 255], sizes = [16, 1], strides = [1, 1]} : vector<16x256xbf16> to vector<16x1xbf16>
    %728 = vector.extract_strided_slice %715 {offsets = [0, 0], sizes = [16, 255], strides = [1, 1]} : vector<16x256xbf16> to vector<16x255xbf16>
    %729 = tpu.concatenate %727, %728 in 1 : vector<16x1xbf16>, vector<16x255xbf16> -> vector<16x256xbf16>
    %730 = vector.extract_strided_slice %715 {offsets = [0, 15], sizes = [16, 241], strides = [1, 1]} : vector<16x256xbf16> to vector<16x241xbf16>
    %731 = vector.extract_strided_slice %715 {offsets = [0, 0], sizes = [16, 15], strides = [1, 1]} : vector<16x256xbf16> to vector<16x15xbf16>
    %732 = tpu.concatenate %730, %731 in 1 : vector<16x241xbf16>, vector<16x15xbf16> -> vector<16x256xbf16>
    %c1_i32_85 = arith.constant 1 : i32
    %733 = vector.broadcast %c1_i32_85 : i32 to vector<1x256xi32>
    %734 = arith.cmpi sge, %16, %733 : vector<1x256xi32>
    %735 = vector.shape_cast %734 : vector<1x256xi1> to vector<1x256xi1>
    %736 = vector.broadcast %735 : vector<1x256xi1> to vector<16x256xi1>
    %737 = arith.select %736, %729, %732 : vector<16x256xi1>, vector<16x256xbf16>
    %738 = vector.extract_strided_slice %715 {offsets = [0, 1], sizes = [16, 255], strides = [1, 1]} : vector<16x256xbf16> to vector<16x255xbf16>
    %739 = vector.extract_strided_slice %715 {offsets = [0, 0], sizes = [16, 1], strides = [1, 1]} : vector<16x256xbf16> to vector<16x1xbf16>
    %740 = tpu.concatenate %738, %739 in 1 : vector<16x255xbf16>, vector<16x1xbf16> -> vector<16x256xbf16>
    %741 = vector.extract_strided_slice %715 {offsets = [0, 241], sizes = [16, 15], strides = [1, 1]} : vector<16x256xbf16> to vector<16x15xbf16>
    %742 = vector.extract_strided_slice %715 {offsets = [0, 0], sizes = [16, 241], strides = [1, 1]} : vector<16x256xbf16> to vector<16x241xbf16>
    %743 = tpu.concatenate %741, %742 in 1 : vector<16x15xbf16>, vector<16x241xbf16> -> vector<16x256xbf16>
    %c15_i32_86 = arith.constant 15 : i32
    %744 = vector.broadcast %c15_i32_86 : i32 to vector<1x256xi32>
    %745 = arith.cmpi slt, %16, %744 : vector<1x256xi32>
    %746 = vector.shape_cast %745 : vector<1x256xi1> to vector<1x256xi1>
    %747 = vector.broadcast %746 : vector<1x256xi1> to vector<16x256xi1>
    %748 = arith.select %747, %740, %743 : vector<16x256xi1>, vector<16x256xbf16>
    %749 = vector.extract_strided_slice %715 {offsets = [0, 2], sizes = [16, 254], strides = [1, 1]} : vector<16x256xbf16> to vector<16x254xbf16>
    %750 = vector.extract_strided_slice %715 {offsets = [0, 0], sizes = [16, 2], strides = [1, 1]} : vector<16x256xbf16> to vector<16x2xbf16>
    %751 = tpu.concatenate %749, %750 in 1 : vector<16x254xbf16>, vector<16x2xbf16> -> vector<16x256xbf16>
    %752 = vector.extract_strided_slice %715 {offsets = [0, 242], sizes = [16, 14], strides = [1, 1]} : vector<16x256xbf16> to vector<16x14xbf16>
    %753 = vector.extract_strided_slice %715 {offsets = [0, 0], sizes = [16, 242], strides = [1, 1]} : vector<16x256xbf16> to vector<16x242xbf16>
    %754 = tpu.concatenate %752, %753 in 1 : vector<16x14xbf16>, vector<16x242xbf16> -> vector<16x256xbf16>
    %c14_i32_87 = arith.constant 14 : i32
    %755 = vector.broadcast %c14_i32_87 : i32 to vector<1x256xi32>
    %756 = arith.cmpi slt, %16, %755 : vector<1x256xi32>
    %757 = vector.shape_cast %756 : vector<1x256xi1> to vector<1x256xi1>
    %758 = vector.broadcast %757 : vector<1x256xi1> to vector<16x256xi1>
    %759 = arith.select %758, %751, %754 : vector<16x256xi1>, vector<16x256xbf16>
    %760 = vector.extract_strided_slice %726 {offsets = [0, 224], sizes = [16, 32], strides = [1, 1]} : vector<16x256xbf16> to vector<16x32xbf16>
    %761 = vector.extract_strided_slice %726 {offsets = [0, 0], sizes = [16, 224], strides = [1, 1]} : vector<16x256xbf16> to vector<16x224xbf16>
    %762 = tpu.concatenate %760, %761 in 1 : vector<16x32xbf16>, vector<16x224xbf16> -> vector<16x256xbf16>
    %763 = vector.extract_strided_slice %737 {offsets = [0, 224], sizes = [16, 32], strides = [1, 1]} : vector<16x256xbf16> to vector<16x32xbf16>
    %764 = vector.extract_strided_slice %737 {offsets = [0, 0], sizes = [16, 224], strides = [1, 1]} : vector<16x256xbf16> to vector<16x224xbf16>
    %765 = tpu.concatenate %763, %764 in 1 : vector<16x32xbf16>, vector<16x224xbf16> -> vector<16x256xbf16>
    %766 = vector.extract_strided_slice %715 {offsets = [0, 224], sizes = [16, 32], strides = [1, 1]} : vector<16x256xbf16> to vector<16x32xbf16>
    %767 = vector.extract_strided_slice %715 {offsets = [0, 0], sizes = [16, 224], strides = [1, 1]} : vector<16x256xbf16> to vector<16x224xbf16>
    %768 = tpu.concatenate %766, %767 in 1 : vector<16x32xbf16>, vector<16x224xbf16> -> vector<16x256xbf16>
    %769 = vector.extract_strided_slice %748 {offsets = [0, 224], sizes = [16, 32], strides = [1, 1]} : vector<16x256xbf16> to vector<16x32xbf16>
    %770 = vector.extract_strided_slice %748 {offsets = [0, 0], sizes = [16, 224], strides = [1, 1]} : vector<16x256xbf16> to vector<16x224xbf16>
    %771 = tpu.concatenate %769, %770 in 1 : vector<16x32xbf16>, vector<16x224xbf16> -> vector<16x256xbf16>
    %772 = vector.extract_strided_slice %759 {offsets = [0, 224], sizes = [16, 32], strides = [1, 1]} : vector<16x256xbf16> to vector<16x32xbf16>
    %773 = vector.extract_strided_slice %759 {offsets = [0, 0], sizes = [16, 224], strides = [1, 1]} : vector<16x256xbf16> to vector<16x224xbf16>
    %774 = tpu.concatenate %772, %773 in 1 : vector<16x32xbf16>, vector<16x224xbf16> -> vector<16x256xbf16>
    %775 = vector.extract_strided_slice %726 {offsets = [0, 240], sizes = [16, 16], strides = [1, 1]} : vector<16x256xbf16> to vector<16x16xbf16>
    %776 = vector.extract_strided_slice %726 {offsets = [0, 0], sizes = [16, 240], strides = [1, 1]} : vector<16x256xbf16> to vector<16x240xbf16>
    %777 = tpu.concatenate %775, %776 in 1 : vector<16x16xbf16>, vector<16x240xbf16> -> vector<16x256xbf16>
    %778 = vector.extract_strided_slice %737 {offsets = [0, 240], sizes = [16, 16], strides = [1, 1]} : vector<16x256xbf16> to vector<16x16xbf16>
    %779 = vector.extract_strided_slice %737 {offsets = [0, 0], sizes = [16, 240], strides = [1, 1]} : vector<16x256xbf16> to vector<16x240xbf16>
    %780 = tpu.concatenate %778, %779 in 1 : vector<16x16xbf16>, vector<16x240xbf16> -> vector<16x256xbf16>
    %781 = vector.extract_strided_slice %715 {offsets = [0, 240], sizes = [16, 16], strides = [1, 1]} : vector<16x256xbf16> to vector<16x16xbf16>
    %782 = vector.extract_strided_slice %715 {offsets = [0, 0], sizes = [16, 240], strides = [1, 1]} : vector<16x256xbf16> to vector<16x240xbf16>
    %783 = tpu.concatenate %781, %782 in 1 : vector<16x16xbf16>, vector<16x240xbf16> -> vector<16x256xbf16>
    %784 = vector.extract_strided_slice %748 {offsets = [0, 240], sizes = [16, 16], strides = [1, 1]} : vector<16x256xbf16> to vector<16x16xbf16>
    %785 = vector.extract_strided_slice %748 {offsets = [0, 0], sizes = [16, 240], strides = [1, 1]} : vector<16x256xbf16> to vector<16x240xbf16>
    %786 = tpu.concatenate %784, %785 in 1 : vector<16x16xbf16>, vector<16x240xbf16> -> vector<16x256xbf16>
    %787 = vector.extract_strided_slice %759 {offsets = [0, 240], sizes = [16, 16], strides = [1, 1]} : vector<16x256xbf16> to vector<16x16xbf16>
    %788 = vector.extract_strided_slice %759 {offsets = [0, 0], sizes = [16, 240], strides = [1, 1]} : vector<16x256xbf16> to vector<16x240xbf16>
    %789 = tpu.concatenate %787, %788 in 1 : vector<16x16xbf16>, vector<16x240xbf16> -> vector<16x256xbf16>
    %790 = vector.extract_strided_slice %726 {offsets = [0, 16], sizes = [16, 240], strides = [1, 1]} : vector<16x256xbf16> to vector<16x240xbf16>
    %791 = vector.extract_strided_slice %726 {offsets = [0, 0], sizes = [16, 16], strides = [1, 1]} : vector<16x256xbf16> to vector<16x16xbf16>
    %792 = tpu.concatenate %790, %791 in 1 : vector<16x240xbf16>, vector<16x16xbf16> -> vector<16x256xbf16>
    %793 = vector.extract_strided_slice %737 {offsets = [0, 16], sizes = [16, 240], strides = [1, 1]} : vector<16x256xbf16> to vector<16x240xbf16>
    %794 = vector.extract_strided_slice %737 {offsets = [0, 0], sizes = [16, 16], strides = [1, 1]} : vector<16x256xbf16> to vector<16x16xbf16>
    %795 = tpu.concatenate %793, %794 in 1 : vector<16x240xbf16>, vector<16x16xbf16> -> vector<16x256xbf16>
    %796 = vector.extract_strided_slice %715 {offsets = [0, 16], sizes = [16, 240], strides = [1, 1]} : vector<16x256xbf16> to vector<16x240xbf16>
    %797 = vector.extract_strided_slice %715 {offsets = [0, 0], sizes = [16, 16], strides = [1, 1]} : vector<16x256xbf16> to vector<16x16xbf16>
    %798 = tpu.concatenate %796, %797 in 1 : vector<16x240xbf16>, vector<16x16xbf16> -> vector<16x256xbf16>
    %799 = vector.extract_strided_slice %748 {offsets = [0, 16], sizes = [16, 240], strides = [1, 1]} : vector<16x256xbf16> to vector<16x240xbf16>
    %800 = vector.extract_strided_slice %748 {offsets = [0, 0], sizes = [16, 16], strides = [1, 1]} : vector<16x256xbf16> to vector<16x16xbf16>
    %801 = tpu.concatenate %799, %800 in 1 : vector<16x240xbf16>, vector<16x16xbf16> -> vector<16x256xbf16>
    %802 = vector.extract_strided_slice %759 {offsets = [0, 16], sizes = [16, 240], strides = [1, 1]} : vector<16x256xbf16> to vector<16x240xbf16>
    %803 = vector.extract_strided_slice %759 {offsets = [0, 0], sizes = [16, 16], strides = [1, 1]} : vector<16x256xbf16> to vector<16x16xbf16>
    %804 = tpu.concatenate %802, %803 in 1 : vector<16x240xbf16>, vector<16x16xbf16> -> vector<16x256xbf16>
    %805 = vector.extract_strided_slice %726 {offsets = [0, 32], sizes = [16, 224], strides = [1, 1]} : vector<16x256xbf16> to vector<16x224xbf16>
    %806 = vector.extract_strided_slice %726 {offsets = [0, 0], sizes = [16, 32], strides = [1, 1]} : vector<16x256xbf16> to vector<16x32xbf16>
    %807 = tpu.concatenate %805, %806 in 1 : vector<16x224xbf16>, vector<16x32xbf16> -> vector<16x256xbf16>
    %808 = vector.extract_strided_slice %737 {offsets = [0, 32], sizes = [16, 224], strides = [1, 1]} : vector<16x256xbf16> to vector<16x224xbf16>
    %809 = vector.extract_strided_slice %737 {offsets = [0, 0], sizes = [16, 32], strides = [1, 1]} : vector<16x256xbf16> to vector<16x32xbf16>
    %810 = tpu.concatenate %808, %809 in 1 : vector<16x224xbf16>, vector<16x32xbf16> -> vector<16x256xbf16>
    %811 = vector.extract_strided_slice %715 {offsets = [0, 32], sizes = [16, 224], strides = [1, 1]} : vector<16x256xbf16> to vector<16x224xbf16>
    %812 = vector.extract_strided_slice %715 {offsets = [0, 0], sizes = [16, 32], strides = [1, 1]} : vector<16x256xbf16> to vector<16x32xbf16>
    %813 = tpu.concatenate %811, %812 in 1 : vector<16x224xbf16>, vector<16x32xbf16> -> vector<16x256xbf16>
    %814 = vector.extract_strided_slice %748 {offsets = [0, 32], sizes = [16, 224], strides = [1, 1]} : vector<16x256xbf16> to vector<16x224xbf16>
    %815 = vector.extract_strided_slice %748 {offsets = [0, 0], sizes = [16, 32], strides = [1, 1]} : vector<16x256xbf16> to vector<16x32xbf16>
    %816 = tpu.concatenate %814, %815 in 1 : vector<16x224xbf16>, vector<16x32xbf16> -> vector<16x256xbf16>
    %817 = vector.extract_strided_slice %759 {offsets = [0, 32], sizes = [16, 224], strides = [1, 1]} : vector<16x256xbf16> to vector<16x224xbf16>
    %818 = vector.extract_strided_slice %759 {offsets = [0, 0], sizes = [16, 32], strides = [1, 1]} : vector<16x256xbf16> to vector<16x32xbf16>
    %819 = tpu.concatenate %817, %818 in 1 : vector<16x224xbf16>, vector<16x32xbf16> -> vector<16x256xbf16>
    %820 = tpu.concatenate %762, %765, %768, %771, %774, %777, %780, %783, %786, %789, %726, %737, %715, %748, %759, %792 in 0 : vector<16x256xbf16>, vector<16x256xbf16>, vector<16x256xbf16>, vector<16x256xbf16>, vector<16x256xbf16>, vector<16x256xbf16>, vector<16x256xbf16>, vector<16x256xbf16>, vector<16x256xbf16>, vector<16x256xbf16>, vector<16x256xbf16>, vector<16x256xbf16>, vector<16x256xbf16>, vector<16x256xbf16>, vector<16x256xbf16>, vector<16x256xbf16> -> vector<256x256xbf16>
    %821 = tpu.concatenate %795, %798, %801, %804, %807, %810, %813, %816, %819 in 0 : vector<16x256xbf16>, vector<16x256xbf16>, vector<16x256xbf16>, vector<16x256xbf16>, vector<16x256xbf16>, vector<16x256xbf16>, vector<16x256xbf16>, vector<16x256xbf16>, vector<16x256xbf16> -> vector<144x256xbf16>
    %822 = tpu.concatenate %820, %821 in 0 : vector<256x256xbf16>, vector<144x256xbf16> -> vector<400x256xbf16>
    %cst_88 = arith.constant dense<0.000000e+00> : vector<2x256xf32>
    %823 = tpu.matmul %19, %822, %cst_88 {dimension_numbers = #tpu.dot_dimension_numbers<[1], [0], [0], [1], [0, 0, 1, 1], [], []>} : vector<2x400xbf16>, vector<400x256xbf16>, vector<2x256xf32> -> vector<2x256xf32>
    %824 = vector.broadcast %251 : vector<2x1xf32> to vector<2x256xf32>
    %825 = arith.addf %823, %824 : vector<2x256xf32>
    %cst_89 = arith.constant 0.000000e+00 : f32
    %826 = vector.broadcast %cst_89 : f32 to vector<2x256xf32>
    %827 = vector.extract_strided_slice %694 {offsets = [0, 224], sizes = [2, 32], strides = [1, 1]} : vector<2x256xf32> to vector<2x32xf32>
    %828 = vector.extract_strided_slice %694 {offsets = [0, 0], sizes = [2, 224], strides = [1, 1]} : vector<2x256xf32> to vector<2x224xf32>
    %829 = tpu.concatenate %827, %828 in 1 : vector<2x32xf32>, vector<2x224xf32> -> vector<2x256xf32>
    %cst_90 = arith.constant -0.208333358 : f32
    %830 = vector.broadcast %cst_90 : f32 to vector<2x256xf32>
    %831 = arith.mulf %830, %829 : vector<2x256xf32>
    %832 = arith.addf %826, %831 : vector<2x256xf32>
    %833 = vector.extract_strided_slice %694 {offsets = [0, 240], sizes = [2, 16], strides = [1, 1]} : vector<2x256xf32> to vector<2x16xf32>
    %834 = vector.extract_strided_slice %694 {offsets = [0, 0], sizes = [2, 240], strides = [1, 1]} : vector<2x256xf32> to vector<2x240xf32>
    %835 = tpu.concatenate %833, %834 in 1 : vector<2x16xf32>, vector<2x240xf32> -> vector<2x256xf32>
    %cst_91 = arith.constant 3.33333373 : f32
    %836 = vector.broadcast %cst_91 : f32 to vector<2x256xf32>
    %837 = arith.mulf %836, %835 : vector<2x256xf32>
    %838 = arith.addf %832, %837 : vector<2x256xf32>
    %839 = vector.extract_strided_slice %694 {offsets = [0, 254], sizes = [2, 2], strides = [1, 1]} : vector<2x256xf32> to vector<2x2xf32>
    %840 = vector.extract_strided_slice %694 {offsets = [0, 0], sizes = [2, 254], strides = [1, 1]} : vector<2x256xf32> to vector<2x254xf32>
    %841 = tpu.concatenate %839, %840 in 1 : vector<2x2xf32>, vector<2x254xf32> -> vector<2x256xf32>
    %842 = vector.extract_strided_slice %694 {offsets = [0, 14], sizes = [2, 242], strides = [1, 1]} : vector<2x256xf32> to vector<2x242xf32>
    %843 = vector.extract_strided_slice %694 {offsets = [0, 0], sizes = [2, 14], strides = [1, 1]} : vector<2x256xf32> to vector<2x14xf32>
    %844 = tpu.concatenate %842, %843 in 1 : vector<2x242xf32>, vector<2x14xf32> -> vector<2x256xf32>
    %c2_i32_92 = arith.constant 2 : i32
    %845 = vector.broadcast %c2_i32_92 : i32 to vector<1x256xi32>
    %846 = arith.cmpi sge, %16, %845 : vector<1x256xi32>
    %847 = vector.shape_cast %846 : vector<1x256xi1> to vector<1x256xi1>
    %848 = vector.broadcast %847 : vector<1x256xi1> to vector<2x256xi1>
    %849 = arith.select %848, %841, %844 : vector<2x256xi1>, vector<2x256xf32>
    %cst_93 = arith.constant -0.208333358 : f32
    %850 = vector.broadcast %cst_93 : f32 to vector<2x256xf32>
    %851 = arith.mulf %850, %849 : vector<2x256xf32>
    %852 = arith.addf %838, %851 : vector<2x256xf32>
    %853 = vector.extract_strided_slice %694 {offsets = [0, 255], sizes = [2, 1], strides = [1, 1]} : vector<2x256xf32> to vector<2x1xf32>
    %854 = vector.extract_strided_slice %694 {offsets = [0, 0], sizes = [2, 255], strides = [1, 1]} : vector<2x256xf32> to vector<2x255xf32>
    %855 = tpu.concatenate %853, %854 in 1 : vector<2x1xf32>, vector<2x255xf32> -> vector<2x256xf32>
    %856 = vector.extract_strided_slice %694 {offsets = [0, 15], sizes = [2, 241], strides = [1, 1]} : vector<2x256xf32> to vector<2x241xf32>
    %857 = vector.extract_strided_slice %694 {offsets = [0, 0], sizes = [2, 15], strides = [1, 1]} : vector<2x256xf32> to vector<2x15xf32>
    %858 = tpu.concatenate %856, %857 in 1 : vector<2x241xf32>, vector<2x15xf32> -> vector<2x256xf32>
    %c1_i32_94 = arith.constant 1 : i32
    %859 = vector.broadcast %c1_i32_94 : i32 to vector<1x256xi32>
    %860 = arith.cmpi sge, %16, %859 : vector<1x256xi32>
    %861 = vector.shape_cast %860 : vector<1x256xi1> to vector<1x256xi1>
    %862 = vector.broadcast %861 : vector<1x256xi1> to vector<2x256xi1>
    %863 = arith.select %862, %855, %858 : vector<2x256xi1>, vector<2x256xf32>
    %cst_95 = arith.constant 3.33333373 : f32
    %864 = vector.broadcast %cst_95 : f32 to vector<2x256xf32>
    %865 = arith.mulf %864, %863 : vector<2x256xf32>
    %866 = arith.addf %852, %865 : vector<2x256xf32>
    %cst_96 = arith.constant -12.500001 : f32
    %867 = vector.broadcast %cst_96 : f32 to vector<2x256xf32>
    %868 = arith.mulf %867, %694 : vector<2x256xf32>
    %869 = arith.addf %866, %868 : vector<2x256xf32>
    %870 = vector.extract_strided_slice %694 {offsets = [0, 1], sizes = [2, 255], strides = [1, 1]} : vector<2x256xf32> to vector<2x255xf32>
    %871 = vector.extract_strided_slice %694 {offsets = [0, 0], sizes = [2, 1], strides = [1, 1]} : vector<2x256xf32> to vector<2x1xf32>
    %872 = tpu.concatenate %870, %871 in 1 : vector<2x255xf32>, vector<2x1xf32> -> vector<2x256xf32>
    %873 = vector.extract_strided_slice %694 {offsets = [0, 241], sizes = [2, 15], strides = [1, 1]} : vector<2x256xf32> to vector<2x15xf32>
    %874 = vector.extract_strided_slice %694 {offsets = [0, 0], sizes = [2, 241], strides = [1, 1]} : vector<2x256xf32> to vector<2x241xf32>
    %875 = tpu.concatenate %873, %874 in 1 : vector<2x15xf32>, vector<2x241xf32> -> vector<2x256xf32>
    %c15_i32_97 = arith.constant 15 : i32
    %876 = vector.broadcast %c15_i32_97 : i32 to vector<1x256xi32>
    %877 = arith.cmpi slt, %16, %876 : vector<1x256xi32>
    %878 = vector.shape_cast %877 : vector<1x256xi1> to vector<1x256xi1>
    %879 = vector.broadcast %878 : vector<1x256xi1> to vector<2x256xi1>
    %880 = arith.select %879, %872, %875 : vector<2x256xi1>, vector<2x256xf32>
    %cst_98 = arith.constant 3.33333373 : f32
    %881 = vector.broadcast %cst_98 : f32 to vector<2x256xf32>
    %882 = arith.mulf %881, %880 : vector<2x256xf32>
    %883 = arith.addf %869, %882 : vector<2x256xf32>
    %884 = vector.extract_strided_slice %694 {offsets = [0, 2], sizes = [2, 254], strides = [1, 1]} : vector<2x256xf32> to vector<2x254xf32>
    %885 = vector.extract_strided_slice %694 {offsets = [0, 0], sizes = [2, 2], strides = [1, 1]} : vector<2x256xf32> to vector<2x2xf32>
    %886 = tpu.concatenate %884, %885 in 1 : vector<2x254xf32>, vector<2x2xf32> -> vector<2x256xf32>
    %887 = vector.extract_strided_slice %694 {offsets = [0, 242], sizes = [2, 14], strides = [1, 1]} : vector<2x256xf32> to vector<2x14xf32>
    %888 = vector.extract_strided_slice %694 {offsets = [0, 0], sizes = [2, 242], strides = [1, 1]} : vector<2x256xf32> to vector<2x242xf32>
    %889 = tpu.concatenate %887, %888 in 1 : vector<2x14xf32>, vector<2x242xf32> -> vector<2x256xf32>
    %c14_i32_99 = arith.constant 14 : i32
    %890 = vector.broadcast %c14_i32_99 : i32 to vector<1x256xi32>
    %891 = arith.cmpi slt, %16, %890 : vector<1x256xi32>
    %892 = vector.shape_cast %891 : vector<1x256xi1> to vector<1x256xi1>
    %893 = vector.broadcast %892 : vector<1x256xi1> to vector<2x256xi1>
    %894 = arith.select %893, %886, %889 : vector<2x256xi1>, vector<2x256xf32>
    %cst_100 = arith.constant -0.208333358 : f32
    %895 = vector.broadcast %cst_100 : f32 to vector<2x256xf32>
    %896 = arith.mulf %895, %894 : vector<2x256xf32>
    %897 = arith.addf %883, %896 : vector<2x256xf32>
    %898 = vector.extract_strided_slice %694 {offsets = [0, 16], sizes = [2, 240], strides = [1, 1]} : vector<2x256xf32> to vector<2x240xf32>
    %899 = vector.extract_strided_slice %694 {offsets = [0, 0], sizes = [2, 16], strides = [1, 1]} : vector<2x256xf32> to vector<2x16xf32>
    %900 = tpu.concatenate %898, %899 in 1 : vector<2x240xf32>, vector<2x16xf32> -> vector<2x256xf32>
    %cst_101 = arith.constant 3.33333373 : f32
    %901 = vector.broadcast %cst_101 : f32 to vector<2x256xf32>
    %902 = arith.mulf %901, %900 : vector<2x256xf32>
    %903 = arith.addf %897, %902 : vector<2x256xf32>
    %904 = vector.extract_strided_slice %694 {offsets = [0, 32], sizes = [2, 224], strides = [1, 1]} : vector<2x256xf32> to vector<2x224xf32>
    %905 = vector.extract_strided_slice %694 {offsets = [0, 0], sizes = [2, 32], strides = [1, 1]} : vector<2x256xf32> to vector<2x32xf32>
    %906 = tpu.concatenate %904, %905 in 1 : vector<2x224xf32>, vector<2x32xf32> -> vector<2x256xf32>
    %cst_102 = arith.constant -0.208333358 : f32
    %907 = vector.broadcast %cst_102 : f32 to vector<2x256xf32>
    %908 = arith.mulf %907, %906 : vector<2x256xf32>
    %909 = arith.addf %903, %908 : vector<2x256xf32>
    %910 = vector.broadcast %250 : vector<2x1xf32> to vector<2x256xf32>
    %911 = arith.mulf %909, %910 : vector<2x256xf32>
    %912 = arith.addf %825, %911 : vector<2x256xf32>
    %c2 = arith.constant 2 : index
    %c0_103 = arith.constant 0 : index
    %c0_104 = arith.constant 0 : index
    %c0_105 = arith.constant 0 : index
    %913 = vector.load %arg10[%c2, %c0_103, %c0_104, %c0_105] : memref<3x1x2x256xf32, #tpu.memory_space<vmem>>, vector<1x1x2x256xf32>
    %914 = vector.shape_cast %913 : vector<1x1x2x256xf32> to vector<2x256xf32>
    %915 = vector.shape_cast %912 : vector<2x256xf32> to vector<1x1x2x256xf32>
    tpu.vector_store %arg10[%c2, %c0_103, %c0_104, %c0_105], %915 {strides = array<i32>} : memref<3x1x2x256xf32, #tpu.memory_space<vmem>>, vector<1x1x2x256xf32>,
    return
  }
  func.func @transform_0(%arg0: i32) -> (i32, i32, i32) {
    %c0_i32 = arith.constant 0 : i32
    %c0_i32_0 = arith.constant 0 : i32
    %c0_i32_1 = arith.constant 0 : i32
    return %arg0, %c0_i32, %c0_i32_0 : i32, i32, i32
  }
  func.func @transform_1(%arg0: i32) -> (i32, i32, i32) {
    %c0_i32 = arith.constant 0 : i32
    %c0_i32_0 = arith.constant 0 : i32
    %c0_i32_1 = arith.constant 0 : i32
    return %arg0, %c0_i32, %c0_i32_0 : i32, i32, i32
  }
  func.func @transform_2(%arg0: i32) -> (i32, i32, i32) {
    %c0_i32 = arith.constant 0 : i32
    %c0_i32_0 = arith.constant 0 : i32
    %c0_i32_1 = arith.constant 0 : i32
    return %arg0, %c0_i32, %c0_i32_0 : i32, i32, i32
  }
  func.func @transform_3(%arg0: i32) -> (i32, i32, i32) {
    %c0_i32 = arith.constant 0 : i32
    %c0_i32_0 = arith.constant 0 : i32
    %c0_i32_1 = arith.constant 0 : i32
    return %arg0, %c0_i32, %c0_i32_0 : i32, i32, i32
  }
  func.func @transform_4(%arg0: i32) -> (i32, i32) {
    %c0_i32 = arith.constant 0 : i32
    %c0_i32_0 = arith.constant 0 : i32
    %c0_i32_1 = arith.constant 0 : i32
    return %c0_i32, %c0_i32_0 : i32, i32
  }
  func.func @transform_5(%arg0: i32) -> (i32, i32) {
    %c0_i32 = arith.constant 0 : i32
    %c0_i32_0 = arith.constant 0 : i32
    %c0_i32_1 = arith.constant 0 : i32
    return %c0_i32, %c0_i32_0 : i32, i32
  }
  func.func @transform_6(%arg0: i32) -> (i32, i32) {
    %c0_i32 = arith.constant 0 : i32
    %c0_i32_0 = arith.constant 0 : i32
    %c0_i32_1 = arith.constant 0 : i32
    return %c0_i32, %c0_i32_0 : i32, i32
  }
  func.func @transform_7(%arg0: i32) -> (i32, i32) {
    %c0_i32 = arith.constant 0 : i32
    %c0_i32_0 = arith.constant 0 : i32
    %c0_i32_1 = arith.constant 0 : i32
    return %c0_i32, %c0_i32_0 : i32, i32
  }
  func.func @transform_8(%arg0: i32) -> (i32, i32) {
    %c0_i32 = arith.constant 0 : i32
    %c0_i32_0 = arith.constant 0 : i32
    %c0_i32_1 = arith.constant 0 : i32
    return %c0_i32, %c0_i32_0 : i32, i32
  }
  func.func @transform_9(%arg0: i32) -> (i32, i32, i32, i32) {
    %c0_i32 = arith.constant 0 : i32
    %c0_i32_0 = arith.constant 0 : i32
    %c0_i32_1 = arith.constant 0 : i32
    %c0_i32_2 = arith.constant 0 : i32
    return %c0_i32, %arg0, %c0_i32_0, %c0_i32_1 : i32, i32, i32, i32
  }
  func.func @transform_10(%arg0: i32) -> (i32, i32, i32) {
    %c0_i32 = arith.constant 0 : i32
    %c0_i32_0 = arith.constant 0 : i32
    %c0_i32_1 = arith.constant 0 : i32
    return %arg0, %c0_i32, %c0_i32_0 : i32, i32, i32
  }
  func.func @transform_11(%arg0: i32) -> (i32, i32, i32) {
    %c0_i32 = arith.constant 0 : i32
    %c0_i32_0 = arith.constant 0 : i32
    %c0_i32_1 = arith.constant 0 : i32
    return %arg0, %c0_i32, %c0_i32_0 : i32, i32, i32
  }
}

</mosaic_0001>

<bundles_post_ra>
// kernel: tpu_custom_call.1
= control target key start
LH: loop header
LB: loop body
LE: loop exit
PB: predicated region body
PF: predicated region fallthrough
CT: control target
= control target key end

     0   :  { %s7454_s0 = inlined_call_operand.hbm [shape: f32[2,2,256], index: 0, kind: input, shape index: {}]   ;;  %s7455_s1 = inlined_call_operand.hbm [shape: f32[2,16,256], index: 1, kind: input, shape index: {}]   ;;  %s7456_s2 = inlined_call_operand.hbm [shape: f32[2,16,256], index: 2, kind: input, shape index: {}]   ;;  %s7457_s3 = inlined_call_operand.hbm [shape: f32[2,2,256], index: 3, kind: input, shape index: {}]   ;;  %s7458_s4 = inlined_call_operand.vmem [shape: bf16[64,50], index: 4, kind: input, shape index: {}]   ;;  %s7459_s5 = inlined_call_operand.vmem [shape: bf16[66,400], index: 5, kind: input, shape index: {}]   ;;  %s7460_s6 = inlined_call_operand.vmem [shape: f32[64,1], index: 6, kind: input, shape index: {}]   ;;  %s7461_s7 = inlined_call_operand.vmem [shape: f32[2,1], index: 7, kind: input, shape index: {}]   ;;  %s7462_s8 = inlined_call_operand.vmem [shape: f32[2,1], index: 8, kind: input, shape index: {}]   ;;  %s7463_s9 = inlined_call_operand.hbm [shape: f32[3,2,2,256], index: 9, kind: output, shape index: {0}]   ;;  %s7464_s10 = inlined_call_operand.hbm [shape: f32[2,16,256], index: 10, kind: output, shape index: {1}]   ;;  %s7465_s11 = inlined_call_operand.hbm [shape: f32[2,16,256], index: 11, kind: output, shape index: {2}]  }
   0x1   :  { %7541 = sst [smem:[#allocation31_spill]] %s7455_s1 }
   0x2   :  { %7542 = sst [smem:[#allocation32_spill]] %s7463_s9 }
   0x3   :  { %7543 = sst [smem:[#allocation33_spill]] %s7464_s10 }
   0x4   :  { %7544 = sst [smem:[#allocation34_spill]] %s7465_s11 }
   0x5   :  { %17 = vsyncpa [#allocation3], 0 }
   0x6   :  { %19 = vsyncpa [#allocation3 + $0x1], 0 }
   0x7   :  { %20 = vsyncpa [#allocation6], 0 }
   0x8   :  { %22 = vsyncpa [#allocation6 + $0x1], 0 }
   0x9   :  { %23 = vsyncpa [#allocation9], 0 }
   0xa   :  { %25 = vsyncpa [#allocation9 + $0x1], 0 }
   0xb   :  { %26 = vsyncpa [#allocation4], 0 }
   0xc   :  { %28 = vsyncpa [#allocation4 + $0x1], 0 }
   0xd   :  { %29 = vsyncpa [#allocation12], 0 }
   0xe   :  { %31 = vsyncpa [#allocation12 + $0x1], 0  ;;  %s5132_s17 = smov 0   ;;  %s5134_s18 = smov 0  }
   0xf   :  { %s5136_s19 = smov 0   ;;  %s5138_s20 = smov 0  }
  0x10 LB: > { %7545 = sst [smem:[#allocation19_spill]] %s5031_s17  ;;  %s5153_s21 = sadd.s32 4294967295, %s5043_s20   ;;  %s5043_s20 = sphi %s5138_s20, %s7888_s20   ;;  %s5039_s19 = sphi %s5136_s19, %s7890_s19   ;;  %s5035_s18 = sphi %s5134_s18, %s7892_s18   ;;  %s5031_s17 = sphi %s5132_s17, %s7891_s17  }
  0x11   : > { %7546 = sst [smem:[#allocation20_spill]] %s5039_s19  ;;  %s7466_s22 = sadd.s32 4294967294, %s5043_s20  }
  0x12   : > { %s5157_s23 = sadd.s32 1, %s5043_s20   ;;  %s44_s24 = sadd.s32 1, %s5039_s19 }
  0x13   : > { %7547 = sst [smem:[#allocation21_spill]] %s5157_s23  ;;  %s41_s25 = ssub.s32 %s5043_s20, %s5157_s23 }
  0x14   : > { %p51_p0 = scmp.ne.s32.totalorder %s5039_s19, %s5035_s18  ;;  %p42_p1 = scmp.eq.s32.totalorder %s41_s25, 0 }
  0x15   : > { %p52_p2 = scmp.eq.s32.totalorder %s5043_s20, 0  ;;  %p57_p3 = scmp.ne.s32.totalorder %s5035_s18, %s5031_s17 }
  0x16   : > { %p58_p4 = scmp.eq.s32.totalorder %s5153_s21, 0  ;;  %p264_p7 = scmp.eq.s32.totalorder %s5153_s21, 1 }
  0x17   : > { %s5169_s26 = scalar_select %p42_p1, %s5039_s19, %s44_s24  }
  0x18   : > { %p53_p5 = por %p52_p2, %p51_p0  ;;  %p5171_p6 = por %p58_p4, %p57_p3 }
  0x19   : > { %7548 = sst [smem:[#allocation22_spill]] %s5169_s26  ;;  %p270_p8 = scmp.eq.s32.totalorder %s7466_s22, 1 }
  0x1a   : > { %s7549_s27 = scalar_select %p5171_p6, 1, 0 }
  0x1b   : > { %p4494_p10 = scmp.lt.s32.totalorder %s5043_s20, 2  ;;  %p5180_p11 = por %p264_p7, %p51_p0 }
  0x1c   : > { %p5184_p12 = por %p270_p8, %p57_p3  ;;  %s5189_s30 = sand.u32 1, %s5039_s19  }
  0x1d   : > { %s7550_s28 = scalar_select %p5180_p11, 1, 0 }
  0x1e   : > { %s7552_s29 = scalar_select %p5184_p12, 1, 0 }
  0x1f   : > { %7551 = sst [smem:[#allocation23_spill]] %s7550_s28  ;;  %p5191_p13 = pnand %p4494_p10, %p53_p5 }
  0x20   : > { %7553 = sst [smem:[#allocation24_spill]] %s7552_s29  ;;  %s376_s13 = sand.u32 1, %s5043_s20  }
  0x21   : > { %s7554_s12 = scalar_select %p5191_p13, 1, 0 }
  0x22   : > { %s7471_s14 = sshll.u32 %s5189_s30, 5  ;;  %s7472_s15 = sshll.u32 %s5043_s20, 9 }
  0x23   : > { %s7555_s1 = sld [smem:[#allocation31_spill]]  ;;  %s380_s22 = scalar_lea.vmem [#allocation5], %s7471_s14 }
  0x24   : > { %s387_s26 = sshll.u32 %s380_s22, 4  ;;  %s5209_s19 = scalar_lea.sflag [#allocation6], %s376_s13  ;;  %s5207_s26 = int_to_ptr.vmem [resolvable:$true] %s387_s26 }
  0x25   : > { %p5215_p1 = pneg %p5191_p13 }
  0x29   : > { %s5203_s25 = scalar_lea.hbm %s7555_s1, %s7472_s15  ;;  %s4794_s14 = scalar_lea.hbm %s7555_s1, 1024 }
  0x2a   : > { %s4789_s23 = scalar_lea.hbm %s5203_s25, 512  ;;  %p4795_p4 = scmp.lt.u32.totalorder %s5203_s25, %s7555_s1 }
  0x2b   : > { %p4790_p0 = scmp.ne.s32.totalorder %s5203_s25, %s4789_s23  ;;  %p4796_p5 = scmp.lt.u32.totalorder %s4794_s14, %s4789_s23 }
  0x2c   : > { %p4798_p8 = scmp.lt.u32.totalorder %s4789_s23, %s5203_s25 }
  0x2d   : > { %p4792_p2 = pnand %p5215_p1, %p4790_p0  ;;  %p4797_p7 = por %p4796_p5, %p4795_p4 }
  0x2f   : > { %p4793_p3 = pneg %p4792_p2  ;;  %p4799_p10 = por %p4798_p8, %p4797_p7 }
  0x31   : > { %p4800_p9 = pnand %p4799_p10, %p4793_p3 }
  0x33   : > { %4803 = shalt.err (!%p4800_p9)
}
  0x34   : > { %s4804_s13 = scalar_lea.vmem %s5207_s26, 512  ;;  %s5045_s16 = smov [#allocation5]  }
  0x35   : > { %p4805_p0 = scmp.ne.s32.totalorder %s5207_s26, %s4804_s13  ;;  %s4809_s24 = sshll.u32 %s5045_s16, 4  ;;  %s4810_s24 = int_to_ptr.vmem [resolvable:$false] %s4809_s24 }
  0x36   : > { %s4811_s15 = scalar_lea.vmem %s4810_s24, 1024  ;;  %p4812_p11 = scmp.lt.s32.totalorder %s5207_s26, %s4810_s24 }
  0x37   : > { %p4807_p2 = pnand %p4805_p0, %p5215_p1  ;;  %p4813_p6 = scmp.lt.s32.totalorder %s4811_s15, %s4804_s13 }
  0x39   : > { %p4808_p12 = pneg %p4807_p2  ;;  %p4814_p4 = por %p4813_p6, %p4812_p11 }
  0x3b   : > { %p4815_p5 = pnand %p4814_p4, %p4808_p12 }
  0x3d   : > { %4818 = shalt.err (!%p4815_p5)
}
  0x3e   : > { %s7479_s23 = smov 256   ;;  %s7480_s14 = smov 16  }
  0x3f   : > { %4477 = dma.hbm_to_vmem [thread:$0]  (!%p5191_p13), %s5203_s25, 512, %s5207_s26, %s5209_s19, %s7479_s23, %s7479_s23, %s7480_s14  }
  0x40   : > { %s7557_s22 = sshll.u32 %s5043_s20, 9  ;;  %s7558_s15 = sshll.u32 %s5189_s30, 5 }
  0x41   : > { %s5247_s24 = scalar_lea.hbm %s7456_s2, %s7557_s22  ;;  %s401_s1 = scalar_lea.vmem [#allocation7], %s7558_s15 }
  0x42   : > { %s408_s17 = sshll.u32 %s401_s1, 4  ;;  %p4298_p6 = scmp.ge.s32.totalorder %s5043_s20, 1  ;;  %s5251_s17 = int_to_ptr.vmem [resolvable:$true] %s408_s17 }
  0x43   : > { %p435_p9 = scmp.lt.s32.totalorder %s5043_s20, 3  ;;  %s7482_s9 = sshll.u32 %s5189_s30, 2 }
  0x44   : > { %s7481_s11 = sshll.u32 %s5043_s20, 6  ;;  %s361_s1 = scalar_lea.vmem [#allocation2], %s7482_s9 }
  0x45   : > { %p5257_p11 = pnand %p4298_p6, %p435_p9  ;;  %s5266_s22 = scalar_lea.hbm %s7454_s0, %s7481_s11 }
  0x46   : > { %s369_s13 = sshll.u32 %s361_s1, 4  ;;  %s358_s16 = scalar_lea.sflag [#allocation3], %s5189_s30  ;;  %s370_s13 = int_to_ptr.vmem [resolvable:$true] %s369_s13 }
  0x47   : > { %s7559_s10 = scalar_select %p5257_p11, 1, 0 }
  0x48   : > { %s4819_s15 = scalar_lea.hbm %s5266_s22, 64  ;;  %s4824_s26 = scalar_lea.hbm %s7454_s0, 128 }
  0x49   : > { %p4820_p12 = scmp.ne.s32.totalorder %s5266_s22, %s4819_s15  ;;  %p4825_p8 = scmp.lt.u32.totalorder %s5266_s22, %s7454_s0 }
  0x4a   : > { %p4826_p10 = scmp.lt.u32.totalorder %s4824_s26, %s4819_s15  ;;  %p4828_p2 = scmp.lt.u32.totalorder %s4819_s15, %s5266_s22 }
  0x4b   : > { %p4822_p3 = pnand %p4820_p12, %p5215_p1 }
  0x4c   : > { %p4827_p0 = por %p4826_p10, %p4825_p8 }
  0x4d   : > { %p4823_p7 = pneg %p4822_p3 }
  0x4e   : > { %p4829_p4 = por %p4828_p2, %p4827_p0 }
  0x50   : > { %p4830_p5 = pnand %p4829_p4, %p4823_p7 }
  0x52   : > { %4833 = shalt.err (!%p4830_p5)
}
  0x53   : > { %s4834_s1 = scalar_lea.vmem %s370_s13, 64  ;;  %s5048_s9 = smov [#allocation2]  }
  0x54   : > { %p4835_p6 = scmp.ne.s32.totalorder %s370_s13, %s4834_s1  ;;  %s4839_s28 = sshll.u32 %s5048_s9, 4  ;;  %s4840_s28 = int_to_ptr.vmem [resolvable:$false] %s4839_s28 }
  0x55   : > { %s4841_s23 = scalar_lea.vmem %s4840_s28, 128  ;;  %p4842_p3 = scmp.lt.s32.totalorder %s370_s13, %s4840_s28 }
  0x56   : > { %p4837_p9 = pnand %p4835_p6, %p5215_p1  ;;  %p4843_p11 = scmp.lt.s32.totalorder %s4841_s23, %s4834_s1 }
  0x58   : > { %p4838_p12 = pneg %p4837_p9  ;;  %p4844_p13 = por %p4843_p11, %p4842_p3 }
  0x5a   : > { %p4845_p8 = pnand %p4844_p13, %p4838_p12 }
  0x5c   : > { %4848 = shalt.err (!%p4845_p8)
}
  0x5d   : > { %p7560_p10 = scmp.ne.s32.totalorder %s7554_s12, 0  ;;  %s4849_s11 = scalar_lea.hbm %s5247_s24, 512 }
  0x5e   : > { %p4850_p7 = scmp.ne.s32.totalorder %s5247_s24, %s4849_s11  ;;  %s4854_s14 = scalar_lea.hbm %s7456_s2, 1024 }
  0x5f   : > { %4474 = dma.hbm_to_vmem [thread:$0]  (!%p7560_p10), %s5266_s22, 64, %s370_s13, %s358_s16  }
  0x60   : > { %p4852_p0 = pnand %p4850_p7, %p5215_p1  ;;  %p4855_p13 = scmp.lt.u32.totalorder %s5247_s24, %s7456_s2 }
  0x61   : > { %p4856_p11 = scmp.lt.u32.totalorder %s4854_s14, %s4849_s11  ;;  %p4858_p5 = scmp.lt.u32.totalorder %s4849_s11, %s5247_s24 }
  0x62   : > { %p4853_p2 = pneg %p4852_p0 }
  0x63   : > { %p4857_p4 = por %p4856_p11, %p4855_p13 }
  0x65   : > { %p4859_p6 = por %p4858_p5, %p4857_p4 }
  0x67   : > { %p4860_p9 = pnand %p4859_p6, %p4853_p2 }
  0x69   : > { %4863 = shalt.err (!%p4860_p9)
}
  0x6a   : > { %s4864_s22 = scalar_lea.vmem %s5251_s17, 512  ;;  %s5049_s13 = smov [#allocation7]  }
  0x6b   : > { %p4865_p12 = scmp.ne.s32.totalorder %s5251_s17, %s4864_s22  ;;  %s4869_s16 = sshll.u32 %s5049_s13, 4  ;;  %s4870_s16 = int_to_ptr.vmem [resolvable:$false] %s4869_s16 }
  0x6c   : > { %s4871_s25 = scalar_lea.vmem %s4870_s16, 1024  ;;  %p4872_p7 = scmp.lt.s32.totalorder %s5251_s17, %s4870_s16 }
  0x6d   : > { %p4867_p3 = pnand %p4865_p12, %p5215_p1  ;;  %p4873_p0 = scmp.lt.s32.totalorder %s4871_s25, %s4864_s22 }
  0x6f   : > { %p4868_p8 = pneg %p4867_p3  ;;  %p4874_p13 = por %p4873_p0, %p4872_p7 }
  0x71   : > { %p4875_p11 = pnand %p4874_p13, %p4868_p8 }
  0x73   : > { %4878 = shalt.err (!%p4875_p11)
}
  0x74   : > { %s7561_s1 = smov 16   ;;  %s7562_s23 = smov 256  }
  0x75   : > { %4480 = dma.hbm_to_vmem [thread:$0]  (!%p7560_p10), %s5247_s24, 512, %s5251_s17, %s5209_s19, %s7562_s23, %s7562_s23, %s7561_s1  }
  0x76   : > { %s7563_s11 = sshll.u32 %s5043_s20, 6  ;;  %s7564_s15 = sshll.u32 %s5189_s30, 2 }
  0x77   : > { %s5318_s14 = scalar_lea.hbm %s7457_s3, %s7563_s11  ;;  %s422_s26 = scalar_lea.vmem [#allocation8], %s7564_s15 }
  0x78   : > { %s430_s22 = sshll.u32 %s422_s26, 4  ;;  %s419_s13 = scalar_lea.sflag [#allocation9], %s5189_s30  ;;  %s431_s22 = int_to_ptr.vmem [resolvable:$true] %s430_s22 }
  0x79   : > { %s4879_s16 = scalar_lea.hbm %s5318_s14, 64  ;;  %s4884_s24 = scalar_lea.hbm %s7457_s3, 128 }
  0x7a   : > { %p4880_p2 = scmp.ne.s32.totalorder %s5318_s14, %s4879_s16  ;;  %p4885_p6 = scmp.lt.u32.totalorder %s5318_s14, %s7457_s3 }
  0x7b   : > { %p4886_p9 = scmp.lt.u32.totalorder %s4884_s24, %s4879_s16  ;;  %p4888_p3 = scmp.lt.u32.totalorder %s4879_s16, %s5318_s14 }
  0x7c   : > { %p4882_p4 = pnand %p4880_p2, %p5215_p1 }
  0x7d   : > { %p4887_p12 = por %p4886_p9, %p4885_p6 }
  0x7e   : > { %p4883_p5 = pneg %p4882_p4 }
  0x7f   : > { %p4889_p8 = por %p4888_p3, %p4887_p12 }
  0x81   : > { %p4890_p7 = pnand %p4889_p8, %p4883_p5 }
  0x83   : > { %4893 = shalt.err (!%p4890_p7)
}
  0x84   : > { %s4894_s30 = scalar_lea.vmem %s431_s22, 64  ;;  %s5050_s23 = smov [#allocation8]  }
  0x85   : > { %p4895_p0 = scmp.ne.s32.totalorder %s431_s22, %s4894_s30  ;;  %s4899_s11 = sshll.u32 %s5050_s23, 4  ;;  %s4900_s11 = int_to_ptr.vmem [resolvable:$false] %s4899_s11 }
  0x86   : > { %s4901_s9 = scalar_lea.vmem %s4900_s11, 128  ;;  %p4902_p2 = scmp.lt.s32.totalorder %s431_s22, %s4900_s11 }
  0x87   : > { %p4897_p13 = pnand %p4895_p0, %p5215_p1  ;;  %p4903_p4 = scmp.lt.s32.totalorder %s4901_s9, %s4894_s30 }
  0x89   : > { %p4898_p11 = pneg %p4897_p13  ;;  %p4904_p10 = por %p4903_p4, %p4902_p2 }
  0x8b   : > { %p4905_p6 = pnand %p4904_p10, %p4898_p11 }
  0x8d   : > { %4908 = shalt.err (!%p4905_p6)
}
  0x8e   : > { %p7565_p9 = scmp.ne.s32.totalorder %s7554_s12, 0  ;;  %p7566_p5 = scmp.ne.s32.totalorder %s7559_s10, 0 }
  0x90   : > { %4483 = dma.hbm_to_vmem [thread:$0]  (!%p7565_p9), %s5318_s14, 64, %s431_s22, %s419_s13  }
  0x91   : > { %439 = sbr.rel (%p7566_p5) target bundleno = 2824 (0xb08), region = 56 }
  0x98   : > { %s5343_s29 = sand.u32 1, %s5035_s18   ;;  %p7567_p1 = scmp.ne.s32.totalorder %s7549_s27, 0 }
  0x99   : > { %s4299_s28 = sshll.u32 %s5343_s29, 2  ;;  %s442_s15 = scalar_lea.sflag [#allocation3], %s5343_s29 }
  0x9a   : > { %s5347_s26 = scalar_lea.vmem [#allocation2], %s4299_s28 }
  0x9b   : > { %5010 = dma.done.wait (%p7567_p1), %s442_s15, 64  }
  0x9c   : > { %5012 = vsyncadd (%p7567_p1), %s442_s15, 4294967232  ;;  %s7498_s10 = sand.u32 1, %s5153_s21   ;;  %s5355_s12 = sshll.u32 %s5343_s29, 5 }
  0x9d   : > { %s451_s14 = scalar_lea.sflag [#allocation6], %s7498_s10  ;;  %s454_s22 = scalar_lea.vmem [#allocation5], %s5355_s12 }
  0x9e   : > { %5014 = dma.done.wait (%p7567_p1), %s451_s14, 1024  }
  0x9f   : > { %5016 = vsyncadd (%p7567_p1), %s451_s14, 4294966272  ;;  %s5365_s13 = scalar_lea.vmem [#allocation7], %s5355_s12  ;;  %s469_s16 = scalar_lea.sflag [#allocation9], %s5343_s29 }
  0xa0   : > { %s5368_s17 = scalar_lea.vmem [#allocation8], %s4299_s28 }
  0xa1   : > { %5018 = dma.done.wait (%p7567_p1), %s469_s16, 64  }
  0xa2   : > { %5020 = vsyncadd (%p7567_p1), %s469_s16, 4294967232  ;;  %v5051_v0 = vmov 0   ;;  %v1278_v1 = vld [vmem:[%s454_s22 + $0x8] sm:$0xff]  ;;  %v1280_v2 = vld [vmem:[%s454_s22 + $0x18] sm:$0xff]  ;;  %s5052_s19 = smov 2   ;;  %s5053_s27 = smov 114   ;;  %v539_v11 = vlaneseq }
  0xa3   : > { %1236 = vmatprep.mubr.bf16.mxu0 %v5051_v0  ;;  %4549 = vset.pattern.permute.xlu1 %v5051_v0  ;;  %v1277_v3 = vld [vmem:[%s454_s22] sm:$0xff]  ;;  %v5377_v4 = vpack.c.bf16 %v1280_v2, %v1278_v1  ;;  %v1279_v5 = vld [vmem:[%s454_s22 + $0x10] sm:$0xff]  ;;  %s7539_s24 = smov 1   ;;  %s5055_s25 = smov 113   ;;  %vm7511_vm5 = vcmask 15360   ;;  %vm7513_vm7 = vcmask 932864  }
  0xa4   : > { %4548 = vset.pattern.permute.xlu0 %v5051_v0  ;;  %v5379_v6 = vpack.c.bf16 %v1279_v5, %v1277_v3  ;;  %s7537_s1 = smov 127   ;;  %s7535_s30 = smov 15   ;;  %v4305_v7 = vld.sshfl [vmem:[%s5347_s26] sm:$0x33 pattern:$0x76325410] }
  0xa5   : > { %1284 = vrot.lane.b32.xlu0 %v5377_v4, %s5052_s19  ;;  %s7533_s23 = smov 126   ;;  %s7525_s11 = smov 14   ;;  %v593_v8 = vcombine.high %v4305_v7, %v4305_v7  ;;  %v5420_v10 = vpack.c.bf16 %v4305_v7, %v4305_v7  ;;  %v540_v12 = vand.u32 127, %v539_v11  ;;  %v5472_v16 = vshrl.u32 %v539_v11, 7 }
  0xa6   : > { %1295 = vrot.lane.b32.xlu1 %v5379_v6, %s5053_s27  ;;  %s7505_s9 = smov 32   ;;  %s7503_s28 = smov 16   ;;  %vm7509_vm13 = vcmask 7168   ;;  %vm7510_vm14 = vcmask 924672   ;;  %v5064_v11 = vmov 1983009808  }
  0xa7   : > { %v5416_v9 = vpack.c.bf16 %v593_v8, %v593_v8  ;;  %s7501_s15 = smov 112   ;;  %v541_v13 = vadd.s32 128, %v540_v12  ;;  %v5466_v14 = vand.u32 15, %v540_v12  ;;  %7570 = vst [vmem:[#allocation27_spill] sm:$0xff] %v5472_v16  ;;  %v5479_v17 = vsub.s32 0, %v5472_v16  ;;  %s7499_s22 = smov 96  }
  0xa8   : > { %v5482_v18 = vsub.s32 4, %v5472_v16  ;;  %v7585_v12 = vmov 0  ;;  %s7643_s10 = smov 96   ;;  %s7735_s16 = smov 126  }
  0xa9   : > { %1287 = vrot.lane.b32.xlu0 %v5379_v6, %s5052_s19  ;;  %7568 = vst [vmem:[#allocation25_spill] sm:$0xff] %v5466_v14  ;;  %v5468_v15 = vand.u32 15, %v541_v13  ;;  %vm7495_vm0 = vcmp.ge.s32.totalorder %v5466_v14, 2  ;;  %vm7491_vm3 = vcmp.ge.s32.totalorder %v5466_v14, 1  ;;  %vm7489_vm10 = vcmp.lt.s32.totalorder %v5466_v14, 15 }
  0xaa   : > { %1297 = vrot.lane.b32.xlu1 %v5377_v4, %s5053_s27 }
  0xab   : > { %7569 = vst [vmem:[#allocation26_spill] sm:$0xff] %v5468_v15  ;;  %vm7492_vm1 = vcmp.ge.s32.totalorder %v5468_v15, 2  ;;  %vm7490_vm4 = vcmp.ge.s32.totalorder %v5468_v15, 1  ;;  %vm7488_vm11 = vcmp.lt.s32.totalorder %v5468_v15, 15 }
  0xac   : > { %vm630_vm2 = vmpackc.low %vm7492_vm1, %vm7495_vm0 }
  0xad   : > { %1307 = vrot.lane.b32.xlu0 %v5377_v4, %s7539_s24  ;;  %v631_v19 = vsel %vm630_vm2, 65537, %v5051_v0  ;;  %vm674_vm6 = vmpackc.low %vm7490_vm4, %vm7491_vm3  ;;  %vm7507_vm4 = vcmask 121856  }
  0xae   : > { %1309 = vrot.lane.b32.xlu1 %v5379_v6, %s7539_s24  ;;  %v635_v21 = vrot.slane %v631_v19, %v5479_v17  ;;  %v639_v22 = vrot.slane %v631_v19, %v5482_v18  ;;  %v675_v30 = vsel %vm674_vm6, 65537, %v5051_v0  ;;  %vm718_vm12 = vmpackc.low %vm7488_vm11, %vm7489_vm10  ;;  %vm7494_vm6 = vcmp.lt.s32.totalorder %v5466_v14, 14 }
  0xaf   : > { %v679_v36 = vrot.slane %v675_v30, %v5479_v17  ;;  %v683_v37 = vrot.slane %v675_v30, %v5482_v18  ;;  %v719_v43 = vsel %vm718_vm12, 65537, %v5051_v0  ;;  %vm7493_vm12 = vcmp.lt.s32.totalorder %v5468_v15, 14 }
  0xb0   : > { %vm5493_vm8 = vcmp.ne.s16.totalorder %v635_v21, 0  ;;  %vm5497_vm9 = vcmp.ne.s16.totalorder %v639_v22, 0  ;;  %v723_v51 = vrot.slane %v719_v43, %v5479_v17  ;;  %v727_v52 = vrot.slane %v719_v43, %v5482_v18  ;;  %vm762_vm11 = vmpackc.low %vm7493_vm12, %vm7494_vm6 }
  0xb1   : > { %1317 = vrot.lane.b32.xlu0 %v5379_v6, %s5055_s25  ;;  %vm5526_vm15 = vcmp.ne.s16.totalorder %v679_v36, 0  ;;  %vm5530_vm2 = vcmp.ne.s16.totalorder %v683_v37, 0  ;;  %vm7508_vm10 = vcmask 1039360   ;;  %v763_v58 = vsel %vm762_vm11, 65537, %v5051_v0 }
  0xb2   : > { %1319 = vrot.lane.b32.xlu1 %v5377_v4, %s5055_s25  ;;  %vm5559_vm3 = vcmp.ne.s16.totalorder %v723_v51, 0  ;;  %vm5563_vm1 = vcmp.ne.s16.totalorder %v727_v52, 0  ;;  %v767_v3 = vrot.slane %v763_v58, %v5479_v17  ;;  %v771_v5 = vrot.slane %v763_v58, %v5482_v18 }
  0xb3   : > { %vm7497_vm11 = vcmask 1031168   ;;  %vm7496_vm12 = vcmask 113664  }
  0xb4   : > { %vm5586_vm6 = vcmp.ne.s16.totalorder %v767_v3, 0  ;;  %vm5590_vm0 = vcmp.ne.s16.totalorder %v771_v5, 0 }
  0xb5   : > { %1329 = vrot.lane.b32.xlu0 %v5379_v6, %s7537_s1  ;;  %v7586_v12 = vsel %vm5590_vm0, 4294967295, %v7585_v12 }
  0xb6   : > { %1331 = vrot.lane.b32.xlu1 %v5377_v4, %s7537_s1 }
  0xb9   : > { %1339 = vrot.lane.b32.xlu0 %v5377_v4, %s7535_s30 }
  0xba   : > { %1341 = vrot.lane.b32.xlu1 %v5379_v6, %s7535_s30 }
  0xbd   : > { %1351 = vrot.lane.b32.xlu0 %v5379_v6, %s7533_s23 }
  0xbe   : > { %1353 = vrot.lane.b32.xlu1 %v5377_v4, %s7533_s23 }
  0xc1   : > { %1361 = vrot.lane.b32.xlu0 %v5377_v4, %s7525_s11 }
  0xc2   : > { %1363 = vrot.lane.b32.xlu1 %v5379_v6, %s7525_s11 }
  0xc5   : > { %1397 = vrot.lane.b32.xlu0 %v5377_v4, %s7505_s9 }
  0xc6   : > { %1399 = vrot.lane.b32.xlu1 %v5379_v6, %s7505_s9 }
  0xc9   : > { %644 = vrot.lane.b32.xlu0 %v5416_v9, %s7539_s24 }
  0xca   : > { %646 = vrot.lane.b32.xlu1 %v5420_v10, %s7539_s24 }
  0xcd   : > { %656 = vrot.lane.b32.xlu0 %v5420_v10, %s5055_s25 }
  0xce   : > { %658 = vrot.lane.b32.xlu1 %v5416_v9, %s5055_s25 }
  0xd1   : > { %599 = vrot.lane.b32.xlu0 %v5416_v9, %s5052_s19 }
  0xd2   : > { %602 = vrot.lane.b32.xlu1 %v5420_v10, %s5052_s19 }
  0xd5   : > { %612 = vrot.lane.b32.xlu0 %v5420_v10, %s5053_s27 }
  0xd6   : > { %614 = vrot.lane.b32.xlu1 %v5416_v9, %s5053_s27 }
  0xd9   : > { %688 = vrot.lane.b32.xlu0 %v5420_v10, %s7537_s1 }
  0xda   : > { %690 = vrot.lane.b32.xlu1 %v5416_v9, %s7537_s1 }
  0xdd   : > { %700 = vrot.lane.b32.xlu0 %v5416_v9, %s7535_s30 }
  0xde   : > { %702 = vrot.lane.b32.xlu1 %v5420_v10, %s7535_s30 }
  0xe1   : > { %732 = vrot.lane.b32.xlu0 %v5420_v10, %s7533_s23 }
  0xe2   : > { %734 = vrot.lane.b32.xlu1 %v5416_v9, %s7533_s23 }
  0xe5   : > { %744 = vrot.lane.b32.xlu0 %v5416_v9, %s7525_s11 }
  0xe6   : > { %746 = vrot.lane.b32.xlu1 %v5420_v10, %s7525_s11 }
  0xe9   : > { %1451 = vrot.lane.b32.xlu0 %v5377_v4, %s7503_s28 }
  0xea   : > { %1453 = vrot.lane.b32.xlu1 %v5379_v6, %s7503_s28 }
  0xed   : > { %1501 = vrot.lane.b32.xlu0 %v5379_v6, %s7501_s15 }
  0xee   : > { %1503 = vrot.lane.b32.xlu1 %v5377_v4, %s7501_s15 }
  0xf1   : > { %798 = vrot.lane.b32.xlu0 %v5416_v9, %s7505_s9 }
  0xf2   : > { %800 = vrot.lane.b32.xlu1 %v5420_v10, %s7505_s9 }
 0x117   : > { %v1285_v20 = vpop.permute.xlu0 %1284 }
 0x118   : > { %v1296_v23 = vpop.permute.xlu1 %1295 }
 0x11b   : > { %v1288_v24 = vpop.permute.xlu0 %1287 }
 0x11c   : > { %v1298_v27 = vpop.permute.xlu1 %1297  ;;  %v1289_v28 = vsel %vm7511_vm5, %v1288_v24, %v1285_v20  ;;  %v1293_v29 = vsel %vm7511_vm5, %v1285_v20, %v1288_v24 }
 0x11d   : > { %v1299_v31 = vsel %vm7513_vm7, %v1296_v23, %v1298_v27  ;;  %v1303_v32 = vsel %vm7513_vm7, %v1298_v27, %v1296_v23 }
 0x11e   : > { %v5508_v33 = vsel %vm5493_vm8, %v1293_v29, %v1299_v31  ;;  %v5512_v34 = vsel %vm5497_vm9, %v1289_v28, %v1303_v32 }
 0x11f   : > { %1377 = vrot.lane.b32.xlu1 %v5508_v33, %s7505_s9  ;;  %1374 = vrot.lane.b32.xlu0 %v5512_v34, %s7505_s9  ;;  %v1308_v35 = vpop.permute.xlu0 %1307 }
 0x120   : > { %v1310_v38 = vpop.permute.xlu1 %1309 }
 0x121   : > { %v1311_v44 = vsel %vm7509_vm13, %v1310_v38, %v1308_v35  ;;  %v1315_v45 = vsel %vm7509_vm13, %v1308_v35, %v1310_v38 }
 0x123   : > { %v1318_v39 = vpop.permute.xlu0 %1317 }
 0x124   : > { %v1320_v42 = vpop.permute.xlu1 %1319 }
 0x125   : > { %v1321_v46 = vsel %vm7510_vm14, %v1318_v39, %v1320_v42  ;;  %v1325_v47 = vsel %vm7510_vm14, %v1320_v42, %v1318_v39 }
 0x126   : > { %v5541_v48 = vsel %vm5526_vm15, %v1315_v45, %v1321_v46  ;;  %v5545_v49 = vsel %vm5530_vm2, %v1311_v44, %v1325_v47 }
 0x127   : > { %1389 = vrot.lane.b32.xlu1 %v5541_v48, %s7505_s9  ;;  %1386 = vrot.lane.b32.xlu0 %v5545_v49, %s7505_s9  ;;  %v1330_v50 = vpop.permute.xlu0 %1329 }
 0x128   : > { %v1332_v53 = vpop.permute.xlu1 %1331 }
 0x129   : > { %v1333_v59 = vsel %vm7508_vm10, %v1330_v50, %v1332_v53  ;;  %v1337_v60 = vsel %vm7508_vm10, %v1332_v53, %v1330_v50 }
 0x12b   : > { %v1340_v54 = vpop.permute.xlu0 %1339 }
 0x12c   : > { %v1342_v57 = vpop.permute.xlu1 %1341 }
 0x12d   : > { %v1343_v61 = vsel %vm7507_vm4, %v1342_v57, %v1340_v54  ;;  %v1347_v62 = vsel %vm7507_vm4, %v1340_v54, %v1342_v57 }
 0x12e   : > { %v5574_v63 = vsel %vm5559_vm3, %v1333_v59, %v1347_v62  ;;  %v5578_v1 = vsel %vm5563_vm1, %v1337_v60, %v1343_v61  ;;  %v5674_v62 = vld [vmem:[%s7459_s5 + $0x4] ss:$16 sps:$4 sm:$0xff]  }
 0x12f   : > { %1411 = vrot.lane.b32.xlu1 %v5574_v63, %s7505_s9  ;;  %1408 = vrot.lane.b32.xlu0 %v5578_v1, %s7505_s9  ;;  %v1352_v2 = vpop.permute.xlu0 %1351 }
 0x130   : > { %v1354_v7 = vpop.permute.xlu1 %1353  ;;  %1701 = vmatprep.mubr.bf16.mxu1 %v5674_v62 }
 0x131   : > { %v1355_v19 = vsel %vm7497_vm11, %v1352_v2, %v1354_v7  ;;  %v1359_v20 = vsel %vm7497_vm11, %v1354_v7, %v1352_v2 }
 0x133   : > { %v1362_v8 = vpop.permute.xlu0 %1361 }
 0x134   : > { %v1364_v13 = vpop.permute.xlu1 %1363 }
 0x135   : > { %v1365_v17 = vsel %vm7496_vm12, %v1364_v13, %v1362_v8  ;;  %v1369_v18 = vsel %vm7496_vm12, %v1362_v8, %v1364_v13 }
 0x136   : > { %v5600_v21 = vsel %vm5586_vm6, %v1355_v19, %v1369_v18  ;;  %v5604_v22 = vsel %vm5590_vm0, %v1359_v20, %v1365_v17 }
 0x137   : > { %1423 = vrot.lane.b32.xlu1 %v5600_v21, %s7505_s9  ;;  %1420 = vrot.lane.b32.xlu0 %v5604_v22, %s7505_s9  ;;  %v5610_v23 = vpop.permute.xlu0 %1397 }
 0x138   : > { %v5612_v24 = vpop.permute.xlu1 %1399 }
 0x13b   : > { %1433 = vrot.lane.b32.xlu1 %v5508_v33, %s7503_s28  ;;  %1431 = vrot.lane.b32.xlu0 %v5512_v34, %s7503_s28  ;;  %v645_v27 = vpop.permute.xlu0 %644 }
 0x13c   : > { %v647_v28 = vpop.permute.xlu1 %646 }
 0x13d   : > { %v649_v43 = vsel %vm7509_vm13, %v647_v28, %v645_v27  ;;  %v654_v44 = vsel %vm7509_vm13, %v645_v27, %v647_v28  ;;  %vm7519_vm13 = vcmask 1041408  }
 0x13f   : > { %1443 = vrot.lane.b32.xlu1 %v5541_v48, %s7503_s28  ;;  %1441 = vrot.lane.b32.xlu0 %v5545_v49, %s7503_s28  ;;  %v657_v29 = vpop.permute.xlu0 %656 }
 0x140   : > { %v659_v30 = vpop.permute.xlu1 %658 }
 0x141   : > { %v661_v45 = vsel %vm7510_vm14, %v657_v29, %v659_v30  ;;  %v666_v46 = vsel %vm7510_vm14, %v659_v30, %v657_v29  ;;  %vm7521_vm14 = vcmask 1042432  }
 0x142   : > { %v5649_v50 = vsel %vm5530_vm2, %v649_v43, %v666_v46  ;;  %v5653_v51 = vsel %vm5526_vm15, %v654_v44, %v661_v45 }
 0x143   : > { %1463 = vrot.lane.b32.xlu1 %v5574_v63, %s7503_s28  ;;  %1461 = vrot.lane.b32.xlu0 %v5578_v1, %s7503_s28  ;;  %v600_v31 = vpop.permute.xlu0 %599 }
 0x144   : > { %v603_v32 = vpop.permute.xlu1 %602 }
 0x145   : > { %v605_v47 = vsel %vm7511_vm5, %v603_v32, %v600_v31  ;;  %v610_v54 = vsel %vm7511_vm5, %v600_v31, %v603_v32  ;;  %vm7520_vm5 = vcmask 1043456  }
 0x147   : > { %1473 = vrot.lane.b32.xlu1 %v5600_v21, %s7503_s28  ;;  %1471 = vrot.lane.b32.xlu0 %v5604_v22, %s7503_s28  ;;  %v613_v35 = vpop.permute.xlu0 %612 }
 0x148   : > { %v615_v36 = vpop.permute.xlu1 %614 }
 0x149   : > { %v617_v57 = vsel %vm7513_vm7, %v613_v35, %v615_v36  ;;  %v622_v58 = vsel %vm7513_vm7, %v615_v36, %v613_v35  ;;  %vm7517_vm7 = vcmask 1045504  }
 0x14a   : > { %v5665_v60 = vsel %vm5497_vm9, %v605_v47, %v622_v58  ;;  %v5669_v61 = vsel %vm5493_vm8, %v610_v54, %v617_v57 }
 0x14b   : > { %1483 = vrot.lane.b32.xlu1 %v5512_v34, %s7501_s15  ;;  %1481 = vrot.lane.b32.xlu0 %v5508_v33, %s7501_s15  ;;  %v689_v37 = vpop.permute.xlu0 %688 }
 0x14c   : > { %v691_v38 = vpop.permute.xlu1 %690 }
 0x14d   : > { %v693_v59 = vsel %vm7508_vm10, %v689_v37, %v691_v38  ;;  %v698_v2 = vsel %vm7508_vm10, %v691_v38, %v689_v37  ;;  %vm7514_vm10 = vcmask 1040384  }
 0x14f   : > { %1493 = vrot.lane.b32.xlu1 %v5545_v49, %s7501_s15  ;;  %1491 = vrot.lane.b32.xlu0 %v5541_v48, %s7501_s15  ;;  %v701_v42 = vpop.permute.xlu0 %700 }
 0x150   : > { %v703_v39 = vpop.permute.xlu1 %702 }
 0x151   : > { %v705_v3 = vsel %vm7507_vm4, %v703_v39, %v701_v42  ;;  %v710_v5 = vsel %vm7507_vm4, %v701_v42, %v703_v39  ;;  %vm7515_vm4 = vcmask 916480  }
 0x152   : > { %v5687_v19 = vsel %vm5559_vm3, %v693_v59, %v710_v5  ;;  %v5691_v20 = vsel %vm5563_vm1, %v698_v2, %v705_v3 }
 0x153   : > { %1513 = vrot.lane.b32.xlu1 %v5578_v1, %s7501_s15  ;;  %1511 = vrot.lane.b32.xlu0 %v5574_v63, %s7501_s15  ;;  %v733_v53 = vpop.permute.xlu0 %732 }
 0x154   : > { %v735_v52 = vpop.permute.xlu1 %734 }
 0x155   : > { %v737_v13 = vsel %vm7497_vm11, %v733_v53, %v735_v52  ;;  %v742_v17 = vsel %vm7497_vm11, %v735_v52, %v733_v53  ;;  %vm7518_vm11 = vcmask 130048  }
 0x157   : > { %789 = vrot.lane.b32.xlu0 %v5649_v50, %s7505_s9  ;;  %792 = vrot.lane.b32.xlu1 %v5653_v51, %s7505_s9  ;;  %v745_v8 = vpop.permute.xlu0 %744 }
 0x158   : > { %v747_v7 = vpop.permute.xlu1 %746 }
 0x159   : > { %v749_v18 = vsel %vm7496_vm12, %v747_v7, %v745_v8  ;;  %v754_v27 = vsel %vm7496_vm12, %v745_v8, %v747_v7  ;;  %vm7512_vm12 = vcmask 261120  }
 0x15a   : > { %v5702_v28 = vsel %vm5586_vm6, %v737_v13, %v754_v27  ;;  %v5706_v29 = vsel %vm5590_vm0, %v742_v17, %v749_v18  ;;  %v1401_v52 = vsel %vm7512_vm12, %v5612_v24, %v5610_v23  ;;  %v1405_v53 = vsel %vm7512_vm12, %v5610_v23, %v5612_v24 }
 0x15b   : > { %777 = vrot.lane.b32.xlu0 %v5665_v60, %s7505_s9  ;;  %780 = vrot.lane.b32.xlu1 %v5669_v61, %s7505_s9  ;;  %v5742_v31 = vpop.permute.xlu0 %1451 }
 0x15c   : > { %v5740_v30 = vpop.permute.xlu1 %1453 }
 0x15f   : > { %810 = vrot.lane.b32.xlu1 %v5687_v19, %s7505_s9  ;;  %807 = vrot.lane.b32.xlu0 %v5691_v20, %s7505_s9  ;;  %v5750_v35 = vpop.permute.xlu0 %1501 }
 0x160   : > { %v5748_v32 = vpop.permute.xlu1 %1503 }
 0x163   : > { %820 = vrot.lane.b32.xlu1 %v5702_v28, %s7505_s9  ;;  %817 = vrot.lane.b32.xlu0 %v5706_v29, %s7505_s9  ;;  %v5762_v37 = vpop.permute.xlu0 %798  ;;  %s6492_s9 = scalar_lea.vmem [#allocation13], %s5355_s12 }
 0x164   : > { %v5760_v36 = vpop.permute.xlu1 %800 }
 0x167   : > { %1523 = vrot.lane.b32.xlu1 %v5604_v22, %s7501_s15  ;;  %1521 = vrot.lane.b32.xlu0 %v5600_v21, %s7501_s15 }
 0x16b   : > { %828 = vrot.lane.b32.xlu1 %v5669_v61, %s7503_s28  ;;  %826 = vrot.lane.b32.xlu0 %v5665_v60, %s7503_s28 }
 0x16f   : > { %862 = vrot.lane.b32.xlu1 %v5702_v28, %s7503_s28  ;;  %860 = vrot.lane.b32.xlu0 %v5706_v29, %s7503_s28 }
 0x173   : > { %838 = vrot.lane.b32.xlu1 %v5653_v51, %s7503_s28  ;;  %836 = vrot.lane.b32.xlu0 %v5649_v50, %s7503_s28 }
 0x177   : > { %846 = vrot.lane.b32.xlu1 %v5420_v10, %s7503_s28  ;;  %844 = vrot.lane.b32.xlu0 %v5416_v9, %s7503_s28 }
 0x17b   : > { %854 = vrot.lane.b32.xlu1 %v5687_v19, %s7503_s28  ;;  %852 = vrot.lane.b32.xlu0 %v5691_v20, %s7503_s28  ;;  %s6510_s28 = scalar_lea.vmem [#allocation11], %s5355_s12  ;;  %s7680_s12 = smov 14  }
 0x17f   : > { %1533 = vrot.lane.b32.xlu1 %v5512_v34, %s7499_s22  ;;  %1531 = vrot.lane.b32.xlu0 %v5508_v33, %s7499_s22 }
 0x183   : > { %888 = vrot.lane.b32.xlu1 %v5416_v9, %s7501_s15  ;;  %886 = vrot.lane.b32.xlu0 %v5420_v10, %s7501_s15 }
 0x187   : > { %896 = vrot.lane.b32.xlu1 %v5691_v20, %s7501_s15  ;;  %894 = vrot.lane.b32.xlu0 %v5687_v19, %s7501_s15 }
 0x18b   : > { %870 = vrot.lane.b32.xlu1 %v5665_v60, %s7501_s15  ;;  %868 = vrot.lane.b32.xlu0 %v5669_v61, %s7501_s15 }
 0x18f   : > { %880 = vrot.lane.b32.xlu1 %v5649_v50, %s7501_s15  ;;  %878 = vrot.lane.b32.xlu0 %v5653_v51, %s7501_s15 }
 0x191   : > { %v1378_v38 = vpop.permute.xlu1 %1377  ;;  %v1375_v39 = vpop.permute.xlu0 %1374 }
 0x192   : > { %v1379_v42 = vsel %vm7512_vm12, %v1378_v38, %v1375_v39  ;;  %v1383_v43 = vsel %vm7512_vm12, %v1375_v39, %v1378_v38 }
 0x193   : > { %904 = vrot.lane.b32.xlu1 %v5706_v29, %s7501_s15  ;;  %902 = vrot.lane.b32.xlu0 %v5702_v28, %s7501_s15  ;;  %s7641_s15 = smov 16  }
 0x194   : > { %1669 = vmatprep.subr.bf16.mxu1 %v1379_v42  ;;  %v1455_v42 = vsel %vm7518_vm11, %v5740_v30, %v5742_v31 }
 0x195   : > { %1670 = vmatpush1.bf16.msra.mxu1 %v1383_v43 }
 0x197   : > { %912 = vrot.lane.b32.xlu1 %v5665_v60, %s7499_s22  ;;  %910 = vrot.lane.b32.xlu0 %v5669_v61, %s7499_s22 }
 0x199   : > { %v1390_v44 = vpop.permute.xlu1 %1389  ;;  %v1387_v45 = vpop.permute.xlu0 %1386 }
 0x19a   : > { %v1391_v46 = vsel %vm7512_vm12, %v1390_v44, %v1387_v45  ;;  %v1395_v47 = vsel %vm7512_vm12, %v1387_v45, %v1390_v44  ;;  %v1459_v44 = vsel %vm7518_vm11, %v5742_v31, %v5740_v30 }
 0x19b   : > { %1543 = vrot.lane.b32.xlu1 %v5545_v49, %s7499_s22  ;;  %1541 = vrot.lane.b32.xlu0 %v5541_v48, %s7499_s22 }
 0x19c   : > { %1671 = vmatprep.subr.bf16.mxu1 %v1391_v46 }
 0x19d   : > { %1672 = vmatpush1.bf16.msra.mxu1 %v1395_v47 }
 0x19e   : > { %1673 = vmatprep.subr.bf16.mxu1 %v1401_v52 }
 0x19f   : > { %922 = vrot.lane.b32.xlu1 %v5649_v50, %s7499_s22  ;;  %920 = vrot.lane.b32.xlu0 %v5653_v51, %s7499_s22 }
 0x1a1   : > { %1674 = vmatpush1.bf16.msra.mxu1 %v1405_v53  ;;  %v1412_v54 = vpop.permute.xlu1 %1411  ;;  %v1409_v57 = vpop.permute.xlu0 %1408 }
 0x1a2   : > { %v1413_v58 = vsel %vm7512_vm12, %v1412_v54, %v1409_v57  ;;  %v1417_v59 = vsel %vm7512_vm12, %v1409_v57, %v1412_v54 }
 0x1a3   : > { %930 = vrot.lane.b32.xlu1 %v5416_v9, %s7499_s22  ;;  %928 = vrot.lane.b32.xlu0 %v5420_v10, %s7499_s22 }
 0x1a4   : > { %1675 = vmatprep.subr.bf16.mxu1 %v1413_v58 }
 0x1a5   : > { %1676 = vmatpush1.bf16.msra.mxu1 %v1417_v59 }
 0x1a7   : > { %938 = vrot.lane.b32.xlu1 %v5691_v20, %s7499_s22  ;;  %936 = vrot.lane.b32.xlu0 %v5687_v19, %s7499_s22 }
 0x1a9   : > { %v1424_v23 = vpop.permute.xlu1 %1423  ;;  %v1421_v24 = vpop.permute.xlu0 %1420 }
 0x1aa   : > { %v1425_v2 = vsel %vm7512_vm12, %v1424_v23, %v1421_v24  ;;  %v1429_v3 = vsel %vm7512_vm12, %v1421_v24, %v1424_v23  ;;  %v1119_v24 = vld [vmem:[%s7460_s6 + $0x8] sm:$0xff] }
 0x1ab   : > { %1553 = vrot.lane.b32.xlu1 %v5377_v4, %s7499_s22  ;;  %1551 = vrot.lane.b32.xlu0 %v5379_v6, %s7499_s22 }
 0x1ac   : > { %1677 = vmatprep.subr.bf16.mxu1 %v1425_v2  ;;  %v1118_v2 = vld [vmem:[%s7460_s6] sm:$0xff] }
 0x1ad   : > { %1678 = vmatpush1.bf16.msra.mxu1 %v1429_v3  ;;  %v1434_v5 = vpop.permute.xlu1 %1433  ;;  %v1432_v7 = vpop.permute.xlu0 %1431  ;;  %v1120_v3 = vld [vmem:[%s7460_s6 + $0x10] sm:$0xff] }
 0x1ae   : > { %v1435_v8 = vsel %vm7518_vm11, %v1434_v5, %v1432_v7  ;;  %v1439_v13 = vsel %vm7518_vm11, %v1432_v7, %v1434_v5 }
 0x1af   : > { %1563 = vrot.lane.b32.xlu1 %v5578_v1, %s7499_s22  ;;  %1561 = vrot.lane.b32.xlu0 %v5574_v63, %s7499_s22 }
 0x1b0   : > { %1679 = vmatprep.subr.bf16.mxu1 %v1435_v8  ;;  %v1123_v8 = vld [vmem:[%s7460_s6 + $0x28] sm:$0xff] }
 0x1b1   : > { %1680 = vmatpush1.bf16.msra.mxu1 %v1439_v13  ;;  %v1444_v17 = vpop.permute.xlu1 %1443  ;;  %v1442_v18 = vpop.permute.xlu0 %1441 }
 0x1b2   : > { %v1445_v27 = vsel %vm7518_vm11, %v1444_v17, %v1442_v18  ;;  %v1449_v38 = vsel %vm7518_vm11, %v1442_v18, %v1444_v17  ;;  %v1125_v17 = vld [vmem:[%s7460_s6 + $0x38] sm:$0xff] }
 0x1b3   : > { %946 = vrot.lane.b32.xlu1 %v5706_v29, %s7499_s22  ;;  %944 = vrot.lane.b32.xlu0 %v5702_v28, %s7499_s22 }
 0x1b4   : > { %1681 = vmatprep.subr.bf16.mxu1 %v1445_v27 }
 0x1b5   : > { %1682 = vmatpush1.bf16.msra.mxu1 %v1449_v38  ;;  %v1464_v39 = vpop.permute.xlu1 %1463  ;;  %v1462_v43 = vpop.permute.xlu0 %1461  ;;  %v4552_v38 = vld [vmem:[%s7459_s5] ss:$16 sps:$4 sm:$0xff]  }
 0x1b6   : > { %1683 = vmatprep.subr.bf16.mxu1 %v1455_v42  ;;  %v1465_v46 = vsel %vm7518_vm11, %v1464_v39, %v1462_v43  ;;  %v1469_v52 = vsel %vm7518_vm11, %v1462_v43, %v1464_v39 }
 0x1b7   : > { %1573 = vrot.lane.b32.xlu1 %v5604_v22, %s7499_s22  ;;  %1571 = vrot.lane.b32.xlu0 %v5600_v21, %s7499_s22  ;;  %s7642_s22 = smov 112  }
 0x1b9   : > { %1684 = vmatpush1.bf16.msra.mxu1 %v1459_v44  ;;  %v1474_v45 = vpop.permute.xlu1 %1473  ;;  %v1472_v47 = vpop.permute.xlu0 %1471 }
 0x1ba   : > { %1685 = vmatprep.subr.bf16.mxu1 %v1465_v46  ;;  %v1475_v54 = vsel %vm7518_vm11, %v1474_v45, %v1472_v47  ;;  %v1479_v58 = vsel %vm7518_vm11, %v1472_v47, %v1474_v45  ;;  %v1509_v46 = vsel %vm7515_vm4, %v5748_v32, %v5750_v35  ;;  %v805_v47 = vsel %vm7512_vm12, %v5762_v37, %v5760_v36 }
 0x1bb   : > { %1133 = vperm.xlu1 %4549, %v1119_v24   ;;  %1128 = vperm.xlu0 %4548, %v1118_v2  }
 0x1bd   : > { %1686 = vmatpush1.bf16.msra.mxu1 %v1469_v52  ;;  %v1484_v53 = vpop.permute.xlu1 %1483  ;;  %v1482_v57 = vpop.permute.xlu0 %1481 }
 0x1be   : > { %1687 = vmatprep.subr.bf16.mxu1 %v1475_v54  ;;  %v1485_v27 = vsel %vm7515_vm4, %v1482_v57, %v1484_v53 }
 0x1bf   : > { %1138 = vperm.xlu1 %4549, %v1120_v3  }
 0x1c1   : > { %1688 = vmatpush1.bf16.msra.mxu1 %v1479_v58  ;;  %v1494_v59 = vpop.permute.xlu1 %1493  ;;  %v1492_v23 = vpop.permute.xlu0 %1491  ;;  %v4555_v58 = vld [vmem:[%s7459_s5 + $0x20] ss:$16 sps:$4 sm:$0xff]  }
 0x1c2   : > { %1689 = vmatprep.subr.bf16.mxu1 %v5512_v34  ;;  %v1495_v43 = vsel %vm7515_vm4, %v1492_v23, %v1494_v59 }
 0x1c5   : > { %1690 = vmatpush1.bf16.msra.mxu1 %v5508_v33  ;;  %v5838_v30 = vpop.permute.xlu1 %1513  ;;  %v5840_v31 = vpop.permute.xlu0 %1511 }
 0x1c6   : > { %1691 = vmatprep.subr.bf16.mxu1 %v5545_v49  ;;  %v1121_v49 = vld [vmem:[%s7460_s6 + $0x18] sm:$0xff] }
 0x1c7   : > { %1143 = vperm.xlu0 %4548, %v1121_v49  }
 0x1c9   : > { %1692 = vmatpush1.bf16.msra.mxu1 %v5541_v48  ;;  %v793_v34 = vpop.permute.xlu1 %792  ;;  %v790_v33 = vpop.permute.xlu0 %789  ;;  %v1122_v48 = vld [vmem:[%s7460_s6 + $0x20] sm:$0xff] }
 0x1ca   : > { %1693 = vmatprep.subr.bf16.mxu1 %v5377_v4  ;;  %1148 = vperm.xlu1 %4549, %v1122_v48   ;;  %v797_v52 = vsel %vm7512_vm12, %v790_v33, %v793_v34  ;;  %v794_v54 = vsel %vm7512_vm12, %v793_v34, %v790_v33 }
 0x1cb   : > { %1153 = vperm.xlu0 %4548, %v1123_v8   ;;  %v954_v49 = vrot.slane %v794_v54, 7 }
 0x1cd   : > { %1694 = vmatpush1.bf16.msra.mxu1 %v5379_v6  ;;  %v781_v5 = vpop.permute.xlu1 %780  ;;  %v778_v7 = vpop.permute.xlu0 %777  ;;  %v1124_v6 = vld [vmem:[%s7460_s6 + $0x30] sm:$0xff] }
 0x1ce   : > { %1695 = vmatprep.subr.bf16.mxu1 %v5578_v1  ;;  %1158 = vperm.xlu1 %4549, %v1124_v6  }
 0x1cf   : > { %1163 = vperm.xlu0 %4548, %v1125_v17  }
 0x1d1   : > { %1696 = vmatpush1.bf16.msra.mxu1 %v5574_v63  ;;  %v811_v4 = vpop.permute.xlu1 %810  ;;  %v808_v13 = vpop.permute.xlu0 %807  ;;  %v1489_v63 = vsel %vm7515_vm4, %v1484_v53, %v1482_v57  ;;  %v802_v53 = vsel %vm7512_vm12, %v5760_v36, %v5762_v37  ;;  %v1505_v57 = vsel %vm7515_vm4, %v5750_v35, %v5748_v32  ;;  %v1519_v36 = vsel %vm7515_vm4, %v5838_v30, %v5840_v31  ;;  %v4556_v37 = vld [vmem:[%s7459_s5 + $0x44] ss:$16 sps:$4 sm:$0xff]  }
 0x1d2   : > { %1697 = vmatprep.subr.bf16.mxu1 %v5604_v22  ;;  %v1499_v22 = vsel %vm7515_vm4, %v1494_v59, %v1492_v23  ;;  %v956_v59 = vrot.slane %v805_v47, 6  ;;  %v787_v23 = vsel %vm7512_vm12, %v778_v7, %v781_v5  ;;  %v953_v32 = vrot.slane %v797_v52, 7 }
 0x1d3   : > { %v783_v35 = vsel %vm7512_vm12, %v781_v5, %v778_v7  ;;  %v812_v34 = vsel %vm7512_vm12, %v811_v4, %v808_v13  ;;  %v815_v33 = vsel %vm7512_vm12, %v808_v13, %v811_v4  ;;  %v957_v3 = vrot.slane %v802_v53, 6  ;;  %v4558_v53 = vld [vmem:[%s7459_s5 + $0x40] ss:$16 sps:$4 sm:$0xff]  }
 0x1d4   : > { %v991_v6 = vsel %vm7514_vm10, %v787_v23, %v953_v32  ;;  %v1515_v5 = vsel %vm7515_vm4, %v5840_v31, %v5838_v30  ;;  %v994_v7 = vsel %vm7514_vm10, %v783_v35, %v954_v49  ;;  %v959_v4 = vrot.slane %v815_v33, 5  ;;  %v4559_v23 = vld [vmem:[%s7459_s5 + $0x64] ss:$16 sps:$4 sm:$0xff]  }
 0x1d5   : > { %1698 = vmatpush1.bf16.msra.mxu1 %v5600_v21  ;;  %v821_v1 = vpop.permute.xlu1 %820  ;;  %v818_v18 = vpop.permute.xlu0 %817  ;;  %v4553_v21 = vld [vmem:[%s7459_s5 + $0x24] ss:$16 sps:$4 sm:$0xff]   ;;  %v960_v13 = vrot.slane %v812_v34, 5  ;;  %v997_v30 = vsel %vm7519_vm13, %v991_v6, %v956_v59  ;;  %vm7522_vm10 = vcmask 1046528  }
 0x1d6   : > { %1699 = vmatprep.subr.bf16.mxu1 %v1489_v63  ;;  %v822_v48 = vsel %vm7512_vm12, %v821_v1, %v818_v18  ;;  %v825_v8 = vsel %vm7512_vm12, %v818_v18, %v821_v1  ;;  %vm7516_vm12 = vcmask 1044480   ;;  %v1002_v54 = vsel %vm7521_vm14, %v997_v30, %v959_v4 }
 0x1d7   : > { %v962_v18 = vrot.slane %v825_v8, 4 }
 0x1d9   : > { %1700 = vmatpush1.bf16.msra.mxu1 %v1485_v27  ;;  %v5879_v39 = vpop.permute.xlu1 %1523  ;;  %v5882_v42 = vpop.permute.xlu0 %1521 }
 0x1da   : > { %1742 = vmatprep.subr.bf16.mxu1 %v1499_v22  ;;  %v1529_v1 = vsel %vm7515_vm4, %v5879_v39, %v5882_v42  ;;  %v963_v22 = vrot.slane %v822_v48, 4  ;;  %v1525_v52 = vsel %vm7515_vm4, %v5882_v42, %v5879_v39  ;;  %vm914_vm4 = vcmask 785408  }
 0x1dc   : > { %1702 = vmatmul.mubr.bf16.vlgmr.msra.gmra.mrb[0].mxu1 %v4552_v38 }
 0x1dd   : > { %1743 = vmatpush1.bf16.msra.mxu1 %v1495_v43  ;;  %v829_v44 = vpop.permute.xlu1 %828  ;;  %v827_v45 = vpop.permute.xlu0 %826  ;;  %1711 = vmatprep.mubr.bf16.mxu1 %v4553_v21 }
 0x1de   : > { %1744 = vmatprep.subr.bf16.mxu1 %v1509_v46  ;;  %v831_v17 = vsel %vm7518_vm11, %v829_v44, %v827_v45  ;;  %v835_v63 = vsel %vm7518_vm11, %v827_v45, %v829_v44  ;;  %v999_v45 = vsel %vm7519_vm13, %v994_v7, %v957_v3 }
 0x1df   : > { %v965_v31 = vrot.slane %v835_v63, 3  ;;  %v966_v44 = vrot.slane %v831_v17, 3 }
 0x1e1   : > { %1745 = vmatpush1.bf16.msra.mxu1 %v1505_v57  ;;  %v863_v24 = vpop.permute.xlu1 %862  ;;  %v861_v2 = vpop.permute.xlu0 %860  ;;  %v1004_v57 = vsel %vm7521_vm14, %v999_v45, %v960_v13 }
 0x1e2   : > { %1746 = vmatprep.subr.bf16.mxu1 %v1519_v36  ;;  %v1009_v42 = vsel %vm7520_vm5, %v1004_v57, %v963_v22  ;;  %v864_v3 = vsel %vm7518_vm11, %v863_v24, %v861_v2  ;;  %v867_v49 = vsel %vm7518_vm11, %v861_v2, %v863_v24  ;;  %v977_v22 = vrot.slane %v5665_v60, 6 }
 0x1e3   : > { %v1014_v34 = vsel %vm7516_vm12, %v1009_v42, %v966_v44  ;;  %v974_v13 = vrot.slane %v867_v49, 7  ;;  %v978_v60 = vrot.slane %v5653_v51, 5  ;;  %v983_v51 = vrot.slane %v5691_v20, 3 }
 0x1e4   : > { %1712 = vmatmul.mubr.bf16.gmra.mrb[4].mxu1 %v4555_v58 }
 0x1e5   : > { %1747 = vmatpush1.bf16.msra.mxu1 %v1515_v5  ;;  %v839_v27 = vpop.permute.xlu1 %838  ;;  %v837_v38 = vpop.permute.xlu0 %836  ;;  %1721 = vmatprep.mubr.bf16.mxu1 %v4556_v37  ;;  %v1007_v37 = vsel %vm7520_vm5, %v1002_v54, %v962_v18  ;;  %v4561_v18 = vld [vmem:[%s7459_s5 + $0x60] ss:$16 sps:$4 sm:$0xff]  }
 0x1e6   : > { %v840_v21 = vsel %vm7518_vm11, %v839_v27, %v837_v38  ;;  %v843_v43 = vsel %vm7518_vm11, %v837_v38, %v839_v27  ;;  %1748 = vmatprep.subr.bf16.mxu1 %v1529_v1  ;;  %v1012_v33 = vsel %vm7516_vm12, %v1007_v37, %v965_v31  ;;  %v975_v27 = vrot.slane %v864_v3, 7  ;;  %v4565_v31 = vld [vmem:[%s7459_s5 + $0xc] ss:$16 sps:$4 sm:$0xff]  }
 0x1e7   : > { %v968_v46 = vrot.slane %v843_v43, 2  ;;  %v969_v47 = vrot.slane %v840_v21, 2  ;;  %vm7587_vm12 = vcmask 1040384   ;;  %v976_v21 = vrot.slane %v5669_v61, 6 }
 0x1e9   : > { %1749 = vmatpush1.bf16.msra.mxu1 %v1525_v52  ;;  %v847_v58 = vpop.permute.xlu1 %846  ;;  %v845_v59 = vpop.permute.xlu0 %844  ;;  %v1019_v48 = vsel %vm7517_vm7, %v1014_v34, %v969_v47  ;;  %v1017_v8 = vsel %vm7517_vm7, %v1012_v33, %v968_v46  ;;  %vm7588_vm7 = vmmov %vm7587_vm12  ;;  %v979_v46 = vrot.slane %v5649_v50, 5  ;;  %v981_v52 = vrot.slane %v5416_v9, 4 }
 0x1ea   : > { %v848_v36 = vsel %vm7518_vm11, %v847_v58, %v845_v59  ;;  %v851_v39 = vsel %vm7518_vm11, %v845_v59, %v847_v58  ;;  %v984_v34 = vrot.slane %v5702_v28, 2 }
 0x1eb   : > { %v971_v32 = vrot.slane %v851_v39, 1  ;;  %v972_v35 = vrot.slane %v848_v36, 1  ;;  %v982_v36 = vrot.slane %v5687_v19, 3 }
 0x1ec   : > { %1722 = vmatmul.mubr.bf16.gmra.mrb[8].mxu1 %v4558_v53  ;;  %v980_v53 = vrot.slane %v5420_v10, 4 }
 0x1ed   : > { %v855_v6 = vpop.permute.xlu1 %854  ;;  %v853_v17 = vpop.permute.xlu0 %852  ;;  %v1025_v63 = vsel %vm7522_vm10, %v1019_v48, %v972_v35  ;;  %v1022_v5 = vsel %vm7522_vm10, %v1017_v8, %v971_v32  ;;  %1731 = vmatprep.mubr.bf16.mxu1 %v4559_v23  ;;  %v985_v35 = vrot.slane %v5706_v29, 2 }
 0x1ee   : > { %v856_v7 = vsel %vm7518_vm11, %v855_v6, %v853_v17  ;;  %v859_v4 = vsel %vm7518_vm11, %v853_v17, %v855_v6  ;;  %1204 = vmatprep.subr.bf16.mxu0 %v1025_v63 }
 0x1ef   : > { %1205 = vmatpush1.bf16.msra.mxu0 %v1022_v5  ;;  %v1028_v24 = vsel %vm7587_vm12, %v859_v4, %v974_v13  ;;  %v1031_v2 = vsel %vm7588_vm7, %v856_v7, %v975_v27  ;;  %vm7589_vm7 = vcmask 1044480  }
 0x1f0   : > { %v1033_v44 = vsel %vm7519_vm13, %v1028_v24, %v976_v21  ;;  %v1035_v45 = vsel %vm7519_vm13, %v1031_v2, %v977_v22  ;;  %vm7590_vm12 = vmmov %vm7589_vm7 }
 0x1f1   : > { %v1534_v38 = vpop.permute.xlu1 %1533  ;;  %v1532_v1 = vpop.permute.xlu0 %1531  ;;  %v1037_v54 = vsel %vm7521_vm14, %v1033_v44, %v978_v60  ;;  %v1039_v57 = vsel %vm7521_vm14, %v1035_v45, %v979_v46 }
 0x1f2   : > { %v1539_v43 = vsel %vm914_vm4, %v1534_v38, %v1532_v1  ;;  %v1535_v30 = vsel %vm914_vm4, %v1532_v1, %v1534_v38  ;;  %v1043_v23 = vsel %vm7520_vm5, %v1039_v57, %v981_v52  ;;  %v1041_v50 = vsel %vm7520_vm5, %v1037_v54, %v980_v53 }
 0x1f3   : > { %1750 = vmatprep.subr.bf16.mxu1 %v1539_v43  ;;  %v1047_v10 = vsel %vm7589_vm7, %v1043_v23, %v983_v51  ;;  %v1045_v42 = vsel %vm7590_vm12, %v1041_v50, %v982_v36  ;;  %vm7593_vm5 = vcmask 1045504  }
 0x1f4   : > { %1751 = vmatpush1.bf16.msra.mxu1 %v1535_v30  ;;  %v1051_v20 = vsel %vm7593_vm5, %v1047_v10, %v985_v35  ;;  %vm7594_vm14 = vmmov %vm7593_vm5 }
 0x1f5   : > { %v889_v47 = vpop.permute.xlu1 %888  ;;  %v887_v61 = vpop.permute.xlu0 %886  ;;  %1732 = vmatmul.mubr.bf16.gmra.mrb[12].mxu1 %v4561_v18  ;;  %v1049_v19 = vsel %vm7594_vm14, %v1045_v42, %v984_v34 }
 0x1f6   : > { %4331 = vmatprep.mubr.msk.bf16.mxu1 %vm7518_vm11, %v4565_v31  ;;  %vm7591_vm11 = vcmask 916480  }
 0x1f7   : > { %vm7592_vm13 = vmmov %vm7591_vm11 }
 0x1f8   : > { %vm7595_vm5 = vmmov %vm7591_vm11 }
 0x1f9   : > { %v897_v58 = vpop.permute.xlu1 %896  ;;  %v895_v59 = vpop.permute.xlu0 %894  ;;  %v890_v27 = vsel %vm7595_vm5, %v887_v61, %v889_v47  ;;  %vm7597_vm14 = vmmov %vm7595_vm5 }
 0x1fa   : > { %v898_v2 = vsel %vm7597_vm14, %v895_v59, %v897_v58  ;;  %vm7599_vm7 = vmmov %vm7595_vm5  ;;  %v1059_v31 = vrot.slane %v890_v27, 7  ;;  %vm7607_vm14 = vcmask 1042432  }
 0x1fb   : > { %vm7600_vm12 = vmmov %vm7595_vm5  ;;  %v1062_v60 = vrot.slane %v898_v2, 6 }
 0x1fc   : > { %vm7602_vm0 = vmmov %vm7595_vm5 }
 0x1fd   : > { %v871_v39 = vpop.permute.xlu1 %870  ;;  %v869_v9 = vpop.permute.xlu0 %868 }
 0x1fe   : > { %v873_v37 = vsel %vm7591_vm11, %v869_v9, %v871_v39  ;;  %v877_v32 = vsel %vm7592_vm13, %v871_v39, %v869_v9  ;;  %vm7596_vm13 = vmmov %vm7595_vm5 }
 0x1ff   : > { %v987_v33 = vrot.slane %v873_v37, 1  ;;  %v988_v3 = vrot.slane %v877_v32, 1  ;;  %v893_v24 = vsel %vm7596_vm13, %v889_v47, %v887_v61  ;;  %vm7598_vm11 = vmmov %vm7595_vm5 }
 0x200   : > { %v901_v38 = vsel %vm7598_vm11, %v897_v58, %v895_v59  ;;  %v1060_v44 = vrot.slane %v893_v24, 7  ;;  %vm7608_vm11 = vmmov %vm7607_vm14 }
 0x201   : > { %v881_v49 = vpop.permute.xlu1 %880  ;;  %v879_v48 = vpop.permute.xlu0 %878  ;;  %v1056_v8 = vsel %vm7522_vm10, %v1051_v20, %v988_v3  ;;  %v1053_v6 = vsel %vm7522_vm10, %v1049_v19, %v987_v33  ;;  %vm7601_vm10 = vmmov %vm7595_vm5  ;;  %v1063_v47 = vrot.slane %v901_v38, 6  ;;  %vm7603_vm5 = vcmask 1040384  }
 0x202   : > { %1206 = vmatprep.subr.bf16.mxu0 %v1056_v8  ;;  %v882_v22 = vsel %vm7599_vm7, %v879_v48, %v881_v49  ;;  %v885_v21 = vsel %vm7600_vm12, %v881_v49, %v879_v48  ;;  %vm7604_vm13 = vmmov %vm7603_vm5  ;;  %vm7609_vm7 = vcmask 1043456  }
 0x203   : > { %1207 = vmatpush1.bf16.msra.mxu0 %v1053_v6  ;;  %v1081_v53 = vsel %vm7603_vm5, %v882_v22, %v1059_v31  ;;  %v1083_v54 = vsel %vm7604_vm13, %v885_v21, %v1060_v44  ;;  %vm7610_vm12 = vmmov %vm7609_vm7  ;;  %vm7611_vm5 = vcmask 1044480  }
 0x204   : > { %vm7612_vm13 = vmmov %vm7611_vm5 }
 0x205   : > { %v905_v17 = vpop.permute.xlu1 %904  ;;  %v903_v63 = vpop.permute.xlu0 %902 }
 0x206   : > { %v906_v43 = vsel %vm7601_vm10, %v903_v63, %v905_v17  ;;  %v909_v30 = vsel %vm7602_vm0, %v905_v17, %v903_v63  ;;  %vm7605_vm0 = vcmask 1041408  }
 0x207   : > { %v1065_v57 = vrot.slane %v906_v43, 5  ;;  %v1066_v58 = vrot.slane %v909_v30, 5  ;;  %v1085_v42 = vsel %vm7605_vm0, %v1081_v53, %v1062_v60  ;;  %vm7606_vm10 = vmmov %vm7605_vm0  ;;  %vm7613_vm0 = vcmask 1045504   ;;  %v6046_v53 = vld [vmem:[%s7459_s5 + $0x2c] ss:$16 sps:$4 sm:$0xff]  }
 0x208   : > { %v1087_v37 = vsel %vm7606_vm10, %v1083_v54, %v1063_v47  ;;  %vm7614_vm10 = vmmov %vm7613_vm0  ;;  %v4566_v54 = vld [vmem:[%s7458_s4 + $0x8] sm:$0xff]  }
 0x209   : > { %v913_v5 = vpop.permute.xlu1 %912  ;;  %v911_v29 = vpop.permute.xlu0 %910  ;;  %v1089_v34 = vsel %vm7607_vm14, %v1085_v42, %v1065_v57  ;;  %v1091_v33 = vsel %vm7608_vm11, %v1087_v37, %v1066_v58  ;;  %vm7615_vm14 = vcmask 1046528   ;;  %v6058_v57 = vld [vmem:[%s7459_s5 + $0x28] ss:$16 sps:$4 sm:$0xff]   ;;  %v6064_v58 = vld [vmem:[%s7459_s5 + $0x4c] ss:$16 sps:$4 sm:$0xff]  }
 0x20a   : > { %v915_v45 = vsel %vm914_vm4, %v911_v29, %v913_v5  ;;  %v919_v46 = vsel %vm914_vm4, %v913_v5, %v911_v29  ;;  %vm7616_vm11 = vmmov %vm7615_vm14 }
 0x20b   : > { %v1068_v50 = vrot.slane %v915_v45, 4  ;;  %v1069_v51 = vrot.slane %v919_v46, 4  ;;  %v4562_v45 = vld [vmem:[%s7458_s4] sm:$0xff]  }
 0x20d   : > { %v1544_v7 = vpop.permute.xlu1 %1543  ;;  %v1542_v28 = vpop.permute.xlu0 %1541  ;;  %v1093_v19 = vsel %vm7609_vm7, %v1089_v34, %v1068_v50  ;;  %v1095_v49 = vsel %vm7610_vm12, %v1091_v33, %v1069_v51  ;;  %vm7617_vm7 = vcmask 1040384   ;;  %v6082_v50 = vld [vmem:[%s7459_s5 + $0x6c] ss:$16 sps:$4 sm:$0xff]  }
 0x20e   : > { %v1549_v4 = vsel %vm914_vm4, %v1544_v7, %v1542_v28  ;;  %v1545_v13 = vsel %vm914_vm4, %v1542_v28, %v1544_v7  ;;  %vm7618_vm12 = vmmov %vm7617_vm7  ;;  %v4574_v51 = vld [vmem:[%s7458_s4 + $0x18] sm:$0xff]  }
 0x20f   : > { %1752 = vmatprep.subr.bf16.mxu1 %v1549_v4 }
 0x210   : > { %1753 = vmatpush1.bf16.msra.mxu1 %v1545_v13 }
 0x211   : > { %v923_v1 = vpop.permute.xlu1 %922  ;;  %v921_v18 = vpop.permute.xlu0 %920 }
 0x212   : > { %v924_v61 = vsel %vm914_vm4, %v921_v18, %v923_v1  ;;  %v927_v52 = vsel %vm914_vm4, %v923_v1, %v921_v18 }
 0x213   : > { %v1071_v9 = vrot.slane %v924_v61, 3  ;;  %v1072_v10 = vrot.slane %v927_v52, 3  ;;  %v6040_v52 = vld [vmem:[%s7459_s5 + $0x8] ss:$16 sps:$4 sm:$0xff]  }
 0x215   : > { %v931_v59 = vpop.permute.xlu1 %930  ;;  %v929_v23 = vpop.permute.xlu0 %928  ;;  %v1099_v63 = vsel %vm7611_vm5, %v1095_v49, %v1072_v10  ;;  %v1097_v5 = vsel %vm7612_vm13, %v1093_v19, %v1071_v9  ;;  %vm1186_vm5 = vcmask 408576   ;;  %vm7619_vm13 = vcmask 130048  }
 0x216   : > { %v932_v36 = vsel %vm914_vm4, %v929_v23, %v931_v59  ;;  %v935_v39 = vsel %vm914_vm4, %v931_v59, %v929_v23  ;;  %v4570_v59 = vld [vmem:[%s7458_s4 + $0x10] sm:$0xff]   ;;  %v6076_v23 = vld [vmem:[%s7459_s5 + $0x48] ss:$16 sps:$4 sm:$0xff]  }
 0x217   : > { %v1074_v32 = vrot.slane %v932_v36, 2  ;;  %v1075_v35 = vrot.slane %v935_v39, 2 }
 0x219   : > { %v939_v3 = vpop.permute.xlu1 %938  ;;  %v937_v20 = vpop.permute.xlu0 %936  ;;  %v1103_v29 = vsel %vm7613_vm0, %v1099_v63, %v1075_v35  ;;  %v1101_v7 = vsel %vm7614_vm10, %v1097_v5, %v1074_v32  ;;  %vm7620_vm0 = vmmov %vm7619_vm13 }
 0x21a   : > { %v940_v48 = vsel %vm914_vm4, %v937_v20, %v939_v3  ;;  %v943_v8 = vsel %vm914_vm4, %v939_v3, %v937_v20  ;;  %vm7621_vm10 = vmmov %vm7620_vm0 }
 0x21b   : > { %v1077_v6 = vrot.slane %v940_v48, 1  ;;  %v1078_v17 = vrot.slane %v943_v8, 1 }
 0x21d   : > { %v1554_v28 = vpop.permute.xlu1 %1553  ;;  %v1552_v4 = vpop.permute.xlu0 %1551  ;;  %v1108_v13 = vsel %vm7615_vm14, %v1103_v29, %v1078_v17  ;;  %v1105_v27 = vsel %vm7616_vm11, %v1101_v7, %v1077_v6  ;;  %vm7623_vm14 = vcmask 932864  }
 0x21e   : > { %1208 = vmatprep.subr.bf16.mxu0 %v1108_v13  ;;  %v1559_v24 = vsel %vm914_vm4, %v1554_v28, %v1552_v4  ;;  %v1555_v2 = vsel %vm914_vm4, %v1552_v4, %v1554_v28  ;;  %vm7624_vm11 = vmmov %vm7623_vm14 }
 0x21f   : > { %1209 = vmatpush1.bf16.msra.mxu0 %v1105_v27  ;;  %1754 = vmatprep.subr.bf16.mxu1 %v1559_v24 }
 0x220   : > { %1755 = vmatpush1.bf16.msra.mxu1 %v1555_v2 }
 0x221   : > { %v1564_v38 = vpop.permute.xlu1 %1563  ;;  %v1562_v1 = vpop.permute.xlu0 %1561 }
 0x222   : > { %v1569_v18 = vsel %vm914_vm4, %v1564_v38, %v1562_v1  ;;  %v1565_v22 = vsel %vm914_vm4, %v1562_v1, %v1564_v38 }
 0x223   : > { %1756 = vmatprep.subr.bf16.mxu1 %v1569_v18 }
 0x224   : > { %1757 = vmatpush1.bf16.msra.mxu1 %v1565_v22 }
 0x225   : > { %v947_v21 = vpop.permute.xlu1 %946  ;;  %v945_v43 = vpop.permute.xlu0 %944 }
 0x226   : > { %v951_v30 = vsel %vm914_vm4, %v947_v21, %v945_v43  ;;  %v948_v31 = vsel %vm914_vm4, %v945_v43, %v947_v21 }
 0x227   : > { %4310 = vmatprep.subr.msk.bf16.mxu0 %vm7617_vm7, %v951_v30  ;;  %v1200_v44 = vsel %vm7618_vm12, %v948_v31, 0  ;;  %vm7625_vm7 = vcmask 15360  }
 0x228   : > { %1211 = vmatpush1.bf16.msra.mxu0 %v1200_v44  ;;  %vm7626_vm12 = vmmov %vm7625_vm7 }
 0x229   : > { %v1574_v46 = vpop.permute.xlu1 %1573  ;;  %v1572_v60 = vpop.permute.xlu0 %1571 }
 0x22a   : > { %v1579_v47 = vsel %vm914_vm4, %v1574_v46, %v1572_v60  ;;  %v1575_v61 = vsel %vm914_vm4, %v1572_v60, %v1574_v46 }
 0x22b   : > { %4311 = vmatmul.mubr.msk.bf16.vlgmr.msra.gmra.mrb[0].mxu0 %vm1186_vm5, %v4562_v45  ;;  %1758 = vmatprep.subr.bf16.mxu1 %v1579_v47 }
 0x22c   : > { %1759 = vmatpush1.bf16.msra.mxu1 %v1575_v61  ;;  %1246 = vmatprep.mubr.bf16.mxu0 %v5051_v0 }
 0x22f   : > { %1775 = vmatmul.mubr.bf16.vlgmr.msra.gmra.mrb[0].mxu1 %v6040_v52 }
 0x230   : > { %4332 = vmatprep.mubr.msk.bf16.mxu1 %vm7619_vm13, %v6046_v53 }
 0x233   : > { %4312 = vmatmul.mubr.msk.bf16.gmra.mrb[4].mxu0 %vm1186_vm5, %v4566_v54 }
 0x234   : > { %1256 = vmatprep.mubr.bf16.mxu0 %v5051_v0 }
 0x237   : > { %1785 = vmatmul.mubr.bf16.gmra.mrb[4].mxu1 %v6058_v57 }
 0x238   : > { %4333 = vmatprep.mubr.msk.bf16.mxu1 %vm7620_vm0, %v6064_v58  ;;  %vm7630_vm0 = vcmask 7168  }
 0x23a   : > { %v1129_v36 = vpop.permute.xlu0 %1128  ;;  %v1134_v42 = vpop.permute.xlu1 %1133 }
 0x23b   : > { %4313 = vmatmul.mubr.msk.bf16.gmra.mrb[8].mxu0 %vm1186_vm5, %v4570_v59 }
 0x23c   : > { %1266 = vmatprep.mubr.bf16.mxu0 %v5051_v0  ;;  %v6094_v0 = vld [vmem:[%s7459_s5 + $0x68] ss:$16 sps:$4 sm:$0xff]  }
 0x23e   : > { %v1139_v17 = vpop.permute.xlu1 %1138 }
 0x23f   : > { %1795 = vmatmul.mubr.bf16.gmra.mrb[8].mxu1 %v6076_v23 }
 0x240   : > { %4334 = vmatprep.mubr.msk.bf16.mxu1 %vm7621_vm10, %v6082_v50  ;;  %vm7631_vm10 = vmmov %vm7630_vm0 }
 0x243   : > { %4314 = vmatmul.mubr.msk.bf16.gmra.mrb[12].mxu0 %vm1186_vm5, %v4574_v51  ;;  %vm7628_vm5 = vcmask 924672  }
 0x244   : > { %2282 = vmatprep.mubr.bf16.mxu0 %v5674_v62  ;;  %vm7629_vm13 = vmmov %vm7628_vm5 }
 0x246   : > { %v1144_v2 = vpop.permute.xlu0 %1143 }
 0x247   : > { %1805 = vmatmul.mubr.bf16.gmra.mrb[12].mxu1 %v6094_v0 }
 0x248   : > { %3063 = vmatprep.mubr.bf16.mxu1 %v5674_v62 }
 0x249   : > { %v1149_v51 = vpop.permute.xlu1 %1148 }
 0x2fe   : > { %v1238_v39 = vpop.f32.mrb[0].mxu0 }
 0x2ff   : > { %v6099_v9 = vadd.f32 %v1238_v39, %v1129_v36  ;;  %v1240_v10 = vpop.f32.mrb[1].mxu0 }
 0x300   : > { %v6101_v37 = vadd.f32 %v1240_v10, %v1129_v36  ;;  %v1242_v32 = vpop.f32.mrb[2].mxu0 }
 0x301   : > { %v1244_v35 = vpop.f32.mrb[3].mxu0  ;;  %v6103_v33 = vadd.f32 %v1242_v32, %v1134_v42 }
 0x302   : > { %v1776_v34 = vpop.f32.mrb[0].mxu1  ;;  %v6106_v19 = vadd.f32 %v1244_v35, %v1134_v42 }
 0x303   : > { %v1822_v3 = vadd.f32 %v1776_v34, %v6099_v9  ;;  %v1778_v20 = vpop.f32.mrb[1].mxu1 }
 0x304   : > { %v1823_v62 = vadd.f32 %v1778_v20, %v6101_v37  ;;  %v1780_v49 = vpop.f32.mrb[2].mxu1 }
 0x305   : > { %v4335_v48 = vmul.f32 -1.442695, %v1822_v3  ;;  %v1824_v8 = vadd.f32 %v1780_v49, %v6103_v33  ;;  %v1782_v6 = vpop.f32.mrb[3].mxu1  ;;  %v1154_v3 = vpop.permute.xlu0 %1153 }
 0x306   : > { %v4336_v63 = vmul.f32 -1.442695, %v1823_v62  ;;  %v1825_v5 = vadd.f32 %v1782_v6, %v6106_v19  ;;  %v1248_v29 = vpop.f32.mrb[4].mxu0 }
 0x307   : > { %4582 = vpow2.f32 %v4335_v48  ;;  %v4337_v7 = vmul.f32 -1.442695, %v1824_v8  ;;  %v6111_v28 = vadd.f32 %v1248_v29, %v1139_v17  ;;  %v1250_v4 = vpop.f32.mrb[5].mxu0 }
 0x308   : > { %4584 = vpow2.f32 %v4336_v63  ;;  %v4338_v13 = vmul.f32 -1.442695, %v1825_v5  ;;  %v1252_v27 = vpop.f32.mrb[6].mxu0  ;;  %v6113_v38 = vadd.f32 %v1250_v4, %v1139_v17 }
 0x309   : > { %4586 = vpow2.f32 %v4337_v7  ;;  %v1254_v24 = vpop.f32.mrb[7].mxu0  ;;  %v6115_v18 = vadd.f32 %v1252_v27, %v1144_v2 }
 0x30a   : > { %4588 = vpow2.f32 %v4338_v13  ;;  %v1786_v1 = vpop.f32.mrb[4].mxu1  ;;  %v6118_v43 = vadd.f32 %v1254_v24, %v1144_v2 }
 0x30b   : > { %v1826_v22 = vadd.f32 %v1786_v1, %v6111_v28  ;;  %v1788_v21 = vpop.f32.mrb[5].mxu1 }
 0x30c   : > { %v1827_v30 = vadd.f32 %v1788_v21, %v6113_v38  ;;  %v1790_v31 = vpop.f32.mrb[6].mxu1 }
 0x30d   : > { %v4339_v44 = vmul.f32 -1.442695, %v1826_v22  ;;  %v1828_v45 = vadd.f32 %v1790_v31, %v6115_v18  ;;  %v1792_v46 = vpop.f32.mrb[7].mxu1 }
 0x30e   : > { %v4340_v60 = vmul.f32 -1.442695, %v1827_v30  ;;  %v1829_v47 = vadd.f32 %v1792_v46, %v6118_v43  ;;  %v1258_v61 = vpop.f32.mrb[8].mxu0 }
 0x30f   : > { %4590 = vpow2.f32 %v4339_v44  ;;  %v4341_v54 = vmul.f32 -1.442695, %v1828_v45  ;;  %v1260_v59 = vpop.f32.mrb[9].mxu0  ;;  %v6123_v42 = vadd.f32 %v1258_v61, %v1149_v51 }
 0x310   : > { %4592 = vpow2.f32 %v4340_v60  ;;  %v4342_v36 = vmul.f32 -1.442695, %v1829_v47  ;;  %v1262_v39 = vpop.f32.mrb[10].mxu0  ;;  %v6125_v20 = vadd.f32 %v1260_v59, %v1149_v51  ;;  %v1159_v60 = vpop.permute.xlu1 %1158 }
 0x311   : > { %v4583_v10 = vpop.eup %4582  ;;  %4594 = vpow2.f32 %v4341_v54  ;;  %v1264_v32 = vpop.f32.mrb[11].mxu0  ;;  %v6127_v8 = vadd.f32 %v1262_v39, %v1154_v3 }
 0x312   : > { %v4585_v35 = vpop.eup %4584  ;;  %v1874_v34 = vadd.f32 1.0, %v4583_v10  ;;  %4596 = vpow2.f32 %v4342_v36  ;;  %v1796_v62 = vpop.f32.mrb[8].mxu1  ;;  %v6130_v29 = vadd.f32 %v1264_v32, %v1154_v3 }
 0x313   : > { %v4587_v49 = vpop.eup %4586  ;;  %v1875_v48 = vadd.f32 1.0, %v4585_v35  ;;  %v1830_v6 = vadd.f32 %v1796_v62, %v6123_v42  ;;  %v1798_v17 = vpop.f32.mrb[9].mxu1 }
 0x314   : > { %v4589_v63 = vpop.eup %4588  ;;  %4598 = vrcp.f32 %v1874_v34  ;;  %v1876_v5 = vadd.f32 1.0, %v4587_v49  ;;  %v1831_v7 = vadd.f32 %v1798_v17, %v6125_v20  ;;  %v1800_v4 = vpop.f32.mrb[10].mxu1 }
 0x315   : > { %4600 = vrcp.f32 %v1875_v48  ;;  %v1877_v13 = vadd.f32 1.0, %v4589_v63  ;;  %v4343_v27 = vmul.f32 -1.442695, %v1830_v6  ;;  %v1832_v24 = vadd.f32 %v1800_v4, %v6127_v8  ;;  %v1802_v2 = vpop.f32.mrb[11].mxu1  ;;  %v1164_v39 = vpop.permute.xlu0 %1163 }
 0x316   : > { %4602 = vrcp.f32 %v1876_v5  ;;  %v4344_v1 = vmul.f32 -1.442695, %v1831_v7  ;;  %v1833_v22 = vadd.f32 %v1802_v2, %v6130_v29  ;;  %v1268_v21 = vpop.f32.mrb[12].mxu0 }
 0x317   : > { %4604 = vrcp.f32 %v1877_v13  ;;  %v4345_v30 = vmul.f32 -1.442695, %v1832_v24  ;;  %v1270_v31 = vpop.f32.mrb[13].mxu0  ;;  %v6135_v59 = vadd.f32 %v1268_v21, %v1159_v60 }
 0x318   : > { %4606 = vpow2.f32 %v4343_v27  ;;  %v4346_v44 = vmul.f32 -1.442695, %v1833_v22  ;;  %v1272_v45 = vpop.f32.mrb[14].mxu0  ;;  %v6137_v32 = vadd.f32 %v1270_v31, %v1159_v60 }
 0x319   : > { %v4591_v46 = vpop.eup %4590  ;;  %4608 = vpow2.f32 %v4344_v1  ;;  %v1274_v47 = vpop.f32.mrb[15].mxu0  ;;  %v6139_v62 = vadd.f32 %v1272_v45, %v1164_v39 }
 0x31a   : > { %v4593_v61 = vpop.eup %4592  ;;  %v1878_v54 = vadd.f32 1.0, %v4591_v46  ;;  %4610 = vpow2.f32 %v4345_v30  ;;  %v1806_v51 = vpop.f32.mrb[12].mxu1  ;;  %v6142_v17 = vadd.f32 %v1274_v47, %v1164_v39  ;;  %v1816_v46 = vld [vmem:[%s5365_s13 + $0x8] sm:$0xff]  ;;  %v1818_v39 = vld [vmem:[%s5365_s13 + $0x18] sm:$0xff] }
 0x31b   : > { %v4595_v36 = vpop.eup %4594  ;;  %v1879_v10 = vadd.f32 1.0, %v4593_v61  ;;  %4612 = vpow2.f32 %v4346_v44  ;;  %v1808_v35 = vpop.f32.mrb[13].mxu1  ;;  %v1834_v49 = vadd.f32 %v1806_v51, %v6135_v59  ;;  %v1815_v44 = vld [vmem:[%s5365_s13] sm:$0xff]  ;;  %v1817_v61 = vld [vmem:[%s5365_s13 + $0x10] sm:$0xff]  ;;  %s7627_s13 = smov 32  }
 0x31c   : > { %v4597_v34 = vpop.eup %4596  ;;  %4614 = vrcp.f32 %v1878_v54  ;;  %v1880_v3 = vadd.f32 1.0, %v4595_v36  ;;  %v1810_v48 = vpop.f32.mrb[14].mxu1  ;;  %7622 = vst [vmem:[#allocation28_spill] sm:$0xff] %v6142_v17  ;;  %v1835_v63 = vadd.f32 %v1808_v35, %v6137_v32 }
 0x31d   : > { %4616 = vrcp.f32 %v1879_v10  ;;  %v1881_v6 = vadd.f32 1.0, %v4597_v34  ;;  %v1812_v5 = vpop.f32.mrb[15].mxu1  ;;  %v1836_v4 = vadd.f32 %v1810_v48, %v6139_v62 }
 0x31e   : > { %v4599_v7 = vpop.eup %4598  ;;  %4618 = vrcp.f32 %v1880_v3  ;;  %v1837_v27 = vadd.f32 %v1812_v5, %v6142_v17 }
 0x31f   : > { %v4601_v13 = vpop.eup %4600  ;;  %4620 = vrcp.f32 %v1881_v6 }
 0x320   : > { %v4603_v24 = vpop.eup %4602  ;;  %4622 = vtanh.f32 %v1834_v49 }
 0x321   : > { %v4605_v2 = vpop.eup %4604  ;;  %4624 = vtanh.f32 %v1835_v63 }
 0x322   : > { %v4607_v1 = vpop.eup %4606  ;;  %4626 = vtanh.f32 %v1836_v4 }
 0x323   : > { %v4609_v22 = vpop.eup %4608  ;;  %4628 = vtanh.f32 %v1837_v27  ;;  %v1882_v60 = vadd.f32 1.0, %v4607_v1 }
 0x324   : > { %v4611_v21 = vpop.eup %4610  ;;  %v1883_v54 = vadd.f32 1.0, %v4609_v22 }
 0x325   : > { %v4613_v30 = vpop.eup %4612  ;;  %v1884_v10 = vadd.f32 1.0, %v4611_v21  ;;  %4630 = vrcp.f32 %v1882_v60 }
 0x326   : > { %v4615_v31 = vpop.eup %4614  ;;  %v1885_v3 = vadd.f32 1.0, %v4613_v30  ;;  %4632 = vrcp.f32 %v1883_v54 }
 0x327   : > { %v4617_v45 = vpop.eup %4616  ;;  %v1914_v36 = vmul.f32 %v4615_v31, %v1815_v44  ;;  %4634 = vrcp.f32 %v1884_v10 }
 0x328   : > { %v4619_v47 = vpop.eup %4618  ;;  %v1915_v34 = vmul.f32 %v4617_v45, %v1816_v46  ;;  %4636 = vrcp.f32 %v1885_v3 }
 0x329   : > { %v4621_v51 = vpop.eup %4620  ;;  %v1916_v48 = vmul.f32 %v4619_v47, %v1817_v61 }
 0x32a   : > { %v4623_v35 = vpop.eup %4622  ;;  %v1917_v5 = vmul.f32 %v4621_v51, %v1818_v39 }
 0x32b   : > { %v4625_v49 = vpop.eup %4624  ;;  %v1918_v6 = vmul.f32 %v4623_v35, %v4599_v7 }
 0x32c   : > { %v4627_v63 = vpop.eup %4626  ;;  %v1919_v4 = vmul.f32 %v4625_v49, %v4601_v13 }
 0x32d   : > { %v4629_v27 = vpop.eup %4628  ;;  %v6151_v1 = vadd.f32 %v1918_v6, %v1914_v36  ;;  %v1920_v22 = vmul.f32 %v4627_v63, %v4603_v24 }
 0x32e   : > { %v6153_v31 = vadd.f32 %v1919_v4, %v1915_v34  ;;  %v1921_v21 = vmul.f32 %v4629_v27, %v4605_v2 }
 0x32f   : > { %4638 = vtanh.f32 %v6151_v1  ;;  %v6156_v30 = vadd.f32 %v1920_v22, %v1916_v48  ;;  %v4631_v13 = vpop.eup %4630 }
 0x330   : > { %4640 = vtanh.f32 %v6153_v31  ;;  %v6159_v7 = vadd.f32 %v1921_v21, %v1917_v5  ;;  %v4633_v44 = vpop.eup %4632 }
 0x331   : > { %4642 = vtanh.f32 %v6156_v30  ;;  %v4635_v45 = vpop.eup %4634 }
 0x332   : > { %4644 = vtanh.f32 %v6159_v7  ;;  %v4637_v24 = vpop.eup %4636 }
 0x339   : > { %v4639_v46 = vpop.eup %4638 }
 0x33a   : > { %v4641_v60 = vpop.eup %4640  ;;  %v1930_v61 = vmul.f32 %v4639_v46, %v4631_v13 }
 0x33b   : > { %v4643_v47 = vpop.eup %4642  ;;  %v1931_v51 = vmul.f32 %v4641_v60, %v4633_v44 }
 0x33c   : > { %v4645_v2 = vpop.eup %4644  ;;  %v1932_v54 = vmul.f32 %v4643_v47, %v4635_v45 }
 0x33d   : > { %v1933_v36 = vmul.f32 %v4645_v2, %v4637_v24 }
 0x33e   : > { %v6163_v39 = vpack.c.bf16 %v1932_v54, %v1930_v61 }
 0x33f   : > { %v6165_v10 = vpack.c.bf16 %v1933_v36, %v1931_v51 }
 0x340   : > { %1948 = vrot.lane.b32.xlu1 %v6163_v39, %s5053_s27  ;;  %1940 = vrot.lane.b32.xlu0 %v6163_v39, %s5052_s19 }
 0x344   : > { %1970 = vrot.lane.b32.xlu1 %v6163_v39, %s5055_s25  ;;  %1962 = vrot.lane.b32.xlu0 %v6163_v39, %s7539_s24 }
 0x348   : > { %1982 = vrot.lane.b32.xlu1 %v6163_v39, %s7537_s1  ;;  %1994 = vrot.lane.b32.xlu0 %v6163_v39, %s7535_s30 }
 0x34c   : > { %1950 = vrot.lane.b32.xlu0 %v6165_v10, %s5053_s27  ;;  %1937 = vrot.lane.b32.xlu1 %v6165_v10, %s5052_s19 }
 0x350   : > { %1972 = vrot.lane.b32.xlu0 %v6165_v10, %s5055_s25  ;;  %1960 = vrot.lane.b32.xlu1 %v6165_v10, %s7539_s24 }
 0x354   : > { %1984 = vrot.lane.b32.xlu0 %v6165_v10, %s7537_s1  ;;  %2004 = vrot.lane.b32.xlu1 %v6163_v39, %s7533_s23 }
 0x358   : > { %2006 = vrot.lane.b32.xlu0 %v6165_v10, %s7533_s23  ;;  %1992 = vrot.lane.b32.xlu1 %v6165_v10, %s7535_s30 }
 0x35c   : > { %2016 = vrot.lane.b32.xlu0 %v6163_v39, %s7525_s11  ;;  %2014 = vrot.lane.b32.xlu1 %v6165_v10, %s7525_s11  ;;  %s7734_s11 = smov 15  }
 0x3b2   : > { %v1949_v35 = vpop.permute.xlu1 %1948  ;;  %v1941_v34 = vpop.permute.xlu0 %1940 }
 0x3b6   : > { %v1971_v3 = vpop.permute.xlu1 %1970  ;;  %v1963_v49 = vpop.permute.xlu0 %1962 }
 0x3ba   : > { %v1983_v48 = vpop.permute.xlu1 %1982  ;;  %v1995_v6 = vpop.permute.xlu0 %1994 }
 0x3be   : > { %v1951_v63 = vpop.permute.xlu0 %1950  ;;  %v1938_v5 = vpop.permute.xlu1 %1937 }
 0x3bf   : > { %v1952_v4 = vsel %vm7623_vm14, %v1949_v35, %v1951_v63  ;;  %v1956_v27 = vsel %vm7624_vm11, %v1951_v63, %v1949_v35  ;;  %v1942_v22 = vsel %vm7625_vm7, %v1941_v34, %v1938_v5  ;;  %v1946_v21 = vsel %vm7626_vm12, %v1938_v5, %v1941_v34 }
 0x3c0   : > { %v6205_v13 = vsel %vm5493_vm8, %v1946_v21, %v1952_v4  ;;  %v6209_v44 = vsel %vm5497_vm9, %v1942_v22, %v1956_v27  ;;  %vm7632_vm14 = vcmask 1039360   ;;  %vm7634_vm7 = vcmask 121856  }
 0x3c1   : > { %2030 = vrot.lane.b32.xlu0 %v6205_v13, %s7627_s13  ;;  %2027 = vrot.lane.b32.xlu1 %v6209_v44, %s7627_s13  ;;  %vm7633_vm11 = vmmov %vm7632_vm14 }
 0x3c2   : > { %v1973_v45 = vpop.permute.xlu0 %1972  ;;  %v1961_v24 = vpop.permute.xlu1 %1960  ;;  %vm7635_vm12 = vmmov %vm7634_vm7 }
 0x3c3   : > { %v1974_v46 = vsel %vm7628_vm5, %v1971_v3, %v1973_v45  ;;  %v1978_v60 = vsel %vm7629_vm13, %v1973_v45, %v1971_v3  ;;  %v1964_v47 = vsel %vm7630_vm0, %v1963_v49, %v1961_v24  ;;  %v1968_v2 = vsel %vm7631_vm10, %v1961_v24, %v1963_v49 }
 0x3c4   : > { %v6221_v61 = vsel %vm5526_vm15, %v1968_v2, %v1974_v46  ;;  %v6225_v54 = vsel %vm5530_vm2, %v1964_v47, %v1978_v60  ;;  %vm7636_vm5 = vcmask 1031168   ;;  %vm7638_vm0 = vcmask 113664  }
 0x3c5   : > { %2042 = vrot.lane.b32.xlu0 %v6221_v61, %s7627_s13  ;;  %2039 = vrot.lane.b32.xlu1 %v6225_v54, %s7627_s13  ;;  %vm7637_vm13 = vmmov %vm7636_vm5 }
 0x3c6   : > { %v1985_v51 = vpop.permute.xlu0 %1984  ;;  %v2005_v36 = vpop.permute.xlu1 %2004  ;;  %vm7639_vm10 = vmmov %vm7638_vm0 }
 0x3c7   : > { %v1986_v3 = vsel %vm7632_vm14, %v1983_v48, %v1985_v51  ;;  %v1990_v49 = vsel %vm7633_vm11, %v1985_v51, %v1983_v48  ;;  %vm7640_vm14 = vnez %v7586_v12  ;;  %vm7644_vm11 = vcmask 261120  }
 0x3c8   : > { %v2421_v12 = vunpack.c.l.s4 %v5064_v11 }
 0x3c9   : > { %2052 = vrot.lane.b32.xlu0 %v6163_v39, %s7627_s13  ;;  %2050 = vrot.lane.b32.xlu1 %v6165_v10, %s7627_s13 }
 0x3ca   : > { %v2007_v35 = vpop.permute.xlu0 %2006  ;;  %v1993_v34 = vpop.permute.xlu1 %1992 }
 0x3cb   : > { %v1996_v63 = vsel %vm7634_vm7, %v1995_v6, %v1993_v34  ;;  %v2000_v5 = vsel %vm7635_vm12, %v1993_v34, %v1995_v6  ;;  %v2008_v21 = vsel %vm7636_vm5, %v2005_v36, %v2007_v35  ;;  %v2012_v6 = vsel %vm7637_vm13, %v2007_v35, %v2005_v36  ;;  %vm7645_vm7 = vmmov %vm7644_vm11 }
 0x3cc   : > { %v6241_v4 = vsel %vm5559_vm3, %v1986_v3, %v2000_v5  ;;  %v6245_v27 = vsel %vm5563_vm1, %v1990_v49, %v1996_v63  ;;  %vm7646_vm12 = vmmov %vm7645_vm7 }
 0x3cd   : > { %2064 = vrot.lane.b32.xlu0 %v6241_v4, %s7627_s13  ;;  %2061 = vrot.lane.b32.xlu1 %v6245_v27, %s7627_s13  ;;  %vm7647_vm5 = vmmov %vm7645_vm7 }
 0x3ce   : > { %v2017_v22 = vpop.permute.xlu0 %2016  ;;  %v2015_v48 = vpop.permute.xlu1 %2014  ;;  %vm7648_vm13 = vmmov %vm7647_vm5 }
 0x3cf   : > { %v2018_v45 = vsel %vm7638_vm0, %v2017_v22, %v2015_v48  ;;  %v2022_v24 = vsel %vm7639_vm10, %v2015_v48, %v2017_v22  ;;  %vm7649_vm0 = vmmov %vm7647_vm5 }
 0x3d0   : > { %v6257_v46 = vsel %vm5586_vm6, %v2008_v21, %v2022_v24  ;;  %v6261_v60 = vsel %vm7640_vm14, %v2012_v6, %v2018_v45  ;;  %vm7650_vm10 = vmmov %vm7649_vm0 }
 0x3d1   : > { %2076 = vrot.lane.b32.xlu0 %v6257_v46, %s7627_s13  ;;  %2073 = vrot.lane.b32.xlu1 %v6261_v60, %s7627_s13 }
 0x3d5   : > { %2086 = vrot.lane.b32.xlu0 %v6205_v13, %s7641_s15  ;;  %2084 = vrot.lane.b32.xlu1 %v6209_v44, %s7641_s15 }
 0x3d9   : > { %2096 = vrot.lane.b32.xlu0 %v6221_v61, %s7641_s15  ;;  %2094 = vrot.lane.b32.xlu1 %v6225_v54, %s7641_s15 }
 0x3dd   : > { %2106 = vrot.lane.b32.xlu0 %v6163_v39, %s7641_s15  ;;  %2104 = vrot.lane.b32.xlu1 %v6165_v10, %s7641_s15 }
 0x3e1   : > { %2116 = vrot.lane.b32.xlu0 %v6241_v4, %s7641_s15  ;;  %2114 = vrot.lane.b32.xlu1 %v6245_v27, %s7641_s15 }
 0x3e5   : > { %2126 = vrot.lane.b32.xlu0 %v6257_v46, %s7641_s15  ;;  %2124 = vrot.lane.b32.xlu1 %v6261_v60, %s7641_s15 }
 0x3e9   : > { %2136 = vrot.lane.b32.xlu0 %v6209_v44, %s7642_s22  ;;  %2134 = vrot.lane.b32.xlu1 %v6205_v13, %s7642_s22 }
 0x3ed   : > { %2146 = vrot.lane.b32.xlu0 %v6225_v54, %s7642_s22  ;;  %2144 = vrot.lane.b32.xlu1 %v6221_v61, %s7642_s22 }
 0x3f1   : > { %2156 = vrot.lane.b32.xlu0 %v6165_v10, %s7642_s22  ;;  %2154 = vrot.lane.b32.xlu1 %v6163_v39, %s7642_s22 }
 0x3f5   : > { %2166 = vrot.lane.b32.xlu0 %v6245_v27, %s7642_s22  ;;  %2164 = vrot.lane.b32.xlu1 %v6241_v4, %s7642_s22 }
 0x3f9   : > { %2176 = vrot.lane.b32.xlu0 %v6261_v60, %s7642_s22  ;;  %2174 = vrot.lane.b32.xlu1 %v6257_v46, %s7642_s22 }
 0x3fd   : > { %2186 = vrot.lane.b32.xlu0 %v6209_v44, %s7643_s10  ;;  %2184 = vrot.lane.b32.xlu1 %v6205_v13, %s7643_s10 }
 0x401   : > { %2196 = vrot.lane.b32.xlu0 %v6225_v54, %s7643_s10  ;;  %2194 = vrot.lane.b32.xlu1 %v6221_v61, %s7643_s10 }
 0x405   : > { %2206 = vrot.lane.b32.xlu0 %v6165_v10, %s7643_s10  ;;  %2204 = vrot.lane.b32.xlu1 %v6163_v39, %s7643_s10 }
 0x409   : > { %2216 = vrot.lane.b32.xlu0 %v6245_v27, %s7643_s10  ;;  %2214 = vrot.lane.b32.xlu1 %v6241_v4, %s7643_s10 }
 0x40d   : > { %2226 = vrot.lane.b32.xlu0 %v6261_v60, %s7643_s10  ;;  %2224 = vrot.lane.b32.xlu1 %v6257_v46, %s7643_s10 }
 0x433   : > { %v2031_v47 = vpop.permute.xlu0 %2030  ;;  %v2028_v2 = vpop.permute.xlu1 %2027 }
 0x434   : > { %v2032_v51 = vsel %vm7644_vm11, %v2031_v47, %v2028_v2  ;;  %v2036_v36 = vsel %vm7645_vm7, %v2028_v2, %v2031_v47  ;;  %vm7651_vm11 = vmmov %vm7649_vm0 }
 0x435   : > { %2250 = vmatprep.subr.bf16.mxu0 %v2032_v51  ;;  %vm7652_vm7 = vmmov %vm7649_vm0 }
 0x436   : > { %2251 = vmatpush1.bf16.msra.mxu0 %v2036_v36 }
 0x437   : > { %v2043_v35 = vpop.permute.xlu0 %2042  ;;  %v2040_v34 = vpop.permute.xlu1 %2039 }
 0x438   : > { %v2044_v3 = vsel %vm7646_vm12, %v2043_v35, %v2040_v34  ;;  %v2048_v49 = vsel %vm7647_vm5, %v2040_v34, %v2043_v35  ;;  %vm7653_vm12 = vmmov %vm7649_vm0  ;;  %vm7654_vm5 = vcmask 130048  }
 0x439   : > { %2252 = vmatprep.subr.bf16.mxu0 %v2044_v3 }
 0x43a   : > { %2253 = vmatpush1.bf16.msra.mxu0 %v2048_v49 }
 0x43b   : > { %v2053_v63 = vpop.permute.xlu0 %2052  ;;  %v2051_v5 = vpop.permute.xlu1 %2050 }
 0x43c   : > { %v2054_v22 = vsel %vm7648_vm13, %v2053_v63, %v2051_v5  ;;  %v2058_v48 = vsel %vm7649_vm0, %v2051_v5, %v2053_v63  ;;  %vm7655_vm13 = vmmov %vm7654_vm5 }
 0x43d   : > { %2254 = vmatprep.subr.bf16.mxu0 %v2054_v22  ;;  %vm7656_vm0 = vmmov %vm7654_vm5 }
 0x43e   : > { %2255 = vmatpush1.bf16.msra.mxu0 %v2058_v48 }
 0x43f   : > { %v2065_v21 = vpop.permute.xlu0 %2064  ;;  %v2062_v6 = vpop.permute.xlu1 %2061 }
 0x440   : > { %v2066_v45 = vsel %vm7650_vm10, %v2065_v21, %v2062_v6  ;;  %v2070_v24 = vsel %vm7651_vm11, %v2062_v6, %v2065_v21  ;;  %vm7657_vm10 = vmmov %vm7656_vm0 }
 0x441   : > { %2256 = vmatprep.subr.bf16.mxu0 %v2066_v45  ;;  %vm7658_vm11 = vmmov %vm7656_vm0 }
 0x442   : > { %2257 = vmatpush1.bf16.msra.mxu0 %v2070_v24 }
 0x443   : > { %v2077_v47 = vpop.permute.xlu0 %2076  ;;  %v2074_v2 = vpop.permute.xlu1 %2073 }
 0x444   : > { %v2078_v51 = vsel %vm7652_vm7, %v2077_v47, %v2074_v2  ;;  %v2082_v36 = vsel %vm7653_vm12, %v2074_v2, %v2077_v47  ;;  %vm7659_vm7 = vmmov %vm7656_vm0 }
 0x445   : > { %2258 = vmatprep.subr.bf16.mxu0 %v2078_v51  ;;  %vm7660_vm12 = vmmov %vm7656_vm0 }
 0x446   : > { %2259 = vmatpush1.bf16.msra.mxu0 %v2082_v36 }
 0x447   : > { %v2087_v35 = vpop.permute.xlu0 %2086  ;;  %v2085_v34 = vpop.permute.xlu1 %2084 }
 0x448   : > { %v2088_v3 = vsel %vm7654_vm5, %v2087_v35, %v2085_v34  ;;  %v2092_v49 = vsel %vm7655_vm13, %v2085_v34, %v2087_v35  ;;  %vm7661_vm5 = vmmov %vm7656_vm0 }
 0x449   : > { %2260 = vmatprep.subr.bf16.mxu0 %v2088_v3  ;;  %vm7662_vm13 = vmmov %vm7656_vm0 }
 0x44a   : > { %2261 = vmatpush1.bf16.msra.mxu0 %v2092_v49 }
 0x44b   : > { %v2097_v63 = vpop.permute.xlu0 %2096  ;;  %v2095_v5 = vpop.permute.xlu1 %2094 }
 0x44c   : > { %v2098_v22 = vsel %vm7656_vm0, %v2097_v63, %v2095_v5  ;;  %v2102_v48 = vsel %vm7657_vm10, %v2095_v5, %v2097_v63  ;;  %vm7663_vm10 = vcmask 916480  }
 0x44d   : > { %2262 = vmatprep.subr.bf16.mxu0 %v2098_v22 }
 0x44e   : > { %2263 = vmatpush1.bf16.msra.mxu0 %v2102_v48 }
 0x44f   : > { %v2107_v21 = vpop.permute.xlu0 %2106  ;;  %v2105_v6 = vpop.permute.xlu1 %2104 }
 0x450   : > { %v2108_v45 = vsel %vm7658_vm11, %v2107_v21, %v2105_v6  ;;  %v2112_v24 = vsel %vm7659_vm7, %v2105_v6, %v2107_v21  ;;  %vm7664_vm11 = vmmov %vm7663_vm10 }
 0x451   : > { %2264 = vmatprep.subr.bf16.mxu0 %v2108_v45  ;;  %vm7665_vm7 = vmmov %vm7663_vm10 }
 0x452   : > { %2265 = vmatpush1.bf16.msra.mxu0 %v2112_v24 }
 0x453   : > { %v2117_v47 = vpop.permute.xlu0 %2116  ;;  %v2115_v2 = vpop.permute.xlu1 %2114 }
 0x454   : > { %v2118_v51 = vsel %vm7660_vm12, %v2117_v47, %v2115_v2  ;;  %v2122_v36 = vsel %vm7661_vm5, %v2115_v2, %v2117_v47  ;;  %vm7666_vm12 = vmmov %vm7665_vm7 }
 0x455   : > { %2266 = vmatprep.subr.bf16.mxu0 %v2118_v51  ;;  %vm7667_vm5 = vmmov %vm7665_vm7 }
 0x456   : > { %2267 = vmatpush1.bf16.msra.mxu0 %v2122_v36 }
 0x457   : > { %v2127_v35 = vpop.permute.xlu0 %2126  ;;  %v2125_v34 = vpop.permute.xlu1 %2124 }
 0x458   : > { %v2128_v3 = vsel %vm7662_vm13, %v2127_v35, %v2125_v34  ;;  %v2132_v49 = vsel %vm7656_vm0, %v2125_v34, %v2127_v35  ;;  %vm7668_vm13 = vmmov %vm7667_vm5  ;;  %v6379_v34 = vld [vmem:[%s7459_s5 + $0x20] ss:$16 sps:$4 sm:$0xff]  }
 0x459   : > { %2268 = vmatprep.subr.bf16.mxu0 %v2128_v3  ;;  %vm7669_vm0 = vmmov %vm7667_vm5 }
 0x45a   : > { %2269 = vmatpush1.bf16.msra.mxu0 %v2132_v49 }
 0x45b   : > { %v2137_v63 = vpop.permute.xlu0 %2136  ;;  %2270 = vmatprep.subr.bf16.mxu0 %v6209_v44  ;;  %v2135_v5 = vpop.permute.xlu1 %2134 }
 0x45e   : > { %2271 = vmatpush1.bf16.msra.mxu0 %v6205_v13  ;;  %v2142_v13 = vsel %vm7663_vm10, %v2137_v63, %v2135_v5  ;;  %vm7670_vm10 = vmmov %vm7669_vm0 }
 0x45f   : > { %v2147_v22 = vpop.permute.xlu0 %2146  ;;  %2272 = vmatprep.subr.bf16.mxu0 %v6225_v54  ;;  %v2145_v48 = vpop.permute.xlu1 %2144 }
 0x462   : > { %2273 = vmatpush1.bf16.msra.mxu0 %v6221_v61 }
 0x463   : > { %2274 = vmatprep.subr.bf16.mxu0 %v6165_v10  ;;  %v2157_v21 = vpop.permute.xlu0 %2156  ;;  %v2155_v6 = vpop.permute.xlu1 %2154  ;;  %v2138_v10 = vsel %vm7664_vm11, %v2135_v5, %v2137_v63  ;;  %vm7671_vm11 = vmmov %vm7669_vm0  ;;  %v6387_v63 = vld [vmem:[%s7459_s5 + $0x44] ss:$16 sps:$4 sm:$0xff]  }
 0x464   : > { %v2158_v2 = vsel %vm7668_vm13, %v2155_v6, %v2157_v21 }
 0x466   : > { %2275 = vmatpush1.bf16.msra.mxu0 %v6163_v39  ;;  %v2152_v39 = vsel %vm7665_vm7, %v2147_v22, %v2145_v48  ;;  %vm7672_vm7 = vmmov %vm7669_vm0 }
 0x467   : > { %2276 = vmatprep.subr.bf16.mxu0 %v6245_v27  ;;  %v2167_v44 = vpop.permute.xlu0 %2166  ;;  %v2165_v45 = vpop.permute.xlu1 %2164  ;;  %v2148_v27 = vsel %vm7666_vm12, %v2145_v48, %v2147_v22  ;;  %vm7673_vm12 = vcmask 130048  }
 0x468   : > { %v2172_v51 = vsel %vm7669_vm0, %v2167_v44, %v2165_v45  ;;  %v2168_v3 = vsel %vm7670_vm10, %v2165_v45, %v2167_v44 }
 0x46a   : > { %2277 = vmatpush1.bf16.msra.mxu0 %v6241_v4  ;;  %v6363_v4 = vld [vmem:[%s7459_s5] ss:$16 sps:$4 sm:$0xff]  }
 0x46b   : > { %2278 = vmatprep.subr.bf16.mxu0 %v6261_v60  ;;  %v2177_v61 = vpop.permute.xlu0 %2176  ;;  %v2175_v54 = vpop.permute.xlu1 %2174  ;;  %v6371_v60 = vld [vmem:[%s7459_s5 + $0x24] ss:$16 sps:$4 sm:$0xff]  }
 0x46c   : > { %v2182_v49 = vsel %vm7671_vm11, %v2177_v61, %v2175_v54  ;;  %v2178_v5 = vsel %vm7672_vm7, %v2175_v54, %v2177_v61  ;;  %v582_v61 = vld [vmem:[%s7459_s5 + $0x80] sm:$0x11]  ;;  %vm7681_vm11 = vcmask 932864  }
 0x46d   : > { %vm7682_vm7 = vmmov %vm7681_vm11 }
 0x46e   : > { %2279 = vmatpush1.bf16.msra.mxu0 %v6257_v46  ;;  %v2162_v46 = vsel %vm7667_vm5, %v2157_v21, %v2155_v6  ;;  %v6395_v6 = vld [vmem:[%s7459_s5 + $0x40] ss:$16 sps:$4 sm:$0xff]   ;;  %vm7674_vm5 = vmmov %vm7673_vm12 }
 0x46f   : > { %2280 = vmatprep.subr.bf16.mxu0 %v2142_v13  ;;  %v2187_v24 = vpop.permute.xlu0 %2186  ;;  %v2185_v47 = vpop.permute.xlu1 %2184  ;;  %v6403_v13 = vld [vmem:[%s7459_s5 + $0x64] ss:$16 sps:$4 sm:$0xff]   ;;  %vm7675_vm13 = vmmov %vm7674_vm5 }
 0x470   : > { %v2192_v22 = vsel %vm914_vm4, %v2187_v24, %v2185_v47  ;;  %v2188_v44 = vsel %vm914_vm4, %v2185_v47, %v2187_v24  ;;  %v6416_v24 = vld [vmem:[%s7459_s5 + $0x60] ss:$16 sps:$4 sm:$0xff]   ;;  %vm7676_vm0 = vmmov %vm7674_vm5 }
 0x471   : > { %vm7677_vm10 = vmmov %vm7676_vm0 }
 0x472   : > { %2281 = vmatpush1.bf16.msra.mxu0 %v2138_v10 }
 0x473   : > { %2331 = vmatprep.subr.bf16.mxu0 %v2152_v39  ;;  %v2197_v36 = vpop.permute.xlu0 %2196  ;;  %v2195_v35 = vpop.permute.xlu1 %2194 }
 0x474   : > { %v2202_v45 = vsel %vm914_vm4, %v2197_v36, %v2195_v35  ;;  %v2198_v39 = vsel %vm914_vm4, %v2195_v35, %v2197_v36 }
 0x475   : > { %2283 = vmatmul.mubr.bf16.vlgmr.msra.gmra.mrb[16].mxu0 %v6363_v4 }
 0x476   : > { %2332 = vmatpush1.bf16.msra.mxu0 %v2148_v27  ;;  %2292 = vmatprep.mubr.bf16.mxu0 %v6371_v60 }
 0x477   : > { %2333 = vmatprep.subr.bf16.mxu0 %v2162_v46  ;;  %v2207_v48 = vpop.permute.xlu0 %2206  ;;  %v2205_v21 = vpop.permute.xlu1 %2204  ;;  %v6411_v46 = vcombine.high %v582_v61, %v582_v61 }
 0x478   : > { %v2212_v27 = vsel %vm914_vm4, %v2207_v48, %v2205_v21  ;;  %v2208_v47 = vsel %vm914_vm4, %v2205_v21, %v2207_v48  ;;  %v583_v48 = vld [vmem:[%s7459_s5 + $0x88] sm:$0x11] }
 0x479   : > { %v6447_v21 = vcombine.high %v583_v48, %v583_v48 }
 0x47a   : > { %2334 = vmatpush1.bf16.msra.mxu0 %v2158_v2 }
 0x47b   : > { %2335 = vmatprep.subr.bf16.mxu0 %v2172_v51  ;;  %v2217_v54 = vpop.permute.xlu0 %2216  ;;  %v2215_v10 = vpop.permute.xlu1 %2214 }
 0x47c   : > { %v2222_v2 = vsel %vm914_vm4, %v2217_v54, %v2215_v10  ;;  %v2218_v35 = vsel %vm914_vm4, %v2215_v10, %v2217_v54 }
 0x47d   : > { %2293 = vmatmul.mubr.bf16.gmra.mrb[20].mxu0 %v6379_v34 }
 0x47e   : > { %2336 = vmatpush1.bf16.msra.mxu0 %v2168_v3  ;;  %2302 = vmatprep.mubr.bf16.mxu0 %v6387_v63  ;;  %v6423_v3 = vcombine.low %v582_v61, %v582_v61 }
 0x47f   : > { %2337 = vmatprep.subr.bf16.mxu0 %v2182_v49  ;;  %v2227_v51 = vpop.permute.xlu0 %2226  ;;  %v2225_v36 = vpop.permute.xlu1 %2224 }
 0x480   : > { %v2232_v49 = vsel %vm914_vm4, %v2227_v51, %v2225_v36 }
 0x482   : > { %2338 = vmatpush1.bf16.msra.mxu0 %v2178_v5  ;;  %v2228_v5 = vsel %vm914_vm4, %v2225_v36, %v2227_v51 }
 0x483   : > { %2339 = vmatprep.subr.bf16.mxu0 %v2192_v22  ;;  %v6431_v22 = vld [vmem:[%s7459_s5 + $0xc] ss:$16 sps:$4 sm:$0xff]  }
 0x485   : > { %2303 = vmatmul.mubr.bf16.gmra.mrb[24].mxu0 %v6395_v6 }
 0x486   : > { %2340 = vmatpush1.bf16.msra.mxu0 %v2188_v44  ;;  %2312 = vmatprep.mubr.bf16.mxu0 %v6403_v13 }
 0x487   : > { %2341 = vmatprep.subr.bf16.mxu0 %v2202_v45 }
 0x48a   : > { %2342 = vmatpush1.bf16.msra.mxu0 %v2198_v39 }
 0x48b   : > { %2343 = vmatprep.subr.bf16.mxu0 %v2212_v27 }
 0x48d   : > { %2313 = vmatmul.mubr.bf16.gmra.mrb[28].mxu0 %v6416_v24 }
 0x48e   : > { %2344 = vmatpush1.bf16.msra.mxu0 %v2208_v47  ;;  %2322 = vmatprep.mubr.bf16.mxu0 %v6411_v46 }
 0x48f   : > { %2345 = vmatprep.subr.bf16.mxu0 %v2222_v2 }
 0x492   : > { %2346 = vmatpush1.bf16.msra.mxu0 %v2218_v35 }
 0x493   : > { %2347 = vmatprep.subr.bf16.mxu0 %v2232_v49 }
 0x495   : > { %2323 = vmatmul.mubr.bf16.gmra.mrb[32].mxu0 %v6423_v3 }
 0x496   : > { %2348 = vmatpush1.bf16.msra.mxu0 %v2228_v5  ;;  %4351 = vmatprep.mubr.msk.bf16.mxu0 %vm7673_vm12, %v6431_v22  ;;  %vm7683_vm12 = vcmask 15360  }
 0x49d   : > { %2364 = vmatmul.mubr.bf16.vlgmr.msra.gmra.mrb[16].mxu0 %v6040_v52  ;;  %v6452_v52 = vcombine.low %v583_v48, %v583_v48 }
 0x49e   : > { %4352 = vmatprep.mubr.msk.bf16.mxu0 %vm7674_vm5, %v6046_v53  ;;  %vm7684_vm5 = vmmov %vm7683_vm12 }
 0x4a5   : > { %2374 = vmatmul.mubr.bf16.gmra.mrb[20].mxu0 %v6058_v57 }
 0x4a6   : > { %4353 = vmatprep.mubr.msk.bf16.mxu0 %vm7675_vm13, %v6064_v58  ;;  %vm7685_vm13 = vcmask 924672  }
 0x4ad   : > { %2384 = vmatmul.mubr.bf16.gmra.mrb[24].mxu0 %v6076_v23 }
 0x4ae   : > { %4354 = vmatprep.mubr.msk.bf16.mxu0 %vm7676_vm0, %v6082_v50  ;;  %vm7686_vm0 = vmmov %vm7685_vm13 }
 0x4b5   : > { %2394 = vmatmul.mubr.bf16.gmra.mrb[28].mxu0 %v6094_v0 }
 0x4b6   : > { %4355 = vmatprep.mubr.msk.bf16.mxu0 %vm7677_vm10, %v6447_v21  ;;  %vm7687_vm10 = vcmask 7168  }
 0x4bd   : > { %2404 = vmatmul.mubr.bf16.gmra.mrb[36].mxu0 %v6452_v52 }
 0x4be   : > { %3808 = vmatprep.mubr.bf16.mxu0 %v6411_v46 }
 0x568   : > { %v6456_v53 = vpop.f32.mrb[32].mxu0 }
 0x569   : > { %v6458_v57 = vpop.f32.mrb[33].mxu0 }
 0x56a   : > { %v2328_v58 = vpop.f32.mrb[34].mxu0 }
 0x56b   : > { %v2329_v23 = vpop.f32.mrb[35].mxu0 }
 0x570   : > { %v2365_v50 = vpop.f32.mrb[16].mxu0 }
 0x571   : > { %v2611_v44 = vadd.f32 %v2365_v50, %v6099_v9  ;;  %v2367_v45 = vpop.f32.mrb[17].mxu0 }
 0x572   : > { %v2612_v0 = vadd.f32 %v2367_v45, %v6101_v37  ;;  %v2369_v61 = vpop.f32.mrb[18].mxu0 }
 0x573   : > { %v4357_v54 = vmul.f32 -1.442695, %v2611_v44  ;;  %v2613_v10 = vadd.f32 %v2369_v61, %v6103_v33  ;;  %v2371_v39 = vpop.f32.mrb[19].mxu0 }
 0x574   : > { %v4358_v27 = vmul.f32 -1.442695, %v2612_v0  ;;  %v2614_v47 = vadd.f32 %v2371_v39, %v6106_v19 }
 0x575   : > { %4646 = vpow2.f32 %v4357_v54  ;;  %v4359_v2 = vmul.f32 -1.442695, %v2613_v10 }
 0x576   : > { %4648 = vpow2.f32 %v4358_v27  ;;  %v4360_v51 = vmul.f32 -1.442695, %v2614_v47 }
 0x577   : > { %4650 = vpow2.f32 %v4359_v2 }
 0x578   : > { %4652 = vpow2.f32 %v4360_v51  ;;  %v2375_v36 = vpop.f32.mrb[20].mxu0 }
 0x579   : > { %v2615_v35 = vadd.f32 %v2375_v36, %v6111_v28  ;;  %v2377_v49 = vpop.f32.mrb[21].mxu0 }
 0x57a   : > { %v2616_v5 = vadd.f32 %v2377_v49, %v6113_v38  ;;  %v2379_v48 = vpop.f32.mrb[22].mxu0 }
 0x57b   : > { %v4361_v58 = vmul.f32 -1.442695, %v2615_v35  ;;  %v2617_v23 = vadd.f32 %v2379_v48, %v6115_v18  ;;  %v2381_v50 = vpop.f32.mrb[23].mxu0 }
 0x57c   : > { %v4362_v44 = vmul.f32 -1.442695, %v2616_v5  ;;  %v2618_v45 = vadd.f32 %v2381_v50, %v6118_v43 }
 0x57d   : > { %4654 = vpow2.f32 %v4361_v58  ;;  %v4363_v0 = vmul.f32 -1.442695, %v2617_v23 }
 0x57e   : > { %4656 = vpow2.f32 %v4362_v44  ;;  %v4364_v61 = vmul.f32 -1.442695, %v2618_v45 }
 0x57f   : > { %v4647_v54 = vpop.eup %4646  ;;  %4658 = vpow2.f32 %v4363_v0 }
 0x580   : > { %v4649_v10 = vpop.eup %4648  ;;  %v2663_v39 = vadd.f32 1.0, %v4647_v54  ;;  %4660 = vpow2.f32 %v4364_v61  ;;  %v2385_v27 = vpop.f32.mrb[24].mxu0 }
 0x581   : > { %v4651_v47 = vpop.eup %4650  ;;  %v2664_v2 = vadd.f32 1.0, %v4649_v10  ;;  %v2619_v51 = vadd.f32 %v2385_v27, %v6123_v42  ;;  %v2387_v36 = vpop.f32.mrb[25].mxu0 }
 0x582   : > { %v4653_v35 = vpop.eup %4652  ;;  %4662 = vrcp.f32 %v2663_v39  ;;  %v2665_v49 = vadd.f32 1.0, %v4651_v47  ;;  %v2620_v5 = vadd.f32 %v2387_v36, %v6125_v20  ;;  %v2389_v48 = vpop.f32.mrb[26].mxu0 }
 0x583   : > { %4664 = vrcp.f32 %v2664_v2  ;;  %v2666_v58 = vadd.f32 1.0, %v4653_v35  ;;  %v4365_v23 = vmul.f32 -1.442695, %v2619_v51  ;;  %v2621_v50 = vadd.f32 %v2389_v48, %v6127_v8  ;;  %v2391_v44 = vpop.f32.mrb[27].mxu0 }
 0x584   : > { %4666 = vrcp.f32 %v2665_v49  ;;  %v4366_v45 = vmul.f32 -1.442695, %v2620_v5  ;;  %v2622_v0 = vadd.f32 %v2391_v44, %v6130_v29 }
 0x585   : > { %4668 = vrcp.f32 %v2666_v58  ;;  %v4367_v61 = vmul.f32 -1.442695, %v2621_v50 }
 0x586   : > { %4670 = vpow2.f32 %v4365_v23  ;;  %v4368_v54 = vmul.f32 -1.442695, %v2622_v0 }
 0x587   : > { %v4655_v10 = vpop.eup %4654  ;;  %4672 = vpow2.f32 %v4366_v45 }
 0x588   : > { %v4657_v39 = vpop.eup %4656  ;;  %v2667_v27 = vadd.f32 1.0, %v4655_v10  ;;  %4674 = vpow2.f32 %v4367_v61  ;;  %v2395_v47 = vpop.f32.mrb[28].mxu0 }
 0x589   : > { %v4659_v2 = vpop.eup %4658  ;;  %v2668_v36 = vadd.f32 1.0, %v4657_v39  ;;  %4676 = vpow2.f32 %v4368_v54  ;;  %v2397_v51 = vpop.f32.mrb[29].mxu0  ;;  %v2623_v5 = vadd.f32 %v2395_v47, %v6135_v59 }
 0x58a   : > { %v4661_v35 = vpop.eup %4660  ;;  %4678 = vrcp.f32 %v2667_v27  ;;  %v2669_v49 = vadd.f32 1.0, %v4659_v2  ;;  %v2399_v48 = vpop.f32.mrb[30].mxu0  ;;  %v2624_v23 = vadd.f32 %v2397_v51, %v6137_v32 }
 0x58b   : > { %4680 = vrcp.f32 %v2668_v36  ;;  %v2670_v58 = vadd.f32 1.0, %v4661_v35  ;;  %v2401_v50 = vpop.f32.mrb[31].mxu0  ;;  %v2625_v45 = vadd.f32 %v2399_v48, %v6139_v62 }
 0x58c   : > { %v4663_v44 = vpop.eup %4662  ;;  %4682 = vrcp.f32 %v2669_v49  ;;  %v2626_v61 = vadd.f32 %v2401_v50, %v6142_v17 }
 0x58d   : > { %v4665_v0 = vpop.eup %4664  ;;  %4684 = vrcp.f32 %v2670_v58 }
 0x58e   : > { %v4667_v54 = vpop.eup %4666  ;;  %4686 = vtanh.f32 %v2623_v5 }
 0x58f   : > { %v4669_v10 = vpop.eup %4668  ;;  %4688 = vtanh.f32 %v2624_v23 }
 0x590   : > { %v4671_v39 = vpop.eup %4670  ;;  %4690 = vtanh.f32 %v2625_v45  ;;  %v2405_v27 = vpop.f32.mrb[36].mxu0 }
 0x591   : > { %v4673_v47 = vpop.eup %4672  ;;  %4692 = vtanh.f32 %v2626_v61  ;;  %v6477_v2 = vadd.f32 %v2405_v27, %v6456_v53  ;;  %v2407_v36 = vpop.f32.mrb[37].mxu0  ;;  %v2671_v15 = vadd.f32 1.0, %v4671_v39 }
 0x592   : > { %v4675_v51 = vpop.eup %4674  ;;  %v6480_v35 = vadd.f32 %v2407_v36, %v6458_v57  ;;  %v2409_v49 = vpop.f32.mrb[38].mxu0  ;;  %v2672_v14 = vadd.f32 1.0, %v4673_v47 }
 0x593   : > { %7678 = vst [vmem:[#allocation29_spill] sm:$0xff] %v6477_v2  ;;  %v4677_v48 = vpop.eup %4676  ;;  %v2410_v58 = vpop.f32.mrb[39].mxu0  ;;  %v2673_v61 = vadd.f32 1.0, %v4675_v51  ;;  %4694 = vrcp.f32 %v2671_v15 }
 0x594   : > { %7679 = vst [vmem:[#allocation30_spill] sm:$0xff] %v6480_v35  ;;  %v4679_v50 = vpop.eup %4678  ;;  %v2674_v27 = vadd.f32 1.0, %v4677_v48  ;;  %4696 = vrcp.f32 %v2672_v14 }
 0x595   : > { %v4681_v5 = vpop.eup %4680  ;;  %v2703_v16 = vmul.f32 %v4679_v50, %v6151_v1  ;;  %4698 = vrcp.f32 %v2673_v61 }
 0x596   : > { %v4683_v23 = vpop.eup %4682  ;;  %v2704_v53 = vmul.f32 %v4681_v5, %v6153_v31  ;;  %4700 = vrcp.f32 %v2674_v27 }
 0x597   : > { %v4685_v45 = vpop.eup %4684  ;;  %v2705_v57 = vmul.f32 %v4683_v23, %v6156_v30 }
 0x598   : > { %v4687_v17 = vpop.eup %4686  ;;  %v2706_v58 = vmul.f32 %v4685_v45, %v6159_v7 }
 0x599   : > { %v4689_v2 = vpop.eup %4688  ;;  %v2707_v36 = vmul.f32 %v4687_v17, %v4663_v44 }
 0x59a   : > { %v4691_v49 = vpop.eup %4690  ;;  %v2708_v39 = vmul.f32 %v4689_v2, %v4665_v0 }
 0x59b   : > { %v4693_v47 = vpop.eup %4692  ;;  %v6486_v35 = vadd.f32 %v2707_v36, %v2703_v16  ;;  %v2709_v1 = vmul.f32 %v4691_v49, %v4667_v54 }
 0x59c   : > { %v6488_v51 = vadd.f32 %v2708_v39, %v2704_v53  ;;  %v2710_v31 = vmul.f32 %v4693_v47, %v4669_v10 }
 0x59d   : > { %4702 = vtanh.f32 %v6486_v35  ;;  %2727 = vst [vmem:[%s6492_s9] sm:$0xff] %v6486_v35  ;;  %v6496_v14 = vadd.f32 %v2709_v1, %v2705_v57  ;;  %v4695_v16 = vpop.eup %4694 }
 0x59e   : > { %4704 = vtanh.f32 %v6488_v51  ;;  %2728 = vst [vmem:[%s6492_s9 + $0x8] sm:$0xff] %v6488_v51  ;;  %v6501_v15 = vadd.f32 %v2710_v31, %v2706_v58  ;;  %v4697_v17 = vpop.eup %4696 }
 0x59f   : > { %4706 = vtanh.f32 %v6496_v14  ;;  %2729 = vst [vmem:[%s6492_s9 + $0x10] sm:$0xff] %v6496_v14  ;;  %v4699_v30 = vpop.eup %4698 }
 0x5a0   : > { %4708 = vtanh.f32 %v6501_v15  ;;  %2730 = vst [vmem:[%s6492_s9 + $0x18] sm:$0xff] %v6501_v15  ;;  %v4701_v7 = vpop.eup %4700 }
 0x5a7   : > { %v4703_v44 = vpop.eup %4702 }
 0x5a8   : > { %v4705_v0 = vpop.eup %4704  ;;  %v2719_v54 = vmul.f32 %v4703_v44, %v4695_v16 }
 0x5a9   : > { %v4707_v10 = vpop.eup %4706  ;;  %v2720_v2 = vmul.f32 %v4705_v0, %v4697_v17 }
 0x5aa   : > { %v4709_v48 = vpop.eup %4708  ;;  %v2721_v50 = vmul.f32 %v4707_v10, %v4699_v30  ;;  %2723 = vst [vmem:[%s6510_s28] sm:$0xff] %v2719_v54 }
 0x5ab   : > { %v2722_v5 = vmul.f32 %v4709_v48, %v4701_v7  ;;  %2724 = vst [vmem:[%s6510_s28 + $0x8] sm:$0xff] %v2720_v2 }
 0x5ac   : > { %v6514_v23 = vpack.c.bf16 %v2721_v50, %v2719_v54  ;;  %2725 = vst [vmem:[%s6510_s28 + $0x10] sm:$0xff] %v2721_v50 }
 0x5ad   : > { %v6517_v45 = vpack.c.bf16 %v2722_v5, %v2720_v2  ;;  %2726 = vst [vmem:[%s6510_s28 + $0x18] sm:$0xff] %v2722_v5 }
 0x5ae   : > { %2745 = vrot.lane.b32.xlu1 %v6514_v23, %s5053_s27  ;;  %2737 = vrot.lane.b32.xlu0 %v6514_v23, %s5052_s19 }
 0x5b2   : > { %2767 = vrot.lane.b32.xlu1 %v6514_v23, %s5055_s25  ;;  %2759 = vrot.lane.b32.xlu0 %v6514_v23, %s7539_s24 }
 0x5b6   : > { %2779 = vrot.lane.b32.xlu1 %v6514_v23, %s7537_s1  ;;  %2791 = vrot.lane.b32.xlu0 %v6514_v23, %s7535_s30 }
 0x5ba   : > { %2747 = vrot.lane.b32.xlu0 %v6517_v45, %s5053_s27  ;;  %2734 = vrot.lane.b32.xlu1 %v6517_v45, %s5052_s19 }
 0x5be   : > { %2769 = vrot.lane.b32.xlu0 %v6517_v45, %s5055_s25  ;;  %2757 = vrot.lane.b32.xlu1 %v6517_v45, %s7539_s24  ;;  %s7732_s24 = smov 1  }
 0x5c2   : > { %2781 = vrot.lane.b32.xlu0 %v6517_v45, %s7537_s1  ;;  %2801 = vrot.lane.b32.xlu1 %v6514_v23, %s7533_s23  ;;  %s7733_s1 = smov 127  }
 0x5c6   : > { %2803 = vrot.lane.b32.xlu0 %v6517_v45, %s7533_s23  ;;  %2789 = vrot.lane.b32.xlu1 %v6517_v45, %s7535_s30  ;;  %s4456_s23 = smul.u32 12, %s5343_s29 }
 0x5ca   : > { %2813 = vrot.lane.b32.xlu0 %v6514_v23, %s7680_s12  ;;  %2811 = vrot.lane.b32.xlu1 %v6517_v45, %s7680_s12 }
 0x620   : > { %v2746_v61 = vpop.permute.xlu1 %2745  ;;  %v2738_v53 = vpop.permute.xlu0 %2737 }
 0x624   : > { %v2768_v27 = vpop.permute.xlu1 %2767  ;;  %v2760_v57 = vpop.permute.xlu0 %2759 }
 0x628   : > { %v2780_v36 = vpop.permute.xlu1 %2779  ;;  %v2792_v49 = vpop.permute.xlu0 %2791 }
 0x62c   : > { %v2748_v58 = vpop.permute.xlu0 %2747  ;;  %v2735_v39 = vpop.permute.xlu1 %2734 }
 0x62d   : > { %v2749_v47 = vsel %vm7681_vm11, %v2746_v61, %v2748_v58  ;;  %v2753_v1 = vsel %vm7682_vm7, %v2748_v58, %v2746_v61  ;;  %v2739_v31 = vsel %vm7683_vm12, %v2738_v53, %v2735_v39  ;;  %v2743_v16 = vsel %vm7684_vm5, %v2735_v39, %v2738_v53  ;;  %vm7688_vm11 = vmmov %vm7687_vm10 }
 0x62e   : > { %v6558_v17 = vsel %vm5493_vm8, %v2743_v16, %v2749_v47  ;;  %v6562_v30 = vsel %vm5497_vm9, %v2739_v31, %v2753_v1  ;;  %vm7689_vm7 = vcmask 1039360   ;;  %vm7691_vm5 = vcmask 121856  }
 0x62f   : > { %2827 = vrot.lane.b32.xlu0 %v6558_v17, %s7627_s13  ;;  %2824 = vrot.lane.b32.xlu1 %v6562_v30, %s7627_s13  ;;  %vm7690_vm12 = vmmov %vm7689_vm7 }
 0x630   : > { %v2770_v7 = vpop.permute.xlu0 %2769  ;;  %v2758_v44 = vpop.permute.xlu1 %2757 }
 0x631   : > { %v2771_v0 = vsel %vm7685_vm13, %v2768_v27, %v2770_v7  ;;  %v2775_v54 = vsel %vm7686_vm0, %v2770_v7, %v2768_v27  ;;  %v2761_v10 = vsel %vm7687_vm10, %v2760_v57, %v2758_v44  ;;  %v2765_v2 = vsel %vm7688_vm11, %v2758_v44, %v2760_v57  ;;  %vm7692_vm13 = vmmov %vm7691_vm5 }
 0x632   : > { %v6574_v48 = vsel %vm5526_vm15, %v2765_v2, %v2771_v0  ;;  %v6578_v50 = vsel %vm5530_vm2, %v2761_v10, %v2775_v54  ;;  %vm7693_vm0 = vcmask 1031168   ;;  %vm7695_vm11 = vcmask 113664  }
 0x633   : > { %2839 = vrot.lane.b32.xlu0 %v6574_v48, %s7627_s13  ;;  %2836 = vrot.lane.b32.xlu1 %v6578_v50, %s7627_s13  ;;  %vm7694_vm10 = vmmov %vm7693_vm0 }
 0x634   : > { %v2782_v5 = vpop.permute.xlu0 %2781  ;;  %v2802_v61 = vpop.permute.xlu1 %2801 }
 0x635   : > { %v2783_v57 = vsel %vm7689_vm7, %v2780_v36, %v2782_v5  ;;  %v2787_v58 = vsel %vm7690_vm12, %v2782_v5, %v2780_v36  ;;  %vm7696_vm7 = vmmov %vm7695_vm11  ;;  %vm7697_vm12 = vcmask 261120  }
 0x637   : > { %2849 = vrot.lane.b32.xlu0 %v6514_v23, %s7627_s13  ;;  %2847 = vrot.lane.b32.xlu1 %v6517_v45, %s7627_s13 }
 0x638   : > { %v2804_v53 = vpop.permute.xlu0 %2803  ;;  %v2790_v27 = vpop.permute.xlu1 %2789 }
 0x639   : > { %v2793_v39 = vsel %vm7691_vm5, %v2792_v49, %v2790_v27  ;;  %v2797_v47 = vsel %vm7692_vm13, %v2790_v27, %v2792_v49  ;;  %v2805_v7 = vsel %vm7693_vm0, %v2802_v61, %v2804_v53  ;;  %v2809_v49 = vsel %vm7694_vm10, %v2804_v53, %v2802_v61  ;;  %vm7698_vm5 = vmmov %vm7697_vm12 }
 0x63a   : > { %v6594_v1 = vsel %vm5559_vm3, %v2783_v57, %v2797_v47  ;;  %v6598_v31 = vsel %vm5563_vm1, %v2787_v58, %v2793_v39  ;;  %vm7699_vm13 = vmmov %vm7698_vm5 }
 0x63b   : > { %2861 = vrot.lane.b32.xlu0 %v6594_v1, %s7627_s13  ;;  %2858 = vrot.lane.b32.xlu1 %v6598_v31, %s7627_s13  ;;  %vm7700_vm0 = vmmov %vm7698_vm5 }
 0x63c   : > { %v2814_v16 = vpop.permute.xlu0 %2813  ;;  %v2812_v36 = vpop.permute.xlu1 %2811  ;;  %vm7701_vm10 = vmmov %vm7700_vm0 }
 0x63d   : > { %v2815_v44 = vsel %vm7695_vm11, %v2814_v16, %v2812_v36  ;;  %v2819_v0 = vsel %vm7696_vm7, %v2812_v36, %v2814_v16  ;;  %vm7702_vm11 = vmmov %vm7700_vm0 }
 0x63e   : > { %v6610_v54 = vsel %vm5586_vm6, %v2805_v7, %v2819_v0  ;;  %v6614_v10 = vsel %vm7640_vm14, %v2809_v49, %v2815_v44  ;;  %vm7703_vm7 = vmmov %vm7700_vm0 }
 0x63f   : > { %2873 = vrot.lane.b32.xlu0 %v6610_v54, %s7627_s13  ;;  %2870 = vrot.lane.b32.xlu1 %v6614_v10, %s7627_s13 }
 0x643   : > { %2883 = vrot.lane.b32.xlu0 %v6558_v17, %s7641_s15  ;;  %2881 = vrot.lane.b32.xlu1 %v6562_v30, %s7641_s15 }
 0x647   : > { %2893 = vrot.lane.b32.xlu0 %v6574_v48, %s7641_s15  ;;  %2891 = vrot.lane.b32.xlu1 %v6578_v50, %s7641_s15 }
 0x64b   : > { %2903 = vrot.lane.b32.xlu0 %v6514_v23, %s7641_s15  ;;  %2901 = vrot.lane.b32.xlu1 %v6517_v45, %s7641_s15 }
 0x64f   : > { %2913 = vrot.lane.b32.xlu0 %v6594_v1, %s7641_s15  ;;  %2911 = vrot.lane.b32.xlu1 %v6598_v31, %s7641_s15 }
 0x653   : > { %2923 = vrot.lane.b32.xlu0 %v6610_v54, %s7641_s15  ;;  %2921 = vrot.lane.b32.xlu1 %v6614_v10, %s7641_s15 }
 0x657   : > { %2933 = vrot.lane.b32.xlu0 %v6562_v30, %s7642_s22  ;;  %2931 = vrot.lane.b32.xlu1 %v6558_v17, %s7642_s22 }
 0x65b   : > { %2943 = vrot.lane.b32.xlu0 %v6578_v50, %s7642_s22  ;;  %2941 = vrot.lane.b32.xlu1 %v6574_v48, %s7642_s22 }
 0x65f   : > { %2953 = vrot.lane.b32.xlu0 %v6517_v45, %s7642_s22  ;;  %2951 = vrot.lane.b32.xlu1 %v6514_v23, %s7642_s22 }
 0x663   : > { %2963 = vrot.lane.b32.xlu0 %v6598_v31, %s7642_s22  ;;  %2961 = vrot.lane.b32.xlu1 %v6594_v1, %s7642_s22 }
 0x667   : > { %2973 = vrot.lane.b32.xlu0 %v6614_v10, %s7642_s22  ;;  %2971 = vrot.lane.b32.xlu1 %v6610_v54, %s7642_s22 }
 0x66b   : > { %2983 = vrot.lane.b32.xlu0 %v6562_v30, %s7643_s10  ;;  %2981 = vrot.lane.b32.xlu1 %v6558_v17, %s7643_s10 }
 0x66f   : > { %2993 = vrot.lane.b32.xlu0 %v6578_v50, %s7643_s10  ;;  %2991 = vrot.lane.b32.xlu1 %v6574_v48, %s7643_s10 }
 0x673   : > { %3003 = vrot.lane.b32.xlu0 %v6517_v45, %s7643_s10  ;;  %3001 = vrot.lane.b32.xlu1 %v6514_v23, %s7643_s10 }
 0x677   : > { %3013 = vrot.lane.b32.xlu0 %v6598_v31, %s7643_s10  ;;  %3011 = vrot.lane.b32.xlu1 %v6594_v1, %s7643_s10 }
 0x67b   : > { %3023 = vrot.lane.b32.xlu0 %v6614_v10, %s7643_s10  ;;  %3021 = vrot.lane.b32.xlu1 %v6610_v54, %s7643_s10 }
 0x6a1   : > { %v2828_v2 = vpop.permute.xlu0 %2827  ;;  %v2825_v5 = vpop.permute.xlu1 %2824 }
 0x6a2   : > { %v2829_v61 = vsel %vm7697_vm12, %v2828_v2, %v2825_v5  ;;  %v2833_v53 = vsel %vm7698_vm5, %v2825_v5, %v2828_v2  ;;  %vm7704_vm12 = vmmov %vm7700_vm0 }
 0x6a3   : > { %3031 = vmatprep.subr.bf16.mxu1 %v2829_v61  ;;  %vm7705_vm5 = vmmov %vm7700_vm0 }
 0x6a4   : > { %3032 = vmatpush1.bf16.msra.mxu1 %v2833_v53 }
 0x6a5   : > { %v2840_v27 = vpop.permute.xlu0 %2839  ;;  %v2837_v57 = vpop.permute.xlu1 %2836 }
 0x6a6   : > { %v2841_v58 = vsel %vm7699_vm13, %v2840_v27, %v2837_v57  ;;  %v2845_v39 = vsel %vm7700_vm0, %v2837_v57, %v2840_v27  ;;  %vm7706_vm13 = vmmov %vm7700_vm0  ;;  %vm7707_vm0 = vcmask 130048  }
 0x6a7   : > { %3033 = vmatprep.subr.bf16.mxu1 %v2841_v58 }
 0x6a8   : > { %3034 = vmatpush1.bf16.msra.mxu1 %v2845_v39 }
 0x6a9   : > { %v2850_v47 = vpop.permute.xlu0 %2849  ;;  %v2848_v16 = vpop.permute.xlu1 %2847 }
 0x6aa   : > { %v2851_v36 = vsel %vm7701_vm10, %v2850_v47, %v2848_v16  ;;  %v2855_v7 = vsel %vm7702_vm11, %v2848_v16, %v2850_v47  ;;  %vm7708_vm10 = vmmov %vm7707_vm0 }
 0x6ab   : > { %3035 = vmatprep.subr.bf16.mxu1 %v2851_v36  ;;  %vm7709_vm11 = vmmov %vm7707_vm0 }
 0x6ac   : > { %3036 = vmatpush1.bf16.msra.mxu1 %v2855_v7 }
 0x6ad   : > { %v2862_v49 = vpop.permute.xlu0 %2861  ;;  %v2859_v44 = vpop.permute.xlu1 %2858 }
 0x6ae   : > { %v2863_v0 = vsel %vm7703_vm7, %v2862_v49, %v2859_v44  ;;  %v2867_v2 = vsel %vm7704_vm12, %v2859_v44, %v2862_v49  ;;  %vm7710_vm7 = vmmov %vm7707_vm0 }
 0x6af   : > { %3037 = vmatprep.subr.bf16.mxu1 %v2863_v0  ;;  %vm7711_vm12 = vmmov %vm7707_vm0 }
 0x6b0   : > { %3038 = vmatpush1.bf16.msra.mxu1 %v2867_v2 }
 0x6b1   : > { %v2874_v5 = vpop.permute.xlu0 %2873  ;;  %v2871_v61 = vpop.permute.xlu1 %2870 }
 0x6b2   : > { %v2875_v53 = vsel %vm7705_vm5, %v2874_v5, %v2871_v61  ;;  %v2879_v27 = vsel %vm7706_vm13, %v2871_v61, %v2874_v5  ;;  %vm7712_vm5 = vmmov %vm7707_vm0 }
 0x6b3   : > { %3039 = vmatprep.subr.bf16.mxu1 %v2875_v53  ;;  %vm7713_vm13 = vmmov %vm7707_vm0 }
 0x6b4   : > { %3040 = vmatpush1.bf16.msra.mxu1 %v2879_v27 }
 0x6b5   : > { %v2884_v57 = vpop.permute.xlu0 %2883  ;;  %v2882_v58 = vpop.permute.xlu1 %2881 }
 0x6b6   : > { %v2885_v39 = vsel %vm7707_vm0, %v2884_v57, %v2882_v58  ;;  %v2889_v47 = vsel %vm7708_vm10, %v2882_v58, %v2884_v57  ;;  %vm7714_vm10 = vmmov %vm7707_vm0 }
 0x6b7   : > { %3041 = vmatprep.subr.bf16.mxu1 %v2885_v39 }
 0x6b8   : > { %3042 = vmatpush1.bf16.msra.mxu1 %v2889_v47 }
 0x6b9   : > { %v2894_v16 = vpop.permute.xlu0 %2893  ;;  %v2892_v36 = vpop.permute.xlu1 %2891 }
 0x6ba   : > { %v2895_v7 = vsel %vm7709_vm11, %v2894_v16, %v2892_v36  ;;  %v2899_v49 = vsel %vm7710_vm7, %v2892_v36, %v2894_v16  ;;  %vm7715_vm11 = vmmov %vm7707_vm0  ;;  %vm7716_vm7 = vcmask 916480  }
 0x6bb   : > { %3043 = vmatprep.subr.bf16.mxu1 %v2895_v7 }
 0x6bc   : > { %3044 = vmatpush1.bf16.msra.mxu1 %v2899_v49 }
 0x6bd   : > { %v2904_v44 = vpop.permute.xlu0 %2903  ;;  %v2902_v0 = vpop.permute.xlu1 %2901 }
 0x6be   : > { %v2905_v2 = vsel %vm7711_vm12, %v2904_v44, %v2902_v0  ;;  %v2909_v5 = vsel %vm7712_vm5, %v2902_v0, %v2904_v44  ;;  %vm7717_vm12 = vmmov %vm7716_vm7 }
 0x6bf   : > { %3045 = vmatprep.subr.bf16.mxu1 %v2905_v2  ;;  %vm7718_vm5 = vmmov %vm7716_vm7 }
 0x6c0   : > { %3046 = vmatpush1.bf16.msra.mxu1 %v2909_v5 }
 0x6c1   : > { %v2914_v61 = vpop.permute.xlu0 %2913  ;;  %v2912_v53 = vpop.permute.xlu1 %2911 }
 0x6c2   : > { %v2915_v27 = vsel %vm7713_vm13, %v2914_v61, %v2912_v53  ;;  %v2919_v57 = vsel %vm7707_vm0, %v2912_v53, %v2914_v61  ;;  %vm7719_vm13 = vmmov %vm7718_vm5 }
 0x6c3   : > { %3047 = vmatprep.subr.bf16.mxu1 %v2915_v27  ;;  %vm7720_vm0 = vmmov %vm7718_vm5 }
 0x6c4   : > { %3048 = vmatpush1.bf16.msra.mxu1 %v2919_v57 }
 0x6c5   : > { %v2924_v58 = vpop.permute.xlu0 %2923  ;;  %v2922_v39 = vpop.permute.xlu1 %2921 }
 0x6c6   : > { %v2925_v47 = vsel %vm7714_vm10, %v2924_v58, %v2922_v39  ;;  %v2929_v16 = vsel %vm7715_vm11, %v2922_v39, %v2924_v58  ;;  %vm7721_vm10 = vmmov %vm7720_vm0 }
 0x6c7   : > { %3049 = vmatprep.subr.bf16.mxu1 %v2925_v47  ;;  %vm7722_vm11 = vmmov %vm7720_vm0 }
 0x6c8   : > { %3050 = vmatpush1.bf16.msra.mxu1 %v2929_v16 }
 0x6c9   : > { %v2934_v36 = vpop.permute.xlu0 %2933  ;;  %3051 = vmatprep.subr.bf16.mxu1 %v6562_v30  ;;  %v2932_v7 = vpop.permute.xlu1 %2931 }
 0x6cc   : > { %3052 = vmatpush1.bf16.msra.mxu1 %v6558_v17  ;;  %v2939_v17 = vsel %vm7716_vm7, %v2934_v36, %v2932_v7  ;;  %vm7723_vm7 = vmmov %vm7720_vm0 }
 0x6cd   : > { %v2944_v49 = vpop.permute.xlu0 %2943  ;;  %3053 = vmatprep.subr.bf16.mxu1 %v6578_v50  ;;  %v2942_v44 = vpop.permute.xlu1 %2941 }
 0x6d0   : > { %3054 = vmatpush1.bf16.msra.mxu1 %v6574_v48 }
 0x6d1   : > { %3055 = vmatprep.subr.bf16.mxu1 %v6517_v45  ;;  %v2954_v0 = vpop.permute.xlu0 %2953  ;;  %v2952_v2 = vpop.permute.xlu1 %2951  ;;  %v2935_v45 = vsel %vm7717_vm12, %v2932_v7, %v2934_v36  ;;  %vm7724_vm12 = vmmov %vm7720_vm0 }
 0x6d2   : > { %v2955_v61 = vsel %vm7721_vm10, %v2952_v2, %v2954_v0 }
 0x6d4   : > { %3056 = vmatpush1.bf16.msra.mxu1 %v6514_v23  ;;  %v2949_v23 = vsel %vm7718_vm5, %v2944_v49, %v2942_v44  ;;  %vm7725_vm5 = vmmov %vm7720_vm0 }
 0x6d5   : > { %3057 = vmatprep.subr.bf16.mxu1 %v6598_v31  ;;  %v2964_v30 = vpop.permute.xlu0 %2963  ;;  %v2962_v5 = vpop.permute.xlu1 %2961  ;;  %v2959_v31 = vsel %vm7720_vm0, %v2954_v0, %v2952_v2 }
 0x6d6   : > { %v2969_v53 = vsel %vm7722_vm11, %v2964_v30, %v2962_v5 }
 0x6d8   : > { %3058 = vmatpush1.bf16.msra.mxu1 %v6594_v1  ;;  %v2945_v1 = vsel %vm7719_vm13, %v2942_v44, %v2944_v49  ;;  %vm7726_vm13 = vcmask 130048  }
 0x6d9   : > { %3059 = vmatprep.subr.bf16.mxu1 %v6614_v10  ;;  %v2974_v48 = vpop.permute.xlu0 %2973  ;;  %v2972_v50 = vpop.permute.xlu1 %2971  ;;  %vm7727_vm0 = vmmov %vm7726_vm13 }
 0x6da   : > { %v2979_v58 = vsel %vm7724_vm12, %v2974_v48, %v2972_v50  ;;  %vm7728_vm10 = vmmov %vm7727_vm0  ;;  %vm7736_vm12 = vcmask 932864  }
 0x6db   : > { %vm7729_vm11 = vmmov %vm7727_vm0 }
 0x6dc   : > { %3060 = vmatpush1.bf16.msra.mxu1 %v6610_v54 }
 0x6dd   : > { %3061 = vmatprep.subr.bf16.mxu1 %v2939_v17  ;;  %v2984_v54 = vpop.permute.xlu0 %2983  ;;  %v2982_v10 = vpop.permute.xlu1 %2981  ;;  %v4783_v17 = vld [vmem:[%s7459_s5 + $0x2c] ss:$16 sps:$4 sm:$0xff]  }
 0x6de   : > { %v2989_v39 = vsel %vm914_vm4, %v2984_v54, %v2982_v10 }
 0x6e0   : > { %3062 = vmatpush1.bf16.msra.mxu1 %v2935_v45  ;;  %v4787_v45 = vld [vmem:[%s7459_s5 + $0x6c] ss:$16 sps:$4 sm:$0xff]  }
 0x6e1   : > { %3112 = vmatprep.subr.bf16.mxu1 %v2949_v23  ;;  %v2994_v27 = vpop.permute.xlu0 %2993  ;;  %v2992_v57 = vpop.permute.xlu1 %2991  ;;  %v4788_v23 = vld [vmem:[%s7459_s5 + $0x68] ss:$16 sps:$4 sm:$0xff]  }
 0x6e2   : > { %v2999_v36 = vsel %vm914_vm4, %v2994_v27, %v2992_v57  ;;  %v2995_v49 = vsel %vm914_vm4, %v2992_v57, %v2994_v27 }
 0x6e3   : > { %3064 = vmatmul.mubr.bf16.vlgmr.msra.gmra.mrb[16].mxu1 %v6363_v4  ;;  %v2965_v4 = vsel %vm7723_vm7, %v2962_v5, %v2964_v30  ;;  %vm7730_vm7 = vmmov %vm7727_vm0 }
 0x6e4   : > { %3113 = vmatpush1.bf16.msra.mxu1 %v2945_v1  ;;  %3073 = vmatprep.mubr.bf16.mxu1 %v6371_v60  ;;  %v2975_v60 = vsel %vm7725_vm5, %v2972_v50, %v2974_v48  ;;  %v4784_v48 = vld [vmem:[%s7459_s5 + $0x28] ss:$16 sps:$4 sm:$0xff]   ;;  %vm7737_vm5 = vmmov %vm7736_vm12 }
 0x6e5   : > { %3114 = vmatprep.subr.bf16.mxu1 %v2959_v31  ;;  %v3004_v47 = vpop.permute.xlu0 %3003  ;;  %v3002_v16 = vpop.permute.xlu1 %3001  ;;  %v4786_v50 = vld [vmem:[%s7459_s5 + $0x48] ss:$16 sps:$4 sm:$0xff]  }
 0x6e6   : > { %v3009_v44 = vsel %vm914_vm4, %v3004_v47, %v3002_v16 }
 0x6e8   : > { %3115 = vmatpush1.bf16.msra.mxu1 %v2955_v61 }
 0x6e9   : > { %3116 = vmatprep.subr.bf16.mxu1 %v2969_v53  ;;  %v3012_v7 = vpop.permute.xlu1 %3011 }
 0x6eb   : > { %3074 = vmatmul.mubr.bf16.gmra.mrb[20].mxu1 %v6379_v34  ;;  %v2985_v34 = vsel %vm914_vm4, %v2982_v10, %v2984_v54 }
 0x6ec   : > { %3117 = vmatpush1.bf16.msra.mxu1 %v2965_v4  ;;  %3083 = vmatprep.mubr.bf16.mxu1 %v6387_v63  ;;  %v3014_v63 = vpop.permute.xlu0 %3013 }
 0x6ed   : > { %3118 = vmatprep.subr.bf16.mxu1 %v2979_v58  ;;  %v3019_v0 = vsel %vm914_vm4, %v3014_v63, %v3012_v7  ;;  %v3015_v30 = vsel %vm914_vm4, %v3012_v7, %v3014_v63 }
 0x6f0   : > { %3119 = vmatpush1.bf16.msra.mxu1 %v2975_v60  ;;  %v3024_v2 = vpop.permute.xlu0 %3023 }
 0x6f1   : > { %3120 = vmatprep.subr.bf16.mxu1 %v2989_v39 }
 0x6f3   : > { %3084 = vmatmul.mubr.bf16.gmra.mrb[24].mxu1 %v6395_v6  ;;  %v3005_v6 = vsel %vm914_vm4, %v3002_v16, %v3004_v47 }
 0x6f4   : > { %3121 = vmatpush1.bf16.msra.mxu1 %v2985_v34  ;;  %3093 = vmatprep.mubr.bf16.mxu1 %v6403_v13  ;;  %v3022_v13 = vpop.permute.xlu1 %3021 }
 0x6f5   : > { %3122 = vmatprep.subr.bf16.mxu1 %v2999_v36  ;;  %v3029_v5 = vsel %vm914_vm4, %v3024_v2, %v3022_v13 }
 0x6f8   : > { %3123 = vmatpush1.bf16.msra.mxu1 %v2995_v49 }
 0x6f9   : > { %3124 = vmatprep.subr.bf16.mxu1 %v3009_v44 }
 0x6fb   : > { %3094 = vmatmul.mubr.bf16.gmra.mrb[28].mxu1 %v6416_v24  ;;  %v3025_v24 = vsel %vm914_vm4, %v3022_v13, %v3024_v2 }
 0x6fc   : > { %3125 = vmatpush1.bf16.msra.mxu1 %v3005_v6  ;;  %3103 = vmatprep.mubr.bf16.mxu1 %v6411_v46  ;;  %v4782_v46 = vld [vmem:[%s7459_s5 + $0x8] ss:$16 sps:$4 sm:$0xff]  }
 0x6fd   : > { %3126 = vmatprep.subr.bf16.mxu1 %v3019_v0 }
 0x700   : > { %3127 = vmatpush1.bf16.msra.mxu1 %v3015_v30 }
 0x701   : > { %3128 = vmatprep.subr.bf16.mxu1 %v3029_v5 }
 0x703   : > { %3104 = vmatmul.mubr.bf16.gmra.mrb[32].mxu1 %v6423_v3 }
 0x704   : > { %3129 = vmatpush1.bf16.msra.mxu1 %v3025_v24  ;;  %4369 = vmatprep.mubr.msk.bf16.mxu1 %vm7726_vm13, %v6431_v22  ;;  %v4785_v22 = vld [vmem:[%s7459_s5 + $0x4c] ss:$16 sps:$4 sm:$0xff]   ;;  %vm7738_vm13 = vcmask 15360  }
 0x70b   : > { %3145 = vmatmul.mubr.bf16.vlgmr.msra.gmra.mrb[16].mxu1 %v4782_v46 }
 0x70c   : > { %4370 = vmatprep.mubr.msk.bf16.mxu1 %vm7727_vm0, %v4783_v17  ;;  %vm7739_vm0 = vmmov %vm7738_vm13 }
 0x713   : > { %3155 = vmatmul.mubr.bf16.gmra.mrb[20].mxu1 %v4784_v48 }
 0x714   : > { %4371 = vmatprep.mubr.msk.bf16.mxu1 %vm7728_vm10, %v4785_v22  ;;  %vm7740_vm10 = vcmask 924672  }
 0x71b   : > { %3165 = vmatmul.mubr.bf16.gmra.mrb[24].mxu1 %v4786_v50 }
 0x71c   : > { %4372 = vmatprep.mubr.msk.bf16.mxu1 %vm7729_vm11, %v4787_v45  ;;  %vm7741_vm11 = vmmov %vm7740_vm10 }
 0x723   : > { %3175 = vmatmul.mubr.bf16.gmra.mrb[28].mxu1 %v4788_v23 }
 0x724   : > { %4373 = vmatprep.mubr.msk.bf16.mxu1 %vm7730_vm7, %v6447_v21  ;;  %vm7742_vm7 = vcmask 7168  }
 0x72b   : > { %3185 = vmatmul.mubr.bf16.gmra.mrb[36].mxu1 %v6452_v52 }
 0x7d6   : > { %v6768_v1 = vpop.f32.mrb[32].mxu1 }
 0x7d7   : > { %v6770_v31 = vpop.f32.mrb[33].mxu1 }
 0x7d8   : > { %v3109_v54 = vpop.f32.mrb[34].mxu1 }
 0x7d9   : > { %v3110_v10 = vpop.f32.mrb[35].mxu1 }
 0x7de   : > { %v3146_v61 = vpop.f32.mrb[16].mxu1 }
 0x7df   : > { %v3364_v53 = vadd.f32 %v3146_v61, %v6099_v9  ;;  %v3148_v27 = vpop.f32.mrb[17].mxu1 }
 0x7e0   : > { %v3365_v57 = vadd.f32 %v3148_v27, %v6101_v37  ;;  %v3150_v4 = vpop.f32.mrb[18].mxu1 }
 0x7e1   : > { %v4375_v58 = vmul.f32 -1.442695, %v3364_v53  ;;  %v3366_v60 = vadd.f32 %v3150_v4, %v6103_v33  ;;  %v3152_v39 = vpop.f32.mrb[19].mxu1 }
 0x7e2   : > { %v4376_v47 = vmul.f32 -1.442695, %v3365_v57  ;;  %v3367_v16 = vadd.f32 %v3152_v39, %v6106_v19 }
 0x7e3   : > { %4710 = vpow2.f32 %v4375_v58  ;;  %v4377_v34 = vmul.f32 -1.442695, %v3366_v60 }
 0x7e4   : > { %4712 = vpow2.f32 %v4376_v47  ;;  %v4378_v36 = vmul.f32 -1.442695, %v3367_v16 }
 0x7e5   : > { %4714 = vpow2.f32 %v4377_v34 }
 0x7e6   : > { %4716 = vpow2.f32 %v4378_v36  ;;  %v3156_v63 = vpop.f32.mrb[20].mxu1 }
 0x7e7   : > { %v3368_v9 = vadd.f32 %v3156_v63, %v6111_v28  ;;  %v3158_v7 = vpop.f32.mrb[21].mxu1 }
 0x7e8   : > { %v3369_v37 = vadd.f32 %v3158_v7, %v6113_v38  ;;  %v3160_v49 = vpop.f32.mrb[22].mxu1 }
 0x7e9   : > { %v4379_v44 = vmul.f32 -1.442695, %v3368_v9  ;;  %v3370_v33 = vadd.f32 %v3160_v49, %v6115_v18  ;;  %v3162_v6 = vpop.f32.mrb[23].mxu1 }
 0x7ea   : > { %v4380_v0 = vmul.f32 -1.442695, %v3369_v37  ;;  %v3371_v19 = vadd.f32 %v3162_v6, %v6118_v43 }
 0x7eb   : > { %4718 = vpow2.f32 %v4379_v44  ;;  %v4381_v2 = vmul.f32 -1.442695, %v3370_v33  ;;  %v7731_v44 = vld [vmem:[#allocation28_spill] sm:$0xff] }
 0x7ec   : > { %4720 = vpow2.f32 %v4380_v0  ;;  %v4382_v13 = vmul.f32 -1.442695, %v3371_v19 }
 0x7ed   : > { %v4711_v30 = vpop.eup %4710  ;;  %4722 = vpow2.f32 %v4381_v2 }
 0x7ee   : > { %v4713_v5 = vpop.eup %4712  ;;  %v3416_v24 = vadd.f32 1.0, %v4711_v30  ;;  %4724 = vpow2.f32 %v4382_v13  ;;  %v3166_v28 = vpop.f32.mrb[24].mxu1 }
 0x7ef   : > { %v4715_v46 = vpop.eup %4714  ;;  %v3417_v38 = vadd.f32 1.0, %v4713_v5  ;;  %v3372_v17 = vadd.f32 %v3166_v28, %v6123_v42  ;;  %v3168_v48 = vpop.f32.mrb[25].mxu1 }
 0x7f0   : > { %v4717_v18 = vpop.eup %4716  ;;  %4726 = vrcp.f32 %v3416_v24  ;;  %v3418_v22 = vadd.f32 1.0, %v4715_v46  ;;  %v3373_v43 = vadd.f32 %v3168_v48, %v6125_v20  ;;  %v3170_v50 = vpop.f32.mrb[26].mxu1 }
 0x7f1   : > { %4728 = vrcp.f32 %v3417_v38  ;;  %v3419_v45 = vadd.f32 1.0, %v4717_v18  ;;  %v4383_v23 = vmul.f32 -1.442695, %v3372_v17  ;;  %v3374_v54 = vadd.f32 %v3170_v50, %v6127_v8  ;;  %v3172_v10 = vpop.f32.mrb[27].mxu1 }
 0x7f2   : > { %4730 = vrcp.f32 %v3418_v22  ;;  %v4384_v61 = vmul.f32 -1.442695, %v3373_v43  ;;  %v3375_v53 = vadd.f32 %v3172_v10, %v6130_v29 }
 0x7f3   : > { %4732 = vrcp.f32 %v3419_v45  ;;  %v4385_v27 = vmul.f32 -1.442695, %v3374_v54 }
 0x7f4   : > { %4734 = vpow2.f32 %v4383_v23  ;;  %v4386_v42 = vmul.f32 -1.442695, %v3375_v53 }
 0x7f5   : > { %v4719_v57 = vpop.eup %4718  ;;  %4736 = vpow2.f32 %v4384_v61 }
 0x7f6   : > { %v4721_v4 = vpop.eup %4720  ;;  %v3420_v58 = vadd.f32 1.0, %v4719_v57  ;;  %4738 = vpow2.f32 %v4385_v27  ;;  %v3176_v20 = vpop.f32.mrb[28].mxu1 }
 0x7f7   : > { %v4723_v60 = vpop.eup %4722  ;;  %v3421_v39 = vadd.f32 1.0, %v4721_v4  ;;  %4740 = vpow2.f32 %v4386_v42  ;;  %v3178_v47 = vpop.f32.mrb[29].mxu1  ;;  %v3376_v34 = vadd.f32 %v3176_v20, %v6135_v59 }
 0x7f8   : > { %v4725_v8 = vpop.eup %4724  ;;  %4742 = vrcp.f32 %v3420_v58  ;;  %v3422_v16 = vadd.f32 1.0, %v4723_v60  ;;  %v3180_v29 = vpop.f32.mrb[30].mxu1  ;;  %v3377_v63 = vadd.f32 %v3178_v47, %v6137_v32 }
 0x7f9   : > { %4744 = vrcp.f32 %v3421_v39  ;;  %v3423_v36 = vadd.f32 1.0, %v4725_v8  ;;  %v3182_v9 = vpop.f32.mrb[31].mxu1  ;;  %v3378_v37 = vadd.f32 %v3180_v29, %v6139_v62 }
 0x7fa   : > { %v4727_v7 = vpop.eup %4726  ;;  %4746 = vrcp.f32 %v3422_v16  ;;  %v3379_v33 = vadd.f32 %v3182_v9, %v7731_v44 }
 0x7fb   : > { %v4729_v49 = vpop.eup %4728  ;;  %4748 = vrcp.f32 %v3423_v36 }
 0x7fc   : > { %v4731_v6 = vpop.eup %4730  ;;  %4750 = vtanh.f32 %v3376_v34 }
 0x7fd   : > { %v4733_v0 = vpop.eup %4732  ;;  %4752 = vtanh.f32 %v3377_v63 }
 0x7fe   : > { %v4735_v19 = vpop.eup %4734  ;;  %4754 = vtanh.f32 %v3378_v37  ;;  %v3186_v59 = vpop.f32.mrb[36].mxu1 }
 0x7ff   : > { %v4737_v2 = vpop.eup %4736  ;;  %4756 = vtanh.f32 %v3379_v33  ;;  %v6789_v32 = vadd.f32 %v3186_v59, %v6768_v1  ;;  %v3188_v13 = vpop.f32.mrb[37].mxu1  ;;  %v3424_v17 = vadd.f32 1.0, %v4735_v19 }
 0x800   : > { %v4739_v30 = vpop.eup %4738  ;;  %v6792_v62 = vadd.f32 %v3188_v13, %v6770_v31  ;;  %v3190_v5 = vpop.f32.mrb[38].mxu1  ;;  %v3425_v18 = vadd.f32 1.0, %v4737_v2 }
 0x801   : > { %v4741_v24 = vpop.eup %4740  ;;  %v3191_v28 = vpop.f32.mrb[39].mxu1  ;;  %v3426_v50 = vadd.f32 1.0, %v4739_v30  ;;  %4758 = vrcp.f32 %v3424_v17 }
 0x802   : > { %v4743_v46 = vpop.eup %4742  ;;  %v3427_v23 = vadd.f32 1.0, %v4741_v24  ;;  %4760 = vrcp.f32 %v3425_v18 }
 0x803   : > { %v4745_v38 = vpop.eup %4744  ;;  %v3456_v43 = vmul.f32 %v4743_v46, %v6486_v35  ;;  %4762 = vrcp.f32 %v3426_v50 }
 0x804   : > { %v4747_v48 = vpop.eup %4746  ;;  %v3457_v1 = vmul.f32 %v4745_v38, %v6488_v51  ;;  %4764 = vrcp.f32 %v3427_v23 }
 0x805   : > { %v4749_v22 = vpop.eup %4748  ;;  %v3458_v31 = vmul.f32 %v4747_v48, %v6496_v14 }
 0x806   : > { %v4751_v45 = vpop.eup %4750  ;;  %v3459_v53 = vmul.f32 %v4749_v22, %v6501_v15 }
 0x807   : > { %v4753_v54 = vpop.eup %4752  ;;  %v3460_v10 = vmul.f32 %v4751_v45, %v4727_v7 }
 0x808   : > { %v4755_v61 = vpop.eup %4754  ;;  %v3461_v27 = vmul.f32 %v4753_v54, %v4729_v49 }
 0x809   : > { %v4757_v42 = vpop.eup %4756  ;;  %v3464_v57 = vadd.f32 %v3460_v10, %v3456_v43  ;;  %v3462_v4 = vmul.f32 %v4755_v61, %v4731_v6 }
 0x80a   : > { %v3465_v35 = vadd.f32 %v3461_v27, %v3457_v1  ;;  %v3463_v58 = vmul.f32 %v4757_v42, %v4733_v0 }
 0x80b   : > { %4766 = vtanh.f32 %v3464_v57  ;;  %v3466_v51 = vadd.f32 %v3462_v4, %v3458_v31  ;;  %v4759_v14 = vpop.eup %4758 }
 0x80c   : > { %4768 = vtanh.f32 %v3465_v35  ;;  %v3467_v20 = vadd.f32 %v3463_v58, %v3459_v53  ;;  %v4761_v60 = vpop.eup %4760  ;;  %v2422_v58 = vunpack.c.0.s8 %v2421_v12 }
 0x80d   : > { %4770 = vtanh.f32 %v3466_v51  ;;  %v4763_v39 = vpop.eup %4762  ;;  %v7752_v51 = vld [vmem:[#allocation27_spill] sm:$0xff] }
 0x80e   : > { %4772 = vtanh.f32 %v3467_v20  ;;  %v4765_v47 = vpop.eup %4764  ;;  %v6951_v20 = vsub.s32 %v2422_v58, %v7752_v51 }
 0x815   : > { %v4767_v15 = vpop.eup %4766 }
 0x816   : > { %v4769_v8 = vpop.eup %4768  ;;  %v3472_v16 = vmul.f32 %v4767_v15, %v4759_v14  ;;  %v6958_v14 = vld [vmem:[%s5368_s17] sm:$0xf]  ;;  %s7117_s17 = scalar_lea.vmem [#allocation10], %s4456_s23 }
 0x817   : > { %v4771_v34 = vpop.eup %4770  ;;  %v3473_v29 = vmul.f32 %v4769_v8, %v4761_v60  ;;  %v2426_v60 = vrot.slane %v6958_v14, %v6951_v20 }
 0x818   : > { %v4773_v36 = vpop.eup %4772  ;;  %v3474_v63 = vmul.f32 %v4771_v34, %v4763_v39  ;;  %v1821_v34 = vld [vmem:[%s7461_s7] sm:$0x3] }
 0x819   : > { %v3475_v9 = vmul.f32 %v4773_v36, %v4765_v47  ;;  %v2427_v39 = vcombine.high %v2426_v60, %v2426_v60 }
 0x81a   : > { %v6798_v7 = vpack.c.bf16 %v3474_v63, %v3472_v16 }
 0x81b   : > { %v6800_v37 = vpack.c.bf16 %v3475_v9, %v3473_v29 }
 0x81c   : > { %3490 = vrot.lane.b32.xlu1 %v6798_v7, %s5053_s27  ;;  %3482 = vrot.lane.b32.xlu0 %v6798_v7, %s5052_s19 }
 0x820   : > { %3512 = vrot.lane.b32.xlu1 %v6798_v7, %s5055_s25  ;;  %3504 = vrot.lane.b32.xlu0 %v6798_v7, %s7732_s24 }
 0x824   : > { %3524 = vrot.lane.b32.xlu1 %v6798_v7, %s7733_s1  ;;  %3536 = vrot.lane.b32.xlu0 %v6798_v7, %s7734_s11 }
 0x828   : > { %3492 = vrot.lane.b32.xlu0 %v6800_v37, %s5053_s27  ;;  %3479 = vrot.lane.b32.xlu1 %v6800_v37, %s5052_s19 }
 0x82c   : > { %3514 = vrot.lane.b32.xlu0 %v6800_v37, %s5055_s25  ;;  %3502 = vrot.lane.b32.xlu1 %v6800_v37, %s7732_s24 }
 0x830   : > { %3526 = vrot.lane.b32.xlu0 %v6800_v37, %s7733_s1  ;;  %3546 = vrot.lane.b32.xlu1 %v6798_v7, %s7735_s16 }
 0x834   : > { %3548 = vrot.lane.b32.xlu0 %v6800_v37, %s7735_s16  ;;  %3534 = vrot.lane.b32.xlu1 %v6800_v37, %s7734_s11 }
 0x838   : > { %3558 = vrot.lane.b32.xlu0 %v6798_v7, %s7680_s12  ;;  %3556 = vrot.lane.b32.xlu1 %v6800_v37, %s7680_s12 }
 0x88e   : > { %v3491_v49 = vpop.permute.xlu1 %3490  ;;  %v3483_v44 = vpop.permute.xlu0 %3482 }
 0x892   : > { %v3513_v33 = vpop.permute.xlu1 %3512  ;;  %v3505_v6 = vpop.permute.xlu0 %3504 }
 0x896   : > { %v3525_v0 = vpop.permute.xlu1 %3524  ;;  %v3537_v19 = vpop.permute.xlu0 %3536 }
 0x89a   : > { %v3493_v59 = vpop.permute.xlu0 %3492  ;;  %v3480_v2 = vpop.permute.xlu1 %3479 }
 0x89b   : > { %v3494_v13 = vsel %vm7736_vm12, %v3491_v49, %v3493_v59  ;;  %v3498_v30 = vsel %vm7737_vm5, %v3493_v59, %v3491_v49  ;;  %v3484_v5 = vsel %vm7738_vm13, %v3483_v44, %v3480_v2  ;;  %v3488_v24 = vsel %vm7739_vm0, %v3480_v2, %v3483_v44  ;;  %v1820_v49 = vld [vmem:[%s7462_s8] sm:$0x3] }
 0x89c   : > { %v6840_v28 = vsel %vm5493_vm8, %v3488_v24, %v3494_v13  ;;  %v6844_v46 = vsel %vm5497_vm9, %v3484_v5, %v3498_v30  ;;  %vm7743_vm8 = vmmov %vm7742_vm7  ;;  %vm7744_vm9 = vcmask 1039360   ;;  %vm7748_vm5 = vcmask 1031168  }
 0x89d   : > { %3572 = vrot.lane.b32.xlu0 %v6840_v28, %s7627_s13  ;;  %3569 = vrot.lane.b32.xlu1 %v6844_v46, %s7627_s13  ;;  %vm7749_vm13 = vmmov %vm7748_vm5  ;;  %vm7750_vm0 = vcmask 113664  }
 0x89e   : > { %v3515_v38 = vpop.permute.xlu0 %3514  ;;  %v3503_v17 = vpop.permute.xlu1 %3502 }
 0x89f   : > { %v3516_v48 = vsel %vm7740_vm10, %v3513_v33, %v3515_v38  ;;  %v3520_v18 = vsel %vm7741_vm11, %v3515_v38, %v3513_v33  ;;  %v3506_v25 = vsel %vm7742_vm7, %v3505_v6, %v3503_v17  ;;  %v3510_v22 = vsel %vm7743_vm8, %v3503_v17, %v3505_v6 }
 0x8a0   : > { %v6856_v26 = vsel %vm5526_vm15, %v3510_v22, %v3516_v48  ;;  %v6860_v43 = vsel %vm5530_vm2, %v3506_v25, %v3520_v18  ;;  %vm7745_vm15 = vmmov %vm7744_vm9  ;;  %vm7746_vm2 = vcmask 121856  }
 0x8a1   : > { %3584 = vrot.lane.b32.xlu0 %v6856_v26, %s7627_s13  ;;  %3581 = vrot.lane.b32.xlu1 %v6860_v43, %s7627_s13  ;;  %vm7747_vm12 = vmmov %vm7746_vm2 }
 0x8a2   : > { %v3527_v50 = vpop.permute.xlu0 %3526  ;;  %v3547_v45 = vpop.permute.xlu1 %3546 }
 0x8a3   : > { %v3528_v41 = vsel %vm7744_vm9, %v3525_v0, %v3527_v50  ;;  %v3532_v23 = vsel %vm7745_vm15, %v3527_v50, %v3525_v0 }
 0x8a5   : > { %3594 = vrot.lane.b32.xlu0 %v6798_v7, %s7627_s13  ;;  %3592 = vrot.lane.b32.xlu1 %v6800_v37, %s7627_s13 }
 0x8a6   : > { %v3549_v40 = vpop.permute.xlu0 %3548  ;;  %v3535_v1 = vpop.permute.xlu1 %3534 }
 0x8a7   : > { %v3538_v54 = vsel %vm7746_vm2, %v3537_v19, %v3535_v1  ;;  %v3542_v31 = vsel %vm7747_vm12, %v3535_v1, %v3537_v19  ;;  %v3550_v42 = vsel %vm7748_vm5, %v3547_v45, %v3549_v40  ;;  %v3554_v57 = vsel %vm7749_vm13, %v3549_v40, %v3547_v45 }
 0x8a8   : > { %v6876_v10 = vsel %vm5559_vm3, %v3528_v41, %v3542_v31  ;;  %v6880_v61 = vsel %vm5563_vm1, %v3532_v23, %v3538_v54  ;;  %vm7751_vm3 = vmmov %vm7750_vm0  ;;  %vm7753_vm1 = vcmask 261120   ;;  %vm7763_vm12 = vcmask 130048  }
 0x8a9   : > { %3606 = vrot.lane.b32.xlu0 %v6876_v10, %s7627_s13  ;;  %3603 = vrot.lane.b32.xlu1 %v6880_v61, %s7627_s13  ;;  %vm7756_vm10 = vmmov %vm7753_vm1 }
 0x8aa   : > { %v3559_v53 = vpop.permute.xlu0 %3558  ;;  %v3557_v27 = vpop.permute.xlu1 %3556  ;;  %vm7757_vm11 = vmmov %vm7753_vm1 }
 0x8ab   : > { %v3560_v55 = vsel %vm7750_vm0, %v3559_v53, %v3557_v27  ;;  %v3564_v4 = vsel %vm7751_vm3, %v3557_v27, %v3559_v53  ;;  %vm7758_vm7 = vmmov %vm7753_vm1 }
 0x8ac   : > { %v6892_v56 = vsel %vm5586_vm6, %v3550_v42, %v3564_v4  ;;  %v6896_v35 = vsel %vm7640_vm14, %v3554_v57, %v3560_v55  ;;  %vm7754_vm6 = vmmov %vm7753_vm1 }
 0x8ad   : > { %3618 = vrot.lane.b32.xlu0 %v6892_v56, %s7627_s13  ;;  %3615 = vrot.lane.b32.xlu1 %v6896_v35, %s7627_s13  ;;  %vm7755_vm14 = vmmov %vm7753_vm1 }
 0x8ae   : > { %vm7759_vm8 = vmmov %vm7753_vm1 }
 0x8af   : > { %vm7760_vm9 = vmmov %vm7753_vm1 }
 0x8b0   : > { %vm7761_vm15 = vmmov %vm7753_vm1 }
 0x8b1   : > { %3628 = vrot.lane.b32.xlu0 %v6840_v28, %s7641_s15  ;;  %3626 = vrot.lane.b32.xlu1 %v6844_v46, %s7641_s15  ;;  %vm7762_vm2 = vmmov %vm7753_vm1 }
 0x8b2   : > { %vm7764_vm5 = vmmov %vm7763_vm12 }
 0x8b3   : > { %vm7765_vm13 = vmmov %vm7764_vm5 }
 0x8b4   : > { %vm7766_vm0 = vmmov %vm7764_vm5 }
 0x8b5   : > { %3638 = vrot.lane.b32.xlu0 %v6856_v26, %s7641_s15  ;;  %3636 = vrot.lane.b32.xlu1 %v6860_v43, %s7641_s15  ;;  %vm7767_vm3 = vmmov %vm7766_vm0 }
 0x8b9   : > { %3648 = vrot.lane.b32.xlu0 %v6798_v7, %s7641_s15  ;;  %3646 = vrot.lane.b32.xlu1 %v6800_v37, %s7641_s15 }
 0x8bd   : > { %3658 = vrot.lane.b32.xlu0 %v6876_v10, %s7641_s15  ;;  %3656 = vrot.lane.b32.xlu1 %v6880_v61, %s7641_s15 }
 0x8c1   : > { %3668 = vrot.lane.b32.xlu0 %v6892_v56, %s7641_s15  ;;  %3666 = vrot.lane.b32.xlu1 %v6896_v35, %s7641_s15 }
 0x8c5   : > { %3678 = vrot.lane.b32.xlu0 %v6844_v46, %s7642_s22  ;;  %3676 = vrot.lane.b32.xlu1 %v6840_v28, %s7642_s22 }
 0x8c9   : > { %3698 = vrot.lane.b32.xlu0 %v6800_v37, %s7642_s22  ;;  %3686 = vrot.lane.b32.xlu1 %v6856_v26, %s7642_s22 }
 0x8cd   : > { %3688 = vrot.lane.b32.xlu0 %v6860_v43, %s7642_s22  ;;  %3696 = vrot.lane.b32.xlu1 %v6798_v7, %s7642_s22 }
 0x8d1   : > { %3708 = vrot.lane.b32.xlu0 %v6880_v61, %s7642_s22  ;;  %3706 = vrot.lane.b32.xlu1 %v6876_v10, %s7642_s22 }
 0x8d5   : > { %3718 = vrot.lane.b32.xlu0 %v6896_v35, %s7642_s22  ;;  %3716 = vrot.lane.b32.xlu1 %v6892_v56, %s7642_s22 }
 0x8d9   : > { %3728 = vrot.lane.b32.xlu0 %v6844_v46, %s7643_s10  ;;  %3726 = vrot.lane.b32.xlu1 %v6840_v28, %s7643_s10 }
 0x8dd   : > { %3748 = vrot.lane.b32.xlu0 %v6800_v37, %s7643_s10  ;;  %3736 = vrot.lane.b32.xlu1 %v6856_v26, %s7643_s10 }
 0x8e1   : > { %3738 = vrot.lane.b32.xlu0 %v6860_v43, %s7643_s10  ;;  %3746 = vrot.lane.b32.xlu1 %v6798_v7, %s7643_s10 }
 0x8e5   : > { %3758 = vrot.lane.b32.xlu0 %v6880_v61, %s7643_s10  ;;  %3756 = vrot.lane.b32.xlu1 %v6876_v10, %s7643_s10 }
 0x8e9   : > { %2431 = vrot.lane.b32.xlu0 %v2426_v60, %s7627_s13  ;;  %3766 = vrot.lane.b32.xlu1 %v6892_v56, %s7643_s10 }
 0x8ed   : > { %3768 = vrot.lane.b32.xlu0 %v6896_v35, %s7643_s10  ;;  %2428 = vrot.lane.b32.xlu1 %v2427_v39, %s7627_s13 }
 0x8f1   : > { %2444 = vrot.lane.b32.xlu0 %v2426_v60, %s7641_s15  ;;  %2441 = vrot.lane.b32.xlu1 %v2427_v39, %s7641_s15 }
 0x8f5   : > { %2457 = vrot.lane.b32.xlu0 %v2426_v60, %s5052_s19  ;;  %2454 = vrot.lane.b32.xlu1 %v2427_v39, %s5052_s19 }
 0x8f9   : > { %2465 = vrot.lane.b32.xlu0 %v2427_v39, %s5053_s27  ;;  %2463 = vrot.lane.b32.xlu1 %v2426_v60, %s5053_s27 }
 0x8fd   : > { %2481 = vrot.lane.b32.xlu0 %v2426_v60, %s7732_s24  ;;  %2478 = vrot.lane.b32.xlu1 %v2427_v39, %s7732_s24 }
 0x901   : > { %2489 = vrot.lane.b32.xlu0 %v2427_v39, %s5055_s25  ;;  %2487 = vrot.lane.b32.xlu1 %v2426_v60, %s5055_s25 }
 0x905   : > { %2518 = vrot.lane.b32.xlu0 %v2427_v39, %s7733_s1  ;;  %2516 = vrot.lane.b32.xlu1 %v2426_v60, %s7733_s1 }
 0x909   : > { %2528 = vrot.lane.b32.xlu0 %v2426_v60, %s7734_s11  ;;  %2525 = vrot.lane.b32.xlu1 %v2427_v39, %s7734_s11 }
 0x90d   : > { %2542 = vrot.lane.b32.xlu0 %v2427_v39, %s7735_s16  ;;  %2540 = vrot.lane.b32.xlu1 %v2426_v60, %s7735_s16 }
 0x90f   : > { %v3573_v47 = vpop.permute.xlu0 %3572  ;;  %v3570_v15 = vpop.permute.xlu1 %3569 }
 0x910   : > { %v3574_v8 = vsel %vm7753_vm1, %v3573_v47, %v3570_v15  ;;  %v3578_v16 = vsel %vm7754_vm6, %v3570_v15, %v3573_v47  ;;  %vm7768_vm1 = vmmov %vm7766_vm0 }
 0x911   : > { %2552 = vrot.lane.b32.xlu0 %v2426_v60, %s7680_s12  ;;  %2549 = vrot.lane.b32.xlu1 %v2427_v39, %s7680_s12  ;;  %vm7769_vm6 = vmmov %vm7766_vm0 }
 0x912   : > { %3776 = vmatprep.subr.bf16.mxu0 %v3574_v8 }
 0x913   : > { %3777 = vmatpush1.bf16.msra.mxu0 %v3578_v16  ;;  %v3585_v29 = vpop.permute.xlu0 %3584  ;;  %v3582_v36 = vpop.permute.xlu1 %3581 }
 0x914   : > { %v3586_v63 = vsel %vm7755_vm14, %v3585_v29, %v3582_v36  ;;  %v3590_v9 = vsel %vm7756_vm10, %v3582_v36, %v3585_v29  ;;  %vm7770_vm14 = vmmov %vm7766_vm0 }
 0x915   : > { %2564 = vrot.lane.b32.xlu0 %v2426_v60, %s7642_s22  ;;  %2414 = vperm.xlu1 %4549, %v1821_v34   ;;  %vm7771_vm10 = vmmov %vm7766_vm0 }
 0x916   : > { %3778 = vmatprep.subr.bf16.mxu0 %v3586_v63 }
 0x917   : > { %3779 = vmatpush1.bf16.msra.mxu0 %v3590_v9  ;;  %v3595_v44 = vpop.permute.xlu0 %3594  ;;  %v3593_v33 = vpop.permute.xlu1 %3592 }
 0x918   : > { %v3596_v6 = vsel %vm7757_vm11, %v3595_v44, %v3593_v33  ;;  %v3600_v0 = vsel %vm7758_vm7, %v3593_v33, %v3595_v44  ;;  %vm7772_vm11 = vmmov %vm7766_vm0  ;;  %vm7773_vm7 = vcmask 916480  }
 0x919   : > { %2592 = vperm.xlu0 %4548, %v1820_v49   ;;  %3780 = vmatprep.subr.bf16.mxu0 %v3596_v6 }
 0x91a   : > { %2566 = vrot.lane.b32.xlu1 %v2427_v39, %s7642_s22 }
 0x91b   : > { %3781 = vmatpush1.bf16.msra.mxu0 %v3600_v0  ;;  %v3607_v19 = vpop.permute.xlu0 %3606  ;;  %v3604_v59 = vpop.permute.xlu1 %3603 }
 0x91c   : > { %v3608_v2 = vsel %vm7759_vm8, %v3607_v19, %v3604_v59  ;;  %v3612_v13 = vsel %vm7760_vm9, %v3604_v59, %v3607_v19  ;;  %vm7774_vm8 = vmmov %vm7773_vm7 }
 0x91d   : > { %3782 = vmatprep.subr.bf16.mxu0 %v3608_v2  ;;  %2579 = vrot.lane.b32.xlu0 %v2427_v39, %s7643_s10  ;;  %vm7775_vm9 = vmmov %vm7773_vm7 }
 0x91e   : > { %2577 = vrot.lane.b32.xlu1 %v2426_v60, %s7643_s10 }
 0x91f   : > { %3783 = vmatpush1.bf16.msra.mxu0 %v3612_v13  ;;  %v3619_v30 = vpop.permute.xlu0 %3618  ;;  %v3616_v5 = vpop.permute.xlu1 %3615 }
 0x920   : > { %v3620_v24 = vsel %vm7761_vm15, %v3619_v30, %v3616_v5  ;;  %v3624_v38 = vsel %vm7762_vm2, %v3616_v5, %v3619_v30  ;;  %vm7776_vm15 = vmmov %vm7773_vm7 }
 0x921   : > { %3784 = vmatprep.subr.bf16.mxu0 %v3620_v24  ;;  %vm7777_vm2 = vmmov %vm7773_vm7 }
 0x923   : > { %3785 = vmatpush1.bf16.msra.mxu0 %v3624_v38  ;;  %v3629_v17 = vpop.permute.xlu0 %3628  ;;  %v3627_v48 = vpop.permute.xlu1 %3626 }
 0x924   : > { %v3630_v18 = vsel %vm7763_vm12, %v3629_v17, %v3627_v48  ;;  %v3634_v25 = vsel %vm7764_vm5, %v3627_v48, %v3629_v17  ;;  %vm7778_vm12 = vmmov %vm7766_vm0 }
 0x925   : > { %3786 = vmatprep.subr.bf16.mxu0 %v3630_v18  ;;  %vm7779_vm5 = vmmov %vm7777_vm2 }
 0x927   : > { %3787 = vmatpush1.bf16.msra.mxu0 %v3634_v25  ;;  %v3639_v22 = vpop.permute.xlu0 %3638  ;;  %v3637_v50 = vpop.permute.xlu1 %3636 }
 0x928   : > { %v3640_v45 = vsel %vm7765_vm13, %v3639_v22, %v3637_v50  ;;  %v3644_v40 = vsel %vm7766_vm0, %v3637_v50, %v3639_v22  ;;  %vm7780_vm13 = vmmov %vm7777_vm2 }
 0x929   : > { %3788 = vmatprep.subr.bf16.mxu0 %v3640_v45  ;;  %vm7781_vm0 = vmmov %vm7777_vm2 }
 0x92b   : > { %3789 = vmatpush1.bf16.msra.mxu0 %v3644_v40  ;;  %v3649_v1 = vpop.permute.xlu0 %3648  ;;  %v3647_v41 = vpop.permute.xlu1 %3646 }
 0x92c   : > { %v3650_v23 = vsel %vm7767_vm3, %v3649_v1, %v3647_v41  ;;  %v3654_v54 = vsel %vm7768_vm1, %v3647_v41, %v3649_v1  ;;  %vm7782_vm3 = vmmov %vm7781_vm0 }
 0x92d   : > { %3790 = vmatprep.subr.bf16.mxu0 %v3650_v23  ;;  %vm7783_vm1 = vmmov %vm7781_vm0 }
 0x92f   : > { %3791 = vmatpush1.bf16.msra.mxu0 %v3654_v54  ;;  %v3659_v31 = vpop.permute.xlu0 %3658  ;;  %v3657_v53 = vpop.permute.xlu1 %3656 }
 0x930   : > { %v3664_v27 = vsel %vm7769_vm6, %v3657_v53, %v3659_v31  ;;  %v3660_v42 = vsel %vm7770_vm14, %v3659_v31, %v3657_v53  ;;  %vm7784_vm6 = vcmask 932864  }
 0x931   : > { %3792 = vmatprep.subr.bf16.mxu0 %v3660_v42  ;;  %vm7785_vm14 = vmmov %vm7784_vm6 }
 0x933   : > { %3793 = vmatpush1.bf16.msra.mxu0 %v3664_v27  ;;  %v3669_v57 = vpop.permute.xlu0 %3668  ;;  %v3667_v55 = vpop.permute.xlu1 %3666 }
 0x934   : > { %v3674_v4 = vsel %vm7771_vm10, %v3667_v55, %v3669_v57  ;;  %v3670_v11 = vsel %vm7772_vm11, %v3669_v57, %v3667_v55  ;;  %vm7786_vm11 = vmmov %vm7771_vm10 }
 0x935   : > { %3794 = vmatprep.subr.bf16.mxu0 %v3670_v11 }
 0x937   : > { %3795 = vmatpush1.bf16.msra.mxu0 %v3674_v4  ;;  %v3679_v12 = vpop.permute.xlu0 %3678  ;;  %v3677_v58 = vpop.permute.xlu1 %3676 }
 0x938   : > { %3796 = vmatprep.subr.bf16.mxu0 %v6844_v46 }
 0x93b   : > { %3797 = vmatpush1.bf16.msra.mxu0 %v6840_v28  ;;  %v3699_v51 = vpop.permute.xlu0 %3698  ;;  %v3687_v60 = vpop.permute.xlu1 %3686 }
 0x93c   : > { %3798 = vmatprep.subr.bf16.mxu0 %v6860_v43 }
 0x93f   : > { %3799 = vmatpush1.bf16.msra.mxu0 %v6856_v26  ;;  %v3689_v39 = vpop.permute.xlu0 %3688  ;;  %v3697_v47 = vpop.permute.xlu1 %3696  ;;  %v3684_v26 = vsel %vm7773_vm7, %v3679_v12, %v3677_v58  ;;  %vm7787_vm7 = vcmask 261120  }
 0x940   : > { %3800 = vmatprep.subr.bf16.mxu0 %v6800_v37  ;;  %v3680_v37 = vsel %vm7774_vm8, %v3677_v58, %v3679_v12  ;;  %v3694_v34 = vsel %vm7775_vm9, %v3689_v39, %v3687_v60  ;;  %v3700_v36 = vsel %vm7779_vm5, %v3697_v47, %v3699_v51  ;;  %vm7788_vm8 = vmmov %vm7787_vm7  ;;  %vm7789_vm9 = vcmask 15360  }
 0x941   : > { %vm7795_vm5 = vcmask 924672  }
 0x943   : > { %3801 = vmatpush1.bf16.msra.mxu0 %v6798_v7  ;;  %v3709_v15 = vpop.permute.xlu0 %3708  ;;  %v3707_v8 = vpop.permute.xlu1 %3706 }
 0x944   : > { %3802 = vmatprep.subr.bf16.mxu0 %v6880_v61  ;;  %v3714_v9 = vsel %vm7780_vm13, %v3709_v15, %v3707_v8  ;;  %v3710_v44 = vsel %vm7781_vm0, %v3707_v8, %v3709_v15  ;;  %v7791_v15 = vld [vmem:[#allocation25_spill] sm:$0xff]  ;;  %vm7796_vm13 = vmmov %vm7795_vm5  ;;  %vm7797_vm0 = vcmask 7168  }
 0x947   : > { %3803 = vmatpush1.bf16.msra.mxu0 %v6876_v10  ;;  %v3719_v46 = vpop.permute.xlu0 %3718  ;;  %v3717_v28 = vpop.permute.xlu1 %3716  ;;  %v3690_v10 = vsel %vm7776_vm15, %v3687_v60, %v3689_v39  ;;  %vm7790_vm15 = vmmov %vm7789_vm9 }
 0x948   : > { %3804 = vmatprep.subr.bf16.mxu0 %v6896_v35  ;;  %v3724_v33 = vsel %vm7782_vm3, %v3719_v46, %v3717_v28  ;;  %v3720_v0 = vsel %vm7783_vm1, %v3717_v28, %v3719_v46  ;;  %v7793_v46 = vld [vmem:[#allocation26_spill] sm:$0xff]  ;;  %vm7798_vm3 = vmmov %vm7797_vm0  ;;  %vm7799_vm1 = vcmp.ge.s32.totalorder %v7791_v15, 1 }
 0x94b   : > { %3805 = vmatpush1.bf16.msra.mxu0 %v6892_v56  ;;  %v3729_v43 = vpop.permute.xlu0 %3728  ;;  %v3727_v16 = vpop.permute.xlu1 %3726  ;;  %v3704_v56 = vsel %vm7777_vm2, %v3699_v51, %v3697_v47  ;;  %vm7792_vm2 = vcmp.ge.s32.totalorder %v7791_v15, 2 }
 0x94c   : > { %3806 = vmatprep.subr.bf16.mxu0 %v3684_v26  ;;  %v3734_v19 = vsel %vm914_vm4, %v3729_v43, %v3727_v16  ;;  %v3730_v2 = vsel %vm914_vm4, %v3727_v16, %v3729_v43 }
 0x94f   : > { %3807 = vmatpush1.bf16.msra.mxu0 %v3680_v37  ;;  %v3749_v7 = vpop.permute.xlu0 %3748  ;;  %v3737_v61 = vpop.permute.xlu1 %3736 }
 0x950   : > { %3817 = vmatprep.subr.bf16.mxu0 %v3694_v34 }
 0x952   : > { %3809 = vmatmul.mubr.bf16.vlgmr.msra.gmra.mrb[40].mxu0 %v6423_v3 }
 0x953   : > { %3818 = vmatpush1.bf16.msra.mxu0 %v3690_v10  ;;  %v3739_v35 = vpop.permute.xlu0 %3738  ;;  %v3747_v29 = vpop.permute.xlu1 %3746  ;;  %4387 = vmatprep.mubr.msk.bf16.mxu0 %vm7778_vm12, %v6447_v21  ;;  %vm7794_vm12 = vcmp.ge.s32.totalorder %v7793_v46, 2 }
 0x954   : > { %3819 = vmatprep.subr.bf16.mxu0 %v3704_v56  ;;  %v3744_v30 = vsel %vm914_vm4, %v3739_v35, %v3737_v61  ;;  %v3740_v24 = vsel %vm914_vm4, %v3737_v61, %v3739_v35  ;;  %v3754_v17 = vsel %vm914_vm4, %v3749_v7, %v3747_v29  ;;  %v3750_v18 = vsel %vm914_vm4, %v3747_v29, %v3749_v7 }
 0x955   : > { %v2502_v7 = vmul.f32 -12.500001, %v6958_v14 }
 0x957   : > { %3820 = vmatpush1.bf16.msra.mxu0 %v3700_v36  ;;  %v3759_v63 = vpop.permute.xlu0 %3758  ;;  %v3757_v49 = vpop.permute.xlu1 %3756 }
 0x958   : > { %3821 = vmatprep.subr.bf16.mxu0 %v3714_v9  ;;  %v3764_v22 = vsel %vm914_vm4, %v3759_v63, %v3757_v49  ;;  %v3760_v45 = vsel %vm914_vm4, %v3757_v49, %v3759_v63 }
 0x95b   : > { %3822 = vmatpush1.bf16.msra.mxu0 %v3710_v44  ;;  %v2432_v3 = vpop.permute.xlu0 %2431  ;;  %v3767_v6 = vpop.permute.xlu1 %3766 }
 0x95c   : > { %3823 = vmatprep.subr.bf16.mxu0 %v3724_v33 }
 0x95f   : > { %3824 = vmatpush1.bf16.msra.mxu0 %v3720_v0  ;;  %v3769_v21 = vpop.permute.xlu0 %3768  ;;  %v2429_v59 = vpop.permute.xlu1 %2428 }
 0x960   : > { %3825 = vmatprep.subr.bf16.mxu0 %v3734_v19  ;;  %v3774_v40 = vsel %vm914_vm4, %v3769_v21, %v3767_v6  ;;  %v3770_v23 = vsel %vm914_vm4, %v3767_v6, %v3769_v21  ;;  %v2433_v51 = vsel %vm7787_vm7, %v2432_v3, %v2429_v59  ;;  %v2436_v60 = vsel %vm7788_vm8, %v2429_v59, %v2432_v3 }
 0x961   : > { %v2437_v34 = vmul.f32 -0.20833336, %v2436_v60  ;;  %v2438_v61 = vmul.f32 -0.20833336, %v2433_v51  ;;  %v2510_v3 = vrot.slane %v2502_v7, %v6951_v20  ;;  %vm7805_vm8 = vcmask 113664  }
 0x963   : > { %3826 = vmatpush1.bf16.msra.mxu0 %v3730_v2  ;;  %v2445_v13 = vpop.permute.xlu0 %2444  ;;  %v2442_v5 = vpop.permute.xlu1 %2441 }
 0x964   : > { %3827 = vmatprep.subr.bf16.mxu0 %v3744_v30  ;;  %v2446_v11 = vsel %vm7771_vm10, %v2445_v13, %v2442_v5  ;;  %v2449_v12 = vsel %vm7786_vm11, %v2442_v5, %v2445_v13  ;;  %vm7803_vm11 = vcmask 1039360  }
 0x965   : > { %v2450_v16 = vmul.f32 3.3333337, %v2449_v12  ;;  %v2451_v37 = vmul.f32 3.3333337, %v2446_v11  ;;  %vm7804_vm7 = vmmov %vm7803_vm11 }
 0x967   : > { %3828 = vmatpush1.bf16.msra.mxu0 %v3740_v24  ;;  %v2458_v38 = vpop.permute.xlu0 %2457  ;;  %v2455_v48 = vpop.permute.xlu1 %2454  ;;  %v2452_v49 = vadd.f32 %v2450_v16, %v2437_v34  ;;  %v2453_v44 = vadd.f32 %v2451_v37, %v2438_v61  ;;  %v2511_v24 = vcombine.high %v2510_v3, %v2510_v3  ;;  %v7815_v34 = vld [vmem:[#allocation29_spill] sm:$0xff] }
 0x968   : > { %3829 = vmatprep.subr.bf16.mxu0 %v3754_v17  ;;  %v2462_v39 = vsel %vm7790_vm15, %v2455_v48, %v2458_v38  ;;  %vm7807_vm15 = vcmp.lt.s32.totalorder %v7791_v15, 15 }
 0x96b   : > { %3830 = vmatpush1.bf16.msra.mxu0 %v3750_v18  ;;  %v2466_v25 = vpop.permute.xlu0 %2465  ;;  %v2464_v50 = vpop.permute.xlu1 %2463 }
 0x96c   : > { %3831 = vmatprep.subr.bf16.mxu0 %v3764_v22  ;;  %v2467_v55 = vsel %vm7784_vm6, %v2464_v50, %v2466_v25  ;;  %v2471_v4 = vsel %vm7785_vm14, %v2466_v25, %v2464_v50  ;;  %vm7800_vm6 = vcmp.ge.s32.totalorder %v7793_v46, 1  ;;  %vm7801_vm14 = vcmask 121856  }
 0x96d   : > { %v2472_v8 = vsel %vm7792_vm2, %v2462_v39, %v2467_v55  ;;  %vm7802_vm10 = vmmov %vm7801_vm14  ;;  %vm7808_vm2 = vcmp.lt.s32.totalorder %v7793_v46, 15 }
 0x96e   : > { %v2474_v56 = vmul.f32 -0.20833336, %v2472_v8 }
 0x96f   : > { %3832 = vmatpush1.bf16.msra.mxu0 %v3760_v45  ;;  %v2482_v1 = vpop.permute.xlu0 %2481  ;;  %v2479_v41 = vpop.permute.xlu1 %2478 }
 0x970   : > { %3833 = vmatprep.subr.bf16.mxu0 %v3774_v40  ;;  %v2483_v10 = vsel %vm7797_vm0, %v2482_v1, %v2479_v41  ;;  %v2486_v35 = vsel %vm7798_vm3, %v2479_v41, %v2482_v1  ;;  %v2476_v19 = vadd.f32 %v2474_v56, %v2452_v49  ;;  %vm7812_vm0 = vcmp.lt.s32.totalorder %v7793_v46, 14 }
 0x971   : > { %vm7813_vm3 = vcmask 916480  }
 0x973   : > { %3834 = vmatpush1.bf16.msra.mxu0 %v3770_v23  ;;  %v2490_v54 = vpop.permute.xlu0 %2489  ;;  %v2488_v31 = vpop.permute.xlu1 %2487 }
 0x974   : > { %v2491_v43 = vsel %vm7795_vm5, %v2488_v31, %v2490_v54  ;;  %v2495_v26 = vsel %vm7796_vm13, %v2490_v54, %v2488_v31  ;;  %vm7811_vm13 = vcmp.lt.s32.totalorder %v7791_v15, 14 }
 0x975   : > { %v2496_v36 = vsel %vm7799_vm1, %v2486_v35, %v2491_v43  ;;  %v2497_v63 = vsel %vm7800_vm6, %v2483_v10, %v2495_v26  ;;  %vm7814_vm1 = vmmov %vm7813_vm3  ;;  %v7816_v10 = vld [vmem:[#allocation30_spill] sm:$0xff]  ;;  %vm7817_vm6 = vcmask 130048  }
 0x976   : > { %3850 = vmatmul.mubr.bf16.vlgmr.msra.gmra.mrb[44].mxu0 %v6452_v52  ;;  %v2459_v52 = vsel %vm7789_vm9, %v2458_v38, %v2455_v48  ;;  %v2498_v33 = vmul.f32 3.3333337, %v2496_v36  ;;  %v2499_v6 = vmul.f32 3.3333337, %v2497_v63  ;;  %vm7806_vm9 = vmmov %vm7805_vm8 }
 0x977   : > { %v2519_v53 = vpop.permute.xlu0 %2518  ;;  %v2517_v27 = vpop.permute.xlu1 %2516  ;;  %v2473_v28 = vsel %vm7794_vm12, %v2459_v52, %v2471_v4  ;;  %vm7809_vm12 = vcmask 1031168  }
 0x978   : > { %v2475_v29 = vmul.f32 -0.20833336, %v2473_v28  ;;  %v2520_v2 = vsel %vm7803_vm11, %v2517_v27, %v2519_v53  ;;  %v2524_v13 = vsel %vm7804_vm7, %v2519_v53, %v2517_v27  ;;  %v2500_v17 = vadd.f32 %v2498_v33, %v2476_v19  ;;  %vm7810_vm5 = vmmov %vm7809_vm12 }
 0x979   : > { %vm7821_vm7 = vcmask 261120  }
 0x97a   : > { %v2477_v59 = vadd.f32 %v2475_v29, %v2453_v44  ;;  %v2514_v23 = vadd.f32 %v2510_v3, %v2500_v17 }
 0x97b   : > { %v2529_v42 = vpop.permute.xlu0 %2528  ;;  %v2526_v57 = vpop.permute.xlu1 %2525 }
 0x97c   : > { %v2530_v0 = vsel %vm7801_vm14, %v2529_v42, %v2526_v57  ;;  %v2533_v21 = vsel %vm7802_vm10, %v2526_v57, %v2529_v42  ;;  %v2501_v48 = vadd.f32 %v2499_v6, %v2477_v59  ;;  %vm7818_vm14 = vmmov %vm7817_vm6  ;;  %vm7819_vm10 = vcmask 932864  }
 0x97d   : > { %v2534_v20 = vsel %vm7807_vm15, %v2520_v2, %v2533_v21  ;;  %v2535_v38 = vsel %vm7808_vm2, %v2524_v13, %v2530_v0  ;;  %vm7820_vm11 = vmmov %vm7819_vm10  ;;  %vm7825_vm2 = vcmask 924672  }
 0x97e   : > { %v2536_v1 = vmul.f32 3.3333337, %v2534_v20  ;;  %v2537_v41 = vmul.f32 3.3333337, %v2535_v38  ;;  %v2515_v54 = vadd.f32 %v2511_v24, %v2501_v48 }
 0x97f   : > { %v2543_v58 = vpop.permute.xlu0 %2542  ;;  %v2541_v47 = vpop.permute.xlu1 %2540 }
 0x980   : > { %v2544_v18 = vsel %vm7809_vm12, %v2541_v47, %v2543_v58  ;;  %v2548_v25 = vsel %vm7810_vm5, %v2543_v58, %v2541_v47  ;;  %v2538_v4 = vadd.f32 %v2536_v1, %v2514_v23  ;;  %v2539_v11 = vadd.f32 %v2537_v41, %v2515_v54  ;;  %vm7826_vm12 = vmmov %vm7825_vm2 }
 0x981   : > { %vm7827_vm5 = vcmp.ge.s32.totalorder %v7791_v15, 2 }
 0x983   : > { %v2553_v9 = vpop.permute.xlu0 %2552  ;;  %v2550_v14 = vpop.permute.xlu1 %2549 }
 0x984   : > { %v2554_v30 = vsel %vm7805_vm8, %v2553_v9, %v2550_v14  ;;  %v2557_v5 = vsel %vm7806_vm9, %v2550_v14, %v2553_v9  ;;  %vm7822_vm8 = vmmov %vm7821_vm7  ;;  %vm7823_vm9 = vcmask 15360  }
 0x985   : > { %v2558_v45 = vsel %vm7811_vm13, %v2544_v18, %v2557_v5  ;;  %v2559_v40 = vsel %vm7812_vm0, %v2548_v25, %v2554_v30  ;;  %vm7824_vm15 = vmmov %vm7823_vm9  ;;  %vm7828_vm13 = vcmp.ge.s32.totalorder %v7793_v46, 2  ;;  %vm7829_vm0 = vcmask 7168  }
 0x986   : > { %v2560_v31 = vmul.f32 -0.20833336, %v2558_v45  ;;  %v2561_v53 = vmul.f32 -0.20833336, %v2559_v40 }
 0x987   : > { %v2565_v22 = vpop.permute.xlu0 %2564 }
 0x988   : > { %v2562_v51 = vadd.f32 %v2560_v31, %v2538_v4  ;;  %v2563_v60 = vadd.f32 %v2561_v53, %v2539_v11 }
 0x994   : > { %v7088_v50 = vpop.permute.xlu1 %2414 }
 0x995   : > { %v2417_v61 = vadd.f32 %v7088_v50, %v7815_v34  ;;  %v2418_v35 = vadd.f32 %v7088_v50, %v7816_v10 }
 0x998   : > { %v7094_v27 = vpop.permute.xlu0 %2592  ;;  %v2567_v42 = vpop.permute.xlu1 %2566 }
 0x999   : > { %v2568_v57 = vsel %vm7813_vm3, %v2565_v22, %v2567_v42  ;;  %v2572_v55 = vsel %vm7814_vm1, %v2567_v42, %v2565_v22  ;;  %vm7830_vm3 = vmmov %vm7829_vm0  ;;  %vm7831_vm1 = vcmp.ge.s32.totalorder %v7791_v15, 1 }
 0x99a   : > { %v2573_v12 = vmul.f32 3.3333337, %v2568_v57  ;;  %v2574_v58 = vmul.f32 3.3333337, %v2572_v55 }
 0x99c   : > { %v2580_v52 = vpop.permute.xlu0 %2579  ;;  %v2578_v39 = vpop.permute.xlu1 %2577  ;;  %v2575_v28 = vadd.f32 %v2573_v12, %v2562_v51  ;;  %v2576_v43 = vadd.f32 %v2574_v58, %v2563_v60 }
 0x99d   : > { %v2581_v47 = vsel %vm914_vm4, %v2578_v39, %v2580_v52  ;;  %v2585_v8 = vsel %vm914_vm4, %v2580_v52, %v2578_v39 }
 0x99e   : > { %v2586_v26 = vmul.f32 -0.20833336, %v2581_v47  ;;  %v2587_v16 = vmul.f32 -0.20833336, %v2585_v8 }
 0x9a0   : > { %v2588_v37 = vadd.f32 %v2586_v26, %v2575_v28  ;;  %v2589_v7 = vadd.f32 %v2587_v16, %v2576_v43 }
 0x9a2   : > { %v2595_v56 = vmul.f32 %v7094_v27, %v2588_v37  ;;  %v2596_v29 = vmul.f32 %v7094_v27, %v2589_v7 }
 0x9a4   : > { %v7107_v36 = vadd.f32 %v2595_v56, %v2417_v61  ;;  %v7109_v63 = vadd.f32 %v2596_v29, %v2418_v35 }
 0x9a6   : > { %3195 = vrot.lane.b32.xlu1 %v7109_v63, %s7627_s13  ;;  %3198 = vrot.lane.b32.xlu0 %v7107_v36, %s7627_s13  ;;  %v2601_v9 = vcombine.low %v7107_v36, %v7109_v63 }
 0x9a8   : > { %4356 = vst.sshfl [vmem:[%s7117_s17] sm:$0x33 pattern:$0x76325410] %v2601_v9 }
 0x9aa   : > { %3208 = vrot.lane.b32.xlu1 %v7109_v63, %s7641_s15  ;;  %3211 = vrot.lane.b32.xlu0 %v7107_v36, %s7641_s15 }
 0x9ae   : > { %3221 = vrot.lane.b32.xlu1 %v7109_v63, %s5052_s19  ;;  %3224 = vrot.lane.b32.xlu0 %v7107_v36, %s5052_s19 }
 0x9b2   : > { %3230 = vrot.lane.b32.xlu1 %v7107_v36, %s5053_s27  ;;  %3232 = vrot.lane.b32.xlu0 %v7109_v63, %s5053_s27 }
 0x9b6   : > { %3245 = vrot.lane.b32.xlu1 %v7109_v63, %s7732_s24  ;;  %3248 = vrot.lane.b32.xlu0 %v7107_v36, %s7732_s24 }
 0x9ba   : > { %3254 = vrot.lane.b32.xlu1 %v7107_v36, %s5055_s25  ;;  %3256 = vrot.lane.b32.xlu0 %v7109_v63, %s5055_s25 }
 0x9be   : > { %3273 = vrot.lane.b32.xlu1 %v7107_v36, %s7733_s1  ;;  %3275 = vrot.lane.b32.xlu0 %v7109_v63, %s7733_s1 }
 0x9c2   : > { %3282 = vrot.lane.b32.xlu1 %v7109_v63, %s7734_s11  ;;  %3285 = vrot.lane.b32.xlu0 %v7107_v36, %s7734_s11 }
 0x9c6   : > { %3297 = vrot.lane.b32.xlu1 %v7107_v36, %s7735_s16  ;;  %3299 = vrot.lane.b32.xlu0 %v7109_v63, %s7735_s16 }
 0x9ca   : > { %3306 = vrot.lane.b32.xlu1 %v7109_v63, %s7680_s12  ;;  %3309 = vrot.lane.b32.xlu0 %v7107_v36, %s7680_s12 }
 0x9ce   : > { %3321 = vrot.lane.b32.xlu1 %v7107_v36, %s7642_s22  ;;  %3323 = vrot.lane.b32.xlu0 %v7109_v63, %s7642_s22 }
 0x9d2   : > { %3334 = vrot.lane.b32.xlu1 %v7107_v36, %s7643_s10  ;;  %3336 = vrot.lane.b32.xlu0 %v7109_v63, %s7643_s10 }
 0xa18   : > { %v3196_v49 = vpop.permute.xlu1 %3195  ;;  %v3199_v44 = vpop.permute.xlu0 %3198 }
 0xa19   : > { %v3200_v25 = vsel %vm7821_vm7, %v3199_v44, %v3196_v49  ;;  %v3203_v22 = vsel %vm7822_vm8, %v3196_v49, %v3199_v44  ;;  %vm7837_vm8 = vcmp.lt.s32.totalorder %v7791_v15, 15 }
 0xa1a   : > { %v3204_v11 = vmul.f32 -0.20833336, %v3203_v22  ;;  %v3205_v12 = vmul.f32 -0.20833336, %v3200_v25 }
 0xa1c   : > { %v3209_v3 = vpop.permute.xlu1 %3208  ;;  %v3212_v14 = vpop.permute.xlu0 %3211 }
 0xa1d   : > { %v3213_v38 = vsel %vm7817_vm6, %v3212_v14, %v3209_v3  ;;  %v3216_v17 = vsel %vm7818_vm14, %v3209_v3, %v3212_v14  ;;  %vm7832_vm6 = vcmp.ge.s32.totalorder %v7793_v46, 1  ;;  %vm7833_vm14 = vcmask 121856  }
 0xa1e   : > { %v3217_v31 = vmul.f32 3.3333337, %v3216_v17  ;;  %v3218_v53 = vmul.f32 3.3333337, %v3213_v38  ;;  %v3270_v3 = vmul.f32 -12.500001, %v7109_v63 }
 0xa1f   : > { %v3269_v14 = vmul.f32 -12.500001, %v7107_v36 }
 0xa20   : > { %v3222_v33 = vpop.permute.xlu1 %3221  ;;  %v3225_v6 = vpop.permute.xlu0 %3224  ;;  %v3219_v8 = vadd.f32 %v3217_v31, %v3204_v11  ;;  %v3220_v28 = vadd.f32 %v3218_v53, %v3205_v12 }
 0xa21   : > { %v3226_v45 = vsel %vm7823_vm9, %v3225_v6, %v3222_v33  ;;  %v3229_v40 = vsel %vm7824_vm15, %v3222_v33, %v3225_v6  ;;  %vm7838_vm9 = vcmp.lt.s32.totalorder %v7793_v46, 15  ;;  %vm7839_vm15 = vcmask 1031168  }
 0xa24   : > { %v3231_v0 = vpop.permute.xlu1 %3230  ;;  %v3233_v21 = vpop.permute.xlu0 %3232 }
 0xa25   : > { %v7164_v19 = vpop.f32.mrb[40].mxu0  ;;  %v3234_v48 = vsel %vm7819_vm10, %v3231_v0, %v3233_v21  ;;  %v3238_v18 = vsel %vm7820_vm11, %v3233_v21, %v3231_v0  ;;  %vm7834_vm10 = vmmov %vm7833_vm14  ;;  %vm7835_vm11 = vcmask 1039360  }
 0xa26   : > { %v7166_v59 = vpop.f32.mrb[41].mxu0  ;;  %v3239_v42 = vsel %vm7827_vm5, %v3229_v40, %v3234_v48  ;;  %v3240_v57 = vsel %vm7828_vm13, %v3226_v45, %v3238_v18  ;;  %vm7836_vm7 = vmmov %vm7835_vm11  ;;  %vm7843_vm13 = vcmp.lt.s32.totalorder %v7791_v15, 14 }
 0xa27   : > { %v3814_v2 = vpop.f32.mrb[42].mxu0  ;;  %v3241_v60 = vmul.f32 -0.20833336, %v3239_v42  ;;  %v3242_v52 = vmul.f32 -0.20833336, %v3240_v57 }
 0xa28   : > { %v3246_v13 = vpop.permute.xlu1 %3245  ;;  %v3249_v30 = vpop.permute.xlu0 %3248 }
 0xa29   : > { %v3815_v5 = vpop.f32.mrb[43].mxu0  ;;  %v3250_v55 = vsel %vm7829_vm0, %v3249_v30, %v3246_v13  ;;  %v3253_v4 = vsel %vm7830_vm3, %v3246_v13, %v3249_v30  ;;  %v3243_v7 = vadd.f32 %v3241_v60, %v3219_v8  ;;  %v3244_v34 = vadd.f32 %v3242_v52, %v3220_v28 }
 0xa2a   : > { %vm7844_vm0 = vcmp.lt.s32.totalorder %v7793_v46, 14  ;;  %vm7845_vm3 = vcmask 916480   ;;  %v3813_v52 = vadd.f32 %v7166_v59, %v7088_v50  ;;  %v3194_v8 = vadd.f32 %v6792_v62, %v7088_v50 }
 0xa2c   : > { %v3255_v24 = vpop.permute.xlu1 %3254  ;;  %v3257_v20 = vpop.permute.xlu0 %3256 }
 0xa2d   : > { %v3258_v1 = vsel %vm7825_vm2, %v3255_v24, %v3257_v20  ;;  %v3262_v41 = vsel %vm7826_vm12, %v3257_v20, %v3255_v24  ;;  %vm7840_vm2 = vmmov %vm7839_vm15  ;;  %vm7841_vm12 = vcmask 113664  }
 0xa2e   : > { %v3263_v58 = vsel %vm7831_vm1, %v3253_v4, %v3258_v1  ;;  %v3264_v51 = vsel %vm7832_vm6, %v3250_v55, %v3262_v41  ;;  %vm7842_vm5 = vmmov %vm7841_vm12 }
 0xa2f   : > { %v3265_v43 = vmul.f32 3.3333337, %v3263_v58  ;;  %v3266_v26 = vmul.f32 3.3333337, %v3264_v51  ;;  %vm7846_vm1 = vmmov %vm7845_vm3  ;;  %v3811_v58 = vadd.f32 %v7164_v19, %v7088_v50 }
 0xa30   : > { %v3274_v23 = vpop.permute.xlu1 %3273  ;;  %v3276_v54 = vpop.permute.xlu0 %3275 }
 0xa31   : > { %v3277_v61 = vsel %vm7835_vm11, %v3274_v23, %v3276_v54  ;;  %v3281_v10 = vsel %vm7836_vm7, %v3276_v54, %v3274_v23  ;;  %v3267_v49 = vadd.f32 %v3265_v43, %v3243_v7  ;;  %v3268_v44 = vadd.f32 %v3266_v26, %v3244_v34 }
 0xa33   : > { %v3272_v24 = vadd.f32 %v3270_v3, %v3268_v44  ;;  %v3271_v20 = vadd.f32 %v3269_v14, %v3267_v49 }
 0xa34   : > { %v3283_v39 = vpop.permute.xlu1 %3282  ;;  %v3286_v47 = vpop.permute.xlu0 %3285 }
 0xa35   : > { %v3287_v16 = vsel %vm7833_vm14, %v3286_v47, %v3283_v39  ;;  %v3290_v37 = vsel %vm7834_vm10, %v3283_v39, %v3286_v47  ;;  %v3193_v39 = vadd.f32 %v6789_v32, %v7088_v50 }
 0xa36   : > { %v3291_v29 = vsel %vm7837_vm8, %v3277_v61, %v3290_v37  ;;  %v3292_v9 = vsel %vm7838_vm9, %v3281_v10, %v3287_v16 }
 0xa37   : > { %v3293_v33 = vmul.f32 3.3333337, %v3291_v29  ;;  %v3294_v6 = vmul.f32 3.3333337, %v3292_v9 }
 0xa38   : > { %v3298_v35 = vpop.permute.xlu1 %3297  ;;  %v3300_v56 = vpop.permute.xlu0 %3299 }
 0xa39   : > { %v3301_v2 = vsel %vm7839_vm15, %v3298_v35, %v3300_v56  ;;  %v3305_v13 = vsel %vm7840_vm2, %v3300_v56, %v3298_v35  ;;  %v3295_v48 = vadd.f32 %v3293_v33, %v3271_v20  ;;  %v3296_v18 = vadd.f32 %v3294_v6, %v3272_v24 }
 0xa3c   : > { %v3307_v0 = vpop.permute.xlu1 %3306  ;;  %v3310_v21 = vpop.permute.xlu0 %3309 }
 0xa3d   : > { %v3311_v30 = vsel %vm7841_vm12, %v3310_v21, %v3307_v0  ;;  %v3314_v5 = vsel %vm7842_vm5, %v3307_v0, %v3310_v21 }
 0xa3e   : > { %v3315_v38 = vsel %vm7843_vm13, %v3301_v2, %v3314_v5  ;;  %v3316_v36 = vsel %vm7844_vm0, %v3305_v13, %v3311_v30 }
 0xa3f   : > { %v3317_v63 = vmul.f32 -0.20833336, %v3315_v38  ;;  %v3318_v17 = vmul.f32 -0.20833336, %v3316_v36 }
 0xa40   : > { %v3322_v25 = vpop.permute.xlu1 %3321  ;;  %v3324_v22 = vpop.permute.xlu0 %3323 }
 0xa41   : > { %v3325_v45 = vsel %vm7845_vm3, %v3322_v25, %v3324_v22  ;;  %v3329_v40 = vsel %vm7846_vm1, %v3324_v22, %v3322_v25  ;;  %v3320_v1 = vadd.f32 %v3318_v17, %v3296_v18  ;;  %v3319_v41 = vadd.f32 %v3317_v63, %v3295_v48 }
 0xa42   : > { %v3330_v23 = vmul.f32 3.3333337, %v3325_v45  ;;  %v3331_v54 = vmul.f32 3.3333337, %v3329_v40 }
 0xa44   : > { %v3335_v31 = vpop.permute.xlu1 %3334  ;;  %v3337_v53 = vpop.permute.xlu0 %3336  ;;  %v3332_v55 = vadd.f32 %v3330_v23, %v3319_v41  ;;  %v3333_v4 = vadd.f32 %v3331_v54, %v3320_v1 }
 0xa45   : > { %v3338_v42 = vsel %vm914_vm4, %v3335_v31, %v3337_v53  ;;  %v3342_v57 = vsel %vm914_vm4, %v3337_v53, %v3335_v31 }
 0xa46   : > { %v3343_v11 = vmul.f32 -0.20833336, %v3338_v42  ;;  %v3344_v12 = vmul.f32 -0.20833336, %v3342_v57 }
 0xa48   : > { %v3345_v51 = vadd.f32 %v3343_v11, %v3332_v55  ;;  %v3346_v60 = vadd.f32 %v3344_v12, %v3333_v4 }
 0xa49   : > { %v3851_v47 = vpop.f32.mrb[44].mxu0 }
 0xa4a   : > { %v3347_v28 = vmul.f32 %v3345_v51, %v7094_v27  ;;  %v3348_v43 = vmul.f32 %v3346_v60, %v7094_v27  ;;  %v7220_v26 = vadd.f32 %v3851_v47, %v3811_v58  ;;  %v3853_v19 = vpop.f32.mrb[45].mxu0 }
 0xa4b   : > { %v7222_v16 = vadd.f32 %v3853_v19, %v3813_v52  ;;  %v3855_v37 = vpop.f32.mrb[46].mxu0 }
 0xa4c   : > { %v7224_v7 = vadd.f32 %v3347_v28, %v3193_v39  ;;  %v7226_v59 = vadd.f32 %v3348_v43, %v3194_v8  ;;  %v3856_v34 = vpop.f32.mrb[47].mxu0 }
 0xa4e   : > { %3858 = vrot.lane.b32.xlu1 %v7226_v59, %s7627_s13  ;;  %3861 = vrot.lane.b32.xlu0 %v7224_v7, %s7627_s13  ;;  %v3353_v32 = vcombine.low %v7224_v7, %v7226_v59 }
 0xa50   : > { %4403 = vst.sshfl [vmem:[%s7117_s17 + $0x4] sm:$0x33 pattern:$0x76325410] %v3353_v32 }
 0xa52   : > { %3871 = vrot.lane.b32.xlu1 %v7226_v59, %s7641_s15  ;;  %3874 = vrot.lane.b32.xlu0 %v7224_v7, %s7641_s15 }
 0xa56   : > { %3884 = vrot.lane.b32.xlu1 %v7226_v59, %s5052_s19  ;;  %3887 = vrot.lane.b32.xlu0 %v7224_v7, %s5052_s19  ;;  %s7847_s19 = sld [smem:[#allocation23_spill]] }
 0xa5a   : > { %3893 = vrot.lane.b32.xlu1 %v7224_v7, %s5053_s27  ;;  %3895 = vrot.lane.b32.xlu0 %v7226_v59, %s5053_s27  ;;  %s4406_s27 = sshll.u32 %s5153_s21, 9 }
 0xa5c   : > { %p7850_p12 = scmp.ne.s32.totalorder %s7847_s19, 0 }
 0xa5e   : > { %3908 = vrot.lane.b32.xlu1 %v7226_v59, %s7732_s24  ;;  %3911 = vrot.lane.b32.xlu0 %v7224_v7, %s7732_s24 }
 0xa62   : > { %3917 = vrot.lane.b32.xlu1 %v7224_v7, %s5055_s25  ;;  %3919 = vrot.lane.b32.xlu0 %v7226_v59, %s5055_s25  ;;  %s4067_s25 = sshll.u32 %s6510_s28, 4  ;;  %s7284_s25 = int_to_ptr.vmem [resolvable:$true] %s4067_s25 }
 0xa63   : > { %s4909_s28 = scalar_lea.vmem %s7284_s25, 512 }
 0xa64   : > { %p4910_p10 = scmp.ne.s32.totalorder %s7284_s25, %s4909_s28 }
 0xa66   : > { %3936 = vrot.lane.b32.xlu1 %v7224_v7, %s7733_s1  ;;  %3938 = vrot.lane.b32.xlu0 %v7226_v59, %s7733_s1  ;;  %s7848_s1 = sld [smem:[#allocation33_spill]]  ;;  %p4911_p3 = pnand %p4910_p10, %p7850_p12 }
 0xa68   : > { %p4912_p8 = pneg %p4911_p3 }
 0xa6a   : > { %3945 = vrot.lane.b32.xlu1 %v7226_v59, %s7734_s11  ;;  %3948 = vrot.lane.b32.xlu0 %v7224_v7, %s7734_s11 }
 0xa6c   : > { %s7282_s11 = scalar_lea.hbm %s7848_s1, %s4406_s27 }
 0xa6e   : > { %3960 = vrot.lane.b32.xlu1 %v7224_v7, %s7735_s16  ;;  %3962 = vrot.lane.b32.xlu0 %v7226_v59, %s7735_s16  ;;  %s5065_s16 = smov [#allocation11]  }
 0xa6f   : > { %s4913_s26 = sshll.u32 %s5065_s16, 4  ;;  %s4914_s26 = int_to_ptr.vmem [resolvable:$false] %s4913_s26 }
 0xa70   : > { %s4915_s14 = scalar_lea.vmem %s4914_s26, 1024  ;;  %p4916_p7 = scmp.lt.s32.totalorder %s7284_s25, %s4914_s26 }
 0xa71   : > { %p4917_p0 = scmp.lt.s32.totalorder %s4915_s14, %s4909_s28 }
 0xa72   : > { %3969 = vrot.lane.b32.xlu1 %v7226_v59, %s7680_s12  ;;  %3972 = vrot.lane.b32.xlu0 %v7224_v7, %s7680_s12 }
 0xa73   : > { %p4918_p13 = por %p4917_p0, %p4916_p7 }
 0xa75   : > { %p4919_p11 = pnand %p4918_p13, %p4912_p8 }
 0xa76   : > { %3984 = vrot.lane.b32.xlu1 %v7224_v7, %s7642_s22  ;;  %3986 = vrot.lane.b32.xlu0 %v7226_v59, %s7642_s22  ;;  %s7849_s22 = sand.u32 1, %s5153_s21  }
 0xa77   : > { %s7292_s12 = scalar_lea.sflag [#allocation12], %s7849_s22 }
 0xa7a   : > { %3997 = vrot.lane.b32.xlu1 %v7224_v7, %s7643_s10  ;;  %3999 = vrot.lane.b32.xlu0 %v7226_v59, %s7643_s10 }
 0xa7b   : > { %4922 = shalt.err (!%p4919_p11)
}
 0xa7c   : > { %s4923_s10 = scalar_lea.hbm %s7282_s11, 512  ;;  %s4927_s13 = scalar_lea.hbm %s7848_s1, 1024 }
 0xa7d   : > { %p4924_p2 = scmp.ne.s32.totalorder %s7282_s11, %s4923_s10  ;;  %p4928_p9 = scmp.lt.u32.totalorder %s7282_s11, %s7848_s1 }
 0xa7e   : > { %p4929_p5 = scmp.lt.u32.totalorder %s4927_s13, %s4923_s10  ;;  %p4931_p10 = scmp.lt.u32.totalorder %s4923_s10, %s7282_s11 }
 0xa7f   : > { %p4925_p4 = pnand %p4924_p2, %p7850_p12 }
 0xa80   : > { %p4930_p1 = por %p4929_p5, %p4928_p9 }
 0xa81   : > { %p4926_p6 = pneg %p4925_p4 }
 0xa82   : > { %p4932_p3 = por %p4931_p10, %p4930_p1 }
 0xa84   : > { %p4933_p8 = pnand %p4932_p3, %p4926_p6 }
 0xa86   : > { %4936 = shalt.err (!%p4933_p8)
}
 0xa87   : > { %s5066_s28 = smov 256   ;;  %s7851_s14 = sld [smem:[#allocation34_spill]] }
 0xa88   : > { %4466 = dma.vmem_to_hbm [thread:$0]  (%p7850_p12), %s7284_s25, 512, %s7282_s11, %s7292_s12, %s5066_s28, %s5066_s28, %s7641_s15  }
 0xa89   : > { %s4083_s30 = sshll.u32 %s6492_s9, 4  ;;  %s5067_s13 = smov [#allocation13]   ;;  %s7327_s30 = int_to_ptr.vmem [resolvable:$true] %s4083_s30 }
 0xa8a   : > { %s4937_s23 = scalar_lea.vmem %s7327_s30, 512  ;;  %s4941_s24 = sshll.u32 %s5067_s13, 4  ;;  %s4942_s24 = int_to_ptr.vmem [resolvable:$false] %s4941_s24 }
 0xa8b   : > { %p4938_p7 = scmp.ne.s32.totalorder %s7327_s30, %s4937_s23  ;;  %s4943_s25 = scalar_lea.vmem %s4942_s24, 1024 }
 0xa8c   : > { %p4944_p11 = scmp.lt.s32.totalorder %s7327_s30, %s4942_s24  ;;  %p4945_p2 = scmp.lt.s32.totalorder %s4943_s25, %s4937_s23 }
 0xa8d   : > { %s7324_s10 = scalar_lea.hbm %s7851_s14, %s4406_s27  ;;  %p4939_p0 = pnand %p4938_p7, %p7850_p12 }
 0xa8e   : > { %p4946_p4 = por %p4945_p2, %p4944_p11 }
 0xa8f   : > { %p4940_p13 = pneg %p4939_p0 }
 0xa91   : > { %p4947_p6 = pnand %p4946_p4, %p4940_p13 }
 0xa93   : > { %4950 = shalt.err (!%p4947_p6)
}
 0xa94   : > { %s4951_s9 = scalar_lea.hbm %s7324_s10, 512  ;;  %s4955_s22 = scalar_lea.hbm %s7851_s14, 1024 }
 0xa95   : > { %p4952_p9 = scmp.ne.s32.totalorder %s7324_s10, %s4951_s9  ;;  %p4956_p10 = scmp.lt.u32.totalorder %s7324_s10, %s7851_s14 }
 0xa96   : > { %p4957_p3 = scmp.lt.u32.totalorder %s4955_s22, %s4951_s9  ;;  %p4959_p7 = scmp.lt.u32.totalorder %s4951_s9, %s7324_s10 }
 0xa97   : > { %p4953_p5 = pnand %p4952_p9, %p7850_p12 }
 0xa98   : > { %p4958_p8 = por %p4957_p3, %p4956_p10 }
 0xa99   : > { %p4954_p1 = pneg %p4953_p5 }
 0xa9a   : > { %p4960_p0 = por %p4959_p7, %p4958_p8 }
 0xa9c   : > { %p4961_p13 = pnand %p4960_p0, %p4954_p1 }
 0xa9e   : > { %4964 = shalt.err (!%p4961_p13)
}
 0xa9f   : > { %4467 = dma.vmem_to_hbm [thread:$0]  (%p7850_p12), %s7327_s30, 512, %s7324_s10, %s7292_s12, %s5066_s28, %s5066_s28, %s7641_s15   ;;  %vm7852_vm6 = vcmask 130048   ;;  %vm7854_vm10 = vcmask 932864   ;;  %vm7856_vm7 = vcmask 261120   ;;  %vm7858_vm9 = vcmask 15360  }
 0xaa0   : > { %vm7853_vm14 = vmmov %vm7852_vm6  ;;  %vm7860_vm2 = vcmask 924672   ;;  %vm7862_vm5 = vcmp.ge.s32.totalorder %v7791_v15, 2  ;;  %vm7863_vm13 = vcmp.ge.s32.totalorder %v7793_v46, 2  ;;  %vm7864_vm0 = vcmask 7168   ;;  %s4051_s15 = sshll.u32 %s7117_s17, 4  ;;  %s4405_s12 = sshll.u32 %s5153_s21, 6  ;;  %s7400_s15 = int_to_ptr.vmem [resolvable:$true] %s4051_s15 }
 0xaa1   : > { %vm7855_vm11 = vmmov %vm7854_vm10  ;;  %vm7866_vm1 = vcmp.ge.s32.totalorder %v7791_v15, 1  ;;  %v3933_v37 = vmul.f32 -12.500001, %v7226_v59  ;;  %v3932_v34 = vmul.f32 -12.500001, %v7224_v7  ;;  %s7882_s30 = sld [smem:[#allocation32_spill]] }
 0xaa2   : > { %vm7857_vm8 = vmmov %vm7856_vm7  ;;  %s4028_s13 = scalar_lea.sflag [#allocation4], %s5343_s29  ;;  %s4965_s24 = scalar_lea.vmem %s7400_s15, 192 }
 0xaa3   : > { %vm7859_vm15 = vmmov %vm7858_vm9  ;;  %p4966_p11 = scmp.ne.s32.totalorder %s7400_s15, %s4965_s24  ;;  %s5068_s21 = smov [#allocation10]  }
 0xaa4   : > { %vm7861_vm12 = vmmov %vm7860_vm2  ;;  %s4969_s25 = sshll.u32 %s5068_s21, 4  ;;  %s4970_s25 = int_to_ptr.vmem [resolvable:$false] %s4969_s25 }
 0xaa5   : > { %vm7865_vm3 = vmmov %vm7864_vm0  ;;  %p4967_p2 = pnand %p4966_p11, %p7850_p12  ;;  %s4971_s9 = scalar_lea.vmem %s4970_s25, 384 }
 0xaa6   : > { %p4972_p6 = scmp.lt.s32.totalorder %s7400_s15, %s4970_s25  ;;  %p4973_p9 = scmp.lt.s32.totalorder %s4971_s9, %s4965_s24 }
 0xaa7   : > { %s7407_s23 = scalar_lea.hbm %s7882_s30, %s4405_s12  ;;  %p4968_p4 = pneg %p4967_p2 }
 0xaa8   : > { %p4974_p5 = por %p4973_p9, %p4972_p6 }
 0xaaa   : > { %p4975_p1 = pnand %p4974_p5, %p4968_p4 }
 0xac0   : > { %v3859_v62 = vpop.permute.xlu1 %3858  ;;  %v3862_v50 = vpop.permute.xlu0 %3861 }
 0xac1   : > { %v3863_v2 = vsel %vm7856_vm7, %v3862_v50, %v3859_v62  ;;  %v3866_v13 = vsel %vm7857_vm8, %v3859_v62, %v3862_v50  ;;  %vm7872_vm8 = vcmp.lt.s32.totalorder %v7791_v15, 15 }
 0xac2   : > { %v3867_v45 = vmul.f32 -0.20833336, %v3866_v13  ;;  %v3868_v40 = vmul.f32 -0.20833336, %v3863_v2 }
 0xac4   : > { %v3872_v61 = vpop.permute.xlu1 %3871  ;;  %v3875_v10 = vpop.permute.xlu0 %3874 }
 0xac5   : > { %v3876_v33 = vsel %vm7852_vm6, %v3875_v10, %v3872_v61  ;;  %v3879_v6 = vsel %vm7853_vm14, %v3872_v61, %v3875_v10  ;;  %vm7867_vm6 = vcmp.ge.s32.totalorder %v7793_v46, 1  ;;  %vm7868_vm14 = vcmask 121856  }
 0xac6   : > { %v3880_v63 = vmul.f32 3.3333337, %v3879_v6  ;;  %v3881_v17 = vmul.f32 3.3333337, %v3876_v33 }
 0xac8   : > { %v3885_v35 = vpop.permute.xlu1 %3884  ;;  %v3888_v56 = vpop.permute.xlu0 %3887  ;;  %v3882_v42 = vadd.f32 %v3880_v63, %v3867_v45  ;;  %v3883_v57 = vadd.f32 %v3881_v17, %v3868_v40 }
 0xac9   : > { %v3889_v30 = vsel %vm7858_vm9, %v3888_v56, %v3885_v35  ;;  %v3892_v5 = vsel %vm7859_vm15, %v3885_v35, %v3888_v56  ;;  %vm7873_vm9 = vcmp.lt.s32.totalorder %v7793_v46, 15  ;;  %vm7874_vm15 = vcmask 1031168  }
 0xacc   : > { %v3894_v29 = vpop.permute.xlu1 %3893  ;;  %v3896_v9 = vpop.permute.xlu0 %3895 }
 0xacd   : > { %v3897_v0 = vsel %vm7854_vm10, %v3894_v29, %v3896_v9  ;;  %v3901_v21 = vsel %vm7855_vm11, %v3896_v9, %v3894_v29  ;;  %vm7869_vm10 = vmmov %vm7868_vm14  ;;  %vm7870_vm11 = vcmask 1039360  }
 0xace   : > { %v3902_v48 = vsel %vm7862_vm5, %v3892_v5, %v3897_v0  ;;  %v3903_v18 = vsel %vm7863_vm13, %v3889_v30, %v3901_v21  ;;  %vm7871_vm7 = vmmov %vm7870_vm11  ;;  %vm7878_vm13 = vcmp.lt.s32.totalorder %v7791_v15, 14 }
 0xacf   : > { %v3904_v23 = vmul.f32 -0.20833336, %v3902_v48  ;;  %v3905_v54 = vmul.f32 -0.20833336, %v3903_v18 }
 0xad0   : > { %v3909_v49 = vpop.permute.xlu1 %3908  ;;  %v3912_v44 = vpop.permute.xlu0 %3911 }
 0xad1   : > { %v3913_v25 = vsel %vm7864_vm0, %v3912_v44, %v3909_v49  ;;  %v3916_v22 = vsel %vm7865_vm3, %v3909_v49, %v3912_v44  ;;  %v3906_v58 = vadd.f32 %v3904_v23, %v3882_v42  ;;  %v3907_v51 = vadd.f32 %v3905_v54, %v3883_v57 }
 0xad2   : > { %vm7879_vm0 = vcmp.lt.s32.totalorder %v7793_v46, 14  ;;  %vm7880_vm3 = vcmask 916480  }
 0xad4   : > { %v3918_v3 = vpop.permute.xlu1 %3917  ;;  %v3920_v14 = vpop.permute.xlu0 %3919 }
 0xad5   : > { %v3921_v24 = vsel %vm7860_vm2, %v3918_v3, %v3920_v14  ;;  %v3925_v20 = vsel %vm7861_vm12, %v3920_v14, %v3918_v3  ;;  %vm7875_vm2 = vmmov %vm7874_vm15  ;;  %vm7876_vm12 = vcmask 113664  }
 0xad6   : > { %v3926_v1 = vsel %vm7866_vm1, %v3916_v22, %v3921_v24  ;;  %v3927_v41 = vsel %vm7867_vm6, %v3913_v25, %v3925_v20  ;;  %vm7877_vm5 = vmmov %vm7876_vm12 }
 0xad7   : > { %v3928_v55 = vmul.f32 3.3333337, %v3926_v1  ;;  %v3929_v4 = vmul.f32 3.3333337, %v3927_v41  ;;  %vm7881_vm1 = vmmov %vm7880_vm3 }
 0xad8   : > { %v3937_v38 = vpop.permute.xlu1 %3936  ;;  %v3939_v36 = vpop.permute.xlu0 %3938 }
 0xad9   : > { %v3940_v60 = vsel %vm7870_vm11, %v3937_v38, %v3939_v36  ;;  %v3944_v52 = vsel %vm7871_vm7, %v3939_v36, %v3937_v38  ;;  %v3930_v43 = vadd.f32 %v3928_v55, %v3906_v58  ;;  %v3931_v19 = vadd.f32 %v3929_v4, %v3907_v51 }
 0xadb   : > { %v3935_v9 = vadd.f32 %v3933_v37, %v3931_v19  ;;  %v3934_v49 = vadd.f32 %v3932_v34, %v3930_v43 }
 0xadc   : > { %v3946_v31 = vpop.permute.xlu1 %3945  ;;  %v3949_v53 = vpop.permute.xlu0 %3948 }
 0xadd   : > { %v3950_v11 = vsel %vm7868_vm14, %v3949_v53, %v3946_v31  ;;  %v3953_v12 = vsel %vm7869_vm10, %v3946_v31, %v3949_v53 }
 0xade   : > { %v3954_v8 = vsel %vm7872_vm8, %v3940_v60, %v3953_v12  ;;  %v3955_v28 = vsel %vm7873_vm9, %v3944_v52, %v3950_v11 }
 0xadf   : > { %v3956_v32 = vmul.f32 3.3333337, %v3954_v8  ;;  %v3957_v62 = vmul.f32 3.3333337, %v3955_v28 }
 0xae0   : > { %v3961_v39 = vpop.permute.xlu1 %3960  ;;  %v3963_v47 = vpop.permute.xlu0 %3962 }
 0xae1   : > { %v3964_v10 = vsel %vm7874_vm15, %v3961_v39, %v3963_v47  ;;  %v3968_v35 = vsel %vm7875_vm2, %v3963_v47, %v3961_v39  ;;  %v3958_v14 = vadd.f32 %v3956_v32, %v3934_v49  ;;  %v3959_v33 = vadd.f32 %v3957_v62, %v3935_v9 }
 0xae4   : > { %v3970_v50 = vpop.permute.xlu1 %3969  ;;  %v3973_v61 = vpop.permute.xlu0 %3972 }
 0xae5   : > { %v3974_v56 = vsel %vm7876_vm12, %v3973_v61, %v3970_v50  ;;  %v3977_v29 = vsel %vm7877_vm5, %v3970_v50, %v3973_v61 }
 0xae6   : > { %v3978_v44 = vsel %vm7878_vm13, %v3964_v10, %v3977_v29  ;;  %v3979_v7 = vsel %vm7879_vm0, %v3968_v35, %v3974_v56 }
 0xae7   : > { %v3980_v59 = vmul.f32 -0.20833336, %v3978_v44  ;;  %v3981_v3 = vmul.f32 -0.20833336, %v3979_v7 }
 0xae8   : > { %v3985_v6 = vpop.permute.xlu1 %3984  ;;  %v3987_v0 = vpop.permute.xlu0 %3986 }
 0xae9   : > { %v3988_v21 = vsel %vm7880_vm3, %v3985_v6, %v3987_v0  ;;  %v3992_v2 = vsel %vm7881_vm1, %v3987_v0, %v3985_v6  ;;  %v3983_v13 = vadd.f32 %v3981_v3, %v3959_v33  ;;  %v3982_v30 = vadd.f32 %v3980_v59, %v3958_v14 }
 0xaea   : > { %v3993_v5 = vmul.f32 3.3333337, %v3988_v21  ;;  %v3994_v15 = vmul.f32 3.3333337, %v3992_v2 }
 0xaec   : > { %v3998_v24 = vpop.permute.xlu1 %3997  ;;  %v4000_v20 = vpop.permute.xlu0 %3999  ;;  %v3995_v36 = vadd.f32 %v3993_v5, %v3982_v30  ;;  %v3996_v63 = vadd.f32 %v3994_v15, %v3983_v13 }
 0xaed   : > { %v4001_v46 = vsel %vm914_vm4, %v3998_v24, %v4000_v20  ;;  %v4005_v38 = vsel %vm914_vm4, %v4000_v20, %v3998_v24 }
 0xaee   : > { %v4006_v17 = vmul.f32 -0.20833336, %v4001_v46  ;;  %v4007_v48 = vmul.f32 -0.20833336, %v4005_v38 }
 0xaf0   : > { %v4008_v18 = vadd.f32 %v4006_v17, %v3995_v36  ;;  %v4009_v25 = vadd.f32 %v4007_v48, %v3996_v63 }
 0xaf2   : > { %v4010_v22 = vmul.f32 %v4008_v18, %v7094_v27  ;;  %v4011_v45 = vmul.f32 %v4009_v25, %v7094_v27 }
 0xaf4   : > { %v4012_v40 = vadd.f32 %v4010_v22, %v7220_v26  ;;  %v4013_v1 = vadd.f32 %v4011_v45, %v7222_v16 }
 0xaf6   : > { %v4016_v41 = vcombine.low %v4012_v40, %v4013_v1 }
 0xaf8   : > { %4404 = vst.sshfl [vmem:[%s7117_s17 + $0x8] sm:$0x33 pattern:$0x76325410] %v4016_v41 }
 0xaf9   : > { %4978 = shalt.err (!%p4975_p1)
}
 0xafa   : > { %s4979_s17 = scalar_lea.hbm %s7407_s23, 192  ;;  %s4983_s22 = scalar_lea.hbm %s7882_s30, 384 }
 0xafb   : > { %p4980_p10 = scmp.ne.s32.totalorder %s7407_s23, %s4979_s17  ;;  %p4984_p7 = scmp.lt.u32.totalorder %s7407_s23, %s7882_s30 }
 0xafc   : > { %p4985_p0 = scmp.lt.u32.totalorder %s4983_s22, %s4979_s17  ;;  %p4987_p11 = scmp.lt.u32.totalorder %s4979_s17, %s7407_s23 }
 0xafd   : > { %p4981_p3 = pnand %p4980_p10, %p7850_p12 }
 0xafe   : > { %p4986_p13 = por %p4985_p0, %p4984_p7 }
 0xaff   : > { %p4982_p8 = pneg %p4981_p3 }
 0xb00   : > { %p4988_p2 = por %p4987_p11, %p4986_p13 }
 0xb02   : > { %p4989_p4 = pnand %p4988_p2, %p4982_p8 }
 0xb04   : > { %4992 = shalt.err (!%p4989_p4)
}
 0xb05   : > { %s5069_s12 = smov 64   ;;  %s5070_s28 = smov 128  }
 0xb06   : > { %s5071_s10 = smov 4  }
 0xb07   : > { %4465 = dma.vmem_to_hbm [thread:$0]  (%p7850_p12), %s7400_s15, 192, %s7407_s23, %s4028_s13, %s5069_s12, %s5070_s28, %s5071_s10  }
 0xb08 PF: > { %s7883_s24 = sld [smem:[#allocation19_spill]]  ;;  %s7884_s21 = sld [smem:[#allocation24_spill]] }
 0xb09   : > { %p7886_p9 = scmp.ge.s32.totalorder %s5043_s20, 2 }
 0xb0e   : > { %s4098_s25 = sand.u32 1, %s7883_s24   ;;  %p7885_p6 = scmp.ne.s32.totalorder %s7884_s21, 0 }
 0xb0f   : > { %s4099_s9 = scalar_lea.sflag [#allocation4], %s4098_s25 }
 0xb10   : > { %p4485_p5 = pnand %p7886_p9, %p7885_p6 }
 0xb12   : > { %5022 = dma.done.wait (!%p4485_p5), %s4099_s9, 192  }
 0xb13   : > { %5024 = vsyncadd (!%p4485_p5), %s4099_s9, 4294967104  ;;  %s7887_s17 = sadd.s32 4294967294, %s5043_s20  }
 0xb14   : > { %s4107_s27 = sand.u32 1, %s7887_s17  }
 0xb15   : > { %s4108_s11 = scalar_lea.sflag [#allocation12], %s4107_s27 }
 0xb16   : > { %5026 = dma.done.wait (!%p4485_p5), %s4108_s11, 1024  }
 0xb17   : > { %5028 = vsyncadd (!%p4485_p5), %s4108_s11, 4294966272  ;;  %s7888_s20 = sld [smem:[#allocation21_spill]]  ;;  %s7889_s29 = sld [smem:[#allocation20_spill]] }
 0xb18   : > { %s7890_s19 = sld [smem:[#allocation22_spill]]  ;;  %s7891_s17 = smov %s5035_s18 }
 0xb1d   : > { %p34_p12 = scmp.ge.s32.totalorder %s7888_s20, 4   ;;  %s7892_s18 = smov %s7889_s29 }
 0xb1f   :  { %36 = sbr.rel (!%p34_p12) target bundleno = 16 (0x10), region = 172 }
 0xb26   :  { %4122 = vsyncpa [#allocation3], 1 }
 0xb27   :  { %4124 = vsyncpa [#allocation3 + $0x1], 1 }
 0xb28   :  { %4125 = vsyncpa [#allocation6], 1 }
 0xb29   :  { %4127 = vsyncpa [#allocation6 + $0x1], 1 }
 0xb2a   :  { %4128 = vsyncpa [#allocation9], 1 }
 0xb2b   :  { %4130 = vsyncpa [#allocation9 + $0x1], 1 }
 0xb2c   :  { %4131 = vsyncpa [#allocation4], 1 }
 0xb2d   :  { %4133 = vsyncpa [#allocation4 + $0x1], 1 }
 0xb2e   :  { %4134 = vsyncpa [#allocation12], 1 }
 0xb2f   :  { %4136 = vsyncpa [#allocation12 + $0x1], 1 }

</bundles_post_ra>
